<compile_context>
chip_gen: v7x
topology: tpu7x:2x2x1
jax: 0.10.0
libtpu: 0.0.40
codegen_flags: <defaults>
</compile_context>

<pallas_src>
import jax
import jax.numpy as jnp
from jax.experimental import pallas as pl
from jax.experimental.pallas import tpu as pltpu

# ----------------------------- config ---------------------------------------
INPUT_DIM = 50      # vocab size
EMB_DIM = 16
HID_DIM = 32
N_LSTM_LAYERS = 2
N_FC_LAYERS = 2
OUTPUT_DIM = 3
PAD_IDX = 0
BATCH = 4
PREM_LEN = 8
HYPO_LEN = 6


# ----------------------------- helpers ---------------------------------------
def _full_spec(shape):
    """Whole-array VMEM block for a grid=(1,) call."""
    return pl.BlockSpec(shape, lambda i: (0,) * len(shape))


# ----------------------------- encoder kernel --------------------------------
def _make_encoder_kernel(S, B, H, n_layers):
    """Fused: translation Linear+ReLU -> n_layers of bidirectional LSTM."""
    G = 4 * H  # per-direction gate width

    def kernel(*refs):
        # inputs: emb_flat, trans_w, trans_b, then (w_ih_cat, w_hh_blk, b_cat)/layer
        emb_ref, tw_ref, tb_ref = refs[0], refs[1], refs[2]
        layer_refs = [refs[3 + 3 * l: 6 + 3 * l] for l in range(n_layers)]
        out_ref = refs[3 + 3 * n_layers]
        xp_sc, y_sc, h_sc = refs[4 + 3 * n_layers: 7 + 3 * n_layers]

        f32 = jnp.float32

        # ---- translation (Linear + ReLU), all timesteps in one matmul --------
        x0 = jnp.maximum(
            jnp.dot(emb_ref[...], tw_ref[...], preferred_element_type=f32)
            + tb_ref[...],
            0.0,
        )                                                       # (S*B, H)

        def lstm_cell(gates, c):
            # PyTorch gate order: i, f, g, o
            i = jax.nn.sigmoid(gates[:, 0 * H:1 * H])
            f = jax.nn.sigmoid(gates[:, 1 * H:2 * H])
            g = jnp.tanh(gates[:, 2 * H:3 * H])
            o = jax.nn.sigmoid(gates[:, 3 * H:4 * H])
            c_new = f * c + i * g
            h_new = o * jnp.tanh(c_new)
            return h_new, c_new

        def run_layer(whh_ref, collect):
            """Unrolled time recurrence; fwd + bwd fused (one matmul per step)."""
            h_sc[...] = jnp.zeros((B, 2 * H), f32)              # [h_fwd | h_bwd]
            c_f = jnp.zeros((B, H), f32)
            c_b = jnp.zeros((B, H), f32)
            h_f = h_b = None
            for t in range(S):                                  # static unroll
                rt = S - 1 - t                                  # reversed time idx
                # hoisted input projections: fwd gates of x[t], bwd gates of x[rt]
                xf = xp_sc[t * B:(t + 1) * B, 0:G]              # (B, 4H)
                xb = xp_sc[rt * B:(rt + 1) * B, G:2 * G]        # (B, 4H)
                # single recurrent matmul for both directions (block-diag W_hh)
                rec = jnp.dot(h_sc[...], whh_ref[...],
                              preferred_element_type=f32)       # (B, 8H)
                h_f, c_f = lstm_cell(xf + rec[:, 0:G], c_f)
                h_b, c_b = lstm_cell(xb + rec[:, G:2 * G], c_b)
                h_sc[:, 0:H] = h_f
                h_sc[:, H:2 * H] = h_b
                if collect:
                    # layer output in time order: fwd hidden @ t, bwd hidden @ rt
                    y_sc[t * B:(t + 1) * B, 0:H] = h_f
                    y_sc[rt * B:(rt + 1) * B, H:2 * H] = h_b
            return h_f, h_b

        layer_in = x0                                           # (S*B, Din)
        h_f = h_b = None
        for l in range(n_layers):
            wih_ref, whh_ref, b_ref = layer_refs[l]
            # hoisted input projection for every timestep of both directions
            xp_sc[...] = (jnp.dot(layer_in, wih_ref[...],
                                  preferred_element_type=f32) + b_ref[...])
            last = (l == n_layers - 1)
            h_f, h_b = run_layer(whh_ref, collect=not last)
            if not last:
                layer_in = y_sc[...]                            # (S*B, 2H)
            # NOTE: inter-layer LSTM dropout is identity in eval mode.

        # torch: cat((hidden[-1], hidden[-2]), -1) == cat(bwd_final, fwd_final)
        out_ref[:, 0:H] = h_b
        out_ref[:, H:2 * H] = h_f

    return kernel


def encode(params, tokens):
    """Embedding -> fused (translation + stacked BiLSTM) kernel -> (B, 2H)."""
    # TODO(synk): embedding gather kept in plain JAX (jnp.take); not the hot path.
    emb = jnp.take(params["embedding"], tokens, axis=0)         # (S, B, E)
    S, B, E = emb.shape
    H = HID_DIM
    emb_flat = emb.reshape(S * B, E)                            # free reshape in XLA

    args = [emb_flat, params["trans_w"], params["trans_b"]]
    for lw in params["lstm"]:
        args += [lw["w_ih_cat"], lw["w_hh_blk"], lw["b_cat"]]
    in_specs = [_full_spec(a.shape) for a in args]

    return pl.pallas_call(
        _make_encoder_kernel(S, B, H, len(params["lstm"])),
        out_shape=jax.ShapeDtypeStruct((B, 2 * H), jnp.float32),
        grid_spec=pltpu.PrefetchScalarGridSpec(
            num_scalar_prefetch=0,
            grid=(1,),
            in_specs=in_specs,
            out_specs=_full_spec((B, 2 * H)),
            scratch_shapes=[
                pltpu.VMEM((S * B, 8 * H), jnp.float32),  # hoisted x @ W_ih gates
                pltpu.VMEM((S * B, 2 * H), jnp.float32),  # layer output / next input
                pltpu.VMEM((B, 2 * H), jnp.float32),      # recurrent hidden [h_f|h_b]
            ],
        ),
        compiler_params=pltpu.CompilerParams(
            dimension_semantics=("arbitrary",)),
    )(*args)


# ----------------------------- head kernel -----------------------------------
def _make_head_kernel(n_fc):
    def kernel(*refs):
        x_ref = refs[0]
        o_ref = refs[1 + 2 * (n_fc + 1)]
        h = x_ref[...]
        for l in range(n_fc):
            w = refs[1 + 2 * l][...]
            b = refs[2 + 2 * l][...]
            h = jnp.maximum(
                jnp.dot(h, w, preferred_element_type=jnp.float32) + b, 0.0)
            # Dropout -> identity (eval mode).
        wo = refs[1 + 2 * n_fc][...]
        bo = refs[2 + 2 * n_fc][...]
        o_ref[...] = jnp.dot(h, wo, preferred_element_type=jnp.float32) + bo
    return kernel


def head(params, hidden):
    """Fused FC stack (+ReLU) and fc_out in a single pallas_call."""
    B = hidden.shape[0]
    n_fc = len(params["fc_w"])
    args = [hidden]
    for w, b in zip(params["fc_w"], params["fc_b"]):
        args += [w, b]
    args += [params["out_w"], params["out_b"]]
    in_specs = [_full_spec(a.shape) for a in args]

    return pl.pallas_call(
        _make_head_kernel(n_fc),
        out_shape=jax.ShapeDtypeStruct((B, OUTPUT_DIM), jnp.float32),
        grid_spec=pltpu.PrefetchScalarGridSpec(
            num_scalar_prefetch=0,
            grid=(1,),
            in_specs=in_specs,
            out_specs=_full_spec((B, OUTPUT_DIM)),
            scratch_shapes=[],
        ),
        compiler_params=pltpu.CompilerParams(
            dimension_semantics=("arbitrary",)),
    )(*args)


# ----------------------------- parameters ------------------------------------
def init_params(key):
    ks = iter(jax.random.split(key, 64))
    H = HID_DIM
    p = {}

    emb = jax.random.normal(next(ks), (INPUT_DIM, EMB_DIM), jnp.float32) * 0.1
    emb = emb.at[PAD_IDX].set(0.0)                 # padding_idx row zeroed
    p["embedding"] = emb

    p["trans_w"] = jax.random.normal(next(ks), (EMB_DIM, H), jnp.float32) * 0.1
    p["trans_b"] = (jax.random.normal(next(ks), (H,), jnp.float32) * 0.1
                    ).reshape(1, H)

    lstm = []
    for layer in range(N_LSTM_LAYERS):
        din = H if layer == 0 else 2 * H
        per_dir = {}
        for d in ("f", "b"):
            w_ih = jax.random.normal(next(ks), (din, 4 * H), jnp.float32) * 0.1
            w_hh = jax.random.normal(next(ks), (H, 4 * H), jnp.float32) * 0.1
            b_ih = jax.random.normal(next(ks), (4 * H,), jnp.float32) * 0.1
            b_hh = jax.random.normal(next(ks), (4 * H,), jnp.float32) * 0.1
            per_dir[d] = (w_ih, w_hh, b_ih + b_hh)
        # fuse the two directions: wide input projection + block-diag recurrent mat
        w_ih_cat = jnp.concatenate([per_dir["f"][0], per_dir["b"][0]], axis=1)
        zeros = jnp.zeros((H, 4 * H), jnp.float32)
        w_hh_blk = jnp.concatenate(
            [jnp.concatenate([per_dir["f"][1], zeros], axis=1),
             jnp.concatenate([zeros, per_dir["b"][1]], axis=1)], axis=0)
        b_cat = jnp.concatenate([per_dir["f"][2], per_dir["b"][2]],
                                axis=0).reshape(1, 8 * H)
        lstm.append({"w_ih_cat": w_ih_cat, "w_hh_blk": w_hh_blk, "b_cat": b_cat})
    p["lstm"] = lstm

    fc_dim = 4 * H   # (hidden_dim * 2) * 2
    p["fc_w"] = [jax.random.normal(next(ks), (fc_dim, fc_dim), jnp.float32) * 0.05
                 for _ in range(N_FC_LAYERS)]
    p["fc_b"] = [(jax.random.normal(next(ks), (fc_dim,), jnp.float32) * 0.05
                  ).reshape(1, fc_dim) for _ in range(N_FC_LAYERS)]
    p["out_w"] = jax.random.normal(next(ks), (fc_dim, OUTPUT_DIM), jnp.float32) * 0.05
    p["out_b"] = (jax.random.normal(next(ks), (OUTPUT_DIM,), jnp.float32) * 0.05
                  ).reshape(1, OUTPUT_DIM)
    return p


# ----------------------------- forward ---------------------------------------
def nli_bilstm_forward(params, prem, hypo):
    hidden_prem = encode(params, prem)                            # (B, 2H)
    hidden_hypo = encode(params, hypo)                            # (B, 2H)
    hidden = jnp.concatenate([hidden_prem, hidden_hypo], axis=1)  # (B, 4H)
    return head(params, hidden)                                   # (B, OUTPUT_DIM)


# ----------------------------- main -------------------------------------------
if __name__ == "__main__":
    key = jax.random.PRNGKey(0)
    k_param, k_prem, k_hypo = jax.random.split(key, 3)

    params = init_params(k_param)
    prem = jax.random.randint(k_prem, (PREM_LEN, BATCH), 0, INPUT_DIM, jnp.int32)
    hypo = jax.random.randint(k_hypo, (HYPO_LEN, BATCH), 0, INPUT_DIM, jnp.int32)

    out = jax.jit(nli_bilstm_forward)(params, prem, hypo)
    out = jax.block_until_ready(out)
    assert out.shape == (BATCH, OUTPUT_DIM)
    assert jnp.all(jnp.isfinite(out))
    print("KERNEL_OK")
</pallas_src>

<mosaic_0001>
module attributes {stable_mosaic.version = 11 : i64} {
  func.func @kernel(%arg0: i32, %arg1: memref<4x128xf32, #tpu.memory_space<vmem>>, %arg2: memref<128x128xf32, #tpu.memory_space<vmem>>, %arg3: memref<1x128xf32, #tpu.memory_space<vmem>>, %arg4: memref<128x128xf32, #tpu.memory_space<vmem>>, %arg5: memref<1x128xf32, #tpu.memory_space<vmem>>, %arg6: memref<128x3xf32, #tpu.memory_space<vmem>>, %arg7: memref<1x3xf32, #tpu.memory_space<vmem>>, %arg8: memref<4x3xf32, #tpu.memory_space<vmem>>) attributes {dimension_semantics = [#tpu.dimension_semantics<arbitrary>], iteration_bounds = array<i64: 1>, scalar_prefetch = 0 : i64, scratch_operands = 0 : i64, tpu.core_type = #tpu.core_type<tc>, window_params = [{pipeline_mode = #tpu.pipeline_mode<synchronous>, transform_indices = @transform_0, window_bounds = array<i64: 4, 128>}, {pipeline_mode = #tpu.pipeline_mode<synchronous>, transform_indices = @transform_1, window_bounds = array<i64: 128, 128>}, {pipeline_mode = #tpu.pipeline_mode<synchronous>, transform_indices = @transform_2, window_bounds = array<i64: 1, 128>}, {pipeline_mode = #tpu.pipeline_mode<synchronous>, transform_indices = @transform_3, window_bounds = array<i64: 128, 128>}, {pipeline_mode = #tpu.pipeline_mode<synchronous>, transform_indices = @transform_4, window_bounds = array<i64: 1, 128>}, {pipeline_mode = #tpu.pipeline_mode<synchronous>, transform_indices = @transform_5, window_bounds = array<i64: 128, 3>}, {pipeline_mode = #tpu.pipeline_mode<synchronous>, transform_indices = @transform_6, window_bounds = array<i64: 1, 3>}, {pipeline_mode = #tpu.pipeline_mode<synchronous>, transform_indices = @transform_7, window_bounds = array<i64: 4, 3>}]} {
    %c0 = arith.constant 0 : index
    %c0_0 = arith.constant 0 : index
    %0 = vector.load %arg1[%c0, %c0_0] : memref<4x128xf32, #tpu.memory_space<vmem>>, vector<4x128xf32>
    %c0_1 = arith.constant 0 : index
    %c0_2 = arith.constant 0 : index
    %1 = vector.load %arg2[%c0_1, %c0_2] : memref<128x128xf32, #tpu.memory_space<vmem>>, vector<128x128xf32>
    %c0_3 = arith.constant 0 : index
    %c0_4 = arith.constant 0 : index
    %2 = vector.load %arg3[%c0_3, %c0_4] : memref<1x128xf32, #tpu.memory_space<vmem>>, vector<1x128xf32>
    %cst = arith.constant dense<0.000000e+00> : vector<4x128xf32>
    %3 = tpu.matmul %0, %1, %cst {dimension_numbers = #tpu.dot_dimension_numbers<[1], [0], [0], [1], [0, 0, 1, 1], [], []>} : vector<4x128xf32>, vector<128x128xf32>, vector<4x128xf32> -> vector<4x128xf32>
    %4 = vector.broadcast %2 : vector<1x128xf32> to vector<4x128xf32>
    %5 = arith.addf %3, %4 : vector<4x128xf32>
    %cst_5 = arith.constant 0.000000e+00 : f32
    %6 = vector.broadcast %cst_5 : f32 to vector<4x128xf32>
    %7 = arith.maximumf %5, %6 : vector<4x128xf32>
    %c0_6 = arith.constant 0 : index
    %c0_7 = arith.constant 0 : index
    %8 = vector.load %arg4[%c0_6, %c0_7] : memref<128x128xf32, #tpu.memory_space<vmem>>, vector<128x128xf32>
    %c0_8 = arith.constant 0 : index
    %c0_9 = arith.constant 0 : index
    %9 = vector.load %arg5[%c0_8, %c0_9] : memref<1x128xf32, #tpu.memory_space<vmem>>, vector<1x128xf32>
    %cst_10 = arith.constant dense<0.000000e+00> : vector<4x128xf32>
    %10 = tpu.matmul %7, %8, %cst_10 {dimension_numbers = #tpu.dot_dimension_numbers<[1], [0], [0], [1], [0, 0, 1, 1], [], []>} : vector<4x128xf32>, vector<128x128xf32>, vector<4x128xf32> -> vector<4x128xf32>
    %11 = vector.broadcast %9 : vector<1x128xf32> to vector<4x128xf32>
    %12 = arith.addf %10, %11 : vector<4x128xf32>
    %cst_11 = arith.constant 0.000000e+00 : f32
    %13 = vector.broadcast %cst_11 : f32 to vector<4x128xf32>
    %14 = arith.maximumf %12, %13 : vector<4x128xf32>
    %c0_12 = arith.constant 0 : index
    %c0_13 = arith.constant 0 : index
    %15 = vector.load %arg6[%c0_12, %c0_13] : memref<128x3xf32, #tpu.memory_space<vmem>>, vector<128x3xf32>
    %c0_14 = arith.constant 0 : index
    %c0_15 = arith.constant 0 : index
    %16 = vector.load %arg7[%c0_14, %c0_15] : memref<1x3xf32, #tpu.memory_space<vmem>>, vector<1x3xf32>
    %cst_16 = arith.constant dense<0.000000e+00> : vector<4x3xf32>
    %17 = tpu.matmul %14, %15, %cst_16 {dimension_numbers = #tpu.dot_dimension_numbers<[1], [0], [0], [1], [0, 0, 1, 1], [], []>} : vector<4x128xf32>, vector<128x3xf32>, vector<4x3xf32> -> vector<4x3xf32>
    %18 = vector.broadcast %16 : vector<1x3xf32> to vector<4x3xf32>
    %19 = arith.addf %17, %18 : vector<4x3xf32>
    %c0_17 = arith.constant 0 : index
    %c0_18 = arith.constant 0 : index
    %20 = vector.load %arg8[%c0_17, %c0_18] : memref<4x3xf32, #tpu.memory_space<vmem>>, vector<4x3xf32>
    tpu.vector_store %arg8[%c0_17, %c0_18], %19 {strides = array<i32>} : memref<4x3xf32, #tpu.memory_space<vmem>>, vector<4x3xf32>,
    return
  }
  func.func @transform_0(%arg0: i32) -> (i32, i32) {
    %c0_i32 = arith.constant 0 : i32
    %c0_i32_0 = arith.constant 0 : i32
    %c0_i32_1 = arith.constant 0 : i32
    return %c0_i32, %c0_i32_0 : i32, i32
  }
  func.func @transform_1(%arg0: i32) -> (i32, i32) {
    %c0_i32 = arith.constant 0 : i32
    %c0_i32_0 = arith.constant 0 : i32
    %c0_i32_1 = arith.constant 0 : i32
    return %c0_i32, %c0_i32_0 : i32, i32
  }
  func.func @transform_2(%arg0: i32) -> (i32, i32) {
    %c0_i32 = arith.constant 0 : i32
    %c0_i32_0 = arith.constant 0 : i32
    %c0_i32_1 = arith.constant 0 : i32
    return %c0_i32, %c0_i32_0 : i32, i32
  }
  func.func @transform_3(%arg0: i32) -> (i32, i32) {
    %c0_i32 = arith.constant 0 : i32
    %c0_i32_0 = arith.constant 0 : i32
    %c0_i32_1 = arith.constant 0 : i32
    return %c0_i32, %c0_i32_0 : i32, i32
  }
  func.func @transform_4(%arg0: i32) -> (i32, i32) {
    %c0_i32 = arith.constant 0 : i32
    %c0_i32_0 = arith.constant 0 : i32
    %c0_i32_1 = arith.constant 0 : i32
    return %c0_i32, %c0_i32_0 : i32, i32
  }
  func.func @transform_5(%arg0: i32) -> (i32, i32) {
    %c0_i32 = arith.constant 0 : i32
    %c0_i32_0 = arith.constant 0 : i32
    %c0_i32_1 = arith.constant 0 : i32
    return %c0_i32, %c0_i32_0 : i32, i32
  }
  func.func @transform_6(%arg0: i32) -> (i32, i32) {
    %c0_i32 = arith.constant 0 : i32
    %c0_i32_0 = arith.constant 0 : i32
    %c0_i32_1 = arith.constant 0 : i32
    return %c0_i32, %c0_i32_0 : i32, i32
  }
  func.func @transform_7(%arg0: i32) -> (i32, i32) {
    %c0_i32 = arith.constant 0 : i32
    %c0_i32_0 = arith.constant 0 : i32
    %c0_i32_1 = arith.constant 0 : i32
    return %c0_i32, %c0_i32_0 : i32, i32
  }
}

module attributes {stable_mosaic.version = 11 : i64} {
  func.func @kernel(%arg0: i32, %arg1: memref<24x16xf32, #tpu.memory_space<vmem>>, %arg2: memref<16x32xf32, #tpu.memory_space<vmem>>, %arg3: memref<1x32xf32, #tpu.memory_space<vmem>>, %arg4: memref<32x256xf32, #tpu.memory_space<vmem>>, %arg5: memref<64x256xf32, #tpu.memory_space<vmem>>, %arg6: memref<1x256xf32, #tpu.memory_space<vmem>>, %arg7: memref<64x256xf32, #tpu.memory_space<vmem>>, %arg8: memref<64x256xf32, #tpu.memory_space<vmem>>, %arg9: memref<1x256xf32, #tpu.memory_space<vmem>>, %arg10: memref<4x64xf32, #tpu.memory_space<vmem>>, %arg11: memref<24x256xf32, #tpu.memory_space<vmem>>, %arg12: memref<24x64xf32, #tpu.memory_space<vmem>>, %arg13: memref<4x64xf32, #tpu.memory_space<vmem>>) attributes {dimension_semantics = [#tpu.dimension_semantics<arbitrary>], iteration_bounds = array<i64: 1>, scalar_prefetch = 0 : i64, scratch_operands = 3 : i64, tpu.core_type = #tpu.core_type<tc>, window_params = [{pipeline_mode = #tpu.pipeline_mode<synchronous>, transform_indices = @transform_0, window_bounds = array<i64: 24, 16>}, {pipeline_mode = #tpu.pipeline_mode<synchronous>, transform_indices = @transform_1, window_bounds = array<i64: 16, 32>}, {pipeline_mode = #tpu.pipeline_mode<synchronous>, transform_indices = @transform_2, window_bounds = array<i64: 1, 32>}, {pipeline_mode = #tpu.pipeline_mode<synchronous>, transform_indices = @transform_3, window_bounds = array<i64: 32, 256>}, {pipeline_mode = #tpu.pipeline_mode<synchronous>, transform_indices = @transform_4, window_bounds = array<i64: 64, 256>}, {pipeline_mode = #tpu.pipeline_mode<synchronous>, transform_indices = @transform_5, window_bounds = array<i64: 1, 256>}, {pipeline_mode = #tpu.pipeline_mode<synchronous>, transform_indices = @transform_6, window_bounds = array<i64: 64, 256>}, {pipeline_mode = #tpu.pipeline_mode<synchronous>, transform_indices = @transform_7, window_bounds = array<i64: 64, 256>}, {pipeline_mode = #tpu.pipeline_mode<synchronous>, transform_indices = @transform_8, window_bounds = array<i64: 1, 256>}, {pipeline_mode = #tpu.pipeline_mode<synchronous>, transform_indices = @transform_9, window_bounds = array<i64: 4, 64>}]} {
    %c0 = arith.constant 0 : index
    %c0_0 = arith.constant 0 : index
    %0 = vector.load %arg1[%c0, %c0_0] : memref<24x16xf32, #tpu.memory_space<vmem>>, vector<24x16xf32>
    %c0_1 = arith.constant 0 : index
    %c0_2 = arith.constant 0 : index
    %1 = vector.load %arg2[%c0_1, %c0_2] : memref<16x32xf32, #tpu.memory_space<vmem>>, vector<16x32xf32>
    %cst = arith.constant dense<0.000000e+00> : vector<24x32xf32>
    %2 = tpu.matmul %0, %1, %cst {dimension_numbers = #tpu.dot_dimension_numbers<[1], [0], [0], [1], [0, 0, 1, 1], [], []>} : vector<24x16xf32>, vector<16x32xf32>, vector<24x32xf32> -> vector<24x32xf32>
    %c0_3 = arith.constant 0 : index
    %c0_4 = arith.constant 0 : index
    %3 = vector.load %arg3[%c0_3, %c0_4] : memref<1x32xf32, #tpu.memory_space<vmem>>, vector<1x32xf32>
    %4 = vector.broadcast %3 : vector<1x32xf32> to vector<24x32xf32>
    %5 = arith.addf %2, %4 : vector<24x32xf32>
    %cst_5 = arith.constant 0.000000e+00 : f32
    %6 = vector.broadcast %cst_5 : f32 to vector<24x32xf32>
    %7 = arith.maximumf %5, %6 : vector<24x32xf32>
    %c0_6 = arith.constant 0 : index
    %c0_7 = arith.constant 0 : index
    %8 = vector.load %arg4[%c0_6, %c0_7] : memref<32x256xf32, #tpu.memory_space<vmem>>, vector<32x256xf32>
    %cst_8 = arith.constant dense<0.000000e+00> : vector<24x256xf32>
    %9 = tpu.matmul %7, %8, %cst_8 {dimension_numbers = #tpu.dot_dimension_numbers<[1], [0], [0], [1], [0, 0, 1, 1], [], []>} : vector<24x32xf32>, vector<32x256xf32>, vector<24x256xf32> -> vector<24x256xf32>
    %c0_9 = arith.constant 0 : index
    %c0_10 = arith.constant 0 : index
    %10 = vector.load %arg6[%c0_9, %c0_10] : memref<1x256xf32, #tpu.memory_space<vmem>>, vector<1x256xf32>
    %11 = vector.broadcast %10 : vector<1x256xf32> to vector<24x256xf32>
    %12 = arith.addf %9, %11 : vector<24x256xf32>
    %c0_11 = arith.constant 0 : index
    %c0_12 = arith.constant 0 : index
    %13 = vector.load %arg11[%c0_11, %c0_12] : memref<24x256xf32, #tpu.memory_space<vmem>>, vector<24x256xf32>
    tpu.vector_store %arg11[%c0_11, %c0_12], %12 {strides = array<i32>} : memref<24x256xf32, #tpu.memory_space<vmem>>, vector<24x256xf32>,
    %cst_13 = arith.constant 0.000000e+00 : f32
    %14 = vector.broadcast %cst_13 : f32 to vector<4x64xf32>
    %c0_14 = arith.constant 0 : index
    %c0_15 = arith.constant 0 : index
    %15 = vector.load %arg13[%c0_14, %c0_15] : memref<4x64xf32, #tpu.memory_space<vmem>>, vector<4x64xf32>
    tpu.vector_store %arg13[%c0_14, %c0_15], %14 {strides = array<i32>} : memref<4x64xf32, #tpu.memory_space<vmem>>, vector<4x64xf32>,
    %cst_16 = arith.constant 0.000000e+00 : f32
    %16 = vector.broadcast %cst_16 : f32 to vector<4x32xf32>
    %cst_17 = arith.constant 0.000000e+00 : f32
    %17 = vector.broadcast %cst_17 : f32 to vector<4x32xf32>
    %c0_18 = arith.constant 0 : index
    %c0_19 = arith.constant 0 : index
    %18 = vector.load %arg11[%c0_18, %c0_19] : memref<24x256xf32, #tpu.memory_space<vmem>>, vector<4x128xf32>
    %c20 = arith.constant 20 : index
    %c128 = arith.constant 128 : index
    %19 = vector.load %arg11[%c20, %c128] : memref<24x256xf32, #tpu.memory_space<vmem>>, vector<4x128xf32>
    %c0_20 = arith.constant 0 : index
    %c0_21 = arith.constant 0 : index
    %20 = vector.load %arg13[%c0_20, %c0_21] : memref<4x64xf32, #tpu.memory_space<vmem>>, vector<4x64xf32>
    %c0_22 = arith.constant 0 : index
    %c0_23 = arith.constant 0 : index
    %21 = vector.load %arg5[%c0_22, %c0_23] : memref<64x256xf32, #tpu.memory_space<vmem>>, vector<64x256xf32>
    %cst_24 = arith.constant dense<0.000000e+00> : vector<4x256xf32>
    %22 = tpu.matmul %20, %21, %cst_24 {dimension_numbers = #tpu.dot_dimension_numbers<[1], [0], [0], [1], [0, 0, 1, 1], [], []>} : vector<4x64xf32>, vector<64x256xf32>, vector<4x256xf32> -> vector<4x256xf32>
    %23 = vector.extract_strided_slice %22 {offsets = [0, 0], sizes = [4, 128], strides = [1, 1]} : vector<4x256xf32> to vector<4x128xf32>
    %24 = arith.addf %18, %23 : vector<4x128xf32>
    %25 = vector.extract_strided_slice %24 {offsets = [0, 0], sizes = [4, 32], strides = [1, 1]} : vector<4x128xf32> to vector<4x32xf32>
    %26 = arith.negf %25 : vector<4x32xf32>
    %27 = math.exp %26 : vector<4x32xf32>
    %cst_25 = arith.constant 1.000000e+00 : f32
    %28 = vector.broadcast %cst_25 : f32 to vector<4x32xf32>
    %29 = arith.addf %28, %27 : vector<4x32xf32>
    %30 = arith.divf %28, %29 : vector<4x32xf32>
    %31 = vector.extract_strided_slice %24 {offsets = [0, 32], sizes = [4, 32], strides = [1, 1]} : vector<4x128xf32> to vector<4x32xf32>
    %32 = arith.negf %31 : vector<4x32xf32>
    %33 = math.exp %32 : vector<4x32xf32>
    %cst_26 = arith.constant 1.000000e+00 : f32
    %34 = vector.broadcast %cst_26 : f32 to vector<4x32xf32>
    %35 = arith.addf %34, %33 : vector<4x32xf32>
    %36 = arith.divf %34, %35 : vector<4x32xf32>
    %37 = vector.extract_strided_slice %24 {offsets = [0, 64], sizes = [4, 32], strides = [1, 1]} : vector<4x128xf32> to vector<4x32xf32>
    %38 = math.tanh %37 : vector<4x32xf32>
    %39 = vector.extract_strided_slice %24 {offsets = [0, 96], sizes = [4, 32], strides = [1, 1]} : vector<4x128xf32> to vector<4x32xf32>
    %40 = arith.negf %39 : vector<4x32xf32>
    %41 = math.exp %40 : vector<4x32xf32>
    %cst_27 = arith.constant 1.000000e+00 : f32
    %42 = vector.broadcast %cst_27 : f32 to vector<4x32xf32>
    %43 = arith.addf %42, %41 : vector<4x32xf32>
    %44 = arith.divf %42, %43 : vector<4x32xf32>
    %45 = arith.mulf %36, %16 : vector<4x32xf32>
    %46 = arith.mulf %30, %38 : vector<4x32xf32>
    %47 = arith.addf %45, %46 : vector<4x32xf32>
    %48 = math.tanh %47 : vector<4x32xf32>
    %49 = arith.mulf %44, %48 : vector<4x32xf32>
    %50 = vector.extract_strided_slice %22 {offsets = [0, 128], sizes = [4, 128], strides = [1, 1]} : vector<4x256xf32> to vector<4x128xf32>
    %51 = arith.addf %19, %50 : vector<4x128xf32>
    %52 = vector.extract_strided_slice %51 {offsets = [0, 0], sizes = [4, 32], strides = [1, 1]} : vector<4x128xf32> to vector<4x32xf32>
    %53 = arith.negf %52 : vector<4x32xf32>
    %54 = math.exp %53 : vector<4x32xf32>
    %cst_28 = arith.constant 1.000000e+00 : f32
    %55 = vector.broadcast %cst_28 : f32 to vector<4x32xf32>
    %56 = arith.addf %55, %54 : vector<4x32xf32>
    %57 = arith.divf %55, %56 : vector<4x32xf32>
    %58 = vector.extract_strided_slice %51 {offsets = [0, 32], sizes = [4, 32], strides = [1, 1]} : vector<4x128xf32> to vector<4x32xf32>
    %59 = arith.negf %58 : vector<4x32xf32>
    %60 = math.exp %59 : vector<4x32xf32>
    %cst_29 = arith.constant 1.000000e+00 : f32
    %61 = vector.broadcast %cst_29 : f32 to vector<4x32xf32>
    %62 = arith.addf %61, %60 : vector<4x32xf32>
    %63 = arith.divf %61, %62 : vector<4x32xf32>
    %64 = vector.extract_strided_slice %51 {offsets = [0, 64], sizes = [4, 32], strides = [1, 1]} : vector<4x128xf32> to vector<4x32xf32>
    %65 = math.tanh %64 : vector<4x32xf32>
    %66 = vector.extract_strided_slice %51 {offsets = [0, 96], sizes = [4, 32], strides = [1, 1]} : vector<4x128xf32> to vector<4x32xf32>
    %67 = arith.negf %66 : vector<4x32xf32>
    %68 = math.exp %67 : vector<4x32xf32>
    %cst_30 = arith.constant 1.000000e+00 : f32
    %69 = vector.broadcast %cst_30 : f32 to vector<4x32xf32>
    %70 = arith.addf %69, %68 : vector<4x32xf32>
    %71 = arith.divf %69, %70 : vector<4x32xf32>
    %72 = arith.mulf %63, %17 : vector<4x32xf32>
    %73 = arith.mulf %57, %65 : vector<4x32xf32>
    %74 = arith.addf %72, %73 : vector<4x32xf32>
    %75 = math.tanh %74 : vector<4x32xf32>
    %76 = arith.mulf %71, %75 : vector<4x32xf32>
    %c0_31 = arith.constant 0 : index
    %c0_32 = arith.constant 0 : index
    %77 = vector.load %arg13[%c0_31, %c0_32] : memref<4x64xf32, #tpu.memory_space<vmem>>, vector<4x32xf32>
    tpu.vector_store %arg13[%c0_31, %c0_32], %49 {strides = array<i32>} : memref<4x64xf32, #tpu.memory_space<vmem>>, vector<4x32xf32>,
    %c0_33 = arith.constant 0 : index
    %c32 = arith.constant 32 : index
    %78 = vector.load %arg13[%c0_33, %c32] : memref<4x64xf32, #tpu.memory_space<vmem>>, vector<4x32xf32>
    tpu.vector_store %arg13[%c0_33, %c32], %76 {strides = array<i32>} : memref<4x64xf32, #tpu.memory_space<vmem>>, vector<4x32xf32>,
    %c0_34 = arith.constant 0 : index
    %c0_35 = arith.constant 0 : index
    %79 = vector.load %arg12[%c0_34, %c0_35] : memref<24x64xf32, #tpu.memory_space<vmem>>, vector<4x32xf32>
    tpu.vector_store %arg12[%c0_34, %c0_35], %49 {strides = array<i32>} : memref<24x64xf32, #tpu.memory_space<vmem>>, vector<4x32xf32>,
    %c20_36 = arith.constant 20 : index
    %c32_37 = arith.constant 32 : index
    %80 = vector.load %arg12[%c20_36, %c32_37] : memref<24x64xf32, #tpu.memory_space<vmem>>, vector<4x32xf32>
    tpu.vector_store %arg12[%c20_36, %c32_37], %76 {strides = array<i32>} : memref<24x64xf32, #tpu.memory_space<vmem>>, vector<4x32xf32>,
    %c4 = arith.constant 4 : index
    %c0_38 = arith.constant 0 : index
    %81 = vector.load %arg11[%c4, %c0_38] : memref<24x256xf32, #tpu.memory_space<vmem>>, vector<4x128xf32>
    %c16 = arith.constant 16 : index
    %c128_39 = arith.constant 128 : index
    %82 = vector.load %arg11[%c16, %c128_39] : memref<24x256xf32, #tpu.memory_space<vmem>>, vector<4x128xf32>
    %c0_40 = arith.constant 0 : index
    %c0_41 = arith.constant 0 : index
    %83 = vector.load %arg13[%c0_40, %c0_41] : memref<4x64xf32, #tpu.memory_space<vmem>>, vector<4x64xf32>
    %c0_42 = arith.constant 0 : index
    %c0_43 = arith.constant 0 : index
    %84 = vector.load %arg5[%c0_42, %c0_43] : memref<64x256xf32, #tpu.memory_space<vmem>>, vector<64x256xf32>
    %cst_44 = arith.constant dense<0.000000e+00> : vector<4x256xf32>
    %85 = tpu.matmul %83, %84, %cst_44 {dimension_numbers = #tpu.dot_dimension_numbers<[1], [0], [0], [1], [0, 0, 1, 1], [], []>} : vector<4x64xf32>, vector<64x256xf32>, vector<4x256xf32> -> vector<4x256xf32>
    %86 = vector.extract_strided_slice %85 {offsets = [0, 0], sizes = [4, 128], strides = [1, 1]} : vector<4x256xf32> to vector<4x128xf32>
    %87 = arith.addf %81, %86 : vector<4x128xf32>
    %88 = vector.extract_strided_slice %87 {offsets = [0, 0], sizes = [4, 32], strides = [1, 1]} : vector<4x128xf32> to vector<4x32xf32>
    %89 = arith.negf %88 : vector<4x32xf32>
    %90 = math.exp %89 : vector<4x32xf32>
    %cst_45 = arith.constant 1.000000e+00 : f32
    %91 = vector.broadcast %cst_45 : f32 to vector<4x32xf32>
    %92 = arith.addf %91, %90 : vector<4x32xf32>
    %93 = arith.divf %91, %92 : vector<4x32xf32>
    %94 = vector.extract_strided_slice %87 {offsets = [0, 32], sizes = [4, 32], strides = [1, 1]} : vector<4x128xf32> to vector<4x32xf32>
    %95 = arith.negf %94 : vector<4x32xf32>
    %96 = math.exp %95 : vector<4x32xf32>
    %cst_46 = arith.constant 1.000000e+00 : f32
    %97 = vector.broadcast %cst_46 : f32 to vector<4x32xf32>
    %98 = arith.addf %97, %96 : vector<4x32xf32>
    %99 = arith.divf %97, %98 : vector<4x32xf32>
    %100 = vector.extract_strided_slice %87 {offsets = [0, 64], sizes = [4, 32], strides = [1, 1]} : vector<4x128xf32> to vector<4x32xf32>
    %101 = math.tanh %100 : vector<4x32xf32>
    %102 = vector.extract_strided_slice %87 {offsets = [0, 96], sizes = [4, 32], strides = [1, 1]} : vector<4x128xf32> to vector<4x32xf32>
    %103 = arith.negf %102 : vector<4x32xf32>
    %104 = math.exp %103 : vector<4x32xf32>
    %cst_47 = arith.constant 1.000000e+00 : f32
    %105 = vector.broadcast %cst_47 : f32 to vector<4x32xf32>
    %106 = arith.addf %105, %104 : vector<4x32xf32>
    %107 = arith.divf %105, %106 : vector<4x32xf32>
    %108 = arith.mulf %99, %47 : vector<4x32xf32>
    %109 = arith.mulf %93, %101 : vector<4x32xf32>
    %110 = arith.addf %108, %109 : vector<4x32xf32>
    %111 = math.tanh %110 : vector<4x32xf32>
    %112 = arith.mulf %107, %111 : vector<4x32xf32>
    %113 = vector.extract_strided_slice %85 {offsets = [0, 128], sizes = [4, 128], strides = [1, 1]} : vector<4x256xf32> to vector<4x128xf32>
    %114 = arith.addf %82, %113 : vector<4x128xf32>
    %115 = vector.extract_strided_slice %114 {offsets = [0, 0], sizes = [4, 32], strides = [1, 1]} : vector<4x128xf32> to vector<4x32xf32>
    %116 = arith.negf %115 : vector<4x32xf32>
    %117 = math.exp %116 : vector<4x32xf32>
    %cst_48 = arith.constant 1.000000e+00 : f32
    %118 = vector.broadcast %cst_48 : f32 to vector<4x32xf32>
    %119 = arith.addf %118, %117 : vector<4x32xf32>
    %120 = arith.divf %118, %119 : vector<4x32xf32>
    %121 = vector.extract_strided_slice %114 {offsets = [0, 32], sizes = [4, 32], strides = [1, 1]} : vector<4x128xf32> to vector<4x32xf32>
    %122 = arith.negf %121 : vector<4x32xf32>
    %123 = math.exp %122 : vector<4x32xf32>
    %cst_49 = arith.constant 1.000000e+00 : f32
    %124 = vector.broadcast %cst_49 : f32 to vector<4x32xf32>
    %125 = arith.addf %124, %123 : vector<4x32xf32>
    %126 = arith.divf %124, %125 : vector<4x32xf32>
    %127 = vector.extract_strided_slice %114 {offsets = [0, 64], sizes = [4, 32], strides = [1, 1]} : vector<4x128xf32> to vector<4x32xf32>
    %128 = math.tanh %127 : vector<4x32xf32>
    %129 = vector.extract_strided_slice %114 {offsets = [0, 96], sizes = [4, 32], strides = [1, 1]} : vector<4x128xf32> to vector<4x32xf32>
    %130 = arith.negf %129 : vector<4x32xf32>
    %131 = math.exp %130 : vector<4x32xf32>
    %cst_50 = arith.constant 1.000000e+00 : f32
    %132 = vector.broadcast %cst_50 : f32 to vector<4x32xf32>
    %133 = arith.addf %132, %131 : vector<4x32xf32>
    %134 = arith.divf %132, %133 : vector<4x32xf32>
    %135 = arith.mulf %126, %74 : vector<4x32xf32>
    %136 = arith.mulf %120, %128 : vector<4x32xf32>
    %137 = arith.addf %135, %136 : vector<4x32xf32>
    %138 = math.tanh %137 : vector<4x32xf32>
    %139 = arith.mulf %134, %138 : vector<4x32xf32>
    %c0_51 = arith.constant 0 : index
    %c0_52 = arith.constant 0 : index
    %140 = vector.load %arg13[%c0_51, %c0_52] : memref<4x64xf32, #tpu.memory_space<vmem>>, vector<4x32xf32>
    tpu.vector_store %arg13[%c0_51, %c0_52], %112 {strides = array<i32>} : memref<4x64xf32, #tpu.memory_space<vmem>>, vector<4x32xf32>,
    %c0_53 = arith.constant 0 : index
    %c32_54 = arith.constant 32 : index
    %141 = vector.load %arg13[%c0_53, %c32_54] : memref<4x64xf32, #tpu.memory_space<vmem>>, vector<4x32xf32>
    tpu.vector_store %arg13[%c0_53, %c32_54], %139 {strides = array<i32>} : memref<4x64xf32, #tpu.memory_space<vmem>>, vector<4x32xf32>,
    %c4_55 = arith.constant 4 : index
    %c0_56 = arith.constant 0 : index
    %142 = vector.load %arg12[%c4_55, %c0_56] : memref<24x64xf32, #tpu.memory_space<vmem>>, vector<4x32xf32>
    tpu.vector_store %arg12[%c4_55, %c0_56], %112 {strides = array<i32>} : memref<24x64xf32, #tpu.memory_space<vmem>>, vector<4x32xf32>,
    %c16_57 = arith.constant 16 : index
    %c32_58 = arith.constant 32 : index
    %143 = vector.load %arg12[%c16_57, %c32_58] : memref<24x64xf32, #tpu.memory_space<vmem>>, vector<4x32xf32>
    tpu.vector_store %arg12[%c16_57, %c32_58], %139 {strides = array<i32>} : memref<24x64xf32, #tpu.memory_space<vmem>>, vector<4x32xf32>,
    %c8 = arith.constant 8 : index
    %c0_59 = arith.constant 0 : index
    %144 = vector.load %arg11[%c8, %c0_59] : memref<24x256xf32, #tpu.memory_space<vmem>>, vector<4x128xf32>
    %c12 = arith.constant 12 : index
    %c128_60 = arith.constant 128 : index
    %145 = vector.load %arg11[%c12, %c128_60] : memref<24x256xf32, #tpu.memory_space<vmem>>, vector<4x128xf32>
    %c0_61 = arith.constant 0 : index
    %c0_62 = arith.constant 0 : index
    %146 = vector.load %arg13[%c0_61, %c0_62] : memref<4x64xf32, #tpu.memory_space<vmem>>, vector<4x64xf32>
    %c0_63 = arith.constant 0 : index
    %c0_64 = arith.constant 0 : index
    %147 = vector.load %arg5[%c0_63, %c0_64] : memref<64x256xf32, #tpu.memory_space<vmem>>, vector<64x256xf32>
    %cst_65 = arith.constant dense<0.000000e+00> : vector<4x256xf32>
    %148 = tpu.matmul %146, %147, %cst_65 {dimension_numbers = #tpu.dot_dimension_numbers<[1], [0], [0], [1], [0, 0, 1, 1], [], []>} : vector<4x64xf32>, vector<64x256xf32>, vector<4x256xf32> -> vector<4x256xf32>
    %149 = vector.extract_strided_slice %148 {offsets = [0, 0], sizes = [4, 128], strides = [1, 1]} : vector<4x256xf32> to vector<4x128xf32>
    %150 = arith.addf %144, %149 : vector<4x128xf32>
    %151 = vector.extract_strided_slice %150 {offsets = [0, 0], sizes = [4, 32], strides = [1, 1]} : vector<4x128xf32> to vector<4x32xf32>
    %152 = arith.negf %151 : vector<4x32xf32>
    %153 = math.exp %152 : vector<4x32xf32>
    %cst_66 = arith.constant 1.000000e+00 : f32
    %154 = vector.broadcast %cst_66 : f32 to vector<4x32xf32>
    %155 = arith.addf %154, %153 : vector<4x32xf32>
    %156 = arith.divf %154, %155 : vector<4x32xf32>
    %157 = vector.extract_strided_slice %150 {offsets = [0, 32], sizes = [4, 32], strides = [1, 1]} : vector<4x128xf32> to vector<4x32xf32>
    %158 = arith.negf %157 : vector<4x32xf32>
    %159 = math.exp %158 : vector<4x32xf32>
    %cst_67 = arith.constant 1.000000e+00 : f32
    %160 = vector.broadcast %cst_67 : f32 to vector<4x32xf32>
    %161 = arith.addf %160, %159 : vector<4x32xf32>
    %162 = arith.divf %160, %161 : vector<4x32xf32>
    %163 = vector.extract_strided_slice %150 {offsets = [0, 64], sizes = [4, 32], strides = [1, 1]} : vector<4x128xf32> to vector<4x32xf32>
    %164 = math.tanh %163 : vector<4x32xf32>
    %165 = vector.extract_strided_slice %150 {offsets = [0, 96], sizes = [4, 32], strides = [1, 1]} : vector<4x128xf32> to vector<4x32xf32>
    %166 = arith.negf %165 : vector<4x32xf32>
    %167 = math.exp %166 : vector<4x32xf32>
    %cst_68 = arith.constant 1.000000e+00 : f32
    %168 = vector.broadcast %cst_68 : f32 to vector<4x32xf32>
    %169 = arith.addf %168, %167 : vector<4x32xf32>
    %170 = arith.divf %168, %169 : vector<4x32xf32>
    %171 = arith.mulf %162, %110 : vector<4x32xf32>
    %172 = arith.mulf %156, %164 : vector<4x32xf32>
    %173 = arith.addf %171, %172 : vector<4x32xf32>
    %174 = math.tanh %173 : vector<4x32xf32>
    %175 = arith.mulf %170, %174 : vector<4x32xf32>
    %176 = vector.extract_strided_slice %148 {offsets = [0, 128], sizes = [4, 128], strides = [1, 1]} : vector<4x256xf32> to vector<4x128xf32>
    %177 = arith.addf %145, %176 : vector<4x128xf32>
    %178 = vector.extract_strided_slice %177 {offsets = [0, 0], sizes = [4, 32], strides = [1, 1]} : vector<4x128xf32> to vector<4x32xf32>
    %179 = arith.negf %178 : vector<4x32xf32>
    %180 = math.exp %179 : vector<4x32xf32>
    %cst_69 = arith.constant 1.000000e+00 : f32
    %181 = vector.broadcast %cst_69 : f32 to vector<4x32xf32>
    %182 = arith.addf %181, %180 : vector<4x32xf32>
    %183 = arith.divf %181, %182 : vector<4x32xf32>
    %184 = vector.extract_strided_slice %177 {offsets = [0, 32], sizes = [4, 32], strides = [1, 1]} : vector<4x128xf32> to vector<4x32xf32>
    %185 = arith.negf %184 : vector<4x32xf32>
    %186 = math.exp %185 : vector<4x32xf32>
    %cst_70 = arith.constant 1.000000e+00 : f32
    %187 = vector.broadcast %cst_70 : f32 to vector<4x32xf32>
    %188 = arith.addf %187, %186 : vector<4x32xf32>
    %189 = arith.divf %187, %188 : vector<4x32xf32>
    %190 = vector.extract_strided_slice %177 {offsets = [0, 64], sizes = [4, 32], strides = [1, 1]} : vector<4x128xf32> to vector<4x32xf32>
    %191 = math.tanh %190 : vector<4x32xf32>
    %192 = vector.extract_strided_slice %177 {offsets = [0, 96], sizes = [4, 32], strides = [1, 1]} : vector<4x128xf32> to vector<4x32xf32>
    %193 = arith.negf %192 : vector<4x32xf32>
    %194 = math.exp %193 : vector<4x32xf32>
    %cst_71 = arith.constant 1.000000e+00 : f32
    %195 = vector.broadcast %cst_71 : f32 to vector<4x32xf32>
    %196 = arith.addf %195, %194 : vector<4x32xf32>
    %197 = arith.divf %195, %196 : vector<4x32xf32>
    %198 = arith.mulf %189, %137 : vector<4x32xf32>
    %199 = arith.mulf %183, %191 : vector<4x32xf32>
    %200 = arith.addf %198, %199 : vector<4x32xf32>
    %201 = math.tanh %200 : vector<4x32xf32>
    %202 = arith.mulf %197, %201 : vector<4x32xf32>
    %c0_72 = arith.constant 0 : index
    %c0_73 = arith.constant 0 : index
    %203 = vector.load %arg13[%c0_72, %c0_73] : memref<4x64xf32, #tpu.memory_space<vmem>>, vector<4x32xf32>
    tpu.vector_store %arg13[%c0_72, %c0_73], %175 {strides = array<i32>} : memref<4x64xf32, #tpu.memory_space<vmem>>, vector<4x32xf32>,
    %c0_74 = arith.constant 0 : index
    %c32_75 = arith.constant 32 : index
    %204 = vector.load %arg13[%c0_74, %c32_75] : memref<4x64xf32, #tpu.memory_space<vmem>>, vector<4x32xf32>
    tpu.vector_store %arg13[%c0_74, %c32_75], %202 {strides = array<i32>} : memref<4x64xf32, #tpu.memory_space<vmem>>, vector<4x32xf32>,
    %c8_76 = arith.constant 8 : index
    %c0_77 = arith.constant 0 : index
    %205 = vector.load %arg12[%c8_76, %c0_77] : memref<24x64xf32, #tpu.memory_space<vmem>>, vector<4x32xf32>
    tpu.vector_store %arg12[%c8_76, %c0_77], %175 {strides = array<i32>} : memref<24x64xf32, #tpu.memory_space<vmem>>, vector<4x32xf32>,
    %c12_78 = arith.constant 12 : index
    %c32_79 = arith.constant 32 : index
    %206 = vector.load %arg12[%c12_78, %c32_79] : memref<24x64xf32, #tpu.memory_space<vmem>>, vector<4x32xf32>
    tpu.vector_store %arg12[%c12_78, %c32_79], %202 {strides = array<i32>} : memref<24x64xf32, #tpu.memory_space<vmem>>, vector<4x32xf32>,
    %c12_80 = arith.constant 12 : index
    %c0_81 = arith.constant 0 : index
    %207 = vector.load %arg11[%c12_80, %c0_81] : memref<24x256xf32, #tpu.memory_space<vmem>>, vector<4x128xf32>
    %c8_82 = arith.constant 8 : index
    %c128_83 = arith.constant 128 : index
    %208 = vector.load %arg11[%c8_82, %c128_83] : memref<24x256xf32, #tpu.memory_space<vmem>>, vector<4x128xf32>
    %c0_84 = arith.constant 0 : index
    %c0_85 = arith.constant 0 : index
    %209 = vector.load %arg13[%c0_84, %c0_85] : memref<4x64xf32, #tpu.memory_space<vmem>>, vector<4x64xf32>
    %c0_86 = arith.constant 0 : index
    %c0_87 = arith.constant 0 : index
    %210 = vector.load %arg5[%c0_86, %c0_87] : memref<64x256xf32, #tpu.memory_space<vmem>>, vector<64x256xf32>
    %cst_88 = arith.constant dense<0.000000e+00> : vector<4x256xf32>
    %211 = tpu.matmul %209, %210, %cst_88 {dimension_numbers = #tpu.dot_dimension_numbers<[1], [0], [0], [1], [0, 0, 1, 1], [], []>} : vector<4x64xf32>, vector<64x256xf32>, vector<4x256xf32> -> vector<4x256xf32>
    %212 = vector.extract_strided_slice %211 {offsets = [0, 0], sizes = [4, 128], strides = [1, 1]} : vector<4x256xf32> to vector<4x128xf32>
    %213 = arith.addf %207, %212 : vector<4x128xf32>
    %214 = vector.extract_strided_slice %213 {offsets = [0, 0], sizes = [4, 32], strides = [1, 1]} : vector<4x128xf32> to vector<4x32xf32>
    %215 = arith.negf %214 : vector<4x32xf32>
    %216 = math.exp %215 : vector<4x32xf32>
    %cst_89 = arith.constant 1.000000e+00 : f32
    %217 = vector.broadcast %cst_89 : f32 to vector<4x32xf32>
    %218 = arith.addf %217, %216 : vector<4x32xf32>
    %219 = arith.divf %217, %218 : vector<4x32xf32>
    %220 = vector.extract_strided_slice %213 {offsets = [0, 32], sizes = [4, 32], strides = [1, 1]} : vector<4x128xf32> to vector<4x32xf32>
    %221 = arith.negf %220 : vector<4x32xf32>
    %222 = math.exp %221 : vector<4x32xf32>
    %cst_90 = arith.constant 1.000000e+00 : f32
    %223 = vector.broadcast %cst_90 : f32 to vector<4x32xf32>
    %224 = arith.addf %223, %222 : vector<4x32xf32>
    %225 = arith.divf %223, %224 : vector<4x32xf32>
    %226 = vector.extract_strided_slice %213 {offsets = [0, 64], sizes = [4, 32], strides = [1, 1]} : vector<4x128xf32> to vector<4x32xf32>
    %227 = math.tanh %226 : vector<4x32xf32>
    %228 = vector.extract_strided_slice %213 {offsets = [0, 96], sizes = [4, 32], strides = [1, 1]} : vector<4x128xf32> to vector<4x32xf32>
    %229 = arith.negf %228 : vector<4x32xf32>
    %230 = math.exp %229 : vector<4x32xf32>
    %cst_91 = arith.constant 1.000000e+00 : f32
    %231 = vector.broadcast %cst_91 : f32 to vector<4x32xf32>
    %232 = arith.addf %231, %230 : vector<4x32xf32>
    %233 = arith.divf %231, %232 : vector<4x32xf32>
    %234 = arith.mulf %225, %173 : vector<4x32xf32>
    %235 = arith.mulf %219, %227 : vector<4x32xf32>
    %236 = arith.addf %234, %235 : vector<4x32xf32>
    %237 = math.tanh %236 : vector<4x32xf32>
    %238 = arith.mulf %233, %237 : vector<4x32xf32>
    %239 = vector.extract_strided_slice %211 {offsets = [0, 128], sizes = [4, 128], strides = [1, 1]} : vector<4x256xf32> to vector<4x128xf32>
    %240 = arith.addf %208, %239 : vector<4x128xf32>
    %241 = vector.extract_strided_slice %240 {offsets = [0, 0], sizes = [4, 32], strides = [1, 1]} : vector<4x128xf32> to vector<4x32xf32>
    %242 = arith.negf %241 : vector<4x32xf32>
    %243 = math.exp %242 : vector<4x32xf32>
    %cst_92 = arith.constant 1.000000e+00 : f32
    %244 = vector.broadcast %cst_92 : f32 to vector<4x32xf32>
    %245 = arith.addf %244, %243 : vector<4x32xf32>
    %246 = arith.divf %244, %245 : vector<4x32xf32>
    %247 = vector.extract_strided_slice %240 {offsets = [0, 32], sizes = [4, 32], strides = [1, 1]} : vector<4x128xf32> to vector<4x32xf32>
    %248 = arith.negf %247 : vector<4x32xf32>
    %249 = math.exp %248 : vector<4x32xf32>
    %cst_93 = arith.constant 1.000000e+00 : f32
    %250 = vector.broadcast %cst_93 : f32 to vector<4x32xf32>
    %251 = arith.addf %250, %249 : vector<4x32xf32>
    %252 = arith.divf %250, %251 : vector<4x32xf32>
    %253 = vector.extract_strided_slice %240 {offsets = [0, 64], sizes = [4, 32], strides = [1, 1]} : vector<4x128xf32> to vector<4x32xf32>
    %254 = math.tanh %253 : vector<4x32xf32>
    %255 = vector.extract_strided_slice %240 {offsets = [0, 96], sizes = [4, 32], strides = [1, 1]} : vector<4x128xf32> to vector<4x32xf32>
    %256 = arith.negf %255 : vector<4x32xf32>
    %257 = math.exp %256 : vector<4x32xf32>
    %cst_94 = arith.constant 1.000000e+00 : f32
    %258 = vector.broadcast %cst_94 : f32 to vector<4x32xf32>
    %259 = arith.addf %258, %257 : vector<4x32xf32>
    %260 = arith.divf %258, %259 : vector<4x32xf32>
    %261 = arith.mulf %252, %200 : vector<4x32xf32>
    %262 = arith.mulf %246, %254 : vector<4x32xf32>
    %263 = arith.addf %261, %262 : vector<4x32xf32>
    %264 = math.tanh %263 : vector<4x32xf32>
    %265 = arith.mulf %260, %264 : vector<4x32xf32>
    %c0_95 = arith.constant 0 : index
    %c0_96 = arith.constant 0 : index
    %266 = vector.load %arg13[%c0_95, %c0_96] : memref<4x64xf32, #tpu.memory_space<vmem>>, vector<4x32xf32>
    tpu.vector_store %arg13[%c0_95, %c0_96], %238 {strides = array<i32>} : memref<4x64xf32, #tpu.memory_space<vmem>>, vector<4x32xf32>,
    %c0_97 = arith.constant 0 : index
    %c32_98 = arith.constant 32 : index
    %267 = vector.load %arg13[%c0_97, %c32_98] : memref<4x64xf32, #tpu.memory_space<vmem>>, vector<4x32xf32>
    tpu.vector_store %arg13[%c0_97, %c32_98], %265 {strides = array<i32>} : memref<4x64xf32, #tpu.memory_space<vmem>>, vector<4x32xf32>,
    %c12_99 = arith.constant 12 : index
    %c0_100 = arith.constant 0 : index
    %268 = vector.load %arg12[%c12_99, %c0_100] : memref<24x64xf32, #tpu.memory_space<vmem>>, vector<4x32xf32>
    tpu.vector_store %arg12[%c12_99, %c0_100], %238 {strides = array<i32>} : memref<24x64xf32, #tpu.memory_space<vmem>>, vector<4x32xf32>,
    %c8_101 = arith.constant 8 : index
    %c32_102 = arith.constant 32 : index
    %269 = vector.load %arg12[%c8_101, %c32_102] : memref<24x64xf32, #tpu.memory_space<vmem>>, vector<4x32xf32>
    tpu.vector_store %arg12[%c8_101, %c32_102], %265 {strides = array<i32>} : memref<24x64xf32, #tpu.memory_space<vmem>>, vector<4x32xf32>,
    %c16_103 = arith.constant 16 : index
    %c0_104 = arith.constant 0 : index
    %270 = vector.load %arg11[%c16_103, %c0_104] : memref<24x256xf32, #tpu.memory_space<vmem>>, vector<4x128xf32>
    %c4_105 = arith.constant 4 : index
    %c128_106 = arith.constant 128 : index
    %271 = vector.load %arg11[%c4_105, %c128_106] : memref<24x256xf32, #tpu.memory_space<vmem>>, vector<4x128xf32>
    %c0_107 = arith.constant 0 : index
    %c0_108 = arith.constant 0 : index
    %272 = vector.load %arg13[%c0_107, %c0_108] : memref<4x64xf32, #tpu.memory_space<vmem>>, vector<4x64xf32>
    %c0_109 = arith.constant 0 : index
    %c0_110 = arith.constant 0 : index
    %273 = vector.load %arg5[%c0_109, %c0_110] : memref<64x256xf32, #tpu.memory_space<vmem>>, vector<64x256xf32>
    %cst_111 = arith.constant dense<0.000000e+00> : vector<4x256xf32>
    %274 = tpu.matmul %272, %273, %cst_111 {dimension_numbers = #tpu.dot_dimension_numbers<[1], [0], [0], [1], [0, 0, 1, 1], [], []>} : vector<4x64xf32>, vector<64x256xf32>, vector<4x256xf32> -> vector<4x256xf32>
    %275 = vector.extract_strided_slice %274 {offsets = [0, 0], sizes = [4, 128], strides = [1, 1]} : vector<4x256xf32> to vector<4x128xf32>
    %276 = arith.addf %270, %275 : vector<4x128xf32>
    %277 = vector.extract_strided_slice %276 {offsets = [0, 0], sizes = [4, 32], strides = [1, 1]} : vector<4x128xf32> to vector<4x32xf32>
    %278 = arith.negf %277 : vector<4x32xf32>
    %279 = math.exp %278 : vector<4x32xf32>
    %cst_112 = arith.constant 1.000000e+00 : f32
    %280 = vector.broadcast %cst_112 : f32 to vector<4x32xf32>
    %281 = arith.addf %280, %279 : vector<4x32xf32>
    %282 = arith.divf %280, %281 : vector<4x32xf32>
    %283 = vector.extract_strided_slice %276 {offsets = [0, 32], sizes = [4, 32], strides = [1, 1]} : vector<4x128xf32> to vector<4x32xf32>
    %284 = arith.negf %283 : vector<4x32xf32>
    %285 = math.exp %284 : vector<4x32xf32>
    %cst_113 = arith.constant 1.000000e+00 : f32
    %286 = vector.broadcast %cst_113 : f32 to vector<4x32xf32>
    %287 = arith.addf %286, %285 : vector<4x32xf32>
    %288 = arith.divf %286, %287 : vector<4x32xf32>
    %289 = vector.extract_strided_slice %276 {offsets = [0, 64], sizes = [4, 32], strides = [1, 1]} : vector<4x128xf32> to vector<4x32xf32>
    %290 = math.tanh %289 : vector<4x32xf32>
    %291 = vector.extract_strided_slice %276 {offsets = [0, 96], sizes = [4, 32], strides = [1, 1]} : vector<4x128xf32> to vector<4x32xf32>
    %292 = arith.negf %291 : vector<4x32xf32>
    %293 = math.exp %292 : vector<4x32xf32>
    %cst_114 = arith.constant 1.000000e+00 : f32
    %294 = vector.broadcast %cst_114 : f32 to vector<4x32xf32>
    %295 = arith.addf %294, %293 : vector<4x32xf32>
    %296 = arith.divf %294, %295 : vector<4x32xf32>
    %297 = arith.mulf %288, %236 : vector<4x32xf32>
    %298 = arith.mulf %282, %290 : vector<4x32xf32>
    %299 = arith.addf %297, %298 : vector<4x32xf32>
    %300 = math.tanh %299 : vector<4x32xf32>
    %301 = arith.mulf %296, %300 : vector<4x32xf32>
    %302 = vector.extract_strided_slice %274 {offsets = [0, 128], sizes = [4, 128], strides = [1, 1]} : vector<4x256xf32> to vector<4x128xf32>
    %303 = arith.addf %271, %302 : vector<4x128xf32>
    %304 = vector.extract_strided_slice %303 {offsets = [0, 0], sizes = [4, 32], strides = [1, 1]} : vector<4x128xf32> to vector<4x32xf32>
    %305 = arith.negf %304 : vector<4x32xf32>
    %306 = math.exp %305 : vector<4x32xf32>
    %cst_115 = arith.constant 1.000000e+00 : f32
    %307 = vector.broadcast %cst_115 : f32 to vector<4x32xf32>
    %308 = arith.addf %307, %306 : vector<4x32xf32>
    %309 = arith.divf %307, %308 : vector<4x32xf32>
    %310 = vector.extract_strided_slice %303 {offsets = [0, 32], sizes = [4, 32], strides = [1, 1]} : vector<4x128xf32> to vector<4x32xf32>
    %311 = arith.negf %310 : vector<4x32xf32>
    %312 = math.exp %311 : vector<4x32xf32>
    %cst_116 = arith.constant 1.000000e+00 : f32
    %313 = vector.broadcast %cst_116 : f32 to vector<4x32xf32>
    %314 = arith.addf %313, %312 : vector<4x32xf32>
    %315 = arith.divf %313, %314 : vector<4x32xf32>
    %316 = vector.extract_strided_slice %303 {offsets = [0, 64], sizes = [4, 32], strides = [1, 1]} : vector<4x128xf32> to vector<4x32xf32>
    %317 = math.tanh %316 : vector<4x32xf32>
    %318 = vector.extract_strided_slice %303 {offsets = [0, 96], sizes = [4, 32], strides = [1, 1]} : vector<4x128xf32> to vector<4x32xf32>
    %319 = arith.negf %318 : vector<4x32xf32>
    %320 = math.exp %319 : vector<4x32xf32>
    %cst_117 = arith.constant 1.000000e+00 : f32
    %321 = vector.broadcast %cst_117 : f32 to vector<4x32xf32>
    %322 = arith.addf %321, %320 : vector<4x32xf32>
    %323 = arith.divf %321, %322 : vector<4x32xf32>
    %324 = arith.mulf %315, %263 : vector<4x32xf32>
    %325 = arith.mulf %309, %317 : vector<4x32xf32>
    %326 = arith.addf %324, %325 : vector<4x32xf32>
    %327 = math.tanh %326 : vector<4x32xf32>
    %328 = arith.mulf %323, %327 : vector<4x32xf32>
    %c0_118 = arith.constant 0 : index
    %c0_119 = arith.constant 0 : index
    %329 = vector.load %arg13[%c0_118, %c0_119] : memref<4x64xf32, #tpu.memory_space<vmem>>, vector<4x32xf32>
    tpu.vector_store %arg13[%c0_118, %c0_119], %301 {strides = array<i32>} : memref<4x64xf32, #tpu.memory_space<vmem>>, vector<4x32xf32>,
    %c0_120 = arith.constant 0 : index
    %c32_121 = arith.constant 32 : index
    %330 = vector.load %arg13[%c0_120, %c32_121] : memref<4x64xf32, #tpu.memory_space<vmem>>, vector<4x32xf32>
    tpu.vector_store %arg13[%c0_120, %c32_121], %328 {strides = array<i32>} : memref<4x64xf32, #tpu.memory_space<vmem>>, vector<4x32xf32>,
    %c16_122 = arith.constant 16 : index
    %c0_123 = arith.constant 0 : index
    %331 = vector.load %arg12[%c16_122, %c0_123] : memref<24x64xf32, #tpu.memory_space<vmem>>, vector<4x32xf32>
    tpu.vector_store %arg12[%c16_122, %c0_123], %301 {strides = array<i32>} : memref<24x64xf32, #tpu.memory_space<vmem>>, vector<4x32xf32>,
    %c4_124 = arith.constant 4 : index
    %c32_125 = arith.constant 32 : index
    %332 = vector.load %arg12[%c4_124, %c32_125] : memref<24x64xf32, #tpu.memory_space<vmem>>, vector<4x32xf32>
    tpu.vector_store %arg12[%c4_124, %c32_125], %328 {strides = array<i32>} : memref<24x64xf32, #tpu.memory_space<vmem>>, vector<4x32xf32>,
    %c20_126 = arith.constant 20 : index
    %c0_127 = arith.constant 0 : index
    %333 = vector.load %arg11[%c20_126, %c0_127] : memref<24x256xf32, #tpu.memory_space<vmem>>, vector<4x128xf32>
    %c0_128 = arith.constant 0 : index
    %c128_129 = arith.constant 128 : index
    %334 = vector.load %arg11[%c0_128, %c128_129] : memref<24x256xf32, #tpu.memory_space<vmem>>, vector<4x128xf32>
    %c0_130 = arith.constant 0 : index
    %c0_131 = arith.constant 0 : index
    %335 = vector.load %arg13[%c0_130, %c0_131] : memref<4x64xf32, #tpu.memory_space<vmem>>, vector<4x64xf32>
    %c0_132 = arith.constant 0 : index
    %c0_133 = arith.constant 0 : index
    %336 = vector.load %arg5[%c0_132, %c0_133] : memref<64x256xf32, #tpu.memory_space<vmem>>, vector<64x256xf32>
    %cst_134 = arith.constant dense<0.000000e+00> : vector<4x256xf32>
    %337 = tpu.matmul %335, %336, %cst_134 {dimension_numbers = #tpu.dot_dimension_numbers<[1], [0], [0], [1], [0, 0, 1, 1], [], []>} : vector<4x64xf32>, vector<64x256xf32>, vector<4x256xf32> -> vector<4x256xf32>
    %338 = vector.extract_strided_slice %337 {offsets = [0, 0], sizes = [4, 128], strides = [1, 1]} : vector<4x256xf32> to vector<4x128xf32>
    %339 = arith.addf %333, %338 : vector<4x128xf32>
    %340 = vector.extract_strided_slice %339 {offsets = [0, 0], sizes = [4, 32], strides = [1, 1]} : vector<4x128xf32> to vector<4x32xf32>
    %341 = arith.negf %340 : vector<4x32xf32>
    %342 = math.exp %341 : vector<4x32xf32>
    %cst_135 = arith.constant 1.000000e+00 : f32
    %343 = vector.broadcast %cst_135 : f32 to vector<4x32xf32>
    %344 = arith.addf %343, %342 : vector<4x32xf32>
    %345 = arith.divf %343, %344 : vector<4x32xf32>
    %346 = vector.extract_strided_slice %339 {offsets = [0, 32], sizes = [4, 32], strides = [1, 1]} : vector<4x128xf32> to vector<4x32xf32>
    %347 = arith.negf %346 : vector<4x32xf32>
    %348 = math.exp %347 : vector<4x32xf32>
    %cst_136 = arith.constant 1.000000e+00 : f32
    %349 = vector.broadcast %cst_136 : f32 to vector<4x32xf32>
    %350 = arith.addf %349, %348 : vector<4x32xf32>
    %351 = arith.divf %349, %350 : vector<4x32xf32>
    %352 = vector.extract_strided_slice %339 {offsets = [0, 64], sizes = [4, 32], strides = [1, 1]} : vector<4x128xf32> to vector<4x32xf32>
    %353 = math.tanh %352 : vector<4x32xf32>
    %354 = vector.extract_strided_slice %339 {offsets = [0, 96], sizes = [4, 32], strides = [1, 1]} : vector<4x128xf32> to vector<4x32xf32>
    %355 = arith.negf %354 : vector<4x32xf32>
    %356 = math.exp %355 : vector<4x32xf32>
    %cst_137 = arith.constant 1.000000e+00 : f32
    %357 = vector.broadcast %cst_137 : f32 to vector<4x32xf32>
    %358 = arith.addf %357, %356 : vector<4x32xf32>
    %359 = arith.divf %357, %358 : vector<4x32xf32>
    %360 = arith.mulf %351, %299 : vector<4x32xf32>
    %361 = arith.mulf %345, %353 : vector<4x32xf32>
    %362 = arith.addf %360, %361 : vector<4x32xf32>
    %363 = math.tanh %362 : vector<4x32xf32>
    %364 = arith.mulf %359, %363 : vector<4x32xf32>
    %365 = vector.extract_strided_slice %337 {offsets = [0, 128], sizes = [4, 128], strides = [1, 1]} : vector<4x256xf32> to vector<4x128xf32>
    %366 = arith.addf %334, %365 : vector<4x128xf32>
    %367 = vector.extract_strided_slice %366 {offsets = [0, 0], sizes = [4, 32], strides = [1, 1]} : vector<4x128xf32> to vector<4x32xf32>
    %368 = arith.negf %367 : vector<4x32xf32>
    %369 = math.exp %368 : vector<4x32xf32>
    %cst_138 = arith.constant 1.000000e+00 : f32
    %370 = vector.broadcast %cst_138 : f32 to vector<4x32xf32>
    %371 = arith.addf %370, %369 : vector<4x32xf32>
    %372 = arith.divf %370, %371 : vector<4x32xf32>
    %373 = vector.extract_strided_slice %366 {offsets = [0, 32], sizes = [4, 32], strides = [1, 1]} : vector<4x128xf32> to vector<4x32xf32>
    %374 = arith.negf %373 : vector<4x32xf32>
    %375 = math.exp %374 : vector<4x32xf32>
    %cst_139 = arith.constant 1.000000e+00 : f32
    %376 = vector.broadcast %cst_139 : f32 to vector<4x32xf32>
    %377 = arith.addf %376, %375 : vector<4x32xf32>
    %378 = arith.divf %376, %377 : vector<4x32xf32>
    %379 = vector.extract_strided_slice %366 {offsets = [0, 64], sizes = [4, 32], strides = [1, 1]} : vector<4x128xf32> to vector<4x32xf32>
    %380 = math.tanh %379 : vector<4x32xf32>
    %381 = vector.extract_strided_slice %366 {offsets = [0, 96], sizes = [4, 32], strides = [1, 1]} : vector<4x128xf32> to vector<4x32xf32>
    %382 = arith.negf %381 : vector<4x32xf32>
    %383 = math.exp %382 : vector<4x32xf32>
    %cst_140 = arith.constant 1.000000e+00 : f32
    %384 = vector.broadcast %cst_140 : f32 to vector<4x32xf32>
    %385 = arith.addf %384, %383 : vector<4x32xf32>
    %386 = arith.divf %384, %385 : vector<4x32xf32>
    %387 = arith.mulf %378, %326 : vector<4x32xf32>
    %388 = arith.mulf %372, %380 : vector<4x32xf32>
    %389 = arith.addf %387, %388 : vector<4x32xf32>
    %390 = math.tanh %389 : vector<4x32xf32>
    %391 = arith.mulf %386, %390 : vector<4x32xf32>
    %c0_141 = arith.constant 0 : index
    %c0_142 = arith.constant 0 : index
    %392 = vector.load %arg13[%c0_141, %c0_142] : memref<4x64xf32, #tpu.memory_space<vmem>>, vector<4x32xf32>
    tpu.vector_store %arg13[%c0_141, %c0_142], %364 {strides = array<i32>} : memref<4x64xf32, #tpu.memory_space<vmem>>, vector<4x32xf32>,
    %c0_143 = arith.constant 0 : index
    %c32_144 = arith.constant 32 : index
    %393 = vector.load %arg13[%c0_143, %c32_144] : memref<4x64xf32, #tpu.memory_space<vmem>>, vector<4x32xf32>
    tpu.vector_store %arg13[%c0_143, %c32_144], %391 {strides = array<i32>} : memref<4x64xf32, #tpu.memory_space<vmem>>, vector<4x32xf32>,
    %c20_145 = arith.constant 20 : index
    %c0_146 = arith.constant 0 : index
    %394 = vector.load %arg12[%c20_145, %c0_146] : memref<24x64xf32, #tpu.memory_space<vmem>>, vector<4x32xf32>
    tpu.vector_store %arg12[%c20_145, %c0_146], %364 {strides = array<i32>} : memref<24x64xf32, #tpu.memory_space<vmem>>, vector<4x32xf32>,
    %c0_147 = arith.constant 0 : index
    %c32_148 = arith.constant 32 : index
    %395 = vector.load %arg12[%c0_147, %c32_148] : memref<24x64xf32, #tpu.memory_space<vmem>>, vector<4x32xf32>
    tpu.vector_store %arg12[%c0_147, %c32_148], %391 {strides = array<i32>} : memref<24x64xf32, #tpu.memory_space<vmem>>, vector<4x32xf32>,
    %c0_149 = arith.constant 0 : index
    %c0_150 = arith.constant 0 : index
    %396 = vector.load %arg12[%c0_149, %c0_150] : memref<24x64xf32, #tpu.memory_space<vmem>>, vector<24x64xf32>
    %c0_151 = arith.constant 0 : index
    %c0_152 = arith.constant 0 : index
    %397 = vector.load %arg7[%c0_151, %c0_152] : memref<64x256xf32, #tpu.memory_space<vmem>>, vector<64x256xf32>
    %cst_153 = arith.constant dense<0.000000e+00> : vector<24x256xf32>
    %398 = tpu.matmul %396, %397, %cst_153 {dimension_numbers = #tpu.dot_dimension_numbers<[1], [0], [0], [1], [0, 0, 1, 1], [], []>} : vector<24x64xf32>, vector<64x256xf32>, vector<24x256xf32> -> vector<24x256xf32>
    %c0_154 = arith.constant 0 : index
    %c0_155 = arith.constant 0 : index
    %399 = vector.load %arg9[%c0_154, %c0_155] : memref<1x256xf32, #tpu.memory_space<vmem>>, vector<1x256xf32>
    %400 = vector.broadcast %399 : vector<1x256xf32> to vector<24x256xf32>
    %401 = arith.addf %398, %400 : vector<24x256xf32>
    %c0_156 = arith.constant 0 : index
    %c0_157 = arith.constant 0 : index
    %402 = vector.load %arg11[%c0_156, %c0_157] : memref<24x256xf32, #tpu.memory_space<vmem>>, vector<24x256xf32>
    tpu.vector_store %arg11[%c0_156, %c0_157], %401 {strides = array<i32>} : memref<24x256xf32, #tpu.memory_space<vmem>>, vector<24x256xf32>,
    %cst_158 = arith.constant 0.000000e+00 : f32
    %403 = vector.broadcast %cst_158 : f32 to vector<4x64xf32>
    %c0_159 = arith.constant 0 : index
    %c0_160 = arith.constant 0 : index
    %404 = vector.load %arg13[%c0_159, %c0_160] : memref<4x64xf32, #tpu.memory_space<vmem>>, vector<4x64xf32>
    tpu.vector_store %arg13[%c0_159, %c0_160], %403 {strides = array<i32>} : memref<4x64xf32, #tpu.memory_space<vmem>>, vector<4x64xf32>,
    %cst_161 = arith.constant 0.000000e+00 : f32
    %405 = vector.broadcast %cst_161 : f32 to vector<4x32xf32>
    %cst_162 = arith.constant 0.000000e+00 : f32
    %406 = vector.broadcast %cst_162 : f32 to vector<4x32xf32>
    %c0_163 = arith.constant 0 : index
    %c0_164 = arith.constant 0 : index
    %407 = vector.load %arg11[%c0_163, %c0_164] : memref<24x256xf32, #tpu.memory_space<vmem>>, vector<4x128xf32>
    %c20_165 = arith.constant 20 : index
    %c128_166 = arith.constant 128 : index
    %408 = vector.load %arg11[%c20_165, %c128_166] : memref<24x256xf32, #tpu.memory_space<vmem>>, vector<4x128xf32>
    %c0_167 = arith.constant 0 : index
    %c0_168 = arith.constant 0 : index
    %409 = vector.load %arg13[%c0_167, %c0_168] : memref<4x64xf32, #tpu.memory_space<vmem>>, vector<4x64xf32>
    %c0_169 = arith.constant 0 : index
    %c0_170 = arith.constant 0 : index
    %410 = vector.load %arg8[%c0_169, %c0_170] : memref<64x256xf32, #tpu.memory_space<vmem>>, vector<64x256xf32>
    %cst_171 = arith.constant dense<0.000000e+00> : vector<4x256xf32>
    %411 = tpu.matmul %409, %410, %cst_171 {dimension_numbers = #tpu.dot_dimension_numbers<[1], [0], [0], [1], [0, 0, 1, 1], [], []>} : vector<4x64xf32>, vector<64x256xf32>, vector<4x256xf32> -> vector<4x256xf32>
    %412 = vector.extract_strided_slice %411 {offsets = [0, 0], sizes = [4, 128], strides = [1, 1]} : vector<4x256xf32> to vector<4x128xf32>
    %413 = arith.addf %407, %412 : vector<4x128xf32>
    %414 = vector.extract_strided_slice %413 {offsets = [0, 0], sizes = [4, 32], strides = [1, 1]} : vector<4x128xf32> to vector<4x32xf32>
    %415 = arith.negf %414 : vector<4x32xf32>
    %416 = math.exp %415 : vector<4x32xf32>
    %cst_172 = arith.constant 1.000000e+00 : f32
    %417 = vector.broadcast %cst_172 : f32 to vector<4x32xf32>
    %418 = arith.addf %417, %416 : vector<4x32xf32>
    %419 = arith.divf %417, %418 : vector<4x32xf32>
    %420 = vector.extract_strided_slice %413 {offsets = [0, 32], sizes = [4, 32], strides = [1, 1]} : vector<4x128xf32> to vector<4x32xf32>
    %421 = arith.negf %420 : vector<4x32xf32>
    %422 = math.exp %421 : vector<4x32xf32>
    %cst_173 = arith.constant 1.000000e+00 : f32
    %423 = vector.broadcast %cst_173 : f32 to vector<4x32xf32>
    %424 = arith.addf %423, %422 : vector<4x32xf32>
    %425 = arith.divf %423, %424 : vector<4x32xf32>
    %426 = vector.extract_strided_slice %413 {offsets = [0, 64], sizes = [4, 32], strides = [1, 1]} : vector<4x128xf32> to vector<4x32xf32>
    %427 = math.tanh %426 : vector<4x32xf32>
    %428 = vector.extract_strided_slice %413 {offsets = [0, 96], sizes = [4, 32], strides = [1, 1]} : vector<4x128xf32> to vector<4x32xf32>
    %429 = arith.negf %428 : vector<4x32xf32>
    %430 = math.exp %429 : vector<4x32xf32>
    %cst_174 = arith.constant 1.000000e+00 : f32
    %431 = vector.broadcast %cst_174 : f32 to vector<4x32xf32>
    %432 = arith.addf %431, %430 : vector<4x32xf32>
    %433 = arith.divf %431, %432 : vector<4x32xf32>
    %434 = arith.mulf %425, %405 : vector<4x32xf32>
    %435 = arith.mulf %419, %427 : vector<4x32xf32>
    %436 = arith.addf %434, %435 : vector<4x32xf32>
    %437 = math.tanh %436 : vector<4x32xf32>
    %438 = arith.mulf %433, %437 : vector<4x32xf32>
    %439 = vector.extract_strided_slice %411 {offsets = [0, 128], sizes = [4, 128], strides = [1, 1]} : vector<4x256xf32> to vector<4x128xf32>
    %440 = arith.addf %408, %439 : vector<4x128xf32>
    %441 = vector.extract_strided_slice %440 {offsets = [0, 0], sizes = [4, 32], strides = [1, 1]} : vector<4x128xf32> to vector<4x32xf32>
    %442 = arith.negf %441 : vector<4x32xf32>
    %443 = math.exp %442 : vector<4x32xf32>
    %cst_175 = arith.constant 1.000000e+00 : f32
    %444 = vector.broadcast %cst_175 : f32 to vector<4x32xf32>
    %445 = arith.addf %444, %443 : vector<4x32xf32>
    %446 = arith.divf %444, %445 : vector<4x32xf32>
    %447 = vector.extract_strided_slice %440 {offsets = [0, 32], sizes = [4, 32], strides = [1, 1]} : vector<4x128xf32> to vector<4x32xf32>
    %448 = arith.negf %447 : vector<4x32xf32>
    %449 = math.exp %448 : vector<4x32xf32>
    %cst_176 = arith.constant 1.000000e+00 : f32
    %450 = vector.broadcast %cst_176 : f32 to vector<4x32xf32>
    %451 = arith.addf %450, %449 : vector<4x32xf32>
    %452 = arith.divf %450, %451 : vector<4x32xf32>
    %453 = vector.extract_strided_slice %440 {offsets = [0, 64], sizes = [4, 32], strides = [1, 1]} : vector<4x128xf32> to vector<4x32xf32>
    %454 = math.tanh %453 : vector<4x32xf32>
    %455 = vector.extract_strided_slice %440 {offsets = [0, 96], sizes = [4, 32], strides = [1, 1]} : vector<4x128xf32> to vector<4x32xf32>
    %456 = arith.negf %455 : vector<4x32xf32>
    %457 = math.exp %456 : vector<4x32xf32>
    %cst_177 = arith.constant 1.000000e+00 : f32
    %458 = vector.broadcast %cst_177 : f32 to vector<4x32xf32>
    %459 = arith.addf %458, %457 : vector<4x32xf32>
    %460 = arith.divf %458, %459 : vector<4x32xf32>
    %461 = arith.mulf %452, %406 : vector<4x32xf32>
    %462 = arith.mulf %446, %454 : vector<4x32xf32>
    %463 = arith.addf %461, %462 : vector<4x32xf32>
    %464 = math.tanh %463 : vector<4x32xf32>
    %465 = arith.mulf %460, %464 : vector<4x32xf32>
    %c0_178 = arith.constant 0 : index
    %c0_179 = arith.constant 0 : index
    %466 = vector.load %arg13[%c0_178, %c0_179] : memref<4x64xf32, #tpu.memory_space<vmem>>, vector<4x32xf32>
    tpu.vector_store %arg13[%c0_178, %c0_179], %438 {strides = array<i32>} : memref<4x64xf32, #tpu.memory_space<vmem>>, vector<4x32xf32>,
    %c0_180 = arith.constant 0 : index
    %c32_181 = arith.constant 32 : index
    %467 = vector.load %arg13[%c0_180, %c32_181] : memref<4x64xf32, #tpu.memory_space<vmem>>, vector<4x32xf32>
    tpu.vector_store %arg13[%c0_180, %c32_181], %465 {strides = array<i32>} : memref<4x64xf32, #tpu.memory_space<vmem>>, vector<4x32xf32>,
    %c4_182 = arith.constant 4 : index
    %c0_183 = arith.constant 0 : index
    %468 = vector.load %arg11[%c4_182, %c0_183] : memref<24x256xf32, #tpu.memory_space<vmem>>, vector<4x128xf32>
    %c16_184 = arith.constant 16 : index
    %c128_185 = arith.constant 128 : index
    %469 = vector.load %arg11[%c16_184, %c128_185] : memref<24x256xf32, #tpu.memory_space<vmem>>, vector<4x128xf32>
    %c0_186 = arith.constant 0 : index
    %c0_187 = arith.constant 0 : index
    %470 = vector.load %arg13[%c0_186, %c0_187] : memref<4x64xf32, #tpu.memory_space<vmem>>, vector<4x64xf32>
    %c0_188 = arith.constant 0 : index
    %c0_189 = arith.constant 0 : index
    %471 = vector.load %arg8[%c0_188, %c0_189] : memref<64x256xf32, #tpu.memory_space<vmem>>, vector<64x256xf32>
    %cst_190 = arith.constant dense<0.000000e+00> : vector<4x256xf32>
    %472 = tpu.matmul %470, %471, %cst_190 {dimension_numbers = #tpu.dot_dimension_numbers<[1], [0], [0], [1], [0, 0, 1, 1], [], []>} : vector<4x64xf32>, vector<64x256xf32>, vector<4x256xf32> -> vector<4x256xf32>
    %473 = vector.extract_strided_slice %472 {offsets = [0, 0], sizes = [4, 128], strides = [1, 1]} : vector<4x256xf32> to vector<4x128xf32>
    %474 = arith.addf %468, %473 : vector<4x128xf32>
    %475 = vector.extract_strided_slice %474 {offsets = [0, 0], sizes = [4, 32], strides = [1, 1]} : vector<4x128xf32> to vector<4x32xf32>
    %476 = arith.negf %475 : vector<4x32xf32>
    %477 = math.exp %476 : vector<4x32xf32>
    %cst_191 = arith.constant 1.000000e+00 : f32
    %478 = vector.broadcast %cst_191 : f32 to vector<4x32xf32>
    %479 = arith.addf %478, %477 : vector<4x32xf32>
    %480 = arith.divf %478, %479 : vector<4x32xf32>
    %481 = vector.extract_strided_slice %474 {offsets = [0, 32], sizes = [4, 32], strides = [1, 1]} : vector<4x128xf32> to vector<4x32xf32>
    %482 = arith.negf %481 : vector<4x32xf32>
    %483 = math.exp %482 : vector<4x32xf32>
    %cst_192 = arith.constant 1.000000e+00 : f32
    %484 = vector.broadcast %cst_192 : f32 to vector<4x32xf32>
    %485 = arith.addf %484, %483 : vector<4x32xf32>
    %486 = arith.divf %484, %485 : vector<4x32xf32>
    %487 = vector.extract_strided_slice %474 {offsets = [0, 64], sizes = [4, 32], strides = [1, 1]} : vector<4x128xf32> to vector<4x32xf32>
    %488 = math.tanh %487 : vector<4x32xf32>
    %489 = vector.extract_strided_slice %474 {offsets = [0, 96], sizes = [4, 32], strides = [1, 1]} : vector<4x128xf32> to vector<4x32xf32>
    %490 = arith.negf %489 : vector<4x32xf32>
    %491 = math.exp %490 : vector<4x32xf32>
    %cst_193 = arith.constant 1.000000e+00 : f32
    %492 = vector.broadcast %cst_193 : f32 to vector<4x32xf32>
    %493 = arith.addf %492, %491 : vector<4x32xf32>
    %494 = arith.divf %492, %493 : vector<4x32xf32>
    %495 = arith.mulf %486, %436 : vector<4x32xf32>
    %496 = arith.mulf %480, %488 : vector<4x32xf32>
    %497 = arith.addf %495, %496 : vector<4x32xf32>
    %498 = math.tanh %497 : vector<4x32xf32>
    %499 = arith.mulf %494, %498 : vector<4x32xf32>
    %500 = vector.extract_strided_slice %472 {offsets = [0, 128], sizes = [4, 128], strides = [1, 1]} : vector<4x256xf32> to vector<4x128xf32>
    %501 = arith.addf %469, %500 : vector<4x128xf32>
    %502 = vector.extract_strided_slice %501 {offsets = [0, 0], sizes = [4, 32], strides = [1, 1]} : vector<4x128xf32> to vector<4x32xf32>
    %503 = arith.negf %502 : vector<4x32xf32>
    %504 = math.exp %503 : vector<4x32xf32>
    %cst_194 = arith.constant 1.000000e+00 : f32
    %505 = vector.broadcast %cst_194 : f32 to vector<4x32xf32>
    %506 = arith.addf %505, %504 : vector<4x32xf32>
    %507 = arith.divf %505, %506 : vector<4x32xf32>
    %508 = vector.extract_strided_slice %501 {offsets = [0, 32], sizes = [4, 32], strides = [1, 1]} : vector<4x128xf32> to vector<4x32xf32>
    %509 = arith.negf %508 : vector<4x32xf32>
    %510 = math.exp %509 : vector<4x32xf32>
    %cst_195 = arith.constant 1.000000e+00 : f32
    %511 = vector.broadcast %cst_195 : f32 to vector<4x32xf32>
    %512 = arith.addf %511, %510 : vector<4x32xf32>
    %513 = arith.divf %511, %512 : vector<4x32xf32>
    %514 = vector.extract_strided_slice %501 {offsets = [0, 64], sizes = [4, 32], strides = [1, 1]} : vector<4x128xf32> to vector<4x32xf32>
    %515 = math.tanh %514 : vector<4x32xf32>
    %516 = vector.extract_strided_slice %501 {offsets = [0, 96], sizes = [4, 32], strides = [1, 1]} : vector<4x128xf32> to vector<4x32xf32>
    %517 = arith.negf %516 : vector<4x32xf32>
    %518 = math.exp %517 : vector<4x32xf32>
    %cst_196 = arith.constant 1.000000e+00 : f32
    %519 = vector.broadcast %cst_196 : f32 to vector<4x32xf32>
    %520 = arith.addf %519, %518 : vector<4x32xf32>
    %521 = arith.divf %519, %520 : vector<4x32xf32>
    %522 = arith.mulf %513, %463 : vector<4x32xf32>
    %523 = arith.mulf %507, %515 : vector<4x32xf32>
    %524 = arith.addf %522, %523 : vector<4x32xf32>
    %525 = math.tanh %524 : vector<4x32xf32>
    %526 = arith.mulf %521, %525 : vector<4x32xf32>
    %c0_197 = arith.constant 0 : index
    %c0_198 = arith.constant 0 : index
    %527 = vector.load %arg13[%c0_197, %c0_198] : memref<4x64xf32, #tpu.memory_space<vmem>>, vector<4x32xf32>
    tpu.vector_store %arg13[%c0_197, %c0_198], %499 {strides = array<i32>} : memref<4x64xf32, #tpu.memory_space<vmem>>, vector<4x32xf32>,
    %c0_199 = arith.constant 0 : index
    %c32_200 = arith.constant 32 : index
    %528 = vector.load %arg13[%c0_199, %c32_200] : memref<4x64xf32, #tpu.memory_space<vmem>>, vector<4x32xf32>
    tpu.vector_store %arg13[%c0_199, %c32_200], %526 {strides = array<i32>} : memref<4x64xf32, #tpu.memory_space<vmem>>, vector<4x32xf32>,
    %c8_201 = arith.constant 8 : index
    %c0_202 = arith.constant 0 : index
    %529 = vector.load %arg11[%c8_201, %c0_202] : memref<24x256xf32, #tpu.memory_space<vmem>>, vector<4x128xf32>
    %c12_203 = arith.constant 12 : index
    %c128_204 = arith.constant 128 : index
    %530 = vector.load %arg11[%c12_203, %c128_204] : memref<24x256xf32, #tpu.memory_space<vmem>>, vector<4x128xf32>
    %c0_205 = arith.constant 0 : index
    %c0_206 = arith.constant 0 : index
    %531 = vector.load %arg13[%c0_205, %c0_206] : memref<4x64xf32, #tpu.memory_space<vmem>>, vector<4x64xf32>
    %c0_207 = arith.constant 0 : index
    %c0_208 = arith.constant 0 : index
    %532 = vector.load %arg8[%c0_207, %c0_208] : memref<64x256xf32, #tpu.memory_space<vmem>>, vector<64x256xf32>
    %cst_209 = arith.constant dense<0.000000e+00> : vector<4x256xf32>
    %533 = tpu.matmul %531, %532, %cst_209 {dimension_numbers = #tpu.dot_dimension_numbers<[1], [0], [0], [1], [0, 0, 1, 1], [], []>} : vector<4x64xf32>, vector<64x256xf32>, vector<4x256xf32> -> vector<4x256xf32>
    %534 = vector.extract_strided_slice %533 {offsets = [0, 0], sizes = [4, 128], strides = [1, 1]} : vector<4x256xf32> to vector<4x128xf32>
    %535 = arith.addf %529, %534 : vector<4x128xf32>
    %536 = vector.extract_strided_slice %535 {offsets = [0, 0], sizes = [4, 32], strides = [1, 1]} : vector<4x128xf32> to vector<4x32xf32>
    %537 = arith.negf %536 : vector<4x32xf32>
    %538 = math.exp %537 : vector<4x32xf32>
    %cst_210 = arith.constant 1.000000e+00 : f32
    %539 = vector.broadcast %cst_210 : f32 to vector<4x32xf32>
    %540 = arith.addf %539, %538 : vector<4x32xf32>
    %541 = arith.divf %539, %540 : vector<4x32xf32>
    %542 = vector.extract_strided_slice %535 {offsets = [0, 32], sizes = [4, 32], strides = [1, 1]} : vector<4x128xf32> to vector<4x32xf32>
    %543 = arith.negf %542 : vector<4x32xf32>
    %544 = math.exp %543 : vector<4x32xf32>
    %cst_211 = arith.constant 1.000000e+00 : f32
    %545 = vector.broadcast %cst_211 : f32 to vector<4x32xf32>
    %546 = arith.addf %545, %544 : vector<4x32xf32>
    %547 = arith.divf %545, %546 : vector<4x32xf32>
    %548 = vector.extract_strided_slice %535 {offsets = [0, 64], sizes = [4, 32], strides = [1, 1]} : vector<4x128xf32> to vector<4x32xf32>
    %549 = math.tanh %548 : vector<4x32xf32>
    %550 = vector.extract_strided_slice %535 {offsets = [0, 96], sizes = [4, 32], strides = [1, 1]} : vector<4x128xf32> to vector<4x32xf32>
    %551 = arith.negf %550 : vector<4x32xf32>
    %552 = math.exp %551 : vector<4x32xf32>
    %cst_212 = arith.constant 1.000000e+00 : f32
    %553 = vector.broadcast %cst_212 : f32 to vector<4x32xf32>
    %554 = arith.addf %553, %552 : vector<4x32xf32>
    %555 = arith.divf %553, %554 : vector<4x32xf32>
    %556 = arith.mulf %547, %497 : vector<4x32xf32>
    %557 = arith.mulf %541, %549 : vector<4x32xf32>
    %558 = arith.addf %556, %557 : vector<4x32xf32>
    %559 = math.tanh %558 : vector<4x32xf32>
    %560 = arith.mulf %555, %559 : vector<4x32xf32>
    %561 = vector.extract_strided_slice %533 {offsets = [0, 128], sizes = [4, 128], strides = [1, 1]} : vector<4x256xf32> to vector<4x128xf32>
    %562 = arith.addf %530, %561 : vector<4x128xf32>
    %563 = vector.extract_strided_slice %562 {offsets = [0, 0], sizes = [4, 32], strides = [1, 1]} : vector<4x128xf32> to vector<4x32xf32>
    %564 = arith.negf %563 : vector<4x32xf32>
    %565 = math.exp %564 : vector<4x32xf32>
    %cst_213 = arith.constant 1.000000e+00 : f32
    %566 = vector.broadcast %cst_213 : f32 to vector<4x32xf32>
    %567 = arith.addf %566, %565 : vector<4x32xf32>
    %568 = arith.divf %566, %567 : vector<4x32xf32>
    %569 = vector.extract_strided_slice %562 {offsets = [0, 32], sizes = [4, 32], strides = [1, 1]} : vector<4x128xf32> to vector<4x32xf32>
    %570 = arith.negf %569 : vector<4x32xf32>
    %571 = math.exp %570 : vector<4x32xf32>
    %cst_214 = arith.constant 1.000000e+00 : f32
    %572 = vector.broadcast %cst_214 : f32 to vector<4x32xf32>
    %573 = arith.addf %572, %571 : vector<4x32xf32>
    %574 = arith.divf %572, %573 : vector<4x32xf32>
    %575 = vector.extract_strided_slice %562 {offsets = [0, 64], sizes = [4, 32], strides = [1, 1]} : vector<4x128xf32> to vector<4x32xf32>
    %576 = math.tanh %575 : vector<4x32xf32>
    %577 = vector.extract_strided_slice %562 {offsets = [0, 96], sizes = [4, 32], strides = [1, 1]} : vector<4x128xf32> to vector<4x32xf32>
    %578 = arith.negf %577 : vector<4x32xf32>
    %579 = math.exp %578 : vector<4x32xf32>
    %cst_215 = arith.constant 1.000000e+00 : f32
    %580 = vector.broadcast %cst_215 : f32 to vector<4x32xf32>
    %581 = arith.addf %580, %579 : vector<4x32xf32>
    %582 = arith.divf %580, %581 : vector<4x32xf32>
    %583 = arith.mulf %574, %524 : vector<4x32xf32>
    %584 = arith.mulf %568, %576 : vector<4x32xf32>
    %585 = arith.addf %583, %584 : vector<4x32xf32>
    %586 = math.tanh %585 : vector<4x32xf32>
    %587 = arith.mulf %582, %586 : vector<4x32xf32>
    %c0_216 = arith.constant 0 : index
    %c0_217 = arith.constant 0 : index
    %588 = vector.load %arg13[%c0_216, %c0_217] : memref<4x64xf32, #tpu.memory_space<vmem>>, vector<4x32xf32>
    tpu.vector_store %arg13[%c0_216, %c0_217], %560 {strides = array<i32>} : memref<4x64xf32, #tpu.memory_space<vmem>>, vector<4x32xf32>,
    %c0_218 = arith.constant 0 : index
    %c32_219 = arith.constant 32 : index
    %589 = vector.load %arg13[%c0_218, %c32_219] : memref<4x64xf32, #tpu.memory_space<vmem>>, vector<4x32xf32>
    tpu.vector_store %arg13[%c0_218, %c32_219], %587 {strides = array<i32>} : memref<4x64xf32, #tpu.memory_space<vmem>>, vector<4x32xf32>,
    %c12_220 = arith.constant 12 : index
    %c0_221 = arith.constant 0 : index
    %590 = vector.load %arg11[%c12_220, %c0_221] : memref<24x256xf32, #tpu.memory_space<vmem>>, vector<4x128xf32>
    %c8_222 = arith.constant 8 : index
    %c128_223 = arith.constant 128 : index
    %591 = vector.load %arg11[%c8_222, %c128_223] : memref<24x256xf32, #tpu.memory_space<vmem>>, vector<4x128xf32>
    %c0_224 = arith.constant 0 : index
    %c0_225 = arith.constant 0 : index
    %592 = vector.load %arg13[%c0_224, %c0_225] : memref<4x64xf32, #tpu.memory_space<vmem>>, vector<4x64xf32>
    %c0_226 = arith.constant 0 : index
    %c0_227 = arith.constant 0 : index
    %593 = vector.load %arg8[%c0_226, %c0_227] : memref<64x256xf32, #tpu.memory_space<vmem>>, vector<64x256xf32>
    %cst_228 = arith.constant dense<0.000000e+00> : vector<4x256xf32>
    %594 = tpu.matmul %592, %593, %cst_228 {dimension_numbers = #tpu.dot_dimension_numbers<[1], [0], [0], [1], [0, 0, 1, 1], [], []>} : vector<4x64xf32>, vector<64x256xf32>, vector<4x256xf32> -> vector<4x256xf32>
    %595 = vector.extract_strided_slice %594 {offsets = [0, 0], sizes = [4, 128], strides = [1, 1]} : vector<4x256xf32> to vector<4x128xf32>
    %596 = arith.addf %590, %595 : vector<4x128xf32>
    %597 = vector.extract_strided_slice %596 {offsets = [0, 0], sizes = [4, 32], strides = [1, 1]} : vector<4x128xf32> to vector<4x32xf32>
    %598 = arith.negf %597 : vector<4x32xf32>
    %599 = math.exp %598 : vector<4x32xf32>
    %cst_229 = arith.constant 1.000000e+00 : f32
    %600 = vector.broadcast %cst_229 : f32 to vector<4x32xf32>
    %601 = arith.addf %600, %599 : vector<4x32xf32>
    %602 = arith.divf %600, %601 : vector<4x32xf32>
    %603 = vector.extract_strided_slice %596 {offsets = [0, 32], sizes = [4, 32], strides = [1, 1]} : vector<4x128xf32> to vector<4x32xf32>
    %604 = arith.negf %603 : vector<4x32xf32>
    %605 = math.exp %604 : vector<4x32xf32>
    %cst_230 = arith.constant 1.000000e+00 : f32
    %606 = vector.broadcast %cst_230 : f32 to vector<4x32xf32>
    %607 = arith.addf %606, %605 : vector<4x32xf32>
    %608 = arith.divf %606, %607 : vector<4x32xf32>
    %609 = vector.extract_strided_slice %596 {offsets = [0, 64], sizes = [4, 32], strides = [1, 1]} : vector<4x128xf32> to vector<4x32xf32>
    %610 = math.tanh %609 : vector<4x32xf32>
    %611 = vector.extract_strided_slice %596 {offsets = [0, 96], sizes = [4, 32], strides = [1, 1]} : vector<4x128xf32> to vector<4x32xf32>
    %612 = arith.negf %611 : vector<4x32xf32>
    %613 = math.exp %612 : vector<4x32xf32>
    %cst_231 = arith.constant 1.000000e+00 : f32
    %614 = vector.broadcast %cst_231 : f32 to vector<4x32xf32>
    %615 = arith.addf %614, %613 : vector<4x32xf32>
    %616 = arith.divf %614, %615 : vector<4x32xf32>
    %617 = arith.mulf %608, %558 : vector<4x32xf32>
    %618 = arith.mulf %602, %610 : vector<4x32xf32>
    %619 = arith.addf %617, %618 : vector<4x32xf32>
    %620 = math.tanh %619 : vector<4x32xf32>
    %621 = arith.mulf %616, %620 : vector<4x32xf32>
    %622 = vector.extract_strided_slice %594 {offsets = [0, 128], sizes = [4, 128], strides = [1, 1]} : vector<4x256xf32> to vector<4x128xf32>
    %623 = arith.addf %591, %622 : vector<4x128xf32>
    %624 = vector.extract_strided_slice %623 {offsets = [0, 0], sizes = [4, 32], strides = [1, 1]} : vector<4x128xf32> to vector<4x32xf32>
    %625 = arith.negf %624 : vector<4x32xf32>
    %626 = math.exp %625 : vector<4x32xf32>
    %cst_232 = arith.constant 1.000000e+00 : f32
    %627 = vector.broadcast %cst_232 : f32 to vector<4x32xf32>
    %628 = arith.addf %627, %626 : vector<4x32xf32>
    %629 = arith.divf %627, %628 : vector<4x32xf32>
    %630 = vector.extract_strided_slice %623 {offsets = [0, 32], sizes = [4, 32], strides = [1, 1]} : vector<4x128xf32> to vector<4x32xf32>
    %631 = arith.negf %630 : vector<4x32xf32>
    %632 = math.exp %631 : vector<4x32xf32>
    %cst_233 = arith.constant 1.000000e+00 : f32
    %633 = vector.broadcast %cst_233 : f32 to vector<4x32xf32>
    %634 = arith.addf %633, %632 : vector<4x32xf32>
    %635 = arith.divf %633, %634 : vector<4x32xf32>
    %636 = vector.extract_strided_slice %623 {offsets = [0, 64], sizes = [4, 32], strides = [1, 1]} : vector<4x128xf32> to vector<4x32xf32>
    %637 = math.tanh %636 : vector<4x32xf32>
    %638 = vector.extract_strided_slice %623 {offsets = [0, 96], sizes = [4, 32], strides = [1, 1]} : vector<4x128xf32> to vector<4x32xf32>
    %639 = arith.negf %638 : vector<4x32xf32>
    %640 = math.exp %639 : vector<4x32xf32>
    %cst_234 = arith.constant 1.000000e+00 : f32
    %641 = vector.broadcast %cst_234 : f32 to vector<4x32xf32>
    %642 = arith.addf %641, %640 : vector<4x32xf32>
    %643 = arith.divf %641, %642 : vector<4x32xf32>
    %644 = arith.mulf %635, %585 : vector<4x32xf32>
    %645 = arith.mulf %629, %637 : vector<4x32xf32>
    %646 = arith.addf %644, %645 : vector<4x32xf32>
    %647 = math.tanh %646 : vector<4x32xf32>
    %648 = arith.mulf %643, %647 : vector<4x32xf32>
    %c0_235 = arith.constant 0 : index
    %c0_236 = arith.constant 0 : index
    %649 = vector.load %arg13[%c0_235, %c0_236] : memref<4x64xf32, #tpu.memory_space<vmem>>, vector<4x32xf32>
    tpu.vector_store %arg13[%c0_235, %c0_236], %621 {strides = array<i32>} : memref<4x64xf32, #tpu.memory_space<vmem>>, vector<4x32xf32>,
    %c0_237 = arith.constant 0 : index
    %c32_238 = arith.constant 32 : index
    %650 = vector.load %arg13[%c0_237, %c32_238] : memref<4x64xf32, #tpu.memory_space<vmem>>, vector<4x32xf32>
    tpu.vector_store %arg13[%c0_237, %c32_238], %648 {strides = array<i32>} : memref<4x64xf32, #tpu.memory_space<vmem>>, vector<4x32xf32>,
    %c16_239 = arith.constant 16 : index
    %c0_240 = arith.constant 0 : index
    %651 = vector.load %arg11[%c16_239, %c0_240] : memref<24x256xf32, #tpu.memory_space<vmem>>, vector<4x128xf32>
    %c4_241 = arith.constant 4 : index
    %c128_242 = arith.constant 128 : index
    %652 = vector.load %arg11[%c4_241, %c128_242] : memref<24x256xf32, #tpu.memory_space<vmem>>, vector<4x128xf32>
    %c0_243 = arith.constant 0 : index
    %c0_244 = arith.constant 0 : index
    %653 = vector.load %arg13[%c0_243, %c0_244] : memref<4x64xf32, #tpu.memory_space<vmem>>, vector<4x64xf32>
    %c0_245 = arith.constant 0 : index
    %c0_246 = arith.constant 0 : index
    %654 = vector.load %arg8[%c0_245, %c0_246] : memref<64x256xf32, #tpu.memory_space<vmem>>, vector<64x256xf32>
    %cst_247 = arith.constant dense<0.000000e+00> : vector<4x256xf32>
    %655 = tpu.matmul %653, %654, %cst_247 {dimension_numbers = #tpu.dot_dimension_numbers<[1], [0], [0], [1], [0, 0, 1, 1], [], []>} : vector<4x64xf32>, vector<64x256xf32>, vector<4x256xf32> -> vector<4x256xf32>
    %656 = vector.extract_strided_slice %655 {offsets = [0, 0], sizes = [4, 128], strides = [1, 1]} : vector<4x256xf32> to vector<4x128xf32>
    %657 = arith.addf %651, %656 : vector<4x128xf32>
    %658 = vector.extract_strided_slice %657 {offsets = [0, 0], sizes = [4, 32], strides = [1, 1]} : vector<4x128xf32> to vector<4x32xf32>
    %659 = arith.negf %658 : vector<4x32xf32>
    %660 = math.exp %659 : vector<4x32xf32>
    %cst_248 = arith.constant 1.000000e+00 : f32
    %661 = vector.broadcast %cst_248 : f32 to vector<4x32xf32>
    %662 = arith.addf %661, %660 : vector<4x32xf32>
    %663 = arith.divf %661, %662 : vector<4x32xf32>
    %664 = vector.extract_strided_slice %657 {offsets = [0, 32], sizes = [4, 32], strides = [1, 1]} : vector<4x128xf32> to vector<4x32xf32>
    %665 = arith.negf %664 : vector<4x32xf32>
    %666 = math.exp %665 : vector<4x32xf32>
    %cst_249 = arith.constant 1.000000e+00 : f32
    %667 = vector.broadcast %cst_249 : f32 to vector<4x32xf32>
    %668 = arith.addf %667, %666 : vector<4x32xf32>
    %669 = arith.divf %667, %668 : vector<4x32xf32>
    %670 = vector.extract_strided_slice %657 {offsets = [0, 64], sizes = [4, 32], strides = [1, 1]} : vector<4x128xf32> to vector<4x32xf32>
    %671 = math.tanh %670 : vector<4x32xf32>
    %672 = vector.extract_strided_slice %657 {offsets = [0, 96], sizes = [4, 32], strides = [1, 1]} : vector<4x128xf32> to vector<4x32xf32>
    %673 = arith.negf %672 : vector<4x32xf32>
    %674 = math.exp %673 : vector<4x32xf32>
    %cst_250 = arith.constant 1.000000e+00 : f32
    %675 = vector.broadcast %cst_250 : f32 to vector<4x32xf32>
    %676 = arith.addf %675, %674 : vector<4x32xf32>
    %677 = arith.divf %675, %676 : vector<4x32xf32>
    %678 = arith.mulf %669, %619 : vector<4x32xf32>
    %679 = arith.mulf %663, %671 : vector<4x32xf32>
    %680 = arith.addf %678, %679 : vector<4x32xf32>
    %681 = math.tanh %680 : vector<4x32xf32>
    %682 = arith.mulf %677, %681 : vector<4x32xf32>
    %683 = vector.extract_strided_slice %655 {offsets = [0, 128], sizes = [4, 128], strides = [1, 1]} : vector<4x256xf32> to vector<4x128xf32>
    %684 = arith.addf %652, %683 : vector<4x128xf32>
    %685 = vector.extract_strided_slice %684 {offsets = [0, 0], sizes = [4, 32], strides = [1, 1]} : vector<4x128xf32> to vector<4x32xf32>
    %686 = arith.negf %685 : vector<4x32xf32>
    %687 = math.exp %686 : vector<4x32xf32>
    %cst_251 = arith.constant 1.000000e+00 : f32
    %688 = vector.broadcast %cst_251 : f32 to vector<4x32xf32>
    %689 = arith.addf %688, %687 : vector<4x32xf32>
    %690 = arith.divf %688, %689 : vector<4x32xf32>
    %691 = vector.extract_strided_slice %684 {offsets = [0, 32], sizes = [4, 32], strides = [1, 1]} : vector<4x128xf32> to vector<4x32xf32>
    %692 = arith.negf %691 : vector<4x32xf32>
    %693 = math.exp %692 : vector<4x32xf32>
    %cst_252 = arith.constant 1.000000e+00 : f32
    %694 = vector.broadcast %cst_252 : f32 to vector<4x32xf32>
    %695 = arith.addf %694, %693 : vector<4x32xf32>
    %696 = arith.divf %694, %695 : vector<4x32xf32>
    %697 = vector.extract_strided_slice %684 {offsets = [0, 64], sizes = [4, 32], strides = [1, 1]} : vector<4x128xf32> to vector<4x32xf32>
    %698 = math.tanh %697 : vector<4x32xf32>
    %699 = vector.extract_strided_slice %684 {offsets = [0, 96], sizes = [4, 32], strides = [1, 1]} : vector<4x128xf32> to vector<4x32xf32>
    %700 = arith.negf %699 : vector<4x32xf32>
    %701 = math.exp %700 : vector<4x32xf32>
    %cst_253 = arith.constant 1.000000e+00 : f32
    %702 = vector.broadcast %cst_253 : f32 to vector<4x32xf32>
    %703 = arith.addf %702, %701 : vector<4x32xf32>
    %704 = arith.divf %702, %703 : vector<4x32xf32>
    %705 = arith.mulf %696, %646 : vector<4x32xf32>
    %706 = arith.mulf %690, %698 : vector<4x32xf32>
    %707 = arith.addf %705, %706 : vector<4x32xf32>
    %708 = math.tanh %707 : vector<4x32xf32>
    %709 = arith.mulf %704, %708 : vector<4x32xf32>
    %c0_254 = arith.constant 0 : index
    %c0_255 = arith.constant 0 : index
    %710 = vector.load %arg13[%c0_254, %c0_255] : memref<4x64xf32, #tpu.memory_space<vmem>>, vector<4x32xf32>
    tpu.vector_store %arg13[%c0_254, %c0_255], %682 {strides = array<i32>} : memref<4x64xf32, #tpu.memory_space<vmem>>, vector<4x32xf32>,
    %c0_256 = arith.constant 0 : index
    %c32_257 = arith.constant 32 : index
    %711 = vector.load %arg13[%c0_256, %c32_257] : memref<4x64xf32, #tpu.memory_space<vmem>>, vector<4x32xf32>
    tpu.vector_store %arg13[%c0_256, %c32_257], %709 {strides = array<i32>} : memref<4x64xf32, #tpu.memory_space<vmem>>, vector<4x32xf32>,
    %c20_258 = arith.constant 20 : index
    %c0_259 = arith.constant 0 : index
    %712 = vector.load %arg11[%c20_258, %c0_259] : memref<24x256xf32, #tpu.memory_space<vmem>>, vector<4x128xf32>
    %c0_260 = arith.constant 0 : index
    %c128_261 = arith.constant 128 : index
    %713 = vector.load %arg11[%c0_260, %c128_261] : memref<24x256xf32, #tpu.memory_space<vmem>>, vector<4x128xf32>
    %c0_262 = arith.constant 0 : index
    %c0_263 = arith.constant 0 : index
    %714 = vector.load %arg13[%c0_262, %c0_263] : memref<4x64xf32, #tpu.memory_space<vmem>>, vector<4x64xf32>
    %c0_264 = arith.constant 0 : index
    %c0_265 = arith.constant 0 : index
    %715 = vector.load %arg8[%c0_264, %c0_265] : memref<64x256xf32, #tpu.memory_space<vmem>>, vector<64x256xf32>
    %cst_266 = arith.constant dense<0.000000e+00> : vector<4x256xf32>
    %716 = tpu.matmul %714, %715, %cst_266 {dimension_numbers = #tpu.dot_dimension_numbers<[1], [0], [0], [1], [0, 0, 1, 1], [], []>} : vector<4x64xf32>, vector<64x256xf32>, vector<4x256xf32> -> vector<4x256xf32>
    %717 = vector.extract_strided_slice %716 {offsets = [0, 0], sizes = [4, 128], strides = [1, 1]} : vector<4x256xf32> to vector<4x128xf32>
    %718 = arith.addf %712, %717 : vector<4x128xf32>
    %719 = vector.extract_strided_slice %718 {offsets = [0, 0], sizes = [4, 32], strides = [1, 1]} : vector<4x128xf32> to vector<4x32xf32>
    %720 = arith.negf %719 : vector<4x32xf32>
    %721 = math.exp %720 : vector<4x32xf32>
    %cst_267 = arith.constant 1.000000e+00 : f32
    %722 = vector.broadcast %cst_267 : f32 to vector<4x32xf32>
    %723 = arith.addf %722, %721 : vector<4x32xf32>
    %724 = arith.divf %722, %723 : vector<4x32xf32>
    %725 = vector.extract_strided_slice %718 {offsets = [0, 32], sizes = [4, 32], strides = [1, 1]} : vector<4x128xf32> to vector<4x32xf32>
    %726 = arith.negf %725 : vector<4x32xf32>
    %727 = math.exp %726 : vector<4x32xf32>
    %cst_268 = arith.constant 1.000000e+00 : f32
    %728 = vector.broadcast %cst_268 : f32 to vector<4x32xf32>
    %729 = arith.addf %728, %727 : vector<4x32xf32>
    %730 = arith.divf %728, %729 : vector<4x32xf32>
    %731 = vector.extract_strided_slice %718 {offsets = [0, 64], sizes = [4, 32], strides = [1, 1]} : vector<4x128xf32> to vector<4x32xf32>
    %732 = math.tanh %731 : vector<4x32xf32>
    %733 = vector.extract_strided_slice %718 {offsets = [0, 96], sizes = [4, 32], strides = [1, 1]} : vector<4x128xf32> to vector<4x32xf32>
    %734 = arith.negf %733 : vector<4x32xf32>
    %735 = math.exp %734 : vector<4x32xf32>
    %cst_269 = arith.constant 1.000000e+00 : f32
    %736 = vector.broadcast %cst_269 : f32 to vector<4x32xf32>
    %737 = arith.addf %736, %735 : vector<4x32xf32>
    %738 = arith.divf %736, %737 : vector<4x32xf32>
    %739 = arith.mulf %730, %680 : vector<4x32xf32>
    %740 = arith.mulf %724, %732 : vector<4x32xf32>
    %741 = arith.addf %739, %740 : vector<4x32xf32>
    %742 = math.tanh %741 : vector<4x32xf32>
    %743 = arith.mulf %738, %742 : vector<4x32xf32>
    %744 = vector.extract_strided_slice %716 {offsets = [0, 128], sizes = [4, 128], strides = [1, 1]} : vector<4x256xf32> to vector<4x128xf32>
    %745 = arith.addf %713, %744 : vector<4x128xf32>
    %746 = vector.extract_strided_slice %745 {offsets = [0, 0], sizes = [4, 32], strides = [1, 1]} : vector<4x128xf32> to vector<4x32xf32>
    %747 = arith.negf %746 : vector<4x32xf32>
    %748 = math.exp %747 : vector<4x32xf32>
    %cst_270 = arith.constant 1.000000e+00 : f32
    %749 = vector.broadcast %cst_270 : f32 to vector<4x32xf32>
    %750 = arith.addf %749, %748 : vector<4x32xf32>
    %751 = arith.divf %749, %750 : vector<4x32xf32>
    %752 = vector.extract_strided_slice %745 {offsets = [0, 32], sizes = [4, 32], strides = [1, 1]} : vector<4x128xf32> to vector<4x32xf32>
    %753 = arith.negf %752 : vector<4x32xf32>
    %754 = math.exp %753 : vector<4x32xf32>
    %cst_271 = arith.constant 1.000000e+00 : f32
    %755 = vector.broadcast %cst_271 : f32 to vector<4x32xf32>
    %756 = arith.addf %755, %754 : vector<4x32xf32>
    %757 = arith.divf %755, %756 : vector<4x32xf32>
    %758 = vector.extract_strided_slice %745 {offsets = [0, 64], sizes = [4, 32], strides = [1, 1]} : vector<4x128xf32> to vector<4x32xf32>
    %759 = math.tanh %758 : vector<4x32xf32>
    %760 = vector.extract_strided_slice %745 {offsets = [0, 96], sizes = [4, 32], strides = [1, 1]} : vector<4x128xf32> to vector<4x32xf32>
    %761 = arith.negf %760 : vector<4x32xf32>
    %762 = math.exp %761 : vector<4x32xf32>
    %cst_272 = arith.constant 1.000000e+00 : f32
    %763 = vector.broadcast %cst_272 : f32 to vector<4x32xf32>
    %764 = arith.addf %763, %762 : vector<4x32xf32>
    %765 = arith.divf %763, %764 : vector<4x32xf32>
    %766 = arith.mulf %757, %707 : vector<4x32xf32>
    %767 = arith.mulf %751, %759 : vector<4x32xf32>
    %768 = arith.addf %766, %767 : vector<4x32xf32>
    %769 = math.tanh %768 : vector<4x32xf32>
    %770 = arith.mulf %765, %769 : vector<4x32xf32>
    %c0_273 = arith.constant 0 : index
    %c0_274 = arith.constant 0 : index
    %771 = vector.load %arg13[%c0_273, %c0_274] : memref<4x64xf32, #tpu.memory_space<vmem>>, vector<4x32xf32>
    tpu.vector_store %arg13[%c0_273, %c0_274], %743 {strides = array<i32>} : memref<4x64xf32, #tpu.memory_space<vmem>>, vector<4x32xf32>,
    %c0_275 = arith.constant 0 : index
    %c32_276 = arith.constant 32 : index
    %772 = vector.load %arg13[%c0_275, %c32_276] : memref<4x64xf32, #tpu.memory_space<vmem>>, vector<4x32xf32>
    tpu.vector_store %arg13[%c0_275, %c32_276], %770 {strides = array<i32>} : memref<4x64xf32, #tpu.memory_space<vmem>>, vector<4x32xf32>,
    %c0_277 = arith.constant 0 : index
    %c0_278 = arith.constant 0 : index
    %773 = vector.load %arg10[%c0_277, %c0_278] : memref<4x64xf32, #tpu.memory_space<vmem>>, vector<4x32xf32>
    tpu.vector_store %arg10[%c0_277, %c0_278], %770 {strides = array<i32>} : memref<4x64xf32, #tpu.memory_space<vmem>>, vector<4x32xf32>,
    %c0_279 = arith.constant 0 : index
    %c32_280 = arith.constant 32 : index
    %774 = vector.load %arg10[%c0_279, %c32_280] : memref<4x64xf32, #tpu.memory_space<vmem>>, vector<4x32xf32>
    tpu.vector_store %arg10[%c0_279, %c32_280], %743 {strides = array<i32>} : memref<4x64xf32, #tpu.memory_space<vmem>>, vector<4x32xf32>,
    return
  }
  func.func @transform_0(%arg0: i32) -> (i32, i32) {
    %c0_i32 = arith.constant 0 : i32
    %c0_i32_0 = arith.constant 0 : i32
    %c0_i32_1 = arith.constant 0 : i32
    return %c0_i32, %c0_i32_0 : i32, i32
  }
  func.func @transform_1(%arg0: i32) -> (i32, i32) {
    %c0_i32 = arith.constant 0 : i32
    %c0_i32_0 = arith.constant 0 : i32
    %c0_i32_1 = arith.constant 0 : i32
    return %c0_i32, %c0_i32_0 : i32, i32
  }
  func.func @transform_2(%arg0: i32) -> (i32, i32) {
    %c0_i32 = arith.constant 0 : i32
    %c0_i32_0 = arith.constant 0 : i32
    %c0_i32_1 = arith.constant 0 : i32
    return %c0_i32, %c0_i32_0 : i32, i32
  }
  func.func @transform_3(%arg0: i32) -> (i32, i32) {
    %c0_i32 = arith.constant 0 : i32
    %c0_i32_0 = arith.constant 0 : i32
    %c0_i32_1 = arith.constant 0 : i32
    return %c0_i32, %c0_i32_0 : i32, i32
  }
  func.func @transform_4(%arg0: i32) -> (i32, i32) {
    %c0_i32 = arith.constant 0 : i32
    %c0_i32_0 = arith.constant 0 : i32
    %c0_i32_1 = arith.constant 0 : i32
    return %c0_i32, %c0_i32_0 : i32, i32
  }
  func.func @transform_5(%arg0: i32) -> (i32, i32) {
    %c0_i32 = arith.constant 0 : i32
    %c0_i32_0 = arith.constant 0 : i32
    %c0_i32_1 = arith.constant 0 : i32
    return %c0_i32, %c0_i32_0 : i32, i32
  }
  func.func @transform_6(%arg0: i32) -> (i32, i32) {
    %c0_i32 = arith.constant 0 : i32
    %c0_i32_0 = arith.constant 0 : i32
    %c0_i32_1 = arith.constant 0 : i32
    return %c0_i32, %c0_i32_0 : i32, i32
  }
  func.func @transform_7(%arg0: i32) -> (i32, i32) {
    %c0_i32 = arith.constant 0 : i32
    %c0_i32_0 = arith.constant 0 : i32
    %c0_i32_1 = arith.constant 0 : i32
    return %c0_i32, %c0_i32_0 : i32, i32
  }
  func.func @transform_8(%arg0: i32) -> (i32, i32) {
    %c0_i32 = arith.constant 0 : i32
    %c0_i32_0 = arith.constant 0 : i32
    %c0_i32_1 = arith.constant 0 : i32
    return %c0_i32, %c0_i32_0 : i32, i32
  }
  func.func @transform_9(%arg0: i32) -> (i32, i32) {
    %c0_i32 = arith.constant 0 : i32
    %c0_i32_0 = arith.constant 0 : i32
    %c0_i32_1 = arith.constant 0 : i32
    return %c0_i32, %c0_i32_0 : i32, i32
  }
}

module attributes {stable_mosaic.version = 11 : i64} {
  func.func @kernel(%arg0: i32, %arg1: memref<32x16xf32, #tpu.memory_space<vmem>>, %arg2: memref<16x32xf32, #tpu.memory_space<vmem>>, %arg3: memref<1x32xf32, #tpu.memory_space<vmem>>, %arg4: memref<32x256xf32, #tpu.memory_space<vmem>>, %arg5: memref<64x256xf32, #tpu.memory_space<vmem>>, %arg6: memref<1x256xf32, #tpu.memory_space<vmem>>, %arg7: memref<64x256xf32, #tpu.memory_space<vmem>>, %arg8: memref<64x256xf32, #tpu.memory_space<vmem>>, %arg9: memref<1x256xf32, #tpu.memory_space<vmem>>, %arg10: memref<4x64xf32, #tpu.memory_space<vmem>>, %arg11: memref<32x256xf32, #tpu.memory_space<vmem>>, %arg12: memref<32x64xf32, #tpu.memory_space<vmem>>, %arg13: memref<4x64xf32, #tpu.memory_space<vmem>>) attributes {dimension_semantics = [#tpu.dimension_semantics<arbitrary>], iteration_bounds = array<i64: 1>, scalar_prefetch = 0 : i64, scratch_operands = 3 : i64, tpu.core_type = #tpu.core_type<tc>, window_params = [{pipeline_mode = #tpu.pipeline_mode<synchronous>, transform_indices = @transform_0, window_bounds = array<i64: 32, 16>}, {pipeline_mode = #tpu.pipeline_mode<synchronous>, transform_indices = @transform_1, window_bounds = array<i64: 16, 32>}, {pipeline_mode = #tpu.pipeline_mode<synchronous>, transform_indices = @transform_2, window_bounds = array<i64: 1, 32>}, {pipeline_mode = #tpu.pipeline_mode<synchronous>, transform_indices = @transform_3, window_bounds = array<i64: 32, 256>}, {pipeline_mode = #tpu.pipeline_mode<synchronous>, transform_indices = @transform_4, window_bounds = array<i64: 64, 256>}, {pipeline_mode = #tpu.pipeline_mode<synchronous>, transform_indices = @transform_5, window_bounds = array<i64: 1, 256>}, {pipeline_mode = #tpu.pipeline_mode<synchronous>, transform_indices = @transform_6, window_bounds = array<i64: 64, 256>}, {pipeline_mode = #tpu.pipeline_mode<synchronous>, transform_indices = @transform_7, window_bounds = array<i64: 64, 256>}, {pipeline_mode = #tpu.pipeline_mode<synchronous>, transform_indices = @transform_8, window_bounds = array<i64: 1, 256>}, {pipeline_mode = #tpu.pipeline_mode<synchronous>, transform_indices = @transform_9, window_bounds = array<i64: 4, 64>}]} {
    %c0 = arith.constant 0 : index
    %c0_0 = arith.constant 0 : index
    %0 = vector.load %arg1[%c0, %c0_0] : memref<32x16xf32, #tpu.memory_space<vmem>>, vector<32x16xf32>
    %c0_1 = arith.constant 0 : index
    %c0_2 = arith.constant 0 : index
    %1 = vector.load %arg2[%c0_1, %c0_2] : memref<16x32xf32, #tpu.memory_space<vmem>>, vector<16x32xf32>
    %cst = arith.constant dense<0.000000e+00> : vector<32x32xf32>
    %2 = tpu.matmul %0, %1, %cst {dimension_numbers = #tpu.dot_dimension_numbers<[1], [0], [0], [1], [0, 0, 1, 1], [], []>} : vector<32x16xf32>, vector<16x32xf32>, vector<32x32xf32> -> vector<32x32xf32>
    %c0_3 = arith.constant 0 : index
    %c0_4 = arith.constant 0 : index
    %3 = vector.load %arg3[%c0_3, %c0_4] : memref<1x32xf32, #tpu.memory_space<vmem>>, vector<1x32xf32>
    %4 = vector.broadcast %3 : vector<1x32xf32> to vector<32x32xf32>
    %5 = arith.addf %2, %4 : vector<32x32xf32>
    %cst_5 = arith.constant 0.000000e+00 : f32
    %6 = vector.broadcast %cst_5 : f32 to vector<32x32xf32>
    %7 = arith.maximumf %5, %6 : vector<32x32xf32>
    %c0_6 = arith.constant 0 : index
    %c0_7 = arith.constant 0 : index
    %8 = vector.load %arg4[%c0_6, %c0_7] : memref<32x256xf32, #tpu.memory_space<vmem>>, vector<32x256xf32>
    %cst_8 = arith.constant dense<0.000000e+00> : vector<32x256xf32>
    %9 = tpu.matmul %7, %8, %cst_8 {dimension_numbers = #tpu.dot_dimension_numbers<[1], [0], [0], [1], [0, 0, 1, 1], [], []>} : vector<32x32xf32>, vector<32x256xf32>, vector<32x256xf32> -> vector<32x256xf32>
    %c0_9 = arith.constant 0 : index
    %c0_10 = arith.constant 0 : index
    %10 = vector.load %arg6[%c0_9, %c0_10] : memref<1x256xf32, #tpu.memory_space<vmem>>, vector<1x256xf32>
    %11 = vector.broadcast %10 : vector<1x256xf32> to vector<32x256xf32>
    %12 = arith.addf %9, %11 : vector<32x256xf32>
    %c0_11 = arith.constant 0 : index
    %c0_12 = arith.constant 0 : index
    %13 = vector.load %arg11[%c0_11, %c0_12] : memref<32x256xf32, #tpu.memory_space<vmem>>, vector<32x256xf32>
    tpu.vector_store %arg11[%c0_11, %c0_12], %12 {strides = array<i32>} : memref<32x256xf32, #tpu.memory_space<vmem>>, vector<32x256xf32>,
    %cst_13 = arith.constant 0.000000e+00 : f32
    %14 = vector.broadcast %cst_13 : f32 to vector<4x64xf32>
    %c0_14 = arith.constant 0 : index
    %c0_15 = arith.constant 0 : index
    %15 = vector.load %arg13[%c0_14, %c0_15] : memref<4x64xf32, #tpu.memory_space<vmem>>, vector<4x64xf32>
    tpu.vector_store %arg13[%c0_14, %c0_15], %14 {strides = array<i32>} : memref<4x64xf32, #tpu.memory_space<vmem>>, vector<4x64xf32>,
    %cst_16 = arith.constant 0.000000e+00 : f32
    %16 = vector.broadcast %cst_16 : f32 to vector<4x32xf32>
    %cst_17 = arith.constant 0.000000e+00 : f32
    %17 = vector.broadcast %cst_17 : f32 to vector<4x32xf32>
    %c0_18 = arith.constant 0 : index
    %c0_19 = arith.constant 0 : index
    %18 = vector.load %arg11[%c0_18, %c0_19] : memref<32x256xf32, #tpu.memory_space<vmem>>, vector<4x128xf32>
    %c28 = arith.constant 28 : index
    %c128 = arith.constant 128 : index
    %19 = vector.load %arg11[%c28, %c128] : memref<32x256xf32, #tpu.memory_space<vmem>>, vector<4x128xf32>
    %c0_20 = arith.constant 0 : index
    %c0_21 = arith.constant 0 : index
    %20 = vector.load %arg13[%c0_20, %c0_21] : memref<4x64xf32, #tpu.memory_space<vmem>>, vector<4x64xf32>
    %c0_22 = arith.constant 0 : index
    %c0_23 = arith.constant 0 : index
    %21 = vector.load %arg5[%c0_22, %c0_23] : memref<64x256xf32, #tpu.memory_space<vmem>>, vector<64x256xf32>
    %cst_24 = arith.constant dense<0.000000e+00> : vector<4x256xf32>
    %22 = tpu.matmul %20, %21, %cst_24 {dimension_numbers = #tpu.dot_dimension_numbers<[1], [0], [0], [1], [0, 0, 1, 1], [], []>} : vector<4x64xf32>, vector<64x256xf32>, vector<4x256xf32> -> vector<4x256xf32>
    %23 = vector.extract_strided_slice %22 {offsets = [0, 0], sizes = [4, 128], strides = [1, 1]} : vector<4x256xf32> to vector<4x128xf32>
    %24 = arith.addf %18, %23 : vector<4x128xf32>
    %25 = vector.extract_strided_slice %24 {offsets = [0, 0], sizes = [4, 32], strides = [1, 1]} : vector<4x128xf32> to vector<4x32xf32>
    %26 = arith.negf %25 : vector<4x32xf32>
    %27 = math.exp %26 : vector<4x32xf32>
    %cst_25 = arith.constant 1.000000e+00 : f32
    %28 = vector.broadcast %cst_25 : f32 to vector<4x32xf32>
    %29 = arith.addf %28, %27 : vector<4x32xf32>
    %30 = arith.divf %28, %29 : vector<4x32xf32>
    %31 = vector.extract_strided_slice %24 {offsets = [0, 32], sizes = [4, 32], strides = [1, 1]} : vector<4x128xf32> to vector<4x32xf32>
    %32 = arith.negf %31 : vector<4x32xf32>
    %33 = math.exp %32 : vector<4x32xf32>
    %cst_26 = arith.constant 1.000000e+00 : f32
    %34 = vector.broadcast %cst_26 : f32 to vector<4x32xf32>
    %35 = arith.addf %34, %33 : vector<4x32xf32>
    %36 = arith.divf %34, %35 : vector<4x32xf32>
    %37 = vector.extract_strided_slice %24 {offsets = [0, 64], sizes = [4, 32], strides = [1, 1]} : vector<4x128xf32> to vector<4x32xf32>
    %38 = math.tanh %37 : vector<4x32xf32>
    %39 = vector.extract_strided_slice %24 {offsets = [0, 96], sizes = [4, 32], strides = [1, 1]} : vector<4x128xf32> to vector<4x32xf32>
    %40 = arith.negf %39 : vector<4x32xf32>
    %41 = math.exp %40 : vector<4x32xf32>
    %cst_27 = arith.constant 1.000000e+00 : f32
    %42 = vector.broadcast %cst_27 : f32 to vector<4x32xf32>
    %43 = arith.addf %42, %41 : vector<4x32xf32>
    %44 = arith.divf %42, %43 : vector<4x32xf32>
    %45 = arith.mulf %36, %16 : vector<4x32xf32>
    %46 = arith.mulf %30, %38 : vector<4x32xf32>
    %47 = arith.addf %45, %46 : vector<4x32xf32>
    %48 = math.tanh %47 : vector<4x32xf32>
    %49 = arith.mulf %44, %48 : vector<4x32xf32>
    %50 = vector.extract_strided_slice %22 {offsets = [0, 128], sizes = [4, 128], strides = [1, 1]} : vector<4x256xf32> to vector<4x128xf32>
    %51 = arith.addf %19, %50 : vector<4x128xf32>
    %52 = vector.extract_strided_slice %51 {offsets = [0, 0], sizes = [4, 32], strides = [1, 1]} : vector<4x128xf32> to vector<4x32xf32>
    %53 = arith.negf %52 : vector<4x32xf32>
    %54 = math.exp %53 : vector<4x32xf32>
    %cst_28 = arith.constant 1.000000e+00 : f32
    %55 = vector.broadcast %cst_28 : f32 to vector<4x32xf32>
    %56 = arith.addf %55, %54 : vector<4x32xf32>
    %57 = arith.divf %55, %56 : vector<4x32xf32>
    %58 = vector.extract_strided_slice %51 {offsets = [0, 32], sizes = [4, 32], strides = [1, 1]} : vector<4x128xf32> to vector<4x32xf32>
    %59 = arith.negf %58 : vector<4x32xf32>
    %60 = math.exp %59 : vector<4x32xf32>
    %cst_29 = arith.constant 1.000000e+00 : f32
    %61 = vector.broadcast %cst_29 : f32 to vector<4x32xf32>
    %62 = arith.addf %61, %60 : vector<4x32xf32>
    %63 = arith.divf %61, %62 : vector<4x32xf32>
    %64 = vector.extract_strided_slice %51 {offsets = [0, 64], sizes = [4, 32], strides = [1, 1]} : vector<4x128xf32> to vector<4x32xf32>
    %65 = math.tanh %64 : vector<4x32xf32>
    %66 = vector.extract_strided_slice %51 {offsets = [0, 96], sizes = [4, 32], strides = [1, 1]} : vector<4x128xf32> to vector<4x32xf32>
    %67 = arith.negf %66 : vector<4x32xf32>
    %68 = math.exp %67 : vector<4x32xf32>
    %cst_30 = arith.constant 1.000000e+00 : f32
    %69 = vector.broadcast %cst_30 : f32 to vector<4x32xf32>
    %70 = arith.addf %69, %68 : vector<4x32xf32>
    %71 = arith.divf %69, %70 : vector<4x32xf32>
    %72 = arith.mulf %63, %17 : vector<4x32xf32>
    %73 = arith.mulf %57, %65 : vector<4x32xf32>
    %74 = arith.addf %72, %73 : vector<4x32xf32>
    %75 = math.tanh %74 : vector<4x32xf32>
    %76 = arith.mulf %71, %75 : vector<4x32xf32>
    %c0_31 = arith.constant 0 : index
    %c0_32 = arith.constant 0 : index
    %77 = vector.load %arg13[%c0_31, %c0_32] : memref<4x64xf32, #tpu.memory_space<vmem>>, vector<4x32xf32>
    tpu.vector_store %arg13[%c0_31, %c0_32], %49 {strides = array<i32>} : memref<4x64xf32, #tpu.memory_space<vmem>>, vector<4x32xf32>,
    %c0_33 = arith.constant 0 : index
    %c32 = arith.constant 32 : index
    %78 = vector.load %arg13[%c0_33, %c32] : memref<4x64xf32, #tpu.memory_space<vmem>>, vector<4x32xf32>
    tpu.vector_store %arg13[%c0_33, %c32], %76 {strides = array<i32>} : memref<4x64xf32, #tpu.memory_space<vmem>>, vector<4x32xf32>,
    %c0_34 = arith.constant 0 : index
    %c0_35 = arith.constant 0 : index
    %79 = vector.load %arg12[%c0_34, %c0_35] : memref<32x64xf32, #tpu.memory_space<vmem>>, vector<4x32xf32>
    tpu.vector_store %arg12[%c0_34, %c0_35], %49 {strides = array<i32>} : memref<32x64xf32, #tpu.memory_space<vmem>>, vector<4x32xf32>,
    %c28_36 = arith.constant 28 : index
    %c32_37 = arith.constant 32 : index
    %80 = vector.load %arg12[%c28_36, %c32_37] : memref<32x64xf32, #tpu.memory_space<vmem>>, vector<4x32xf32>
    tpu.vector_store %arg12[%c28_36, %c32_37], %76 {strides = array<i32>} : memref<32x64xf32, #tpu.memory_space<vmem>>, vector<4x32xf32>,
    %c4 = arith.constant 4 : index
    %c0_38 = arith.constant 0 : index
    %81 = vector.load %arg11[%c4, %c0_38] : memref<32x256xf32, #tpu.memory_space<vmem>>, vector<4x128xf32>
    %c24 = arith.constant 24 : index
    %c128_39 = arith.constant 128 : index
    %82 = vector.load %arg11[%c24, %c128_39] : memref<32x256xf32, #tpu.memory_space<vmem>>, vector<4x128xf32>
    %c0_40 = arith.constant 0 : index
    %c0_41 = arith.constant 0 : index
    %83 = vector.load %arg13[%c0_40, %c0_41] : memref<4x64xf32, #tpu.memory_space<vmem>>, vector<4x64xf32>
    %c0_42 = arith.constant 0 : index
    %c0_43 = arith.constant 0 : index
    %84 = vector.load %arg5[%c0_42, %c0_43] : memref<64x256xf32, #tpu.memory_space<vmem>>, vector<64x256xf32>
    %cst_44 = arith.constant dense<0.000000e+00> : vector<4x256xf32>
    %85 = tpu.matmul %83, %84, %cst_44 {dimension_numbers = #tpu.dot_dimension_numbers<[1], [0], [0], [1], [0, 0, 1, 1], [], []>} : vector<4x64xf32>, vector<64x256xf32>, vector<4x256xf32> -> vector<4x256xf32>
    %86 = vector.extract_strided_slice %85 {offsets = [0, 0], sizes = [4, 128], strides = [1, 1]} : vector<4x256xf32> to vector<4x128xf32>
    %87 = arith.addf %81, %86 : vector<4x128xf32>
    %88 = vector.extract_strided_slice %87 {offsets = [0, 0], sizes = [4, 32], strides = [1, 1]} : vector<4x128xf32> to vector<4x32xf32>
    %89 = arith.negf %88 : vector<4x32xf32>
    %90 = math.exp %89 : vector<4x32xf32>
    %cst_45 = arith.constant 1.000000e+00 : f32
    %91 = vector.broadcast %cst_45 : f32 to vector<4x32xf32>
    %92 = arith.addf %91, %90 : vector<4x32xf32>
    %93 = arith.divf %91, %92 : vector<4x32xf32>
    %94 = vector.extract_strided_slice %87 {offsets = [0, 32], sizes = [4, 32], strides = [1, 1]} : vector<4x128xf32> to vector<4x32xf32>
    %95 = arith.negf %94 : vector<4x32xf32>
    %96 = math.exp %95 : vector<4x32xf32>
    %cst_46 = arith.constant 1.000000e+00 : f32
    %97 = vector.broadcast %cst_46 : f32 to vector<4x32xf32>
    %98 = arith.addf %97, %96 : vector<4x32xf32>
    %99 = arith.divf %97, %98 : vector<4x32xf32>
    %100 = vector.extract_strided_slice %87 {offsets = [0, 64], sizes = [4, 32], strides = [1, 1]} : vector<4x128xf32> to vector<4x32xf32>
    %101 = math.tanh %100 : vector<4x32xf32>
    %102 = vector.extract_strided_slice %87 {offsets = [0, 96], sizes = [4, 32], strides = [1, 1]} : vector<4x128xf32> to vector<4x32xf32>
    %103 = arith.negf %102 : vector<4x32xf32>
    %104 = math.exp %103 : vector<4x32xf32>
    %cst_47 = arith.constant 1.000000e+00 : f32
    %105 = vector.broadcast %cst_47 : f32 to vector<4x32xf32>
    %106 = arith.addf %105, %104 : vector<4x32xf32>
    %107 = arith.divf %105, %106 : vector<4x32xf32>
    %108 = arith.mulf %99, %47 : vector<4x32xf32>
    %109 = arith.mulf %93, %101 : vector<4x32xf32>
    %110 = arith.addf %108, %109 : vector<4x32xf32>
    %111 = math.tanh %110 : vector<4x32xf32>
    %112 = arith.mulf %107, %111 : vector<4x32xf32>
    %113 = vector.extract_strided_slice %85 {offsets = [0, 128], sizes = [4, 128], strides = [1, 1]} : vector<4x256xf32> to vector<4x128xf32>
    %114 = arith.addf %82, %113 : vector<4x128xf32>
    %115 = vector.extract_strided_slice %114 {offsets = [0, 0], sizes = [4, 32], strides = [1, 1]} : vector<4x128xf32> to vector<4x32xf32>
    %116 = arith.negf %115 : vector<4x32xf32>
    %117 = math.exp %116 : vector<4x32xf32>
    %cst_48 = arith.constant 1.000000e+00 : f32
    %118 = vector.broadcast %cst_48 : f32 to vector<4x32xf32>
    %119 = arith.addf %118, %117 : vector<4x32xf32>
    %120 = arith.divf %118, %119 : vector<4x32xf32>
    %121 = vector.extract_strided_slice %114 {offsets = [0, 32], sizes = [4, 32], strides = [1, 1]} : vector<4x128xf32> to vector<4x32xf32>
    %122 = arith.negf %121 : vector<4x32xf32>
    %123 = math.exp %122 : vector<4x32xf32>
    %cst_49 = arith.constant 1.000000e+00 : f32
    %124 = vector.broadcast %cst_49 : f32 to vector<4x32xf32>
    %125 = arith.addf %124, %123 : vector<4x32xf32>
    %126 = arith.divf %124, %125 : vector<4x32xf32>
    %127 = vector.extract_strided_slice %114 {offsets = [0, 64], sizes = [4, 32], strides = [1, 1]} : vector<4x128xf32> to vector<4x32xf32>
    %128 = math.tanh %127 : vector<4x32xf32>
    %129 = vector.extract_strided_slice %114 {offsets = [0, 96], sizes = [4, 32], strides = [1, 1]} : vector<4x128xf32> to vector<4x32xf32>
    %130 = arith.negf %129 : vector<4x32xf32>
    %131 = math.exp %130 : vector<4x32xf32>
    %cst_50 = arith.constant 1.000000e+00 : f32
    %132 = vector.broadcast %cst_50 : f32 to vector<4x32xf32>
    %133 = arith.addf %132, %131 : vector<4x32xf32>
    %134 = arith.divf %132, %133 : vector<4x32xf32>
    %135 = arith.mulf %126, %74 : vector<4x32xf32>
    %136 = arith.mulf %120, %128 : vector<4x32xf32>
    %137 = arith.addf %135, %136 : vector<4x32xf32>
    %138 = math.tanh %137 : vector<4x32xf32>
    %139 = arith.mulf %134, %138 : vector<4x32xf32>
    %c0_51 = arith.constant 0 : index
    %c0_52 = arith.constant 0 : index
    %140 = vector.load %arg13[%c0_51, %c0_52] : memref<4x64xf32, #tpu.memory_space<vmem>>, vector<4x32xf32>
    tpu.vector_store %arg13[%c0_51, %c0_52], %112 {strides = array<i32>} : memref<4x64xf32, #tpu.memory_space<vmem>>, vector<4x32xf32>,
    %c0_53 = arith.constant 0 : index
    %c32_54 = arith.constant 32 : index
    %141 = vector.load %arg13[%c0_53, %c32_54] : memref<4x64xf32, #tpu.memory_space<vmem>>, vector<4x32xf32>
    tpu.vector_store %arg13[%c0_53, %c32_54], %139 {strides = array<i32>} : memref<4x64xf32, #tpu.memory_space<vmem>>, vector<4x32xf32>,
    %c4_55 = arith.constant 4 : index
    %c0_56 = arith.constant 0 : index
    %142 = vector.load %arg12[%c4_55, %c0_56] : memref<32x64xf32, #tpu.memory_space<vmem>>, vector<4x32xf32>
    tpu.vector_store %arg12[%c4_55, %c0_56], %112 {strides = array<i32>} : memref<32x64xf32, #tpu.memory_space<vmem>>, vector<4x32xf32>,
    %c24_57 = arith.constant 24 : index
    %c32_58 = arith.constant 32 : index
    %143 = vector.load %arg12[%c24_57, %c32_58] : memref<32x64xf32, #tpu.memory_space<vmem>>, vector<4x32xf32>
    tpu.vector_store %arg12[%c24_57, %c32_58], %139 {strides = array<i32>} : memref<32x64xf32, #tpu.memory_space<vmem>>, vector<4x32xf32>,
    %c8 = arith.constant 8 : index
    %c0_59 = arith.constant 0 : index
    %144 = vector.load %arg11[%c8, %c0_59] : memref<32x256xf32, #tpu.memory_space<vmem>>, vector<4x128xf32>
    %c20 = arith.constant 20 : index
    %c128_60 = arith.constant 128 : index
    %145 = vector.load %arg11[%c20, %c128_60] : memref<32x256xf32, #tpu.memory_space<vmem>>, vector<4x128xf32>
    %c0_61 = arith.constant 0 : index
    %c0_62 = arith.constant 0 : index
    %146 = vector.load %arg13[%c0_61, %c0_62] : memref<4x64xf32, #tpu.memory_space<vmem>>, vector<4x64xf32>
    %c0_63 = arith.constant 0 : index
    %c0_64 = arith.constant 0 : index
    %147 = vector.load %arg5[%c0_63, %c0_64] : memref<64x256xf32, #tpu.memory_space<vmem>>, vector<64x256xf32>
    %cst_65 = arith.constant dense<0.000000e+00> : vector<4x256xf32>
    %148 = tpu.matmul %146, %147, %cst_65 {dimension_numbers = #tpu.dot_dimension_numbers<[1], [0], [0], [1], [0, 0, 1, 1], [], []>} : vector<4x64xf32>, vector<64x256xf32>, vector<4x256xf32> -> vector<4x256xf32>
    %149 = vector.extract_strided_slice %148 {offsets = [0, 0], sizes = [4, 128], strides = [1, 1]} : vector<4x256xf32> to vector<4x128xf32>
    %150 = arith.addf %144, %149 : vector<4x128xf32>
    %151 = vector.extract_strided_slice %150 {offsets = [0, 0], sizes = [4, 32], strides = [1, 1]} : vector<4x128xf32> to vector<4x32xf32>
    %152 = arith.negf %151 : vector<4x32xf32>
    %153 = math.exp %152 : vector<4x32xf32>
    %cst_66 = arith.constant 1.000000e+00 : f32
    %154 = vector.broadcast %cst_66 : f32 to vector<4x32xf32>
    %155 = arith.addf %154, %153 : vector<4x32xf32>
    %156 = arith.divf %154, %155 : vector<4x32xf32>
    %157 = vector.extract_strided_slice %150 {offsets = [0, 32], sizes = [4, 32], strides = [1, 1]} : vector<4x128xf32> to vector<4x32xf32>
    %158 = arith.negf %157 : vector<4x32xf32>
    %159 = math.exp %158 : vector<4x32xf32>
    %cst_67 = arith.constant 1.000000e+00 : f32
    %160 = vector.broadcast %cst_67 : f32 to vector<4x32xf32>
    %161 = arith.addf %160, %159 : vector<4x32xf32>
    %162 = arith.divf %160, %161 : vector<4x32xf32>
    %163 = vector.extract_strided_slice %150 {offsets = [0, 64], sizes = [4, 32], strides = [1, 1]} : vector<4x128xf32> to vector<4x32xf32>
    %164 = math.tanh %163 : vector<4x32xf32>
    %165 = vector.extract_strided_slice %150 {offsets = [0, 96], sizes = [4, 32], strides = [1, 1]} : vector<4x128xf32> to vector<4x32xf32>
    %166 = arith.negf %165 : vector<4x32xf32>
    %167 = math.exp %166 : vector<4x32xf32>
    %cst_68 = arith.constant 1.000000e+00 : f32
    %168 = vector.broadcast %cst_68 : f32 to vector<4x32xf32>
    %169 = arith.addf %168, %167 : vector<4x32xf32>
    %170 = arith.divf %168, %169 : vector<4x32xf32>
    %171 = arith.mulf %162, %110 : vector<4x32xf32>
    %172 = arith.mulf %156, %164 : vector<4x32xf32>
    %173 = arith.addf %171, %172 : vector<4x32xf32>
    %174 = math.tanh %173 : vector<4x32xf32>
    %175 = arith.mulf %170, %174 : vector<4x32xf32>
    %176 = vector.extract_strided_slice %148 {offsets = [0, 128], sizes = [4, 128], strides = [1, 1]} : vector<4x256xf32> to vector<4x128xf32>
    %177 = arith.addf %145, %176 : vector<4x128xf32>
    %178 = vector.extract_strided_slice %177 {offsets = [0, 0], sizes = [4, 32], strides = [1, 1]} : vector<4x128xf32> to vector<4x32xf32>
    %179 = arith.negf %178 : vector<4x32xf32>
    %180 = math.exp %179 : vector<4x32xf32>
    %cst_69 = arith.constant 1.000000e+00 : f32
    %181 = vector.broadcast %cst_69 : f32 to vector<4x32xf32>
    %182 = arith.addf %181, %180 : vector<4x32xf32>
    %183 = arith.divf %181, %182 : vector<4x32xf32>
    %184 = vector.extract_strided_slice %177 {offsets = [0, 32], sizes = [4, 32], strides = [1, 1]} : vector<4x128xf32> to vector<4x32xf32>
    %185 = arith.negf %184 : vector<4x32xf32>
    %186 = math.exp %185 : vector<4x32xf32>
    %cst_70 = arith.constant 1.000000e+00 : f32
    %187 = vector.broadcast %cst_70 : f32 to vector<4x32xf32>
    %188 = arith.addf %187, %186 : vector<4x32xf32>
    %189 = arith.divf %187, %188 : vector<4x32xf32>
    %190 = vector.extract_strided_slice %177 {offsets = [0, 64], sizes = [4, 32], strides = [1, 1]} : vector<4x128xf32> to vector<4x32xf32>
    %191 = math.tanh %190 : vector<4x32xf32>
    %192 = vector.extract_strided_slice %177 {offsets = [0, 96], sizes = [4, 32], strides = [1, 1]} : vector<4x128xf32> to vector<4x32xf32>
    %193 = arith.negf %192 : vector<4x32xf32>
    %194 = math.exp %193 : vector<4x32xf32>
    %cst_71 = arith.constant 1.000000e+00 : f32
    %195 = vector.broadcast %cst_71 : f32 to vector<4x32xf32>
    %196 = arith.addf %195, %194 : vector<4x32xf32>
    %197 = arith.divf %195, %196 : vector<4x32xf32>
    %198 = arith.mulf %189, %137 : vector<4x32xf32>
    %199 = arith.mulf %183, %191 : vector<4x32xf32>
    %200 = arith.addf %198, %199 : vector<4x32xf32>
    %201 = math.tanh %200 : vector<4x32xf32>
    %202 = arith.mulf %197, %201 : vector<4x32xf32>
    %c0_72 = arith.constant 0 : index
    %c0_73 = arith.constant 0 : index
    %203 = vector.load %arg13[%c0_72, %c0_73] : memref<4x64xf32, #tpu.memory_space<vmem>>, vector<4x32xf32>
    tpu.vector_store %arg13[%c0_72, %c0_73], %175 {strides = array<i32>} : memref<4x64xf32, #tpu.memory_space<vmem>>, vector<4x32xf32>,
    %c0_74 = arith.constant 0 : index
    %c32_75 = arith.constant 32 : index
    %204 = vector.load %arg13[%c0_74, %c32_75] : memref<4x64xf32, #tpu.memory_space<vmem>>, vector<4x32xf32>
    tpu.vector_store %arg13[%c0_74, %c32_75], %202 {strides = array<i32>} : memref<4x64xf32, #tpu.memory_space<vmem>>, vector<4x32xf32>,
    %c8_76 = arith.constant 8 : index
    %c0_77 = arith.constant 0 : index
    %205 = vector.load %arg12[%c8_76, %c0_77] : memref<32x64xf32, #tpu.memory_space<vmem>>, vector<4x32xf32>
    tpu.vector_store %arg12[%c8_76, %c0_77], %175 {strides = array<i32>} : memref<32x64xf32, #tpu.memory_space<vmem>>, vector<4x32xf32>,
    %c20_78 = arith.constant 20 : index
    %c32_79 = arith.constant 32 : index
    %206 = vector.load %arg12[%c20_78, %c32_79] : memref<32x64xf32, #tpu.memory_space<vmem>>, vector<4x32xf32>
    tpu.vector_store %arg12[%c20_78, %c32_79], %202 {strides = array<i32>} : memref<32x64xf32, #tpu.memory_space<vmem>>, vector<4x32xf32>,
    %c12 = arith.constant 12 : index
    %c0_80 = arith.constant 0 : index
    %207 = vector.load %arg11[%c12, %c0_80] : memref<32x256xf32, #tpu.memory_space<vmem>>, vector<4x128xf32>
    %c16 = arith.constant 16 : index
    %c128_81 = arith.constant 128 : index
    %208 = vector.load %arg11[%c16, %c128_81] : memref<32x256xf32, #tpu.memory_space<vmem>>, vector<4x128xf32>
    %c0_82 = arith.constant 0 : index
    %c0_83 = arith.constant 0 : index
    %209 = vector.load %arg13[%c0_82, %c0_83] : memref<4x64xf32, #tpu.memory_space<vmem>>, vector<4x64xf32>
    %c0_84 = arith.constant 0 : index
    %c0_85 = arith.constant 0 : index
    %210 = vector.load %arg5[%c0_84, %c0_85] : memref<64x256xf32, #tpu.memory_space<vmem>>, vector<64x256xf32>
    %cst_86 = arith.constant dense<0.000000e+00> : vector<4x256xf32>
    %211 = tpu.matmul %209, %210, %cst_86 {dimension_numbers = #tpu.dot_dimension_numbers<[1], [0], [0], [1], [0, 0, 1, 1], [], []>} : vector<4x64xf32>, vector<64x256xf32>, vector<4x256xf32> -> vector<4x256xf32>
    %212 = vector.extract_strided_slice %211 {offsets = [0, 0], sizes = [4, 128], strides = [1, 1]} : vector<4x256xf32> to vector<4x128xf32>
    %213 = arith.addf %207, %212 : vector<4x128xf32>
    %214 = vector.extract_strided_slice %213 {offsets = [0, 0], sizes = [4, 32], strides = [1, 1]} : vector<4x128xf32> to vector<4x32xf32>
    %215 = arith.negf %214 : vector<4x32xf32>
    %216 = math.exp %215 : vector<4x32xf32>
    %cst_87 = arith.constant 1.000000e+00 : f32
    %217 = vector.broadcast %cst_87 : f32 to vector<4x32xf32>
    %218 = arith.addf %217, %216 : vector<4x32xf32>
    %219 = arith.divf %217, %218 : vector<4x32xf32>
    %220 = vector.extract_strided_slice %213 {offsets = [0, 32], sizes = [4, 32], strides = [1, 1]} : vector<4x128xf32> to vector<4x32xf32>
    %221 = arith.negf %220 : vector<4x32xf32>
    %222 = math.exp %221 : vector<4x32xf32>
    %cst_88 = arith.constant 1.000000e+00 : f32
    %223 = vector.broadcast %cst_88 : f32 to vector<4x32xf32>
    %224 = arith.addf %223, %222 : vector<4x32xf32>
    %225 = arith.divf %223, %224 : vector<4x32xf32>
    %226 = vector.extract_strided_slice %213 {offsets = [0, 64], sizes = [4, 32], strides = [1, 1]} : vector<4x128xf32> to vector<4x32xf32>
    %227 = math.tanh %226 : vector<4x32xf32>
    %228 = vector.extract_strided_slice %213 {offsets = [0, 96], sizes = [4, 32], strides = [1, 1]} : vector<4x128xf32> to vector<4x32xf32>
    %229 = arith.negf %228 : vector<4x32xf32>
    %230 = math.exp %229 : vector<4x32xf32>
    %cst_89 = arith.constant 1.000000e+00 : f32
    %231 = vector.broadcast %cst_89 : f32 to vector<4x32xf32>
    %232 = arith.addf %231, %230 : vector<4x32xf32>
    %233 = arith.divf %231, %232 : vector<4x32xf32>
    %234 = arith.mulf %225, %173 : vector<4x32xf32>
    %235 = arith.mulf %219, %227 : vector<4x32xf32>
    %236 = arith.addf %234, %235 : vector<4x32xf32>
    %237 = math.tanh %236 : vector<4x32xf32>
    %238 = arith.mulf %233, %237 : vector<4x32xf32>
    %239 = vector.extract_strided_slice %211 {offsets = [0, 128], sizes = [4, 128], strides = [1, 1]} : vector<4x256xf32> to vector<4x128xf32>
    %240 = arith.addf %208, %239 : vector<4x128xf32>
    %241 = vector.extract_strided_slice %240 {offsets = [0, 0], sizes = [4, 32], strides = [1, 1]} : vector<4x128xf32> to vector<4x32xf32>
    %242 = arith.negf %241 : vector<4x32xf32>
    %243 = math.exp %242 : vector<4x32xf32>
    %cst_90 = arith.constant 1.000000e+00 : f32
    %244 = vector.broadcast %cst_90 : f32 to vector<4x32xf32>
    %245 = arith.addf %244, %243 : vector<4x32xf32>
    %246 = arith.divf %244, %245 : vector<4x32xf32>
    %247 = vector.extract_strided_slice %240 {offsets = [0, 32], sizes = [4, 32], strides = [1, 1]} : vector<4x128xf32> to vector<4x32xf32>
    %248 = arith.negf %247 : vector<4x32xf32>
    %249 = math.exp %248 : vector<4x32xf32>
    %cst_91 = arith.constant 1.000000e+00 : f32
    %250 = vector.broadcast %cst_91 : f32 to vector<4x32xf32>
    %251 = arith.addf %250, %249 : vector<4x32xf32>
    %252 = arith.divf %250, %251 : vector<4x32xf32>
    %253 = vector.extract_strided_slice %240 {offsets = [0, 64], sizes = [4, 32], strides = [1, 1]} : vector<4x128xf32> to vector<4x32xf32>
    %254 = math.tanh %253 : vector<4x32xf32>
    %255 = vector.extract_strided_slice %240 {offsets = [0, 96], sizes = [4, 32], strides = [1, 1]} : vector<4x128xf32> to vector<4x32xf32>
    %256 = arith.negf %255 : vector<4x32xf32>
    %257 = math.exp %256 : vector<4x32xf32>
    %cst_92 = arith.constant 1.000000e+00 : f32
    %258 = vector.broadcast %cst_92 : f32 to vector<4x32xf32>
    %259 = arith.addf %258, %257 : vector<4x32xf32>
    %260 = arith.divf %258, %259 : vector<4x32xf32>
    %261 = arith.mulf %252, %200 : vector<4x32xf32>
    %262 = arith.mulf %246, %254 : vector<4x32xf32>
    %263 = arith.addf %261, %262 : vector<4x32xf32>
    %264 = math.tanh %263 : vector<4x32xf32>
    %265 = arith.mulf %260, %264 : vector<4x32xf32>
    %c0_93 = arith.constant 0 : index
    %c0_94 = arith.constant 0 : index
    %266 = vector.load %arg13[%c0_93, %c0_94] : memref<4x64xf32, #tpu.memory_space<vmem>>, vector<4x32xf32>
    tpu.vector_store %arg13[%c0_93, %c0_94], %238 {strides = array<i32>} : memref<4x64xf32, #tpu.memory_space<vmem>>, vector<4x32xf32>,
    %c0_95 = arith.constant 0 : index
    %c32_96 = arith.constant 32 : index
    %267 = vector.load %arg13[%c0_95, %c32_96] : memref<4x64xf32, #tpu.memory_space<vmem>>, vector<4x32xf32>
    tpu.vector_store %arg13[%c0_95, %c32_96], %265 {strides = array<i32>} : memref<4x64xf32, #tpu.memory_space<vmem>>, vector<4x32xf32>,
    %c12_97 = arith.constant 12 : index
    %c0_98 = arith.constant 0 : index
    %268 = vector.load %arg12[%c12_97, %c0_98] : memref<32x64xf32, #tpu.memory_space<vmem>>, vector<4x32xf32>
    tpu.vector_store %arg12[%c12_97, %c0_98], %238 {strides = array<i32>} : memref<32x64xf32, #tpu.memory_space<vmem>>, vector<4x32xf32>,
    %c16_99 = arith.constant 16 : index
    %c32_100 = arith.constant 32 : index
    %269 = vector.load %arg12[%c16_99, %c32_100] : memref<32x64xf32, #tpu.memory_space<vmem>>, vector<4x32xf32>
    tpu.vector_store %arg12[%c16_99, %c32_100], %265 {strides = array<i32>} : memref<32x64xf32, #tpu.memory_space<vmem>>, vector<4x32xf32>,
    %c16_101 = arith.constant 16 : index
    %c0_102 = arith.constant 0 : index
    %270 = vector.load %arg11[%c16_101, %c0_102] : memref<32x256xf32, #tpu.memory_space<vmem>>, vector<4x128xf32>
    %c12_103 = arith.constant 12 : index
    %c128_104 = arith.constant 128 : index
    %271 = vector.load %arg11[%c12_103, %c128_104] : memref<32x256xf32, #tpu.memory_space<vmem>>, vector<4x128xf32>
    %c0_105 = arith.constant 0 : index
    %c0_106 = arith.constant 0 : index
    %272 = vector.load %arg13[%c0_105, %c0_106] : memref<4x64xf32, #tpu.memory_space<vmem>>, vector<4x64xf32>
    %c0_107 = arith.constant 0 : index
    %c0_108 = arith.constant 0 : index
    %273 = vector.load %arg5[%c0_107, %c0_108] : memref<64x256xf32, #tpu.memory_space<vmem>>, vector<64x256xf32>
    %cst_109 = arith.constant dense<0.000000e+00> : vector<4x256xf32>
    %274 = tpu.matmul %272, %273, %cst_109 {dimension_numbers = #tpu.dot_dimension_numbers<[1], [0], [0], [1], [0, 0, 1, 1], [], []>} : vector<4x64xf32>, vector<64x256xf32>, vector<4x256xf32> -> vector<4x256xf32>
    %275 = vector.extract_strided_slice %274 {offsets = [0, 0], sizes = [4, 128], strides = [1, 1]} : vector<4x256xf32> to vector<4x128xf32>
    %276 = arith.addf %270, %275 : vector<4x128xf32>
    %277 = vector.extract_strided_slice %276 {offsets = [0, 0], sizes = [4, 32], strides = [1, 1]} : vector<4x128xf32> to vector<4x32xf32>
    %278 = arith.negf %277 : vector<4x32xf32>
    %279 = math.exp %278 : vector<4x32xf32>
    %cst_110 = arith.constant 1.000000e+00 : f32
    %280 = vector.broadcast %cst_110 : f32 to vector<4x32xf32>
    %281 = arith.addf %280, %279 : vector<4x32xf32>
    %282 = arith.divf %280, %281 : vector<4x32xf32>
    %283 = vector.extract_strided_slice %276 {offsets = [0, 32], sizes = [4, 32], strides = [1, 1]} : vector<4x128xf32> to vector<4x32xf32>
    %284 = arith.negf %283 : vector<4x32xf32>
    %285 = math.exp %284 : vector<4x32xf32>
    %cst_111 = arith.constant 1.000000e+00 : f32
    %286 = vector.broadcast %cst_111 : f32 to vector<4x32xf32>
    %287 = arith.addf %286, %285 : vector<4x32xf32>
    %288 = arith.divf %286, %287 : vector<4x32xf32>
    %289 = vector.extract_strided_slice %276 {offsets = [0, 64], sizes = [4, 32], strides = [1, 1]} : vector<4x128xf32> to vector<4x32xf32>
    %290 = math.tanh %289 : vector<4x32xf32>
    %291 = vector.extract_strided_slice %276 {offsets = [0, 96], sizes = [4, 32], strides = [1, 1]} : vector<4x128xf32> to vector<4x32xf32>
    %292 = arith.negf %291 : vector<4x32xf32>
    %293 = math.exp %292 : vector<4x32xf32>
    %cst_112 = arith.constant 1.000000e+00 : f32
    %294 = vector.broadcast %cst_112 : f32 to vector<4x32xf32>
    %295 = arith.addf %294, %293 : vector<4x32xf32>
    %296 = arith.divf %294, %295 : vector<4x32xf32>
    %297 = arith.mulf %288, %236 : vector<4x32xf32>
    %298 = arith.mulf %282, %290 : vector<4x32xf32>
    %299 = arith.addf %297, %298 : vector<4x32xf32>
    %300 = math.tanh %299 : vector<4x32xf32>
    %301 = arith.mulf %296, %300 : vector<4x32xf32>
    %302 = vector.extract_strided_slice %274 {offsets = [0, 128], sizes = [4, 128], strides = [1, 1]} : vector<4x256xf32> to vector<4x128xf32>
    %303 = arith.addf %271, %302 : vector<4x128xf32>
    %304 = vector.extract_strided_slice %303 {offsets = [0, 0], sizes = [4, 32], strides = [1, 1]} : vector<4x128xf32> to vector<4x32xf32>
    %305 = arith.negf %304 : vector<4x32xf32>
    %306 = math.exp %305 : vector<4x32xf32>
    %cst_113 = arith.constant 1.000000e+00 : f32
    %307 = vector.broadcast %cst_113 : f32 to vector<4x32xf32>
    %308 = arith.addf %307, %306 : vector<4x32xf32>
    %309 = arith.divf %307, %308 : vector<4x32xf32>
    %310 = vector.extract_strided_slice %303 {offsets = [0, 32], sizes = [4, 32], strides = [1, 1]} : vector<4x128xf32> to vector<4x32xf32>
    %311 = arith.negf %310 : vector<4x32xf32>
    %312 = math.exp %311 : vector<4x32xf32>
    %cst_114 = arith.constant 1.000000e+00 : f32
    %313 = vector.broadcast %cst_114 : f32 to vector<4x32xf32>
    %314 = arith.addf %313, %312 : vector<4x32xf32>
    %315 = arith.divf %313, %314 : vector<4x32xf32>
    %316 = vector.extract_strided_slice %303 {offsets = [0, 64], sizes = [4, 32], strides = [1, 1]} : vector<4x128xf32> to vector<4x32xf32>
    %317 = math.tanh %316 : vector<4x32xf32>
    %318 = vector.extract_strided_slice %303 {offsets = [0, 96], sizes = [4, 32], strides = [1, 1]} : vector<4x128xf32> to vector<4x32xf32>
    %319 = arith.negf %318 : vector<4x32xf32>
    %320 = math.exp %319 : vector<4x32xf32>
    %cst_115 = arith.constant 1.000000e+00 : f32
    %321 = vector.broadcast %cst_115 : f32 to vector<4x32xf32>
    %322 = arith.addf %321, %320 : vector<4x32xf32>
    %323 = arith.divf %321, %322 : vector<4x32xf32>
    %324 = arith.mulf %315, %263 : vector<4x32xf32>
    %325 = arith.mulf %309, %317 : vector<4x32xf32>
    %326 = arith.addf %324, %325 : vector<4x32xf32>
    %327 = math.tanh %326 : vector<4x32xf32>
    %328 = arith.mulf %323, %327 : vector<4x32xf32>
    %c0_116 = arith.constant 0 : index
    %c0_117 = arith.constant 0 : index
    %329 = vector.load %arg13[%c0_116, %c0_117] : memref<4x64xf32, #tpu.memory_space<vmem>>, vector<4x32xf32>
    tpu.vector_store %arg13[%c0_116, %c0_117], %301 {strides = array<i32>} : memref<4x64xf32, #tpu.memory_space<vmem>>, vector<4x32xf32>,
    %c0_118 = arith.constant 0 : index
    %c32_119 = arith.constant 32 : index
    %330 = vector.load %arg13[%c0_118, %c32_119] : memref<4x64xf32, #tpu.memory_space<vmem>>, vector<4x32xf32>
    tpu.vector_store %arg13[%c0_118, %c32_119], %328 {strides = array<i32>} : memref<4x64xf32, #tpu.memory_space<vmem>>, vector<4x32xf32>,
    %c16_120 = arith.constant 16 : index
    %c0_121 = arith.constant 0 : index
    %331 = vector.load %arg12[%c16_120, %c0_121] : memref<32x64xf32, #tpu.memory_space<vmem>>, vector<4x32xf32>
    tpu.vector_store %arg12[%c16_120, %c0_121], %301 {strides = array<i32>} : memref<32x64xf32, #tpu.memory_space<vmem>>, vector<4x32xf32>,
    %c12_122 = arith.constant 12 : index
    %c32_123 = arith.constant 32 : index
    %332 = vector.load %arg12[%c12_122, %c32_123] : memref<32x64xf32, #tpu.memory_space<vmem>>, vector<4x32xf32>
    tpu.vector_store %arg12[%c12_122, %c32_123], %328 {strides = array<i32>} : memref<32x64xf32, #tpu.memory_space<vmem>>, vector<4x32xf32>,
    %c20_124 = arith.constant 20 : index
    %c0_125 = arith.constant 0 : index
    %333 = vector.load %arg11[%c20_124, %c0_125] : memref<32x256xf32, #tpu.memory_space<vmem>>, vector<4x128xf32>
    %c8_126 = arith.constant 8 : index
    %c128_127 = arith.constant 128 : index
    %334 = vector.load %arg11[%c8_126, %c128_127] : memref<32x256xf32, #tpu.memory_space<vmem>>, vector<4x128xf32>
    %c0_128 = arith.constant 0 : index
    %c0_129 = arith.constant 0 : index
    %335 = vector.load %arg13[%c0_128, %c0_129] : memref<4x64xf32, #tpu.memory_space<vmem>>, vector<4x64xf32>
    %c0_130 = arith.constant 0 : index
    %c0_131 = arith.constant 0 : index
    %336 = vector.load %arg5[%c0_130, %c0_131] : memref<64x256xf32, #tpu.memory_space<vmem>>, vector<64x256xf32>
    %cst_132 = arith.constant dense<0.000000e+00> : vector<4x256xf32>
    %337 = tpu.matmul %335, %336, %cst_132 {dimension_numbers = #tpu.dot_dimension_numbers<[1], [0], [0], [1], [0, 0, 1, 1], [], []>} : vector<4x64xf32>, vector<64x256xf32>, vector<4x256xf32> -> vector<4x256xf32>
    %338 = vector.extract_strided_slice %337 {offsets = [0, 0], sizes = [4, 128], strides = [1, 1]} : vector<4x256xf32> to vector<4x128xf32>
    %339 = arith.addf %333, %338 : vector<4x128xf32>
    %340 = vector.extract_strided_slice %339 {offsets = [0, 0], sizes = [4, 32], strides = [1, 1]} : vector<4x128xf32> to vector<4x32xf32>
    %341 = arith.negf %340 : vector<4x32xf32>
    %342 = math.exp %341 : vector<4x32xf32>
    %cst_133 = arith.constant 1.000000e+00 : f32
    %343 = vector.broadcast %cst_133 : f32 to vector<4x32xf32>
    %344 = arith.addf %343, %342 : vector<4x32xf32>
    %345 = arith.divf %343, %344 : vector<4x32xf32>
    %346 = vector.extract_strided_slice %339 {offsets = [0, 32], sizes = [4, 32], strides = [1, 1]} : vector<4x128xf32> to vector<4x32xf32>
    %347 = arith.negf %346 : vector<4x32xf32>
    %348 = math.exp %347 : vector<4x32xf32>
    %cst_134 = arith.constant 1.000000e+00 : f32
    %349 = vector.broadcast %cst_134 : f32 to vector<4x32xf32>
    %350 = arith.addf %349, %348 : vector<4x32xf32>
    %351 = arith.divf %349, %350 : vector<4x32xf32>
    %352 = vector.extract_strided_slice %339 {offsets = [0, 64], sizes = [4, 32], strides = [1, 1]} : vector<4x128xf32> to vector<4x32xf32>
    %353 = math.tanh %352 : vector<4x32xf32>
    %354 = vector.extract_strided_slice %339 {offsets = [0, 96], sizes = [4, 32], strides = [1, 1]} : vector<4x128xf32> to vector<4x32xf32>
    %355 = arith.negf %354 : vector<4x32xf32>
    %356 = math.exp %355 : vector<4x32xf32>
    %cst_135 = arith.constant 1.000000e+00 : f32
    %357 = vector.broadcast %cst_135 : f32 to vector<4x32xf32>
    %358 = arith.addf %357, %356 : vector<4x32xf32>
    %359 = arith.divf %357, %358 : vector<4x32xf32>
    %360 = arith.mulf %351, %299 : vector<4x32xf32>
    %361 = arith.mulf %345, %353 : vector<4x32xf32>
    %362 = arith.addf %360, %361 : vector<4x32xf32>
    %363 = math.tanh %362 : vector<4x32xf32>
    %364 = arith.mulf %359, %363 : vector<4x32xf32>
    %365 = vector.extract_strided_slice %337 {offsets = [0, 128], sizes = [4, 128], strides = [1, 1]} : vector<4x256xf32> to vector<4x128xf32>
    %366 = arith.addf %334, %365 : vector<4x128xf32>
    %367 = vector.extract_strided_slice %366 {offsets = [0, 0], sizes = [4, 32], strides = [1, 1]} : vector<4x128xf32> to vector<4x32xf32>
    %368 = arith.negf %367 : vector<4x32xf32>
    %369 = math.exp %368 : vector<4x32xf32>
    %cst_136 = arith.constant 1.000000e+00 : f32
    %370 = vector.broadcast %cst_136 : f32 to vector<4x32xf32>
    %371 = arith.addf %370, %369 : vector<4x32xf32>
    %372 = arith.divf %370, %371 : vector<4x32xf32>
    %373 = vector.extract_strided_slice %366 {offsets = [0, 32], sizes = [4, 32], strides = [1, 1]} : vector<4x128xf32> to vector<4x32xf32>
    %374 = arith.negf %373 : vector<4x32xf32>
    %375 = math.exp %374 : vector<4x32xf32>
    %cst_137 = arith.constant 1.000000e+00 : f32
    %376 = vector.broadcast %cst_137 : f32 to vector<4x32xf32>
    %377 = arith.addf %376, %375 : vector<4x32xf32>
    %378 = arith.divf %376, %377 : vector<4x32xf32>
    %379 = vector.extract_strided_slice %366 {offsets = [0, 64], sizes = [4, 32], strides = [1, 1]} : vector<4x128xf32> to vector<4x32xf32>
    %380 = math.tanh %379 : vector<4x32xf32>
    %381 = vector.extract_strided_slice %366 {offsets = [0, 96], sizes = [4, 32], strides = [1, 1]} : vector<4x128xf32> to vector<4x32xf32>
    %382 = arith.negf %381 : vector<4x32xf32>
    %383 = math.exp %382 : vector<4x32xf32>
    %cst_138 = arith.constant 1.000000e+00 : f32
    %384 = vector.broadcast %cst_138 : f32 to vector<4x32xf32>
    %385 = arith.addf %384, %383 : vector<4x32xf32>
    %386 = arith.divf %384, %385 : vector<4x32xf32>
    %387 = arith.mulf %378, %326 : vector<4x32xf32>
    %388 = arith.mulf %372, %380 : vector<4x32xf32>
    %389 = arith.addf %387, %388 : vector<4x32xf32>
    %390 = math.tanh %389 : vector<4x32xf32>
    %391 = arith.mulf %386, %390 : vector<4x32xf32>
    %c0_139 = arith.constant 0 : index
    %c0_140 = arith.constant 0 : index
    %392 = vector.load %arg13[%c0_139, %c0_140] : memref<4x64xf32, #tpu.memory_space<vmem>>, vector<4x32xf32>
    tpu.vector_store %arg13[%c0_139, %c0_140], %364 {strides = array<i32>} : memref<4x64xf32, #tpu.memory_space<vmem>>, vector<4x32xf32>,
    %c0_141 = arith.constant 0 : index
    %c32_142 = arith.constant 32 : index
    %393 = vector.load %arg13[%c0_141, %c32_142] : memref<4x64xf32, #tpu.memory_space<vmem>>, vector<4x32xf32>
    tpu.vector_store %arg13[%c0_141, %c32_142], %391 {strides = array<i32>} : memref<4x64xf32, #tpu.memory_space<vmem>>, vector<4x32xf32>,
    %c20_143 = arith.constant 20 : index
    %c0_144 = arith.constant 0 : index
    %394 = vector.load %arg12[%c20_143, %c0_144] : memref<32x64xf32, #tpu.memory_space<vmem>>, vector<4x32xf32>
    tpu.vector_store %arg12[%c20_143, %c0_144], %364 {strides = array<i32>} : memref<32x64xf32, #tpu.memory_space<vmem>>, vector<4x32xf32>,
    %c8_145 = arith.constant 8 : index
    %c32_146 = arith.constant 32 : index
    %395 = vector.load %arg12[%c8_145, %c32_146] : memref<32x64xf32, #tpu.memory_space<vmem>>, vector<4x32xf32>
    tpu.vector_store %arg12[%c8_145, %c32_146], %391 {strides = array<i32>} : memref<32x64xf32, #tpu.memory_space<vmem>>, vector<4x32xf32>,
    %c24_147 = arith.constant 24 : index
    %c0_148 = arith.constant 0 : index
    %396 = vector.load %arg11[%c24_147, %c0_148] : memref<32x256xf32, #tpu.memory_space<vmem>>, vector<4x128xf32>
    %c4_149 = arith.constant 4 : index
    %c128_150 = arith.constant 128 : index
    %397 = vector.load %arg11[%c4_149, %c128_150] : memref<32x256xf32, #tpu.memory_space<vmem>>, vector<4x128xf32>
    %c0_151 = arith.constant 0 : index
    %c0_152 = arith.constant 0 : index
    %398 = vector.load %arg13[%c0_151, %c0_152] : memref<4x64xf32, #tpu.memory_space<vmem>>, vector<4x64xf32>
    %c0_153 = arith.constant 0 : index
    %c0_154 = arith.constant 0 : index
    %399 = vector.load %arg5[%c0_153, %c0_154] : memref<64x256xf32, #tpu.memory_space<vmem>>, vector<64x256xf32>
    %cst_155 = arith.constant dense<0.000000e+00> : vector<4x256xf32>
    %400 = tpu.matmul %398, %399, %cst_155 {dimension_numbers = #tpu.dot_dimension_numbers<[1], [0], [0], [1], [0, 0, 1, 1], [], []>} : vector<4x64xf32>, vector<64x256xf32>, vector<4x256xf32> -> vector<4x256xf32>
    %401 = vector.extract_strided_slice %400 {offsets = [0, 0], sizes = [4, 128], strides = [1, 1]} : vector<4x256xf32> to vector<4x128xf32>
    %402 = arith.addf %396, %401 : vector<4x128xf32>
    %403 = vector.extract_strided_slice %402 {offsets = [0, 0], sizes = [4, 32], strides = [1, 1]} : vector<4x128xf32> to vector<4x32xf32>
    %404 = arith.negf %403 : vector<4x32xf32>
    %405 = math.exp %404 : vector<4x32xf32>
    %cst_156 = arith.constant 1.000000e+00 : f32
    %406 = vector.broadcast %cst_156 : f32 to vector<4x32xf32>
    %407 = arith.addf %406, %405 : vector<4x32xf32>
    %408 = arith.divf %406, %407 : vector<4x32xf32>
    %409 = vector.extract_strided_slice %402 {offsets = [0, 32], sizes = [4, 32], strides = [1, 1]} : vector<4x128xf32> to vector<4x32xf32>
    %410 = arith.negf %409 : vector<4x32xf32>
    %411 = math.exp %410 : vector<4x32xf32>
    %cst_157 = arith.constant 1.000000e+00 : f32
    %412 = vector.broadcast %cst_157 : f32 to vector<4x32xf32>
    %413 = arith.addf %412, %411 : vector<4x32xf32>
    %414 = arith.divf %412, %413 : vector<4x32xf32>
    %415 = vector.extract_strided_slice %402 {offsets = [0, 64], sizes = [4, 32], strides = [1, 1]} : vector<4x128xf32> to vector<4x32xf32>
    %416 = math.tanh %415 : vector<4x32xf32>
    %417 = vector.extract_strided_slice %402 {offsets = [0, 96], sizes = [4, 32], strides = [1, 1]} : vector<4x128xf32> to vector<4x32xf32>
    %418 = arith.negf %417 : vector<4x32xf32>
    %419 = math.exp %418 : vector<4x32xf32>
    %cst_158 = arith.constant 1.000000e+00 : f32
    %420 = vector.broadcast %cst_158 : f32 to vector<4x32xf32>
    %421 = arith.addf %420, %419 : vector<4x32xf32>
    %422 = arith.divf %420, %421 : vector<4x32xf32>
    %423 = arith.mulf %414, %362 : vector<4x32xf32>
    %424 = arith.mulf %408, %416 : vector<4x32xf32>
    %425 = arith.addf %423, %424 : vector<4x32xf32>
    %426 = math.tanh %425 : vector<4x32xf32>
    %427 = arith.mulf %422, %426 : vector<4x32xf32>
    %428 = vector.extract_strided_slice %400 {offsets = [0, 128], sizes = [4, 128], strides = [1, 1]} : vector<4x256xf32> to vector<4x128xf32>
    %429 = arith.addf %397, %428 : vector<4x128xf32>
    %430 = vector.extract_strided_slice %429 {offsets = [0, 0], sizes = [4, 32], strides = [1, 1]} : vector<4x128xf32> to vector<4x32xf32>
    %431 = arith.negf %430 : vector<4x32xf32>
    %432 = math.exp %431 : vector<4x32xf32>
    %cst_159 = arith.constant 1.000000e+00 : f32
    %433 = vector.broadcast %cst_159 : f32 to vector<4x32xf32>
    %434 = arith.addf %433, %432 : vector<4x32xf32>
    %435 = arith.divf %433, %434 : vector<4x32xf32>
    %436 = vector.extract_strided_slice %429 {offsets = [0, 32], sizes = [4, 32], strides = [1, 1]} : vector<4x128xf32> to vector<4x32xf32>
    %437 = arith.negf %436 : vector<4x32xf32>
    %438 = math.exp %437 : vector<4x32xf32>
    %cst_160 = arith.constant 1.000000e+00 : f32
    %439 = vector.broadcast %cst_160 : f32 to vector<4x32xf32>
    %440 = arith.addf %439, %438 : vector<4x32xf32>
    %441 = arith.divf %439, %440 : vector<4x32xf32>
    %442 = vector.extract_strided_slice %429 {offsets = [0, 64], sizes = [4, 32], strides = [1, 1]} : vector<4x128xf32> to vector<4x32xf32>
    %443 = math.tanh %442 : vector<4x32xf32>
    %444 = vector.extract_strided_slice %429 {offsets = [0, 96], sizes = [4, 32], strides = [1, 1]} : vector<4x128xf32> to vector<4x32xf32>
    %445 = arith.negf %444 : vector<4x32xf32>
    %446 = math.exp %445 : vector<4x32xf32>
    %cst_161 = arith.constant 1.000000e+00 : f32
    %447 = vector.broadcast %cst_161 : f32 to vector<4x32xf32>
    %448 = arith.addf %447, %446 : vector<4x32xf32>
    %449 = arith.divf %447, %448 : vector<4x32xf32>
    %450 = arith.mulf %441, %389 : vector<4x32xf32>
    %451 = arith.mulf %435, %443 : vector<4x32xf32>
    %452 = arith.addf %450, %451 : vector<4x32xf32>
    %453 = math.tanh %452 : vector<4x32xf32>
    %454 = arith.mulf %449, %453 : vector<4x32xf32>
    %c0_162 = arith.constant 0 : index
    %c0_163 = arith.constant 0 : index
    %455 = vector.load %arg13[%c0_162, %c0_163] : memref<4x64xf32, #tpu.memory_space<vmem>>, vector<4x32xf32>
    tpu.vector_store %arg13[%c0_162, %c0_163], %427 {strides = array<i32>} : memref<4x64xf32, #tpu.memory_space<vmem>>, vector<4x32xf32>,
    %c0_164 = arith.constant 0 : index
    %c32_165 = arith.constant 32 : index
    %456 = vector.load %arg13[%c0_164, %c32_165] : memref<4x64xf32, #tpu.memory_space<vmem>>, vector<4x32xf32>
    tpu.vector_store %arg13[%c0_164, %c32_165], %454 {strides = array<i32>} : memref<4x64xf32, #tpu.memory_space<vmem>>, vector<4x32xf32>,
    %c24_166 = arith.constant 24 : index
    %c0_167 = arith.constant 0 : index
    %457 = vector.load %arg12[%c24_166, %c0_167] : memref<32x64xf32, #tpu.memory_space<vmem>>, vector<4x32xf32>
    tpu.vector_store %arg12[%c24_166, %c0_167], %427 {strides = array<i32>} : memref<32x64xf32, #tpu.memory_space<vmem>>, vector<4x32xf32>,
    %c4_168 = arith.constant 4 : index
    %c32_169 = arith.constant 32 : index
    %458 = vector.load %arg12[%c4_168, %c32_169] : memref<32x64xf32, #tpu.memory_space<vmem>>, vector<4x32xf32>
    tpu.vector_store %arg12[%c4_168, %c32_169], %454 {strides = array<i32>} : memref<32x64xf32, #tpu.memory_space<vmem>>, vector<4x32xf32>,
    %c28_170 = arith.constant 28 : index
    %c0_171 = arith.constant 0 : index
    %459 = vector.load %arg11[%c28_170, %c0_171] : memref<32x256xf32, #tpu.memory_space<vmem>>, vector<4x128xf32>
    %c0_172 = arith.constant 0 : index
    %c128_173 = arith.constant 128 : index
    %460 = vector.load %arg11[%c0_172, %c128_173] : memref<32x256xf32, #tpu.memory_space<vmem>>, vector<4x128xf32>
    %c0_174 = arith.constant 0 : index
    %c0_175 = arith.constant 0 : index
    %461 = vector.load %arg13[%c0_174, %c0_175] : memref<4x64xf32, #tpu.memory_space<vmem>>, vector<4x64xf32>
    %c0_176 = arith.constant 0 : index
    %c0_177 = arith.constant 0 : index
    %462 = vector.load %arg5[%c0_176, %c0_177] : memref<64x256xf32, #tpu.memory_space<vmem>>, vector<64x256xf32>
    %cst_178 = arith.constant dense<0.000000e+00> : vector<4x256xf32>
    %463 = tpu.matmul %461, %462, %cst_178 {dimension_numbers = #tpu.dot_dimension_numbers<[1], [0], [0], [1], [0, 0, 1, 1], [], []>} : vector<4x64xf32>, vector<64x256xf32>, vector<4x256xf32> -> vector<4x256xf32>
    %464 = vector.extract_strided_slice %463 {offsets = [0, 0], sizes = [4, 128], strides = [1, 1]} : vector<4x256xf32> to vector<4x128xf32>
    %465 = arith.addf %459, %464 : vector<4x128xf32>
    %466 = vector.extract_strided_slice %465 {offsets = [0, 0], sizes = [4, 32], strides = [1, 1]} : vector<4x128xf32> to vector<4x32xf32>
    %467 = arith.negf %466 : vector<4x32xf32>
    %468 = math.exp %467 : vector<4x32xf32>
    %cst_179 = arith.constant 1.000000e+00 : f32
    %469 = vector.broadcast %cst_179 : f32 to vector<4x32xf32>
    %470 = arith.addf %469, %468 : vector<4x32xf32>
    %471 = arith.divf %469, %470 : vector<4x32xf32>
    %472 = vector.extract_strided_slice %465 {offsets = [0, 32], sizes = [4, 32], strides = [1, 1]} : vector<4x128xf32> to vector<4x32xf32>
    %473 = arith.negf %472 : vector<4x32xf32>
    %474 = math.exp %473 : vector<4x32xf32>
    %cst_180 = arith.constant 1.000000e+00 : f32
    %475 = vector.broadcast %cst_180 : f32 to vector<4x32xf32>
    %476 = arith.addf %475, %474 : vector<4x32xf32>
    %477 = arith.divf %475, %476 : vector<4x32xf32>
    %478 = vector.extract_strided_slice %465 {offsets = [0, 64], sizes = [4, 32], strides = [1, 1]} : vector<4x128xf32> to vector<4x32xf32>
    %479 = math.tanh %478 : vector<4x32xf32>
    %480 = vector.extract_strided_slice %465 {offsets = [0, 96], sizes = [4, 32], strides = [1, 1]} : vector<4x128xf32> to vector<4x32xf32>
    %481 = arith.negf %480 : vector<4x32xf32>
    %482 = math.exp %481 : vector<4x32xf32>
    %cst_181 = arith.constant 1.000000e+00 : f32
    %483 = vector.broadcast %cst_181 : f32 to vector<4x32xf32>
    %484 = arith.addf %483, %482 : vector<4x32xf32>
    %485 = arith.divf %483, %484 : vector<4x32xf32>
    %486 = arith.mulf %477, %425 : vector<4x32xf32>
    %487 = arith.mulf %471, %479 : vector<4x32xf32>
    %488 = arith.addf %486, %487 : vector<4x32xf32>
    %489 = math.tanh %488 : vector<4x32xf32>
    %490 = arith.mulf %485, %489 : vector<4x32xf32>
    %491 = vector.extract_strided_slice %463 {offsets = [0, 128], sizes = [4, 128], strides = [1, 1]} : vector<4x256xf32> to vector<4x128xf32>
    %492 = arith.addf %460, %491 : vector<4x128xf32>
    %493 = vector.extract_strided_slice %492 {offsets = [0, 0], sizes = [4, 32], strides = [1, 1]} : vector<4x128xf32> to vector<4x32xf32>
    %494 = arith.negf %493 : vector<4x32xf32>
    %495 = math.exp %494 : vector<4x32xf32>
    %cst_182 = arith.constant 1.000000e+00 : f32
    %496 = vector.broadcast %cst_182 : f32 to vector<4x32xf32>
    %497 = arith.addf %496, %495 : vector<4x32xf32>
    %498 = arith.divf %496, %497 : vector<4x32xf32>
    %499 = vector.extract_strided_slice %492 {offsets = [0, 32], sizes = [4, 32], strides = [1, 1]} : vector<4x128xf32> to vector<4x32xf32>
    %500 = arith.negf %499 : vector<4x32xf32>
    %501 = math.exp %500 : vector<4x32xf32>
    %cst_183 = arith.constant 1.000000e+00 : f32
    %502 = vector.broadcast %cst_183 : f32 to vector<4x32xf32>
    %503 = arith.addf %502, %501 : vector<4x32xf32>
    %504 = arith.divf %502, %503 : vector<4x32xf32>
    %505 = vector.extract_strided_slice %492 {offsets = [0, 64], sizes = [4, 32], strides = [1, 1]} : vector<4x128xf32> to vector<4x32xf32>
    %506 = math.tanh %505 : vector<4x32xf32>
    %507 = vector.extract_strided_slice %492 {offsets = [0, 96], sizes = [4, 32], strides = [1, 1]} : vector<4x128xf32> to vector<4x32xf32>
    %508 = arith.negf %507 : vector<4x32xf32>
    %509 = math.exp %508 : vector<4x32xf32>
    %cst_184 = arith.constant 1.000000e+00 : f32
    %510 = vector.broadcast %cst_184 : f32 to vector<4x32xf32>
    %511 = arith.addf %510, %509 : vector<4x32xf32>
    %512 = arith.divf %510, %511 : vector<4x32xf32>
    %513 = arith.mulf %504, %452 : vector<4x32xf32>
    %514 = arith.mulf %498, %506 : vector<4x32xf32>
    %515 = arith.addf %513, %514 : vector<4x32xf32>
    %516 = math.tanh %515 : vector<4x32xf32>
    %517 = arith.mulf %512, %516 : vector<4x32xf32>
    %c0_185 = arith.constant 0 : index
    %c0_186 = arith.constant 0 : index
    %518 = vector.load %arg13[%c0_185, %c0_186] : memref<4x64xf32, #tpu.memory_space<vmem>>, vector<4x32xf32>
    tpu.vector_store %arg13[%c0_185, %c0_186], %490 {strides = array<i32>} : memref<4x64xf32, #tpu.memory_space<vmem>>, vector<4x32xf32>,
    %c0_187 = arith.constant 0 : index
    %c32_188 = arith.constant 32 : index
    %519 = vector.load %arg13[%c0_187, %c32_188] : memref<4x64xf32, #tpu.memory_space<vmem>>, vector<4x32xf32>
    tpu.vector_store %arg13[%c0_187, %c32_188], %517 {strides = array<i32>} : memref<4x64xf32, #tpu.memory_space<vmem>>, vector<4x32xf32>,
    %c28_189 = arith.constant 28 : index
    %c0_190 = arith.constant 0 : index
    %520 = vector.load %arg12[%c28_189, %c0_190] : memref<32x64xf32, #tpu.memory_space<vmem>>, vector<4x32xf32>
    tpu.vector_store %arg12[%c28_189, %c0_190], %490 {strides = array<i32>} : memref<32x64xf32, #tpu.memory_space<vmem>>, vector<4x32xf32>,
    %c0_191 = arith.constant 0 : index
    %c32_192 = arith.constant 32 : index
    %521 = vector.load %arg12[%c0_191, %c32_192] : memref<32x64xf32, #tpu.memory_space<vmem>>, vector<4x32xf32>
    tpu.vector_store %arg12[%c0_191, %c32_192], %517 {strides = array<i32>} : memref<32x64xf32, #tpu.memory_space<vmem>>, vector<4x32xf32>,
    %c0_193 = arith.constant 0 : index
    %c0_194 = arith.constant 0 : index
    %522 = vector.load %arg12[%c0_193, %c0_194] : memref<32x64xf32, #tpu.memory_space<vmem>>, vector<32x64xf32>
    %c0_195 = arith.constant 0 : index
    %c0_196 = arith.constant 0 : index
    %523 = vector.load %arg7[%c0_195, %c0_196] : memref<64x256xf32, #tpu.memory_space<vmem>>, vector<64x256xf32>
    %cst_197 = arith.constant dense<0.000000e+00> : vector<32x256xf32>
    %524 = tpu.matmul %522, %523, %cst_197 {dimension_numbers = #tpu.dot_dimension_numbers<[1], [0], [0], [1], [0, 0, 1, 1], [], []>} : vector<32x64xf32>, vector<64x256xf32>, vector<32x256xf32> -> vector<32x256xf32>
    %c0_198 = arith.constant 0 : index
    %c0_199 = arith.constant 0 : index
    %525 = vector.load %arg9[%c0_198, %c0_199] : memref<1x256xf32, #tpu.memory_space<vmem>>, vector<1x256xf32>
    %526 = vector.broadcast %525 : vector<1x256xf32> to vector<32x256xf32>
    %527 = arith.addf %524, %526 : vector<32x256xf32>
    %c0_200 = arith.constant 0 : index
    %c0_201 = arith.constant 0 : index
    %528 = vector.load %arg11[%c0_200, %c0_201] : memref<32x256xf32, #tpu.memory_space<vmem>>, vector<32x256xf32>
    tpu.vector_store %arg11[%c0_200, %c0_201], %527 {strides = array<i32>} : memref<32x256xf32, #tpu.memory_space<vmem>>, vector<32x256xf32>,
    %cst_202 = arith.constant 0.000000e+00 : f32
    %529 = vector.broadcast %cst_202 : f32 to vector<4x64xf32>
    %c0_203 = arith.constant 0 : index
    %c0_204 = arith.constant 0 : index
    %530 = vector.load %arg13[%c0_203, %c0_204] : memref<4x64xf32, #tpu.memory_space<vmem>>, vector<4x64xf32>
    tpu.vector_store %arg13[%c0_203, %c0_204], %529 {strides = array<i32>} : memref<4x64xf32, #tpu.memory_space<vmem>>, vector<4x64xf32>,
    %cst_205 = arith.constant 0.000000e+00 : f32
    %531 = vector.broadcast %cst_205 : f32 to vector<4x32xf32>
    %cst_206 = arith.constant 0.000000e+00 : f32
    %532 = vector.broadcast %cst_206 : f32 to vector<4x32xf32>
    %c0_207 = arith.constant 0 : index
    %c0_208 = arith.constant 0 : index
    %533 = vector.load %arg11[%c0_207, %c0_208] : memref<32x256xf32, #tpu.memory_space<vmem>>, vector<4x128xf32>
    %c28_209 = arith.constant 28 : index
    %c128_210 = arith.constant 128 : index
    %534 = vector.load %arg11[%c28_209, %c128_210] : memref<32x256xf32, #tpu.memory_space<vmem>>, vector<4x128xf32>
    %c0_211 = arith.constant 0 : index
    %c0_212 = arith.constant 0 : index
    %535 = vector.load %arg13[%c0_211, %c0_212] : memref<4x64xf32, #tpu.memory_space<vmem>>, vector<4x64xf32>
    %c0_213 = arith.constant 0 : index
    %c0_214 = arith.constant 0 : index
    %536 = vector.load %arg8[%c0_213, %c0_214] : memref<64x256xf32, #tpu.memory_space<vmem>>, vector<64x256xf32>
    %cst_215 = arith.constant dense<0.000000e+00> : vector<4x256xf32>
    %537 = tpu.matmul %535, %536, %cst_215 {dimension_numbers = #tpu.dot_dimension_numbers<[1], [0], [0], [1], [0, 0, 1, 1], [], []>} : vector<4x64xf32>, vector<64x256xf32>, vector<4x256xf32> -> vector<4x256xf32>
    %538 = vector.extract_strided_slice %537 {offsets = [0, 0], sizes = [4, 128], strides = [1, 1]} : vector<4x256xf32> to vector<4x128xf32>
    %539 = arith.addf %533, %538 : vector<4x128xf32>
    %540 = vector.extract_strided_slice %539 {offsets = [0, 0], sizes = [4, 32], strides = [1, 1]} : vector<4x128xf32> to vector<4x32xf32>
    %541 = arith.negf %540 : vector<4x32xf32>
    %542 = math.exp %541 : vector<4x32xf32>
    %cst_216 = arith.constant 1.000000e+00 : f32
    %543 = vector.broadcast %cst_216 : f32 to vector<4x32xf32>
    %544 = arith.addf %543, %542 : vector<4x32xf32>
    %545 = arith.divf %543, %544 : vector<4x32xf32>
    %546 = vector.extract_strided_slice %539 {offsets = [0, 32], sizes = [4, 32], strides = [1, 1]} : vector<4x128xf32> to vector<4x32xf32>
    %547 = arith.negf %546 : vector<4x32xf32>
    %548 = math.exp %547 : vector<4x32xf32>
    %cst_217 = arith.constant 1.000000e+00 : f32
    %549 = vector.broadcast %cst_217 : f32 to vector<4x32xf32>
    %550 = arith.addf %549, %548 : vector<4x32xf32>
    %551 = arith.divf %549, %550 : vector<4x32xf32>
    %552 = vector.extract_strided_slice %539 {offsets = [0, 64], sizes = [4, 32], strides = [1, 1]} : vector<4x128xf32> to vector<4x32xf32>
    %553 = math.tanh %552 : vector<4x32xf32>
    %554 = vector.extract_strided_slice %539 {offsets = [0, 96], sizes = [4, 32], strides = [1, 1]} : vector<4x128xf32> to vector<4x32xf32>
    %555 = arith.negf %554 : vector<4x32xf32>
    %556 = math.exp %555 : vector<4x32xf32>
    %cst_218 = arith.constant 1.000000e+00 : f32
    %557 = vector.broadcast %cst_218 : f32 to vector<4x32xf32>
    %558 = arith.addf %557, %556 : vector<4x32xf32>
    %559 = arith.divf %557, %558 : vector<4x32xf32>
    %560 = arith.mulf %551, %531 : vector<4x32xf32>
    %561 = arith.mulf %545, %553 : vector<4x32xf32>
    %562 = arith.addf %560, %561 : vector<4x32xf32>
    %563 = math.tanh %562 : vector<4x32xf32>
    %564 = arith.mulf %559, %563 : vector<4x32xf32>
    %565 = vector.extract_strided_slice %537 {offsets = [0, 128], sizes = [4, 128], strides = [1, 1]} : vector<4x256xf32> to vector<4x128xf32>
    %566 = arith.addf %534, %565 : vector<4x128xf32>
    %567 = vector.extract_strided_slice %566 {offsets = [0, 0], sizes = [4, 32], strides = [1, 1]} : vector<4x128xf32> to vector<4x32xf32>
    %568 = arith.negf %567 : vector<4x32xf32>
    %569 = math.exp %568 : vector<4x32xf32>
    %cst_219 = arith.constant 1.000000e+00 : f32
    %570 = vector.broadcast %cst_219 : f32 to vector<4x32xf32>
    %571 = arith.addf %570, %569 : vector<4x32xf32>
    %572 = arith.divf %570, %571 : vector<4x32xf32>
    %573 = vector.extract_strided_slice %566 {offsets = [0, 32], sizes = [4, 32], strides = [1, 1]} : vector<4x128xf32> to vector<4x32xf32>
    %574 = arith.negf %573 : vector<4x32xf32>
    %575 = math.exp %574 : vector<4x32xf32>
    %cst_220 = arith.constant 1.000000e+00 : f32
    %576 = vector.broadcast %cst_220 : f32 to vector<4x32xf32>
    %577 = arith.addf %576, %575 : vector<4x32xf32>
    %578 = arith.divf %576, %577 : vector<4x32xf32>
    %579 = vector.extract_strided_slice %566 {offsets = [0, 64], sizes = [4, 32], strides = [1, 1]} : vector<4x128xf32> to vector<4x32xf32>
    %580 = math.tanh %579 : vector<4x32xf32>
    %581 = vector.extract_strided_slice %566 {offsets = [0, 96], sizes = [4, 32], strides = [1, 1]} : vector<4x128xf32> to vector<4x32xf32>
    %582 = arith.negf %581 : vector<4x32xf32>
    %583 = math.exp %582 : vector<4x32xf32>
    %cst_221 = arith.constant 1.000000e+00 : f32
    %584 = vector.broadcast %cst_221 : f32 to vector<4x32xf32>
    %585 = arith.addf %584, %583 : vector<4x32xf32>
    %586 = arith.divf %584, %585 : vector<4x32xf32>
    %587 = arith.mulf %578, %532 : vector<4x32xf32>
    %588 = arith.mulf %572, %580 : vector<4x32xf32>
    %589 = arith.addf %587, %588 : vector<4x32xf32>
    %590 = math.tanh %589 : vector<4x32xf32>
    %591 = arith.mulf %586, %590 : vector<4x32xf32>
    %c0_222 = arith.constant 0 : index
    %c0_223 = arith.constant 0 : index
    %592 = vector.load %arg13[%c0_222, %c0_223] : memref<4x64xf32, #tpu.memory_space<vmem>>, vector<4x32xf32>
    tpu.vector_store %arg13[%c0_222, %c0_223], %564 {strides = array<i32>} : memref<4x64xf32, #tpu.memory_space<vmem>>, vector<4x32xf32>,
    %c0_224 = arith.constant 0 : index
    %c32_225 = arith.constant 32 : index
    %593 = vector.load %arg13[%c0_224, %c32_225] : memref<4x64xf32, #tpu.memory_space<vmem>>, vector<4x32xf32>
    tpu.vector_store %arg13[%c0_224, %c32_225], %591 {strides = array<i32>} : memref<4x64xf32, #tpu.memory_space<vmem>>, vector<4x32xf32>,
    %c4_226 = arith.constant 4 : index
    %c0_227 = arith.constant 0 : index
    %594 = vector.load %arg11[%c4_226, %c0_227] : memref<32x256xf32, #tpu.memory_space<vmem>>, vector<4x128xf32>
    %c24_228 = arith.constant 24 : index
    %c128_229 = arith.constant 128 : index
    %595 = vector.load %arg11[%c24_228, %c128_229] : memref<32x256xf32, #tpu.memory_space<vmem>>, vector<4x128xf32>
    %c0_230 = arith.constant 0 : index
    %c0_231 = arith.constant 0 : index
    %596 = vector.load %arg13[%c0_230, %c0_231] : memref<4x64xf32, #tpu.memory_space<vmem>>, vector<4x64xf32>
    %c0_232 = arith.constant 0 : index
    %c0_233 = arith.constant 0 : index
    %597 = vector.load %arg8[%c0_232, %c0_233] : memref<64x256xf32, #tpu.memory_space<vmem>>, vector<64x256xf32>
    %cst_234 = arith.constant dense<0.000000e+00> : vector<4x256xf32>
    %598 = tpu.matmul %596, %597, %cst_234 {dimension_numbers = #tpu.dot_dimension_numbers<[1], [0], [0], [1], [0, 0, 1, 1], [], []>} : vector<4x64xf32>, vector<64x256xf32>, vector<4x256xf32> -> vector<4x256xf32>
    %599 = vector.extract_strided_slice %598 {offsets = [0, 0], sizes = [4, 128], strides = [1, 1]} : vector<4x256xf32> to vector<4x128xf32>
    %600 = arith.addf %594, %599 : vector<4x128xf32>
    %601 = vector.extract_strided_slice %600 {offsets = [0, 0], sizes = [4, 32], strides = [1, 1]} : vector<4x128xf32> to vector<4x32xf32>
    %602 = arith.negf %601 : vector<4x32xf32>
    %603 = math.exp %602 : vector<4x32xf32>
    %cst_235 = arith.constant 1.000000e+00 : f32
    %604 = vector.broadcast %cst_235 : f32 to vector<4x32xf32>
    %605 = arith.addf %604, %603 : vector<4x32xf32>
    %606 = arith.divf %604, %605 : vector<4x32xf32>
    %607 = vector.extract_strided_slice %600 {offsets = [0, 32], sizes = [4, 32], strides = [1, 1]} : vector<4x128xf32> to vector<4x32xf32>
    %608 = arith.negf %607 : vector<4x32xf32>
    %609 = math.exp %608 : vector<4x32xf32>
    %cst_236 = arith.constant 1.000000e+00 : f32
    %610 = vector.broadcast %cst_236 : f32 to vector<4x32xf32>
    %611 = arith.addf %610, %609 : vector<4x32xf32>
    %612 = arith.divf %610, %611 : vector<4x32xf32>
    %613 = vector.extract_strided_slice %600 {offsets = [0, 64], sizes = [4, 32], strides = [1, 1]} : vector<4x128xf32> to vector<4x32xf32>
    %614 = math.tanh %613 : vector<4x32xf32>
    %615 = vector.extract_strided_slice %600 {offsets = [0, 96], sizes = [4, 32], strides = [1, 1]} : vector<4x128xf32> to vector<4x32xf32>
    %616 = arith.negf %615 : vector<4x32xf32>
    %617 = math.exp %616 : vector<4x32xf32>
    %cst_237 = arith.constant 1.000000e+00 : f32
    %618 = vector.broadcast %cst_237 : f32 to vector<4x32xf32>
    %619 = arith.addf %618, %617 : vector<4x32xf32>
    %620 = arith.divf %618, %619 : vector<4x32xf32>
    %621 = arith.mulf %612, %562 : vector<4x32xf32>
    %622 = arith.mulf %606, %614 : vector<4x32xf32>
    %623 = arith.addf %621, %622 : vector<4x32xf32>
    %624 = math.tanh %623 : vector<4x32xf32>
    %625 = arith.mulf %620, %624 : vector<4x32xf32>
    %626 = vector.extract_strided_slice %598 {offsets = [0, 128], sizes = [4, 128], strides = [1, 1]} : vector<4x256xf32> to vector<4x128xf32>
    %627 = arith.addf %595, %626 : vector<4x128xf32>
    %628 = vector.extract_strided_slice %627 {offsets = [0, 0], sizes = [4, 32], strides = [1, 1]} : vector<4x128xf32> to vector<4x32xf32>
    %629 = arith.negf %628 : vector<4x32xf32>
    %630 = math.exp %629 : vector<4x32xf32>
    %cst_238 = arith.constant 1.000000e+00 : f32
    %631 = vector.broadcast %cst_238 : f32 to vector<4x32xf32>
    %632 = arith.addf %631, %630 : vector<4x32xf32>
    %633 = arith.divf %631, %632 : vector<4x32xf32>
    %634 = vector.extract_strided_slice %627 {offsets = [0, 32], sizes = [4, 32], strides = [1, 1]} : vector<4x128xf32> to vector<4x32xf32>
    %635 = arith.negf %634 : vector<4x32xf32>
    %636 = math.exp %635 : vector<4x32xf32>
    %cst_239 = arith.constant 1.000000e+00 : f32
    %637 = vector.broadcast %cst_239 : f32 to vector<4x32xf32>
    %638 = arith.addf %637, %636 : vector<4x32xf32>
    %639 = arith.divf %637, %638 : vector<4x32xf32>
    %640 = vector.extract_strided_slice %627 {offsets = [0, 64], sizes = [4, 32], strides = [1, 1]} : vector<4x128xf32> to vector<4x32xf32>
    %641 = math.tanh %640 : vector<4x32xf32>
    %642 = vector.extract_strided_slice %627 {offsets = [0, 96], sizes = [4, 32], strides = [1, 1]} : vector<4x128xf32> to vector<4x32xf32>
    %643 = arith.negf %642 : vector<4x32xf32>
    %644 = math.exp %643 : vector<4x32xf32>
    %cst_240 = arith.constant 1.000000e+00 : f32
    %645 = vector.broadcast %cst_240 : f32 to vector<4x32xf32>
    %646 = arith.addf %645, %644 : vector<4x32xf32>
    %647 = arith.divf %645, %646 : vector<4x32xf32>
    %648 = arith.mulf %639, %589 : vector<4x32xf32>
    %649 = arith.mulf %633, %641 : vector<4x32xf32>
    %650 = arith.addf %648, %649 : vector<4x32xf32>
    %651 = math.tanh %650 : vector<4x32xf32>
    %652 = arith.mulf %647, %651 : vector<4x32xf32>
    %c0_241 = arith.constant 0 : index
    %c0_242 = arith.constant 0 : index
    %653 = vector.load %arg13[%c0_241, %c0_242] : memref<4x64xf32, #tpu.memory_space<vmem>>, vector<4x32xf32>
    tpu.vector_store %arg13[%c0_241, %c0_242], %625 {strides = array<i32>} : memref<4x64xf32, #tpu.memory_space<vmem>>, vector<4x32xf32>,
    %c0_243 = arith.constant 0 : index
    %c32_244 = arith.constant 32 : index
    %654 = vector.load %arg13[%c0_243, %c32_244] : memref<4x64xf32, #tpu.memory_space<vmem>>, vector<4x32xf32>
    tpu.vector_store %arg13[%c0_243, %c32_244], %652 {strides = array<i32>} : memref<4x64xf32, #tpu.memory_space<vmem>>, vector<4x32xf32>,
    %c8_245 = arith.constant 8 : index
    %c0_246 = arith.constant 0 : index
    %655 = vector.load %arg11[%c8_245, %c0_246] : memref<32x256xf32, #tpu.memory_space<vmem>>, vector<4x128xf32>
    %c20_247 = arith.constant 20 : index
    %c128_248 = arith.constant 128 : index
    %656 = vector.load %arg11[%c20_247, %c128_248] : memref<32x256xf32, #tpu.memory_space<vmem>>, vector<4x128xf32>
    %c0_249 = arith.constant 0 : index
    %c0_250 = arith.constant 0 : index
    %657 = vector.load %arg13[%c0_249, %c0_250] : memref<4x64xf32, #tpu.memory_space<vmem>>, vector<4x64xf32>
    %c0_251 = arith.constant 0 : index
    %c0_252 = arith.constant 0 : index
    %658 = vector.load %arg8[%c0_251, %c0_252] : memref<64x256xf32, #tpu.memory_space<vmem>>, vector<64x256xf32>
    %cst_253 = arith.constant dense<0.000000e+00> : vector<4x256xf32>
    %659 = tpu.matmul %657, %658, %cst_253 {dimension_numbers = #tpu.dot_dimension_numbers<[1], [0], [0], [1], [0, 0, 1, 1], [], []>} : vector<4x64xf32>, vector<64x256xf32>, vector<4x256xf32> -> vector<4x256xf32>
    %660 = vector.extract_strided_slice %659 {offsets = [0, 0], sizes = [4, 128], strides = [1, 1]} : vector<4x256xf32> to vector<4x128xf32>
    %661 = arith.addf %655, %660 : vector<4x128xf32>
    %662 = vector.extract_strided_slice %661 {offsets = [0, 0], sizes = [4, 32], strides = [1, 1]} : vector<4x128xf32> to vector<4x32xf32>
    %663 = arith.negf %662 : vector<4x32xf32>
    %664 = math.exp %663 : vector<4x32xf32>
    %cst_254 = arith.constant 1.000000e+00 : f32
    %665 = vector.broadcast %cst_254 : f32 to vector<4x32xf32>
    %666 = arith.addf %665, %664 : vector<4x32xf32>
    %667 = arith.divf %665, %666 : vector<4x32xf32>
    %668 = vector.extract_strided_slice %661 {offsets = [0, 32], sizes = [4, 32], strides = [1, 1]} : vector<4x128xf32> to vector<4x32xf32>
    %669 = arith.negf %668 : vector<4x32xf32>
    %670 = math.exp %669 : vector<4x32xf32>
    %cst_255 = arith.constant 1.000000e+00 : f32
    %671 = vector.broadcast %cst_255 : f32 to vector<4x32xf32>
    %672 = arith.addf %671, %670 : vector<4x32xf32>
    %673 = arith.divf %671, %672 : vector<4x32xf32>
    %674 = vector.extract_strided_slice %661 {offsets = [0, 64], sizes = [4, 32], strides = [1, 1]} : vector<4x128xf32> to vector<4x32xf32>
    %675 = math.tanh %674 : vector<4x32xf32>
    %676 = vector.extract_strided_slice %661 {offsets = [0, 96], sizes = [4, 32], strides = [1, 1]} : vector<4x128xf32> to vector<4x32xf32>
    %677 = arith.negf %676 : vector<4x32xf32>
    %678 = math.exp %677 : vector<4x32xf32>
    %cst_256 = arith.constant 1.000000e+00 : f32
    %679 = vector.broadcast %cst_256 : f32 to vector<4x32xf32>
    %680 = arith.addf %679, %678 : vector<4x32xf32>
    %681 = arith.divf %679, %680 : vector<4x32xf32>
    %682 = arith.mulf %673, %623 : vector<4x32xf32>
    %683 = arith.mulf %667, %675 : vector<4x32xf32>
    %684 = arith.addf %682, %683 : vector<4x32xf32>
    %685 = math.tanh %684 : vector<4x32xf32>
    %686 = arith.mulf %681, %685 : vector<4x32xf32>
    %687 = vector.extract_strided_slice %659 {offsets = [0, 128], sizes = [4, 128], strides = [1, 1]} : vector<4x256xf32> to vector<4x128xf32>
    %688 = arith.addf %656, %687 : vector<4x128xf32>
    %689 = vector.extract_strided_slice %688 {offsets = [0, 0], sizes = [4, 32], strides = [1, 1]} : vector<4x128xf32> to vector<4x32xf32>
    %690 = arith.negf %689 : vector<4x32xf32>
    %691 = math.exp %690 : vector<4x32xf32>
    %cst_257 = arith.constant 1.000000e+00 : f32
    %692 = vector.broadcast %cst_257 : f32 to vector<4x32xf32>
    %693 = arith.addf %692, %691 : vector<4x32xf32>
    %694 = arith.divf %692, %693 : vector<4x32xf32>
    %695 = vector.extract_strided_slice %688 {offsets = [0, 32], sizes = [4, 32], strides = [1, 1]} : vector<4x128xf32> to vector<4x32xf32>
    %696 = arith.negf %695 : vector<4x32xf32>
    %697 = math.exp %696 : vector<4x32xf32>
    %cst_258 = arith.constant 1.000000e+00 : f32
    %698 = vector.broadcast %cst_258 : f32 to vector<4x32xf32>
    %699 = arith.addf %698, %697 : vector<4x32xf32>
    %700 = arith.divf %698, %699 : vector<4x32xf32>
    %701 = vector.extract_strided_slice %688 {offsets = [0, 64], sizes = [4, 32], strides = [1, 1]} : vector<4x128xf32> to vector<4x32xf32>
    %702 = math.tanh %701 : vector<4x32xf32>
    %703 = vector.extract_strided_slice %688 {offsets = [0, 96], sizes = [4, 32], strides = [1, 1]} : vector<4x128xf32> to vector<4x32xf32>
    %704 = arith.negf %703 : vector<4x32xf32>
    %705 = math.exp %704 : vector<4x32xf32>
    %cst_259 = arith.constant 1.000000e+00 : f32
    %706 = vector.broadcast %cst_259 : f32 to vector<4x32xf32>
    %707 = arith.addf %706, %705 : vector<4x32xf32>
    %708 = arith.divf %706, %707 : vector<4x32xf32>
    %709 = arith.mulf %700, %650 : vector<4x32xf32>
    %710 = arith.mulf %694, %702 : vector<4x32xf32>
    %711 = arith.addf %709, %710 : vector<4x32xf32>
    %712 = math.tanh %711 : vector<4x32xf32>
    %713 = arith.mulf %708, %712 : vector<4x32xf32>
    %c0_260 = arith.constant 0 : index
    %c0_261 = arith.constant 0 : index
    %714 = vector.load %arg13[%c0_260, %c0_261] : memref<4x64xf32, #tpu.memory_space<vmem>>, vector<4x32xf32>
    tpu.vector_store %arg13[%c0_260, %c0_261], %686 {strides = array<i32>} : memref<4x64xf32, #tpu.memory_space<vmem>>, vector<4x32xf32>,
    %c0_262 = arith.constant 0 : index
    %c32_263 = arith.constant 32 : index
    %715 = vector.load %arg13[%c0_262, %c32_263] : memref<4x64xf32, #tpu.memory_space<vmem>>, vector<4x32xf32>
    tpu.vector_store %arg13[%c0_262, %c32_263], %713 {strides = array<i32>} : memref<4x64xf32, #tpu.memory_space<vmem>>, vector<4x32xf32>,
    %c12_264 = arith.constant 12 : index
    %c0_265 = arith.constant 0 : index
    %716 = vector.load %arg11[%c12_264, %c0_265] : memref<32x256xf32, #tpu.memory_space<vmem>>, vector<4x128xf32>
    %c16_266 = arith.constant 16 : index
    %c128_267 = arith.constant 128 : index
    %717 = vector.load %arg11[%c16_266, %c128_267] : memref<32x256xf32, #tpu.memory_space<vmem>>, vector<4x128xf32>
    %c0_268 = arith.constant 0 : index
    %c0_269 = arith.constant 0 : index
    %718 = vector.load %arg13[%c0_268, %c0_269] : memref<4x64xf32, #tpu.memory_space<vmem>>, vector<4x64xf32>
    %c0_270 = arith.constant 0 : index
    %c0_271 = arith.constant 0 : index
    %719 = vector.load %arg8[%c0_270, %c0_271] : memref<64x256xf32, #tpu.memory_space<vmem>>, vector<64x256xf32>
    %cst_272 = arith.constant dense<0.000000e+00> : vector<4x256xf32>
    %720 = tpu.matmul %718, %719, %cst_272 {dimension_numbers = #tpu.dot_dimension_numbers<[1], [0], [0], [1], [0, 0, 1, 1], [], []>} : vector<4x64xf32>, vector<64x256xf32>, vector<4x256xf32> -> vector<4x256xf32>
    %721 = vector.extract_strided_slice %720 {offsets = [0, 0], sizes = [4, 128], strides = [1, 1]} : vector<4x256xf32> to vector<4x128xf32>
    %722 = arith.addf %716, %721 : vector<4x128xf32>
    %723 = vector.extract_strided_slice %722 {offsets = [0, 0], sizes = [4, 32], strides = [1, 1]} : vector<4x128xf32> to vector<4x32xf32>
    %724 = arith.negf %723 : vector<4x32xf32>
    %725 = math.exp %724 : vector<4x32xf32>
    %cst_273 = arith.constant 1.000000e+00 : f32
    %726 = vector.broadcast %cst_273 : f32 to vector<4x32xf32>
    %727 = arith.addf %726, %725 : vector<4x32xf32>
    %728 = arith.divf %726, %727 : vector<4x32xf32>
    %729 = vector.extract_strided_slice %722 {offsets = [0, 32], sizes = [4, 32], strides = [1, 1]} : vector<4x128xf32> to vector<4x32xf32>
    %730 = arith.negf %729 : vector<4x32xf32>
    %731 = math.exp %730 : vector<4x32xf32>
    %cst_274 = arith.constant 1.000000e+00 : f32
    %732 = vector.broadcast %cst_274 : f32 to vector<4x32xf32>
    %733 = arith.addf %732, %731 : vector<4x32xf32>
    %734 = arith.divf %732, %733 : vector<4x32xf32>
    %735 = vector.extract_strided_slice %722 {offsets = [0, 64], sizes = [4, 32], strides = [1, 1]} : vector<4x128xf32> to vector<4x32xf32>
    %736 = math.tanh %735 : vector<4x32xf32>
    %737 = vector.extract_strided_slice %722 {offsets = [0, 96], sizes = [4, 32], strides = [1, 1]} : vector<4x128xf32> to vector<4x32xf32>
    %738 = arith.negf %737 : vector<4x32xf32>
    %739 = math.exp %738 : vector<4x32xf32>
    %cst_275 = arith.constant 1.000000e+00 : f32
    %740 = vector.broadcast %cst_275 : f32 to vector<4x32xf32>
    %741 = arith.addf %740, %739 : vector<4x32xf32>
    %742 = arith.divf %740, %741 : vector<4x32xf32>
    %743 = arith.mulf %734, %684 : vector<4x32xf32>
    %744 = arith.mulf %728, %736 : vector<4x32xf32>
    %745 = arith.addf %743, %744 : vector<4x32xf32>
    %746 = math.tanh %745 : vector<4x32xf32>
    %747 = arith.mulf %742, %746 : vector<4x32xf32>
    %748 = vector.extract_strided_slice %720 {offsets = [0, 128], sizes = [4, 128], strides = [1, 1]} : vector<4x256xf32> to vector<4x128xf32>
    %749 = arith.addf %717, %748 : vector<4x128xf32>
    %750 = vector.extract_strided_slice %749 {offsets = [0, 0], sizes = [4, 32], strides = [1, 1]} : vector<4x128xf32> to vector<4x32xf32>
    %751 = arith.negf %750 : vector<4x32xf32>
    %752 = math.exp %751 : vector<4x32xf32>
    %cst_276 = arith.constant 1.000000e+00 : f32
    %753 = vector.broadcast %cst_276 : f32 to vector<4x32xf32>
    %754 = arith.addf %753, %752 : vector<4x32xf32>
    %755 = arith.divf %753, %754 : vector<4x32xf32>
    %756 = vector.extract_strided_slice %749 {offsets = [0, 32], sizes = [4, 32], strides = [1, 1]} : vector<4x128xf32> to vector<4x32xf32>
    %757 = arith.negf %756 : vector<4x32xf32>
    %758 = math.exp %757 : vector<4x32xf32>
    %cst_277 = arith.constant 1.000000e+00 : f32
    %759 = vector.broadcast %cst_277 : f32 to vector<4x32xf32>
    %760 = arith.addf %759, %758 : vector<4x32xf32>
    %761 = arith.divf %759, %760 : vector<4x32xf32>
    %762 = vector.extract_strided_slice %749 {offsets = [0, 64], sizes = [4, 32], strides = [1, 1]} : vector<4x128xf32> to vector<4x32xf32>
    %763 = math.tanh %762 : vector<4x32xf32>
    %764 = vector.extract_strided_slice %749 {offsets = [0, 96], sizes = [4, 32], strides = [1, 1]} : vector<4x128xf32> to vector<4x32xf32>
    %765 = arith.negf %764 : vector<4x32xf32>
    %766 = math.exp %765 : vector<4x32xf32>
    %cst_278 = arith.constant 1.000000e+00 : f32
    %767 = vector.broadcast %cst_278 : f32 to vector<4x32xf32>
    %768 = arith.addf %767, %766 : vector<4x32xf32>
    %769 = arith.divf %767, %768 : vector<4x32xf32>
    %770 = arith.mulf %761, %711 : vector<4x32xf32>
    %771 = arith.mulf %755, %763 : vector<4x32xf32>
    %772 = arith.addf %770, %771 : vector<4x32xf32>
    %773 = math.tanh %772 : vector<4x32xf32>
    %774 = arith.mulf %769, %773 : vector<4x32xf32>
    %c0_279 = arith.constant 0 : index
    %c0_280 = arith.constant 0 : index
    %775 = vector.load %arg13[%c0_279, %c0_280] : memref<4x64xf32, #tpu.memory_space<vmem>>, vector<4x32xf32>
    tpu.vector_store %arg13[%c0_279, %c0_280], %747 {strides = array<i32>} : memref<4x64xf32, #tpu.memory_space<vmem>>, vector<4x32xf32>,
    %c0_281 = arith.constant 0 : index
    %c32_282 = arith.constant 32 : index
    %776 = vector.load %arg13[%c0_281, %c32_282] : memref<4x64xf32, #tpu.memory_space<vmem>>, vector<4x32xf32>
    tpu.vector_store %arg13[%c0_281, %c32_282], %774 {strides = array<i32>} : memref<4x64xf32, #tpu.memory_space<vmem>>, vector<4x32xf32>,
    %c16_283 = arith.constant 16 : index
    %c0_284 = arith.constant 0 : index
    %777 = vector.load %arg11[%c16_283, %c0_284] : memref<32x256xf32, #tpu.memory_space<vmem>>, vector<4x128xf32>
    %c12_285 = arith.constant 12 : index
    %c128_286 = arith.constant 128 : index
    %778 = vector.load %arg11[%c12_285, %c128_286] : memref<32x256xf32, #tpu.memory_space<vmem>>, vector<4x128xf32>
    %c0_287 = arith.constant 0 : index
    %c0_288 = arith.constant 0 : index
    %779 = vector.load %arg13[%c0_287, %c0_288] : memref<4x64xf32, #tpu.memory_space<vmem>>, vector<4x64xf32>
    %c0_289 = arith.constant 0 : index
    %c0_290 = arith.constant 0 : index
    %780 = vector.load %arg8[%c0_289, %c0_290] : memref<64x256xf32, #tpu.memory_space<vmem>>, vector<64x256xf32>
    %cst_291 = arith.constant dense<0.000000e+00> : vector<4x256xf32>
    %781 = tpu.matmul %779, %780, %cst_291 {dimension_numbers = #tpu.dot_dimension_numbers<[1], [0], [0], [1], [0, 0, 1, 1], [], []>} : vector<4x64xf32>, vector<64x256xf32>, vector<4x256xf32> -> vector<4x256xf32>
    %782 = vector.extract_strided_slice %781 {offsets = [0, 0], sizes = [4, 128], strides = [1, 1]} : vector<4x256xf32> to vector<4x128xf32>
    %783 = arith.addf %777, %782 : vector<4x128xf32>
    %784 = vector.extract_strided_slice %783 {offsets = [0, 0], sizes = [4, 32], strides = [1, 1]} : vector<4x128xf32> to vector<4x32xf32>
    %785 = arith.negf %784 : vector<4x32xf32>
    %786 = math.exp %785 : vector<4x32xf32>
    %cst_292 = arith.constant 1.000000e+00 : f32
    %787 = vector.broadcast %cst_292 : f32 to vector<4x32xf32>
    %788 = arith.addf %787, %786 : vector<4x32xf32>
    %789 = arith.divf %787, %788 : vector<4x32xf32>
    %790 = vector.extract_strided_slice %783 {offsets = [0, 32], sizes = [4, 32], strides = [1, 1]} : vector<4x128xf32> to vector<4x32xf32>
    %791 = arith.negf %790 : vector<4x32xf32>
    %792 = math.exp %791 : vector<4x32xf32>
    %cst_293 = arith.constant 1.000000e+00 : f32
    %793 = vector.broadcast %cst_293 : f32 to vector<4x32xf32>
    %794 = arith.addf %793, %792 : vector<4x32xf32>
    %795 = arith.divf %793, %794 : vector<4x32xf32>
    %796 = vector.extract_strided_slice %783 {offsets = [0, 64], sizes = [4, 32], strides = [1, 1]} : vector<4x128xf32> to vector<4x32xf32>
    %797 = math.tanh %796 : vector<4x32xf32>
    %798 = vector.extract_strided_slice %783 {offsets = [0, 96], sizes = [4, 32], strides = [1, 1]} : vector<4x128xf32> to vector<4x32xf32>
    %799 = arith.negf %798 : vector<4x32xf32>
    %800 = math.exp %799 : vector<4x32xf32>
    %cst_294 = arith.constant 1.000000e+00 : f32
    %801 = vector.broadcast %cst_294 : f32 to vector<4x32xf32>
    %802 = arith.addf %801, %800 : vector<4x32xf32>
    %803 = arith.divf %801, %802 : vector<4x32xf32>
    %804 = arith.mulf %795, %745 : vector<4x32xf32>
    %805 = arith.mulf %789, %797 : vector<4x32xf32>
    %806 = arith.addf %804, %805 : vector<4x32xf32>
    %807 = math.tanh %806 : vector<4x32xf32>
    %808 = arith.mulf %803, %807 : vector<4x32xf32>
    %809 = vector.extract_strided_slice %781 {offsets = [0, 128], sizes = [4, 128], strides = [1, 1]} : vector<4x256xf32> to vector<4x128xf32>
    %810 = arith.addf %778, %809 : vector<4x128xf32>
    %811 = vector.extract_strided_slice %810 {offsets = [0, 0], sizes = [4, 32], strides = [1, 1]} : vector<4x128xf32> to vector<4x32xf32>
    %812 = arith.negf %811 : vector<4x32xf32>
    %813 = math.exp %812 : vector<4x32xf32>
    %cst_295 = arith.constant 1.000000e+00 : f32
    %814 = vector.broadcast %cst_295 : f32 to vector<4x32xf32>
    %815 = arith.addf %814, %813 : vector<4x32xf32>
    %816 = arith.divf %814, %815 : vector<4x32xf32>
    %817 = vector.extract_strided_slice %810 {offsets = [0, 32], sizes = [4, 32], strides = [1, 1]} : vector<4x128xf32> to vector<4x32xf32>
    %818 = arith.negf %817 : vector<4x32xf32>
    %819 = math.exp %818 : vector<4x32xf32>
    %cst_296 = arith.constant 1.000000e+00 : f32
    %820 = vector.broadcast %cst_296 : f32 to vector<4x32xf32>
    %821 = arith.addf %820, %819 : vector<4x32xf32>
    %822 = arith.divf %820, %821 : vector<4x32xf32>
    %823 = vector.extract_strided_slice %810 {offsets = [0, 64], sizes = [4, 32], strides = [1, 1]} : vector<4x128xf32> to vector<4x32xf32>
    %824 = math.tanh %823 : vector<4x32xf32>
    %825 = vector.extract_strided_slice %810 {offsets = [0, 96], sizes = [4, 32], strides = [1, 1]} : vector<4x128xf32> to vector<4x32xf32>
    %826 = arith.negf %825 : vector<4x32xf32>
    %827 = math.exp %826 : vector<4x32xf32>
    %cst_297 = arith.constant 1.000000e+00 : f32
    %828 = vector.broadcast %cst_297 : f32 to vector<4x32xf32>
    %829 = arith.addf %828, %827 : vector<4x32xf32>
    %830 = arith.divf %828, %829 : vector<4x32xf32>
    %831 = arith.mulf %822, %772 : vector<4x32xf32>
    %832 = arith.mulf %816, %824 : vector<4x32xf32>
    %833 = arith.addf %831, %832 : vector<4x32xf32>
    %834 = math.tanh %833 : vector<4x32xf32>
    %835 = arith.mulf %830, %834 : vector<4x32xf32>
    %c0_298 = arith.constant 0 : index
    %c0_299 = arith.constant 0 : index
    %836 = vector.load %arg13[%c0_298, %c0_299] : memref<4x64xf32, #tpu.memory_space<vmem>>, vector<4x32xf32>
    tpu.vector_store %arg13[%c0_298, %c0_299], %808 {strides = array<i32>} : memref<4x64xf32, #tpu.memory_space<vmem>>, vector<4x32xf32>,
    %c0_300 = arith.constant 0 : index
    %c32_301 = arith.constant 32 : index
    %837 = vector.load %arg13[%c0_300, %c32_301] : memref<4x64xf32, #tpu.memory_space<vmem>>, vector<4x32xf32>
    tpu.vector_store %arg13[%c0_300, %c32_301], %835 {strides = array<i32>} : memref<4x64xf32, #tpu.memory_space<vmem>>, vector<4x32xf32>,
    %c20_302 = arith.constant 20 : index
    %c0_303 = arith.constant 0 : index
    %838 = vector.load %arg11[%c20_302, %c0_303] : memref<32x256xf32, #tpu.memory_space<vmem>>, vector<4x128xf32>
    %c8_304 = arith.constant 8 : index
    %c128_305 = arith.constant 128 : index
    %839 = vector.load %arg11[%c8_304, %c128_305] : memref<32x256xf32, #tpu.memory_space<vmem>>, vector<4x128xf32>
    %c0_306 = arith.constant 0 : index
    %c0_307 = arith.constant 0 : index
    %840 = vector.load %arg13[%c0_306, %c0_307] : memref<4x64xf32, #tpu.memory_space<vmem>>, vector<4x64xf32>
    %c0_308 = arith.constant 0 : index
    %c0_309 = arith.constant 0 : index
    %841 = vector.load %arg8[%c0_308, %c0_309] : memref<64x256xf32, #tpu.memory_space<vmem>>, vector<64x256xf32>
    %cst_310 = arith.constant dense<0.000000e+00> : vector<4x256xf32>
    %842 = tpu.matmul %840, %841, %cst_310 {dimension_numbers = #tpu.dot_dimension_numbers<[1], [0], [0], [1], [0, 0, 1, 1], [], []>} : vector<4x64xf32>, vector<64x256xf32>, vector<4x256xf32> -> vector<4x256xf32>
    %843 = vector.extract_strided_slice %842 {offsets = [0, 0], sizes = [4, 128], strides = [1, 1]} : vector<4x256xf32> to vector<4x128xf32>
    %844 = arith.addf %838, %843 : vector<4x128xf32>
    %845 = vector.extract_strided_slice %844 {offsets = [0, 0], sizes = [4, 32], strides = [1, 1]} : vector<4x128xf32> to vector<4x32xf32>
    %846 = arith.negf %845 : vector<4x32xf32>
    %847 = math.exp %846 : vector<4x32xf32>
    %cst_311 = arith.constant 1.000000e+00 : f32
    %848 = vector.broadcast %cst_311 : f32 to vector<4x32xf32>
    %849 = arith.addf %848, %847 : vector<4x32xf32>
    %850 = arith.divf %848, %849 : vector<4x32xf32>
    %851 = vector.extract_strided_slice %844 {offsets = [0, 32], sizes = [4, 32], strides = [1, 1]} : vector<4x128xf32> to vector<4x32xf32>
    %852 = arith.negf %851 : vector<4x32xf32>
    %853 = math.exp %852 : vector<4x32xf32>
    %cst_312 = arith.constant 1.000000e+00 : f32
    %854 = vector.broadcast %cst_312 : f32 to vector<4x32xf32>
    %855 = arith.addf %854, %853 : vector<4x32xf32>
    %856 = arith.divf %854, %855 : vector<4x32xf32>
    %857 = vector.extract_strided_slice %844 {offsets = [0, 64], sizes = [4, 32], strides = [1, 1]} : vector<4x128xf32> to vector<4x32xf32>
    %858 = math.tanh %857 : vector<4x32xf32>
    %859 = vector.extract_strided_slice %844 {offsets = [0, 96], sizes = [4, 32], strides = [1, 1]} : vector<4x128xf32> to vector<4x32xf32>
    %860 = arith.negf %859 : vector<4x32xf32>
    %861 = math.exp %860 : vector<4x32xf32>
    %cst_313 = arith.constant 1.000000e+00 : f32
    %862 = vector.broadcast %cst_313 : f32 to vector<4x32xf32>
    %863 = arith.addf %862, %861 : vector<4x32xf32>
    %864 = arith.divf %862, %863 : vector<4x32xf32>
    %865 = arith.mulf %856, %806 : vector<4x32xf32>
    %866 = arith.mulf %850, %858 : vector<4x32xf32>
    %867 = arith.addf %865, %866 : vector<4x32xf32>
    %868 = math.tanh %867 : vector<4x32xf32>
    %869 = arith.mulf %864, %868 : vector<4x32xf32>
    %870 = vector.extract_strided_slice %842 {offsets = [0, 128], sizes = [4, 128], strides = [1, 1]} : vector<4x256xf32> to vector<4x128xf32>
    %871 = arith.addf %839, %870 : vector<4x128xf32>
    %872 = vector.extract_strided_slice %871 {offsets = [0, 0], sizes = [4, 32], strides = [1, 1]} : vector<4x128xf32> to vector<4x32xf32>
    %873 = arith.negf %872 : vector<4x32xf32>
    %874 = math.exp %873 : vector<4x32xf32>
    %cst_314 = arith.constant 1.000000e+00 : f32
    %875 = vector.broadcast %cst_314 : f32 to vector<4x32xf32>
    %876 = arith.addf %875, %874 : vector<4x32xf32>
    %877 = arith.divf %875, %876 : vector<4x32xf32>
    %878 = vector.extract_strided_slice %871 {offsets = [0, 32], sizes = [4, 32], strides = [1, 1]} : vector<4x128xf32> to vector<4x32xf32>
    %879 = arith.negf %878 : vector<4x32xf32>
    %880 = math.exp %879 : vector<4x32xf32>
    %cst_315 = arith.constant 1.000000e+00 : f32
    %881 = vector.broadcast %cst_315 : f32 to vector<4x32xf32>
    %882 = arith.addf %881, %880 : vector<4x32xf32>
    %883 = arith.divf %881, %882 : vector<4x32xf32>
    %884 = vector.extract_strided_slice %871 {offsets = [0, 64], sizes = [4, 32], strides = [1, 1]} : vector<4x128xf32> to vector<4x32xf32>
    %885 = math.tanh %884 : vector<4x32xf32>
    %886 = vector.extract_strided_slice %871 {offsets = [0, 96], sizes = [4, 32], strides = [1, 1]} : vector<4x128xf32> to vector<4x32xf32>
    %887 = arith.negf %886 : vector<4x32xf32>
    %888 = math.exp %887 : vector<4x32xf32>
    %cst_316 = arith.constant 1.000000e+00 : f32
    %889 = vector.broadcast %cst_316 : f32 to vector<4x32xf32>
    %890 = arith.addf %889, %888 : vector<4x32xf32>
    %891 = arith.divf %889, %890 : vector<4x32xf32>
    %892 = arith.mulf %883, %833 : vector<4x32xf32>
    %893 = arith.mulf %877, %885 : vector<4x32xf32>
    %894 = arith.addf %892, %893 : vector<4x32xf32>
    %895 = math.tanh %894 : vector<4x32xf32>
    %896 = arith.mulf %891, %895 : vector<4x32xf32>
    %c0_317 = arith.constant 0 : index
    %c0_318 = arith.constant 0 : index
    %897 = vector.load %arg13[%c0_317, %c0_318] : memref<4x64xf32, #tpu.memory_space<vmem>>, vector<4x32xf32>
    tpu.vector_store %arg13[%c0_317, %c0_318], %869 {strides = array<i32>} : memref<4x64xf32, #tpu.memory_space<vmem>>, vector<4x32xf32>,
    %c0_319 = arith.constant 0 : index
    %c32_320 = arith.constant 32 : index
    %898 = vector.load %arg13[%c0_319, %c32_320] : memref<4x64xf32, #tpu.memory_space<vmem>>, vector<4x32xf32>
    tpu.vector_store %arg13[%c0_319, %c32_320], %896 {strides = array<i32>} : memref<4x64xf32, #tpu.memory_space<vmem>>, vector<4x32xf32>,
    %c24_321 = arith.constant 24 : index
    %c0_322 = arith.constant 0 : index
    %899 = vector.load %arg11[%c24_321, %c0_322] : memref<32x256xf32, #tpu.memory_space<vmem>>, vector<4x128xf32>
    %c4_323 = arith.constant 4 : index
    %c128_324 = arith.constant 128 : index
    %900 = vector.load %arg11[%c4_323, %c128_324] : memref<32x256xf32, #tpu.memory_space<vmem>>, vector<4x128xf32>
    %c0_325 = arith.constant 0 : index
    %c0_326 = arith.constant 0 : index
    %901 = vector.load %arg13[%c0_325, %c0_326] : memref<4x64xf32, #tpu.memory_space<vmem>>, vector<4x64xf32>
    %c0_327 = arith.constant 0 : index
    %c0_328 = arith.constant 0 : index
    %902 = vector.load %arg8[%c0_327, %c0_328] : memref<64x256xf32, #tpu.memory_space<vmem>>, vector<64x256xf32>
    %cst_329 = arith.constant dense<0.000000e+00> : vector<4x256xf32>
    %903 = tpu.matmul %901, %902, %cst_329 {dimension_numbers = #tpu.dot_dimension_numbers<[1], [0], [0], [1], [0, 0, 1, 1], [], []>} : vector<4x64xf32>, vector<64x256xf32>, vector<4x256xf32> -> vector<4x256xf32>
    %904 = vector.extract_strided_slice %903 {offsets = [0, 0], sizes = [4, 128], strides = [1, 1]} : vector<4x256xf32> to vector<4x128xf32>
    %905 = arith.addf %899, %904 : vector<4x128xf32>
    %906 = vector.extract_strided_slice %905 {offsets = [0, 0], sizes = [4, 32], strides = [1, 1]} : vector<4x128xf32> to vector<4x32xf32>
    %907 = arith.negf %906 : vector<4x32xf32>
    %908 = math.exp %907 : vector<4x32xf32>
    %cst_330 = arith.constant 1.000000e+00 : f32
    %909 = vector.broadcast %cst_330 : f32 to vector<4x32xf32>
    %910 = arith.addf %909, %908 : vector<4x32xf32>
    %911 = arith.divf %909, %910 : vector<4x32xf32>
    %912 = vector.extract_strided_slice %905 {offsets = [0, 32], sizes = [4, 32], strides = [1, 1]} : vector<4x128xf32> to vector<4x32xf32>
    %913 = arith.negf %912 : vector<4x32xf32>
    %914 = math.exp %913 : vector<4x32xf32>
    %cst_331 = arith.constant 1.000000e+00 : f32
    %915 = vector.broadcast %cst_331 : f32 to vector<4x32xf32>
    %916 = arith.addf %915, %914 : vector<4x32xf32>
    %917 = arith.divf %915, %916 : vector<4x32xf32>
    %918 = vector.extract_strided_slice %905 {offsets = [0, 64], sizes = [4, 32], strides = [1, 1]} : vector<4x128xf32> to vector<4x32xf32>
    %919 = math.tanh %918 : vector<4x32xf32>
    %920 = vector.extract_strided_slice %905 {offsets = [0, 96], sizes = [4, 32], strides = [1, 1]} : vector<4x128xf32> to vector<4x32xf32>
    %921 = arith.negf %920 : vector<4x32xf32>
    %922 = math.exp %921 : vector<4x32xf32>
    %cst_332 = arith.constant 1.000000e+00 : f32
    %923 = vector.broadcast %cst_332 : f32 to vector<4x32xf32>
    %924 = arith.addf %923, %922 : vector<4x32xf32>
    %925 = arith.divf %923, %924 : vector<4x32xf32>
    %926 = arith.mulf %917, %867 : vector<4x32xf32>
    %927 = arith.mulf %911, %919 : vector<4x32xf32>
    %928 = arith.addf %926, %927 : vector<4x32xf32>
    %929 = math.tanh %928 : vector<4x32xf32>
    %930 = arith.mulf %925, %929 : vector<4x32xf32>
    %931 = vector.extract_strided_slice %903 {offsets = [0, 128], sizes = [4, 128], strides = [1, 1]} : vector<4x256xf32> to vector<4x128xf32>
    %932 = arith.addf %900, %931 : vector<4x128xf32>
    %933 = vector.extract_strided_slice %932 {offsets = [0, 0], sizes = [4, 32], strides = [1, 1]} : vector<4x128xf32> to vector<4x32xf32>
    %934 = arith.negf %933 : vector<4x32xf32>
    %935 = math.exp %934 : vector<4x32xf32>
    %cst_333 = arith.constant 1.000000e+00 : f32
    %936 = vector.broadcast %cst_333 : f32 to vector<4x32xf32>
    %937 = arith.addf %936, %935 : vector<4x32xf32>
    %938 = arith.divf %936, %937 : vector<4x32xf32>
    %939 = vector.extract_strided_slice %932 {offsets = [0, 32], sizes = [4, 32], strides = [1, 1]} : vector<4x128xf32> to vector<4x32xf32>
    %940 = arith.negf %939 : vector<4x32xf32>
    %941 = math.exp %940 : vector<4x32xf32>
    %cst_334 = arith.constant 1.000000e+00 : f32
    %942 = vector.broadcast %cst_334 : f32 to vector<4x32xf32>
    %943 = arith.addf %942, %941 : vector<4x32xf32>
    %944 = arith.divf %942, %943 : vector<4x32xf32>
    %945 = vector.extract_strided_slice %932 {offsets = [0, 64], sizes = [4, 32], strides = [1, 1]} : vector<4x128xf32> to vector<4x32xf32>
    %946 = math.tanh %945 : vector<4x32xf32>
    %947 = vector.extract_strided_slice %932 {offsets = [0, 96], sizes = [4, 32], strides = [1, 1]} : vector<4x128xf32> to vector<4x32xf32>
    %948 = arith.negf %947 : vector<4x32xf32>
    %949 = math.exp %948 : vector<4x32xf32>
    %cst_335 = arith.constant 1.000000e+00 : f32
    %950 = vector.broadcast %cst_335 : f32 to vector<4x32xf32>
    %951 = arith.addf %950, %949 : vector<4x32xf32>
    %952 = arith.divf %950, %951 : vector<4x32xf32>
    %953 = arith.mulf %944, %894 : vector<4x32xf32>
    %954 = arith.mulf %938, %946 : vector<4x32xf32>
    %955 = arith.addf %953, %954 : vector<4x32xf32>
    %956 = math.tanh %955 : vector<4x32xf32>
    %957 = arith.mulf %952, %956 : vector<4x32xf32>
    %c0_336 = arith.constant 0 : index
    %c0_337 = arith.constant 0 : index
    %958 = vector.load %arg13[%c0_336, %c0_337] : memref<4x64xf32, #tpu.memory_space<vmem>>, vector<4x32xf32>
    tpu.vector_store %arg13[%c0_336, %c0_337], %930 {strides = array<i32>} : memref<4x64xf32, #tpu.memory_space<vmem>>, vector<4x32xf32>,
    %c0_338 = arith.constant 0 : index
    %c32_339 = arith.constant 32 : index
    %959 = vector.load %arg13[%c0_338, %c32_339] : memref<4x64xf32, #tpu.memory_space<vmem>>, vector<4x32xf32>
    tpu.vector_store %arg13[%c0_338, %c32_339], %957 {strides = array<i32>} : memref<4x64xf32, #tpu.memory_space<vmem>>, vector<4x32xf32>,
    %c28_340 = arith.constant 28 : index
    %c0_341 = arith.constant 0 : index
    %960 = vector.load %arg11[%c28_340, %c0_341] : memref<32x256xf32, #tpu.memory_space<vmem>>, vector<4x128xf32>
    %c0_342 = arith.constant 0 : index
    %c128_343 = arith.constant 128 : index
    %961 = vector.load %arg11[%c0_342, %c128_343] : memref<32x256xf32, #tpu.memory_space<vmem>>, vector<4x128xf32>
    %c0_344 = arith.constant 0 : index
    %c0_345 = arith.constant 0 : index
    %962 = vector.load %arg13[%c0_344, %c0_345] : memref<4x64xf32, #tpu.memory_space<vmem>>, vector<4x64xf32>
    %c0_346 = arith.constant 0 : index
    %c0_347 = arith.constant 0 : index
    %963 = vector.load %arg8[%c0_346, %c0_347] : memref<64x256xf32, #tpu.memory_space<vmem>>, vector<64x256xf32>
    %cst_348 = arith.constant dense<0.000000e+00> : vector<4x256xf32>
    %964 = tpu.matmul %962, %963, %cst_348 {dimension_numbers = #tpu.dot_dimension_numbers<[1], [0], [0], [1], [0, 0, 1, 1], [], []>} : vector<4x64xf32>, vector<64x256xf32>, vector<4x256xf32> -> vector<4x256xf32>
    %965 = vector.extract_strided_slice %964 {offsets = [0, 0], sizes = [4, 128], strides = [1, 1]} : vector<4x256xf32> to vector<4x128xf32>
    %966 = arith.addf %960, %965 : vector<4x128xf32>
    %967 = vector.extract_strided_slice %966 {offsets = [0, 0], sizes = [4, 32], strides = [1, 1]} : vector<4x128xf32> to vector<4x32xf32>
    %968 = arith.negf %967 : vector<4x32xf32>
    %969 = math.exp %968 : vector<4x32xf32>
    %cst_349 = arith.constant 1.000000e+00 : f32
    %970 = vector.broadcast %cst_349 : f32 to vector<4x32xf32>
    %971 = arith.addf %970, %969 : vector<4x32xf32>
    %972 = arith.divf %970, %971 : vector<4x32xf32>
    %973 = vector.extract_strided_slice %966 {offsets = [0, 32], sizes = [4, 32], strides = [1, 1]} : vector<4x128xf32> to vector<4x32xf32>
    %974 = arith.negf %973 : vector<4x32xf32>
    %975 = math.exp %974 : vector<4x32xf32>
    %cst_350 = arith.constant 1.000000e+00 : f32
    %976 = vector.broadcast %cst_350 : f32 to vector<4x32xf32>
    %977 = arith.addf %976, %975 : vector<4x32xf32>
    %978 = arith.divf %976, %977 : vector<4x32xf32>
    %979 = vector.extract_strided_slice %966 {offsets = [0, 64], sizes = [4, 32], strides = [1, 1]} : vector<4x128xf32> to vector<4x32xf32>
    %980 = math.tanh %979 : vector<4x32xf32>
    %981 = vector.extract_strided_slice %966 {offsets = [0, 96], sizes = [4, 32], strides = [1, 1]} : vector<4x128xf32> to vector<4x32xf32>
    %982 = arith.negf %981 : vector<4x32xf32>
    %983 = math.exp %982 : vector<4x32xf32>
    %cst_351 = arith.constant 1.000000e+00 : f32
    %984 = vector.broadcast %cst_351 : f32 to vector<4x32xf32>
    %985 = arith.addf %984, %983 : vector<4x32xf32>
    %986 = arith.divf %984, %985 : vector<4x32xf32>
    %987 = arith.mulf %978, %928 : vector<4x32xf32>
    %988 = arith.mulf %972, %980 : vector<4x32xf32>
    %989 = arith.addf %987, %988 : vector<4x32xf32>
    %990 = math.tanh %989 : vector<4x32xf32>
    %991 = arith.mulf %986, %990 : vector<4x32xf32>
    %992 = vector.extract_strided_slice %964 {offsets = [0, 128], sizes = [4, 128], strides = [1, 1]} : vector<4x256xf32> to vector<4x128xf32>
    %993 = arith.addf %961, %992 : vector<4x128xf32>
    %994 = vector.extract_strided_slice %993 {offsets = [0, 0], sizes = [4, 32], strides = [1, 1]} : vector<4x128xf32> to vector<4x32xf32>
    %995 = arith.negf %994 : vector<4x32xf32>
    %996 = math.exp %995 : vector<4x32xf32>
    %cst_352 = arith.constant 1.000000e+00 : f32
    %997 = vector.broadcast %cst_352 : f32 to vector<4x32xf32>
    %998 = arith.addf %997, %996 : vector<4x32xf32>
    %999 = arith.divf %997, %998 : vector<4x32xf32>
    %1000 = vector.extract_strided_slice %993 {offsets = [0, 32], sizes = [4, 32], strides = [1, 1]} : vector<4x128xf32> to vector<4x32xf32>
    %1001 = arith.negf %1000 : vector<4x32xf32>
    %1002 = math.exp %1001 : vector<4x32xf32>
    %cst_353 = arith.constant 1.000000e+00 : f32
    %1003 = vector.broadcast %cst_353 : f32 to vector<4x32xf32>
    %1004 = arith.addf %1003, %1002 : vector<4x32xf32>
    %1005 = arith.divf %1003, %1004 : vector<4x32xf32>
    %1006 = vector.extract_strided_slice %993 {offsets = [0, 64], sizes = [4, 32], strides = [1, 1]} : vector<4x128xf32> to vector<4x32xf32>
    %1007 = math.tanh %1006 : vector<4x32xf32>
    %1008 = vector.extract_strided_slice %993 {offsets = [0, 96], sizes = [4, 32], strides = [1, 1]} : vector<4x128xf32> to vector<4x32xf32>
    %1009 = arith.negf %1008 : vector<4x32xf32>
    %1010 = math.exp %1009 : vector<4x32xf32>
    %cst_354 = arith.constant 1.000000e+00 : f32
    %1011 = vector.broadcast %cst_354 : f32 to vector<4x32xf32>
    %1012 = arith.addf %1011, %1010 : vector<4x32xf32>
    %1013 = arith.divf %1011, %1012 : vector<4x32xf32>
    %1014 = arith.mulf %1005, %955 : vector<4x32xf32>
    %1015 = arith.mulf %999, %1007 : vector<4x32xf32>
    %1016 = arith.addf %1014, %1015 : vector<4x32xf32>
    %1017 = math.tanh %1016 : vector<4x32xf32>
    %1018 = arith.mulf %1013, %1017 : vector<4x32xf32>
    %c0_355 = arith.constant 0 : index
    %c0_356 = arith.constant 0 : index
    %1019 = vector.load %arg13[%c0_355, %c0_356] : memref<4x64xf32, #tpu.memory_space<vmem>>, vector<4x32xf32>
    tpu.vector_store %arg13[%c0_355, %c0_356], %991 {strides = array<i32>} : memref<4x64xf32, #tpu.memory_space<vmem>>, vector<4x32xf32>,
    %c0_357 = arith.constant 0 : index
    %c32_358 = arith.constant 32 : index
    %1020 = vector.load %arg13[%c0_357, %c32_358] : memref<4x64xf32, #tpu.memory_space<vmem>>, vector<4x32xf32>
    tpu.vector_store %arg13[%c0_357, %c32_358], %1018 {strides = array<i32>} : memref<4x64xf32, #tpu.memory_space<vmem>>, vector<4x32xf32>,
    %c0_359 = arith.constant 0 : index
    %c0_360 = arith.constant 0 : index
    %1021 = vector.load %arg10[%c0_359, %c0_360] : memref<4x64xf32, #tpu.memory_space<vmem>>, vector<4x32xf32>
    tpu.vector_store %arg10[%c0_359, %c0_360], %1018 {strides = array<i32>} : memref<4x64xf32, #tpu.memory_space<vmem>>, vector<4x32xf32>,
    %c0_361 = arith.constant 0 : index
    %c32_362 = arith.constant 32 : index
    %1022 = vector.load %arg10[%c0_361, %c32_362] : memref<4x64xf32, #tpu.memory_space<vmem>>, vector<4x32xf32>
    tpu.vector_store %arg10[%c0_361, %c32_362], %991 {strides = array<i32>} : memref<4x64xf32, #tpu.memory_space<vmem>>, vector<4x32xf32>,
    return
  }
  func.func @transform_0(%arg0: i32) -> (i32, i32) {
    %c0_i32 = arith.constant 0 : i32
    %c0_i32_0 = arith.constant 0 : i32
    %c0_i32_1 = arith.constant 0 : i32
    return %c0_i32, %c0_i32_0 : i32, i32
  }
  func.func @transform_1(%arg0: i32) -> (i32, i32) {
    %c0_i32 = arith.constant 0 : i32
    %c0_i32_0 = arith.constant 0 : i32
    %c0_i32_1 = arith.constant 0 : i32
    return %c0_i32, %c0_i32_0 : i32, i32
  }
  func.func @transform_2(%arg0: i32) -> (i32, i32) {
    %c0_i32 = arith.constant 0 : i32
    %c0_i32_0 = arith.constant 0 : i32
    %c0_i32_1 = arith.constant 0 : i32
    return %c0_i32, %c0_i32_0 : i32, i32
  }
  func.func @transform_3(%arg0: i32) -> (i32, i32) {
    %c0_i32 = arith.constant 0 : i32
    %c0_i32_0 = arith.constant 0 : i32
    %c0_i32_1 = arith.constant 0 : i32
    return %c0_i32, %c0_i32_0 : i32, i32
  }
  func.func @transform_4(%arg0: i32) -> (i32, i32) {
    %c0_i32 = arith.constant 0 : i32
    %c0_i32_0 = arith.constant 0 : i32
    %c0_i32_1 = arith.constant 0 : i32
    return %c0_i32, %c0_i32_0 : i32, i32
  }
  func.func @transform_5(%arg0: i32) -> (i32, i32) {
    %c0_i32 = arith.constant 0 : i32
    %c0_i32_0 = arith.constant 0 : i32
    %c0_i32_1 = arith.constant 0 : i32
    return %c0_i32, %c0_i32_0 : i32, i32
  }
  func.func @transform_6(%arg0: i32) -> (i32, i32) {
    %c0_i32 = arith.constant 0 : i32
    %c0_i32_0 = arith.constant 0 : i32
    %c0_i32_1 = arith.constant 0 : i32
    return %c0_i32, %c0_i32_0 : i32, i32
  }
  func.func @transform_7(%arg0: i32) -> (i32, i32) {
    %c0_i32 = arith.constant 0 : i32
    %c0_i32_0 = arith.constant 0 : i32
    %c0_i32_1 = arith.constant 0 : i32
    return %c0_i32, %c0_i32_0 : i32, i32
  }
  func.func @transform_8(%arg0: i32) -> (i32, i32) {
    %c0_i32 = arith.constant 0 : i32
    %c0_i32_0 = arith.constant 0 : i32
    %c0_i32_1 = arith.constant 0 : i32
    return %c0_i32, %c0_i32_0 : i32, i32
  }
  func.func @transform_9(%arg0: i32) -> (i32, i32) {
    %c0_i32 = arith.constant 0 : i32
    %c0_i32_0 = arith.constant 0 : i32
    %c0_i32_1 = arith.constant 0 : i32
    return %c0_i32, %c0_i32_0 : i32, i32
  }
}

</mosaic_0001>

<bundles_post_ra>
// kernel: nli_bilstm_forward.5
= control target key start
LH: loop header
LB: loop body
LE: loop exit
PB: predicated region body
PF: predicated region fallthrough
CT: control target
= control target key end

     0   :  { %v584_v3 = vmov 0.0|0.0   ;;  %vm585_vm0 = vmmov 0   ;;  %v586_v6 = vmov 0.0   ;;  %s826_s0 = inlined_call_operand.vmem [shape: f32[4,128], index: 0, kind: input, shape index: {}]   ;;  %s827_s1 = inlined_call_operand.vmem [shape: f32[128,128], index: 1, kind: input, shape index: {}]   ;;  %s828_s2 = inlined_call_operand.vmem [shape: f32[1,128], index: 2, kind: input, shape index: {}]   ;;  %s829_s3 = inlined_call_operand.vmem [shape: f32[128,128], index: 3, kind: input, shape index: {}]   ;;  %s830_s4 = inlined_call_operand.vmem [shape: f32[1,128], index: 4, kind: input, shape index: {}]   ;;  %s831_s5 = inlined_call_operand.vmem [shape: f32[128,3], index: 5, kind: input, shape index: {}]   ;;  %s832_s6 = inlined_call_operand.vmem [shape: f32[1,3], index: 6, kind: input, shape index: {}]   ;;  %s833_s7 = inlined_call_operand.hbm [shape: f32[4,3], index: 7, kind: output, shape index: {}]  }
   0x1   :  { %v28_v0 = vld [vmem:[%s827_s1] sm:$0xff]  ;;  %v29_v1 = vld [vmem:[%s827_s1 + $0x8] sm:$0xff]  ;;  %v30_v2 = vld [vmem:[%s827_s1 + $0x10] sm:$0xff]  ;;  %484 = vmatprep.subr.bf16.mxu0 %v584_v3  ;;  %411 = vmatprep.mubr.msk.f32.mxu0 %vm585_vm0, %v586_v6 }
   0x2   :  { %v485_v4 = vpack.c.bf16 %v29_v1, %v28_v0  ;;  %v31_v5 = vld [vmem:[%s827_s1 + $0x18] sm:$0xff]  ;;  %508 = vmatprep.subr.bf16.mxu1 %v584_v3  ;;  %446 = vmatprep.mubr.msk.f32.mxu1 %vm585_vm0, %v586_v6  ;;  %v32_v8 = vld [vmem:[%s827_s1 + $0x20] sm:$0xff]  ;;  %v33_v9 = vld [vmem:[%s827_s1 + $0x28] sm:$0xff] }
   0x3   :  { %v488_v7 = vpack.c.bf16 %v31_v5, %v30_v2  ;;  %v122_v10 = vld [vmem:[%s829_s3] sm:$0xff]  ;;  %v123_v11 = vld [vmem:[%s829_s3 + $0x8] sm:$0xff]  ;;  %v124_v12 = vld [vmem:[%s829_s3 + $0x10] sm:$0xff]  ;;  %v491_v14 = vpack.c.bf16 %v33_v9, %v32_v8 }
   0x4   :  { %486 = vmatpush3.bf16.msra.mxu0 %v485_v4  ;;  %v125_v13 = vld [vmem:[%s829_s3 + $0x18] sm:$0xff]  ;;  %v509_v15 = vpack.c.bf16 %v123_v11, %v122_v10  ;;  %v34_v16 = vld [vmem:[%s827_s1 + $0x30] sm:$0xff]  ;;  %v126_v19 = vld [vmem:[%s829_s3 + $0x20] sm:$0xff] }
   0x5   :  { %487 = vmatprep.subr.bf16.mxu0 %v584_v3  ;;  %v35_v17 = vld [vmem:[%s827_s1 + $0x38] sm:$0xff]  ;;  %v512_v18 = vpack.c.bf16 %v125_v13, %v124_v12  ;;  %v127_v20 = vld [vmem:[%s829_s3 + $0x28] sm:$0xff] }
   0x6   :  { %510 = vmatpush3.bf16.msra.mxu1 %v509_v15 }
   0x7   :  { %511 = vmatprep.subr.bf16.mxu1 %v584_v3 }
   0x8   :  { %489 = vmatpush3.bf16.msra.mxu0 %v488_v7 }
   0x9   :  { %490 = vmatprep.subr.bf16.mxu0 %v584_v3 }
   0xa   :  { %12 = vsyncpa [#allocation3], 0  ;;  %v494_v21 = vpack.c.bf16 %v35_v17, %v34_v16  ;;  %v36_v22 = vld [vmem:[%s827_s1 + $0x40] sm:$0xff]  ;;  %v37_v23 = vld [vmem:[%s827_s1 + $0x48] sm:$0xff]  ;;  %513 = vmatpush3.bf16.msra.mxu1 %v512_v18  ;;  %v515_v24 = vpack.c.bf16 %v127_v20, %v126_v19  ;;  %s587_s29 = smov [#allocation2]   ;;  %vm309_vm1 = vcmask 19456  }
   0xb   :  { %514 = vmatprep.subr.bf16.mxu1 %v584_v3  ;;  %v128_v25 = vld [vmem:[%s829_s3 + $0x30] sm:$0xff]  ;;  %v129_v26 = vld [vmem:[%s829_s3 + $0x38] sm:$0xff]  ;;  %v497_v27 = vpack.c.bf16 %v37_v23, %v36_v22  ;;  %v130_v31 = vld [vmem:[%s829_s3 + $0x40] sm:$0xff]  ;;  %s317_s30 = sshll.u32 %s587_s29, 4  ;;  %s318_s30 = int_to_ptr.vmem [resolvable:$true] %s317_s30 }
   0xc   :  { %492 = vmatpush3.bf16.msra.mxu0 %v491_v14  ;;  %v38_v28 = vld [vmem:[%s827_s1 + $0x50] sm:$0xff]  ;;  %v39_v29 = vld [vmem:[%s827_s1 + $0x58] sm:$0xff]  ;;  %v518_v30 = vpack.c.bf16 %v129_v26, %v128_v25  ;;  %v131_v32 = vld [vmem:[%s829_s3 + $0x48] sm:$0xff]  ;;  %p565_p1 = scmp.lt.s32.totalorder %s318_s30, %s318_s30 }
   0xd   :  { %493 = vmatprep.subr.bf16.mxu0 %v584_v3  ;;  %v500_v33 = vpack.c.bf16 %v39_v29, %v38_v28  ;;  %v40_v34 = vld [vmem:[%s827_s1 + $0x60] sm:$0xff]  ;;  %v41_v35 = vld [vmem:[%s827_s1 + $0x68] sm:$0xff]  ;;  %v521_v36 = vpack.c.bf16 %v131_v32, %v130_v31  ;;  %v132_v37 = vld [vmem:[%s829_s3 + $0x50] sm:$0xff] }
   0xe   :  { %516 = vmatpush3.bf16.msra.mxu1 %v515_v24  ;;  %v133_v38 = vld [vmem:[%s829_s3 + $0x58] sm:$0xff]  ;;  %v503_v39 = vpack.c.bf16 %v41_v35, %v40_v34  ;;  %v42_v40 = vld [vmem:[%s827_s1 + $0x70] sm:$0xff]  ;;  %v134_v43 = vld [vmem:[%s829_s3 + $0x60] sm:$0xff] }
   0xf   :  { %517 = vmatprep.subr.bf16.mxu1 %v584_v3  ;;  %v43_v41 = vld [vmem:[%s827_s1 + $0x78] sm:$0xff]  ;;  %v524_v42 = vpack.c.bf16 %v133_v38, %v132_v37  ;;  %v135_v44 = vld [vmem:[%s829_s3 + $0x68] sm:$0xff]  ;;  %v27_v47 = vld [vmem:[%s826_s0] sm:$0xf] }
  0x10   :  { %495 = vmatpush3.bf16.msra.mxu0 %v494_v21  ;;  %v506_v45 = vpack.c.bf16 %v43_v41, %v42_v40  ;;  %v527_v46 = vpack.c.bf16 %v135_v44, %v134_v43  ;;  %v136_v48 = vld [vmem:[%s829_s3 + $0x70] sm:$0xff]  ;;  %v137_v49 = vld [vmem:[%s829_s3 + $0x78] sm:$0xff]  ;;  %v216_v51 = vld [vmem:[%s831_s5] sm:$0xff] }
  0x11   :  { %496 = vmatprep.subr.bf16.mxu0 %v584_v3  ;;  %v530_v50 = vpack.c.bf16 %v137_v49, %v136_v48  ;;  %v217_v52 = vld [vmem:[%s831_s5 + $0x8] sm:$0xff]  ;;  %v218_v53 = vld [vmem:[%s831_s5 + $0x10] sm:$0xff]  ;;  %v219_v55 = vld [vmem:[%s831_s5 + $0x18] sm:$0xff] }
  0x12   :  { %519 = vmatpush3.bf16.msra.mxu1 %v518_v30  ;;  %v533_v54 = vpack.c.bf16 %v217_v52, %v216_v51  ;;  %v536_v56 = vpack.c.bf16 %v219_v55, %v218_v53  ;;  %v220_v57 = vld [vmem:[%s831_s5 + $0x20] sm:$0xff]  ;;  %v221_v58 = vld [vmem:[%s831_s5 + $0x28] sm:$0xff]  ;;  %v222_v60 = vld [vmem:[%s831_s5 + $0x30] sm:$0xff] }
  0x13   :  { %520 = vmatprep.subr.bf16.mxu1 %v584_v3  ;;  %v539_v59 = vpack.c.bf16 %v221_v58, %v220_v57  ;;  %v223_v61 = vld [vmem:[%s831_s5 + $0x38] sm:$0xff]  ;;  %v224_v63 = vld [vmem:[%s831_s5 + $0x40] sm:$0xff]  ;;  %v225_v0 = vld [vmem:[%s831_s5 + $0x48] sm:$0xff] }
  0x14   :  { %498 = vmatpush3.bf16.msra.mxu0 %v497_v27  ;;  %v542_v62 = vpack.c.bf16 %v223_v61, %v222_v60  ;;  %v545_v1 = vpack.c.bf16 %v225_v0, %v224_v63  ;;  %v226_v2 = vld [vmem:[%s831_s5 + $0x50] sm:$0xff]  ;;  %v227_v4 = vld [vmem:[%s831_s5 + $0x58] sm:$0xff]  ;;  %v229_v7 = vld [vmem:[%s831_s5 + $0x68] sm:$0xff] }
  0x15   :  { %499 = vmatprep.subr.bf16.mxu0 %v584_v3  ;;  %v548_v5 = vpack.c.bf16 %v227_v4, %v226_v2  ;;  %v325_v9 = vld [vmem:[%s828_s2] ss:$0 sm:$0xff]  ;;  %v230_v14 = vld [vmem:[%s831_s5 + $0x70] sm:$0xff]  ;;  %v231_v15 = vld [vmem:[%s831_s5 + $0x78] sm:$0xff] }
  0x16   :  { %522 = vmatpush3.bf16.msra.mxu1 %v521_v36  ;;  %v554_v16 = vpack.c.bf16 %v231_v15, %v230_v14  ;;  %v327_v21 = vld [vmem:[%s832_s6] ss:$0 sm:$0xff] }
  0x17   :  { %523 = vmatprep.subr.bf16.mxu1 %v584_v3 }
  0x18   :  { %501 = vmatpush3.bf16.msra.mxu0 %v500_v33 }
  0x19   :  { %502 = vmatprep.subr.bf16.mxu0 %v584_v3 }
  0x1a   :  { %525 = vmatpush3.bf16.msra.mxu1 %v524_v42 }
  0x1b   :  { %526 = vmatprep.subr.bf16.mxu1 %v584_v3 }
  0x1c   :  { %504 = vmatpush3.bf16.msra.mxu0 %v503_v39 }
  0x1d   :  { %505 = vmatprep.subr.bf16.mxu0 %v584_v3 }
  0x1e   :  { %528 = vmatpush3.bf16.msra.mxu1 %v527_v46 }
  0x1f   :  { %529 = vmatprep.subr.bf16.mxu1 %v584_v3 }
  0x20   :  { %507 = vmatpush3.bf16.msra.mxu0 %v506_v45 }
  0x21   :  { %532 = vmatprep.subr.bf16.mxu0 %v584_v3 }
  0x22   :  { %531 = vmatpush3.bf16.msra.mxu1 %v530_v50 }
  0x23   :  { %412 = vmatmul.mubr.f32.vlgmr.msra.gmra.mrb[0].mxu0 %v27_v47 }
  0x24   :  { %481 = vmatprep.mubr.msk.f32.mxu0 %vm585_vm0, %v586_v6  ;;  %534 = vmatpush3.bf16.msra.mxu0 %v533_v54  ;;  %v228_v6 = vld [vmem:[%s831_s5 + $0x60] sm:$0xff]  ;;  %s560_s5 = scalar_lea.vmem %s318_s30, 64 }
  0x25   :  { %535 = vmatprep.subr.bf16.mxu0 %v584_v3  ;;  %v551_v8 = vpack.c.bf16 %v229_v7, %v228_v6  ;;  %p561_p0 = scmp.ne.s32.totalorder %s318_s30, %s560_s5  ;;  %p566_p2 = scmp.lt.s32.totalorder %s560_s5, %s560_s5 }
  0x27   :  { %p567_p3 = por %p566_p2, %p565_p1 }
  0x28   :  { %537 = vmatpush3.bf16.msra.mxu0 %v536_v56 }
  0x29   :  { %538 = vmatprep.subr.bf16.mxu0 %v584_v3  ;;  %p568_p4 = pnand %p567_p3, %p561_p0 }
  0x2c   :  { %540 = vmatpush3.bf16.msra.mxu0 %v539_v59 }
  0x2d   :  { %541 = vmatprep.subr.bf16.mxu0 %v584_v3 }
  0x30   :  { %543 = vmatpush3.bf16.msra.mxu0 %v542_v62 }
  0x31   :  { %544 = vmatprep.subr.bf16.mxu0 %v584_v3 }
  0x34   :  { %546 = vmatpush3.bf16.msra.mxu0 %v545_v1 }
  0x35   :  { %547 = vmatprep.subr.bf16.mxu0 %v584_v3 }
  0x38   :  { %549 = vmatpush3.bf16.msra.mxu0 %v548_v5 }
  0x39   :  { %550 = vmatprep.subr.bf16.mxu0 %v584_v3 }
  0x3c   :  { %552 = vmatpush3.bf16.msra.mxu0 %v551_v8 }
  0x3d   :  { %553 = vmatprep.subr.bf16.mxu0 %v584_v3  ;;  %v326_v3 = vld [vmem:[%s830_s4] ss:$0 sm:$0xff] }
  0x40   :  { %555 = vmatpush3.bf16.msra.mxu0 %v554_v16 }
  0xf6   :  { %v117_v10 = vpop.f32.mrb[0].mxu0 }
  0xf7   :  { %v118_v11 = vadd.f32 %v325_v9, %v117_v10  ;;  %v413_v12 = vpop.f32.mrb[1].mxu0 }
  0xf9   :  { %v121_v13 = vmax.f32 %v118_v11, 0.0 }
  0xfb   :  { %447 = vmatmul.mubr.f32.vlgmr.msra.gmra.mrb[0].mxu1 %v121_v13 }
 0x1ce   :  { %v211_v17 = vpop.f32.mrb[0].mxu1 }
 0x1cf   :  { %v212_v18 = vadd.f32 %v326_v3, %v211_v17  ;;  %v448_v19 = vpop.f32.mrb[1].mxu1 }
 0x1d1   :  { %v215_v20 = vmax.f32 %v212_v18, 0.0 }
 0x1d3   :  { %482 = vmatmul.mubr.f32.vlgmr.msra.gmra.mrb[2].mxu0 %v215_v20 }
 0x2a6   :  { %v305_v22 = vpop.f32.mrb[2].mxu0 }
 0x2a7   :  { %v306_v23 = vadd.f32 %v327_v21, %v305_v22  ;;  %v483_v24 = vpop.f32.mrb[3].mxu0 }
 0x2a9   :  { %310 = vst.msk [vmem:[#allocation2] sm:$0xf] %vm309_vm1, %v306_v23 }
 0x2aa   :  { %571 = shalt.err (!%p568_p4)
}
 0x2ab   :  { %s572_s9 = scalar_lea.hbm %s833_s7, 64 }
 0x2ac   :  { %p573_p5 = scmp.ne.s32.totalorder %s833_s7, %s572_s9  ;;  %p576_p6 = scmp.lt.u32.totalorder %s572_s9, %s833_s7 }
 0x2ae   :  { %p578_p7 = pnand %p576_p6, %p573_p5 }
 0x2b0   :  { %581 = shalt.err (!%p578_p7)
}
 0x2b1   :  { %320 = dma.vmem_to_hbm [thread:$0]  %s318_s30, 64, %s833_s7, [#allocation3]  }
 0x2b2   :  { %582 = dma.done.wait [#allocation3], 64  }
 0x2b3   :  { %583 = vsyncadd [#allocation3], 4294967232 }
 0x2b4   :  { %324 = vsyncpa [#allocation3], 1 }

// kernel: nli_bilstm_forward.4
= control target key start
LH: loop header
LB: loop body
LE: loop exit
PB: predicated region body
PF: predicated region fallthrough
CT: control target
= control target key end

     0   :  { %v2829_v0 = vmov 0.0|0.0   ;;  %vm2830_vm0 = vmmov 0   ;;  %v2831_v3 = vmov 0.0   ;;  %vm44_vm1 = vcmask 130048   ;;  %s2833_s20 = smov 32   ;;  %s3449_s1 = inlined_call_operand.vmem [shape: f32[16,32], index: 1, kind: input, shape index: {}]   ;;  %s3450_s0 = inlined_call_operand.vmem [shape: f32[24,16], index: 0, kind: input, shape index: {}]   ;;  %s3451_s3 = inlined_call_operand.vmem [shape: f32[32,256], index: 3, kind: input, shape index: {}]   ;;  %s3452_s4 = inlined_call_operand.vmem [shape: f32[64,256], index: 4, kind: input, shape index: {}]   ;;  %s3453_s2 = inlined_call_operand.vmem [shape: f32[1,32], index: 2, kind: input, shape index: {}]   ;;  %s3454_s5 = inlined_call_operand.vmem [shape: f32[1,256], index: 5, kind: input, shape index: {}]   ;;  %s3455_s6 = inlined_call_operand.vmem [shape: f32[64,256], index: 6, kind: input, shape index: {}]   ;;  %s3456_s7 = inlined_call_operand.vmem [shape: f32[64,256], index: 7, kind: input, shape index: {}]   ;;  %s3457_s8 = inlined_call_operand.vmem [shape: f32[1,256], index: 8, kind: input, shape index: {}]   ;;  %s3458_s9 = inlined_call_operand.vmem [shape: f32[4,64], index: 9, kind: output, shape index: {}]  }
   0x1   :  { %2413 = vmatprep.subr.bf16.mxu1 %v2829_v0  ;;  %v35_v1 = vld [vmem:[%s3449_s1] sm:$0xff]  ;;  %v36_v2 = vld [vmem:[%s3449_s1 + $0x8] sm:$0xff]  ;;  %2404 = vmatprep.mubr.msk.f32.mxu1 %vm2830_vm0, %v2831_v3  ;;  %v140_v7 = vld [vmem:[%s3451_s3 + $0x18] sm:$0xff]  ;;  %vm256_vm2 = vcmask 519168   ;;  %vm277_vm3 = vcmask 523264   ;;  %vm157_vm4 = vcmask 261120   ;;  %v147_v60 = vlaneseq }
   0x2   :  { %v2414_v4 = vpack.c.bf16 %v36_v2, %v35_v1  ;;  %v32_v5 = vld [vmem:[%s3450_s0] sm:$0xff]  ;;  %v138_v6 = vld [vmem:[%s3451_s3 + $0x8] sm:$0xff]  ;;  %345 = vmatprep.mubr.f32.mxu0 %v2831_v3  ;;  %v139_v9 = vld [vmem:[%s3451_s3 + $0x10] sm:$0xff]  ;;  %257 = vst.msk [vmem:[#allocation4] sm:$0xf] %vm256_vm2, %v2831_v3  ;;  %vm409_vm5 = vcmask 257024  }
   0x3   :  { %v137_v8 = vld [vmem:[%s3451_s3] sm:$0xff]  ;;  %v2416_v10 = vpack.c.bf16 %v140_v7, %v138_v6  ;;  %v142_v12 = vld [vmem:[%s3451_s3 + $0x28] sm:$0xff]  ;;  %v144_v13 = vld [vmem:[%s3451_s3 + $0x38] sm:$0xff]  ;;  %v3037_v61 = vshrl.u32 %v147_v60, 7  ;;  %vm415_vm6 = vcmask 523524   ;;  %vm581_vm7 = vcmask 519424  }
   0x4   :  { %2415 = vmatpush3.bf16.msra.mxu1 %v2414_v4  ;;  %v2418_v11 = vpack.c.bf16 %v139_v9, %v137_v8  ;;  %v141_v14 = vld [vmem:[%s3451_s3 + $0x20] sm:$0xff]  ;;  %v2420_v15 = vpack.c.bf16 %v144_v13, %v142_v12  ;;  %v143_v16 = vld [vmem:[%s3451_s3 + $0x30] sm:$0xff]  ;;  %v262_v17 = vld [vmem:[%s3452_s4 + $0x8] sm:$0xff]  ;;  %vm575_vm8 = vcmask 261124  }
   0x5   :  { %v264_v18 = vld [vmem:[%s3452_s4 + $0x18] sm:$0xff]  ;;  %2417 = vmatprep.subr.bf16.mxu1 %v2416_v10  ;;  %v33_v20 = vld [vmem:[%s3450_s0 + $0x8] sm:$0xff]  ;;  %v2422_v21 = vpack.c.bf16 %v143_v16, %v141_v14  ;;  %v34_v22 = vld [vmem:[%s3450_s0 + $0x10] sm:$0xff]  ;;  %v149_v62 = vsub.s32 0, %v3037_v61  ;;  %v153_v0 = vsub.s32 1, %v3037_v61 }
   0x6   :  { %v2926_v19 = vpack.c.bf16 %v264_v18, %v262_v17  ;;  %v261_v23 = vld [vmem:[%s3452_s4] sm:$0xff]  ;;  %v263_v24 = vld [vmem:[%s3452_s4 + $0x10] sm:$0xff]  ;;  %v266_v26 = vld [vmem:[%s3452_s4 + $0x28] sm:$0xff] }
   0x7   :  { %2405 = vmatmul.mubr.msk.f32.vlgmr.msra.gmra.mrb[0].mxu1 %vm44_vm1, %v32_v5  ;;  %v2950_v25 = vpack.c.bf16 %v263_v24, %v261_v23  ;;  %v268_v27 = vld [vmem:[%s3452_s4 + $0x38] sm:$0xff]  ;;  %v265_v29 = vld [vmem:[%s3452_s4 + $0x20] sm:$0xff]  ;;  %v267_v30 = vld [vmem:[%s3452_s4 + $0x30] sm:$0xff] }
   0x8   :  { %2407 = vmatprep.mubr.msk.f32.mxu1 %vm2830_vm0, %v2831_v3  ;;  %2419 = vmatpush1.bf16.msra.mxu1 %v2418_v11  ;;  %v2959_v28 = vpack.c.bf16 %v268_v27, %v266_v26  ;;  %v2967_v31 = vpack.c.bf16 %v267_v30, %v265_v29  ;;  %v270_v32 = vld [vmem:[%s3452_s4 + $0x48] sm:$0xff]  ;;  %v272_v33 = vld [vmem:[%s3452_s4 + $0x58] sm:$0xff]  ;;  %v269_v35 = vld [vmem:[%s3452_s4 + $0x40] sm:$0xff] }
   0x9   :  { %2421 = vmatprep.subr.bf16.mxu1 %v2420_v15  ;;  %2425 = vmatprep.subr.bf16.mxu0 %v2926_v19  ;;  %v2977_v34 = vpack.c.bf16 %v272_v33, %v270_v32  ;;  %v271_v36 = vld [vmem:[%s3452_s4 + $0x50] sm:$0xff]  ;;  %v274_v38 = vld [vmem:[%s3452_s4 + $0x68] sm:$0xff]  ;;  %v276_v39 = vld [vmem:[%s3452_s4 + $0x78] sm:$0xff] }
   0xa   :  { %2427 = vmatpush1.bf16.msra.mxu0 %v2950_v25  ;;  %v2985_v37 = vpack.c.bf16 %v271_v36, %v269_v35  ;;  %v2997_v40 = vpack.c.bf16 %v276_v39, %v274_v38  ;;  %v273_v41 = vld [vmem:[%s3452_s4 + $0x60] sm:$0xff]  ;;  %v275_v42 = vld [vmem:[%s3452_s4 + $0x70] sm:$0xff]  ;;  %v260_v44 = vld [vmem:[#allocation4] sm:$0xf] }
   0xb   :  { %2408 = vmatmul.mubr.msk.f32.gmra.mrb[2].mxu1 %vm44_vm1, %v33_v20  ;;  %2429 = vmatprep.subr.bf16.mxu0 %v2959_v28  ;;  %v3005_v43 = vpack.c.bf16 %v275_v42, %v273_v41  ;;  %v2349_v45 = vld [vmem:[%s3453_s2] ss:$0 sm:$0xff] }
   0xc   :  { %2410 = vmatprep.mubr.msk.f32.mxu1 %vm2830_vm0, %v2831_v3  ;;  %2423 = vmatpush1.bf16.msra.mxu1 %v2422_v21  ;;  %v145_v63 = vld [vmem:[%s3454_s5] sm:$0x3]  ;;  %s2832_s5 = smov 64  }
   0xd   :  { %2441 = vmatprep.subr.bf16.mxu1 %v2926_v19  ;;  %v150_v1 = vrot.slane %v145_v63, %v149_v62  ;;  %v154_v2 = vrot.slane %v145_v63, %v153_v0 }
   0xe   :  { %2431 = vmatpush1.bf16.msra.mxu0 %v2967_v31 }
   0xf   :  { %2411 = vmatmul.mubr.msk.f32.gmra.mrb[4].mxu1 %vm44_vm1, %v34_v22  ;;  %2433 = vmatprep.subr.bf16.mxu0 %v2977_v34 }
  0x10   :  { %231 = vmatprep.mubr.f32.mxu1 %v2831_v3 }
  0x12   :  { %2435 = vmatpush1.bf16.msra.mxu0 %v2985_v37 }
  0x13   :  { %2437 = vmatprep.subr.bf16.mxu0 %v2997_v40 }
  0x16   :  { %2439 = vmatpush1.bf16.msra.mxu0 %v3005_v43 }
  0x17   :  { %2457 = vmatprep.subr.bf16.mxu0 %v2926_v19 }
  0x19   :  { %2356 = vmatmul.mubr.msk.f32.vlgmr.msra.gmra.mrb[0].mxu0 %vm277_vm3, %v260_v44 }
  0x1a   :  { %2459 = vmatpush1.bf16.msra.mxu0 %v2950_v25  ;;  %671 = vmatprep.mubr.f32.mxu0 %v2831_v3 }
  0x1b   :  { %2461 = vmatprep.subr.bf16.mxu0 %v2959_v28 }
  0x1e   :  { %2463 = vmatpush1.bf16.msra.mxu0 %v2967_v31 }
  0x1f   :  { %2465 = vmatprep.subr.bf16.mxu0 %v2977_v34 }
  0x22   :  { %2467 = vmatpush1.bf16.msra.mxu0 %v2985_v37 }
  0x23   :  { %2469 = vmatprep.subr.bf16.mxu0 %v2997_v40 }
  0x26   :  { %2471 = vmatpush1.bf16.msra.mxu0 %v3005_v43 }
  0x27   :  { %2489 = vmatprep.subr.bf16.mxu0 %v2926_v19 }
  0xda   :  { %v120_v46 = vpop.f32.mrb[0].mxu1 }
  0xdb   :  { %v121_v47 = vadd.f32 %v2349_v45, %v120_v46  ;;  %v2406_v48 = vpop.f32.mrb[1].mxu1 }
  0xdd   :  { %v134_v49 = vmax.f32 %v121_v47, 0.0 }
  0xde   :  { %v125_v50 = vpop.f32.mrb[2].mxu1 }
  0xdf   :  { %v126_v51 = vadd.f32 %v2349_v45, %v125_v50  ;;  %v2409_v52 = vpop.f32.mrb[3].mxu1  ;;  %2353 = vmatmul.mubr.msk.f32.vlgmr.msra.gmra.mrb[6].mxu1 %vm157_vm4, %v134_v49 }
  0xe0   :  { %237 = vmatprep.mubr.f32.mxu1 %v2831_v3  ;;  %2443 = vmatpush1.bf16.msra.mxu1 %v2950_v25 }
  0xe1   :  { %v135_v53 = vmax.f32 %v126_v51, 0.0  ;;  %2445 = vmatprep.subr.bf16.mxu1 %v2959_v28 }
  0xe2   :  { %v130_v54 = vpop.f32.mrb[4].mxu1 }
  0xe3   :  { %v131_v55 = vadd.f32 %v2349_v45, %v130_v54  ;;  %v2412_v56 = vpop.f32.mrb[5].mxu1  ;;  %2354 = vmatmul.mubr.msk.f32.gmra.mrb[8].mxu1 %vm157_vm4, %v135_v53 }
  0xe4   :  { %243 = vmatprep.mubr.f32.mxu1 %v2831_v3  ;;  %2447 = vmatpush1.bf16.msra.mxu1 %v2967_v31 }
  0xe5   :  { %v136_v57 = vmax.f32 %v131_v55, 0.0  ;;  %2449 = vmatprep.subr.bf16.mxu1 %v2977_v34 }
  0xe7   :  { %2355 = vmatmul.mubr.msk.f32.gmra.mrb[10].mxu1 %vm157_vm4, %v136_v57 }
  0xe8   :  { %2451 = vmatpush1.bf16.msra.mxu1 %v2985_v37  ;;  %505 = vmatprep.mubr.f32.mxu1 %v2831_v3 }
  0xe9   :  { %2453 = vmatprep.subr.bf16.mxu1 %v2997_v40 }
  0xec   :  { %2455 = vmatpush1.bf16.msra.mxu1 %v3005_v43  ;;  %v347_v58 = vpop.f32.mrb[0].mxu0 }
  0xed   :  { %2473 = vmatprep.subr.bf16.mxu1 %v2926_v19  ;;  %v349_v59 = vpop.f32.mrb[1].mxu0 }
  0xee   :  { %v378_v18 = vrot.slane %v349_v59, 4 }
 0x1b2   :  { %v233_v4 = vpop.f32.mrb[6].mxu1 }
 0x1b3   :  { %v234_v5 = vadd.f32 %v233_v4, %v150_v1  ;;  %v235_v6 = vpop.f32.mrb[7].mxu1 }
 0x1b4   :  { %v236_v7 = vadd.f32 %v235_v6, %v154_v2 }
 0x1b5   :  { %250 = vst [vmem:[#allocation2] sm:$0xff] %v234_v5 }
 0x1b6   :  { %251 = vst [vmem:[#allocation2 + $0x8] sm:$0xff] %v236_v7  ;;  %v239_v8 = vpop.f32.mrb[8].mxu1 }
 0x1b7   :  { %v240_v9 = vadd.f32 %v239_v8, %v150_v1  ;;  %v241_v10 = vpop.f32.mrb[9].mxu1 }
 0x1b8   :  { %v242_v11 = vadd.f32 %v241_v10, %v154_v2 }
 0x1b9   :  { %252 = vst [vmem:[#allocation2 + $0x10] sm:$0xff] %v240_v9 }
 0x1ba   :  { %253 = vst [vmem:[#allocation2 + $0x18] sm:$0xff] %v242_v11  ;;  %v245_v12 = vpop.f32.mrb[10].mxu1 }
 0x1bb   :  { %v246_v13 = vadd.f32 %v245_v12, %v150_v1  ;;  %v247_v14 = vpop.f32.mrb[11].mxu1 }
 0x1bc   :  { %v248_v15 = vadd.f32 %v247_v14, %v154_v2  ;;  %v258_v16 = vld [vmem:[#allocation2] sm:$0xf]  ;;  %v419_v1 = vld [vmem:[#allocation2] sm:$0xf0] }
 0x1bd   :  { %254 = vst [vmem:[#allocation2 + $0x20] sm:$0xff] %v246_v13  ;;  %v352_v17 = vadd.f32 %v347_v58, %v258_v16 }
 0x1be   :  { %255 = vst [vmem:[#allocation2 + $0x28] sm:$0xff] %v248_v15 }
 0x1bf   :  { %2637 = vtanh.f32 %v352_v17  ;;  %v2357_v24 = vmul.f32 -1.442695, %v352_v17 }
 0x1c5   :  { %v259_v20 = vld [vmem:[#allocation2 + $0x28] sm:$0xf0]  ;;  %v420_v60 = vld [vmem:[#allocation2 + $0x28] sm:$0xf] }
 0x1c6   :  { %v380_v21 = vadd.f32 %v378_v18, %v259_v20 }
 0x1c8   :  { %2639 = vtanh.f32 %v380_v21  ;;  %v2358_v26 = vmul.f32 -1.442695, %v380_v21 }
 0x1c9   :  { %v2638_v22 = vpop.eup %2637  ;;  %2641 = vpow2.f32 %v2357_v24 }
 0x1ca   :  { %362 = vrot.lane.b32.xlu0 %v2638_v22, %s2832_s5  ;;  %2643 = vpow2.f32 %v2358_v26 }
 0x1d2   :  { %v2640_v23 = vpop.eup %2639 }
 0x1d3   :  { %390 = vrot.lane.b32.xlu0 %v2640_v23, %s2832_s5  ;;  %v2642_v27 = vpop.eup %2641 }
 0x1d4   :  { %v356_v29 = vadd.f32 1.0, %v2642_v27  ;;  %v2644_v30 = vpop.eup %2643 }
 0x1d5   :  { %v384_v32 = vadd.f32 1.0, %v2644_v30 }
 0x1d6   :  { %2645 = vrcp.f32 %v356_v29 }
 0x1d7   :  { %2647 = vrcp.f32 %v384_v32 }
 0x1e0   :  { %v2646_v33 = vpop.eup %2645 }
 0x1e1   :  { %v2648_v38 = vpop.eup %2647  ;;  %v360_v42 = vmul.f32 0.0, %v2646_v33 }
 0x1e2   :  { %v388_v46 = vmul.f32 0.0, %v2648_v38 }
 0x23c   :  { %v363_v35 = vpop.permute.xlu0 %362 }
 0x23d   :  { %v365_v36 = vmul.f32 %v2646_v33, %v363_v35 }
 0x23f   :  { %367 = vrot.lane.b32.xlu1 %v365_v36, %s2833_s20 }
 0x245   :  { %v391_v39 = vpop.permute.xlu0 %390 }
 0x246   :  { %v393_v41 = vmul.f32 %v2648_v38, %v391_v39 }
 0x248   :  { %395 = vrot.lane.b32.xlu1 %v393_v41, %s2833_s20 }
 0x2b1   :  { %v368_v44 = vpop.permute.xlu1 %367 }
 0x2b2   :  { %v3052_v45 = vadd.f32 %v368_v44, %v360_v42  ;;  %v585_v42 = vld [vmem:[#allocation2 + $0x10] sm:$0xf] }
 0x2b4   :  { %2649 = vtanh.f32 %v3052_v45  ;;  %v524_v20 = vrot.slane %v3052_v45, 4 }
 0x2ba   :  { %v396_v47 = vpop.permute.xlu1 %395 }
 0x2bb   :  { %v3055_v48 = vadd.f32 %v396_v47, %v388_v46 }
 0x2bd   :  { %2651 = vtanh.f32 %v3055_v48  ;;  %v552_v18 = vrot.slane %v3055_v48, 4  ;;  %v586_v48 = vld [vmem:[#allocation2 + $0x18] sm:$0xf0] }
 0x2be   :  { %v2650_v49 = vpop.eup %2649 }
 0x2bf   :  { %373 = vrot.lane.b32.xlu0 %v2650_v49, %s2832_s5 }
 0x2c7   :  { %v2652_v50 = vpop.eup %2651 }
 0x2c8   :  { %401 = vrot.lane.b32.xlu1 %v2652_v50, %s2832_s5 }
 0x331   :  { %v374_v51 = vpop.permute.xlu0 %373 }
 0x332   :  { %v376_v52 = vmul.f32 %v2646_v33, %v374_v51 }
 0x334   :  { %406 = vrot.lane.b32.xlu0 %v376_v52, %s2833_s20 }
 0x33a   :  { %v402_v53 = vpop.permute.xlu1 %401 }
 0x33b   :  { %v404_v54 = vmul.f32 %v2648_v38, %v402_v53 }
 0x33d   :  { %412 = vrot.lane.b32.xlu1 %v404_v54, %s2832_s5 }
 0x3a6   :  { %v407_v55 = vpop.permute.xlu0 %406 }
 0x3a7   :  { %410 = vst.msk [vmem:[#allocation4] sm:$0xf] %vm409_vm5, %v407_v55  ;;  %417 = vst.msk [vmem:[#allocation3] sm:$0xf] %vm409_vm5, %v407_v55 }
 0x3af   :  { %v413_v56 = vpop.permute.xlu1 %412 }
 0x3b0   :  { %416 = vst.msk [vmem:[#allocation4 - $0x4] sm:$0xf0] %vm415_vm6, %v413_v56  ;;  %418 = vst.msk [vmem:[#allocation3 + $0x10] sm:$0xf0] %vm415_vm6, %v413_v56 }
 0x3b7   :  { %v421_v57 = vld [vmem:[#allocation4] sm:$0xf] }
 0x3b8   :  { %2359 = vmatmul.mubr.msk.f32.vlgmr.msra.gmra.mrb[12].mxu1 %vm277_vm3, %v421_v57 }
 0x3b9   :  { %2475 = vmatpush1.bf16.msra.mxu1 %v2950_v25  ;;  %835 = vmatprep.mubr.f32.mxu1 %v2831_v3 }
 0x3ba   :  { %2477 = vmatprep.subr.bf16.mxu1 %v2959_v28 }
 0x3bd   :  { %2479 = vmatpush1.bf16.msra.mxu1 %v2967_v31 }
 0x3be   :  { %2481 = vmatprep.subr.bf16.mxu1 %v2977_v34 }
 0x3c1   :  { %2483 = vmatpush1.bf16.msra.mxu1 %v2985_v37 }
 0x3c2   :  { %2485 = vmatprep.subr.bf16.mxu1 %v2997_v40 }
 0x3c5   :  { %2487 = vmatpush1.bf16.msra.mxu1 %v3005_v43 }
 0x3c6   :  { %2505 = vmatprep.subr.bf16.mxu1 %v2926_v19 }
 0x48b   :  { %v507_v58 = vpop.f32.mrb[12].mxu1 }
 0x48c   :  { %v513_v59 = vrot.slane %v507_v58, 4  ;;  %v509_v63 = vpop.f32.mrb[13].mxu1 }
 0x48d   :  { %v543_v2 = vadd.f32 %v509_v63, %v420_v60 }
 0x48e   :  { %v515_v4 = vadd.f32 %v513_v59, %v419_v1 }
 0x48f   :  { %2653 = vtanh.f32 %v543_v2  ;;  %v2361_v7 = vmul.f32 -1.442695, %v543_v2 }
 0x490   :  { %2655 = vtanh.f32 %v515_v4  ;;  %v2360_v8 = vmul.f32 -1.442695, %v515_v4 }
 0x491   :  { %2657 = vpow2.f32 %v2361_v7 }
 0x492   :  { %2659 = vpow2.f32 %v2360_v8 }
 0x499   :  { %v2654_v5 = vpop.eup %2653 }
 0x49a   :  { %v2656_v6 = vpop.eup %2655  ;;  %556 = vrot.lane.b32.xlu1 %v2654_v5, %s2832_s5 }
 0x49b   :  { %528 = vrot.lane.b32.xlu0 %v2656_v6, %s2832_s5  ;;  %v2658_v19 = vpop.eup %2657 }
 0x49c   :  { %v2660_v9 = vpop.eup %2659  ;;  %v547_v10 = vadd.f32 1.0, %v2658_v19 }
 0x49d   :  { %v519_v11 = vadd.f32 1.0, %v2660_v9 }
 0x49e   :  { %2661 = vrcp.f32 %v547_v10 }
 0x49f   :  { %2663 = vrcp.f32 %v519_v11 }
 0x4a8   :  { %v2662_v12 = vpop.eup %2661 }
 0x4a9   :  { %v2664_v14 = vpop.eup %2663  ;;  %v554_v21 = vmul.f32 %v2662_v12, %v552_v18 }
 0x4aa   :  { %v526_v23 = vmul.f32 %v2664_v14, %v524_v20 }
 0x50c   :  { %v557_v13 = vpop.permute.xlu1 %556 }
 0x50d   :  { %v559_v15 = vmul.f32 %v2662_v12, %v557_v13  ;;  %v529_v16 = vpop.permute.xlu0 %528 }
 0x50e   :  { %v531_v17 = vmul.f32 %v2664_v14, %v529_v16 }
 0x50f   :  { %561 = vrot.lane.b32.xlu1 %v559_v15, %s2833_s20 }
 0x510   :  { %533 = vrot.lane.b32.xlu0 %v531_v17, %s2833_s20 }
 0x581   :  { %v562_v22 = vpop.permute.xlu1 %561 }
 0x582   :  { %v3082_v24 = vadd.f32 %v562_v22, %v554_v21  ;;  %v534_v26 = vpop.permute.xlu0 %533 }
 0x583   :  { %v3084_v27 = vadd.f32 %v534_v26, %v526_v23  ;;  %v750_v23 = vld [vmem:[#allocation2 + $0x18] sm:$0xf]  ;;  %v749_v26 = vld [vmem:[#allocation2 + $0x10] sm:$0xf0] }
 0x584   :  { %2665 = vtanh.f32 %v3082_v24  ;;  %v718_v6 = vrot.slane %v3082_v24, 4 }
 0x585   :  { %2667 = vtanh.f32 %v3084_v27  ;;  %v687_v4 = vrot.slane %v3084_v27, 4 }
 0x58e   :  { %v2666_v29 = vpop.eup %2665 }
 0x58f   :  { %v2668_v30 = vpop.eup %2667  ;;  %567 = vrot.lane.b32.xlu1 %v2666_v29, %s2832_s5 }
 0x590   :  { %539 = vrot.lane.b32.xlu0 %v2668_v30, %s2832_s5 }
 0x601   :  { %v568_v32 = vpop.permute.xlu1 %567 }
 0x602   :  { %v570_v33 = vmul.f32 %v2662_v12, %v568_v32  ;;  %v540_v35 = vpop.permute.xlu0 %539 }
 0x603   :  { %v542_v36 = vmul.f32 %v2664_v14, %v540_v35 }
 0x604   :  { %578 = vrot.lane.b32.xlu1 %v570_v33, %s2832_s5 }
 0x605   :  { %572 = vrot.lane.b32.xlu0 %v542_v36, %s2833_s20 }
 0x676   :  { %v579_v38 = vpop.permute.xlu1 %578 }
 0x677   :  { %584 = vst.msk [vmem:[#allocation3 + $0x10] sm:$0xf] %vm581_vm7, %v579_v38  ;;  %v573_v39 = vpop.permute.xlu0 %572 }
 0x678   :  { %576 = vst.msk [vmem:[#allocation4 - $0x4] sm:$0xf0] %vm575_vm8, %v573_v39  ;;  %583 = vst.msk [vmem:[#allocation3] sm:$0xf0] %vm575_vm8, %v573_v39 }
 0x679   :  { %582 = vst.msk [vmem:[#allocation4] sm:$0xf] %vm581_vm7, %v579_v38 }
 0x680   :  { %v587_v41 = vld [vmem:[#allocation4] sm:$0xf] }
 0x681   :  { %2362 = vmatmul.mubr.msk.f32.vlgmr.msra.gmra.mrb[2].mxu0 %vm277_vm3, %v587_v41 }
 0x682   :  { %2491 = vmatpush1.bf16.msra.mxu0 %v2950_v25  ;;  %999 = vmatprep.mubr.f32.mxu0 %v2831_v3 }
 0x683   :  { %2493 = vmatprep.subr.bf16.mxu0 %v2959_v28 }
 0x686   :  { %2495 = vmatpush1.bf16.msra.mxu0 %v2967_v31 }
 0x687   :  { %2497 = vmatprep.subr.bf16.mxu0 %v2977_v34 }
 0x68a   :  { %2499 = vmatpush1.bf16.msra.mxu0 %v2985_v37 }
 0x68b   :  { %2501 = vmatprep.subr.bf16.mxu0 %v2997_v40 }
 0x68e   :  { %2503 = vmatpush1.bf16.msra.mxu0 %v3005_v43 }
 0x754   :  { %v673_v44 = vpop.f32.mrb[2].mxu0 }
 0x755   :  { %v678_v45 = vadd.f32 %v673_v44, %v585_v42  ;;  %v675_v46 = vpop.f32.mrb[3].mxu0 }
 0x756   :  { %v707_v47 = vrot.slane %v675_v46, 4 }
 0x757   :  { %2669 = vtanh.f32 %v678_v45  ;;  %v2363_v52 = vmul.f32 -1.442695, %v678_v45 }
 0x758   :  { %v709_v49 = vadd.f32 %v707_v47, %v586_v48 }
 0x75a   :  { %2671 = vtanh.f32 %v709_v49  ;;  %v2364_v53 = vmul.f32 -1.442695, %v709_v49 }
 0x75b   :  { %2673 = vpow2.f32 %v2363_v52 }
 0x75c   :  { %2675 = vpow2.f32 %v2364_v53 }
 0x761   :  { %v2670_v50 = vpop.eup %2669 }
 0x762   :  { %691 = vrot.lane.b32.xlu0 %v2670_v50, %s2832_s5 }
 0x764   :  { %v2672_v51 = vpop.eup %2671 }
 0x765   :  { %722 = vrot.lane.b32.xlu1 %v2672_v51, %s2832_s5  ;;  %v2674_v54 = vpop.eup %2673 }
 0x766   :  { %v2676_v55 = vpop.eup %2675  ;;  %v682_v56 = vadd.f32 1.0, %v2674_v54 }
 0x767   :  { %v713_v57 = vadd.f32 1.0, %v2676_v55 }
 0x768   :  { %2677 = vrcp.f32 %v682_v56 }
 0x769   :  { %2679 = vrcp.f32 %v713_v57 }
 0x772   :  { %v2678_v58 = vpop.eup %2677 }
 0x773   :  { %v2680_v63 = vpop.eup %2679  ;;  %v689_v5 = vmul.f32 %v2678_v58, %v687_v4  ;;  %v914_v4 = vld [vmem:[#allocation2 + $0x8] sm:$0xf0] }
 0x774   :  { %v720_v19 = vmul.f32 %v2680_v63, %v718_v6 }
 0x7d4   :  { %v692_v59 = vpop.permute.xlu0 %691 }
 0x7d5   :  { %v694_v60 = vmul.f32 %v2678_v58, %v692_v59  ;;  %v913_v59 = vld [vmem:[#allocation2 + $0x20] sm:$0xf] }
 0x7d7   :  { %696 = vrot.lane.b32.xlu0 %v694_v60, %s2833_s20  ;;  %v723_v1 = vpop.permute.xlu1 %722 }
 0x7d8   :  { %v725_v2 = vmul.f32 %v2680_v63, %v723_v1 }
 0x7da   :  { %727 = vrot.lane.b32.xlu1 %v725_v2, %s2833_s20 }
 0x849   :  { %v697_v7 = vpop.permute.xlu0 %696 }
 0x84a   :  { %v3111_v8 = vadd.f32 %v697_v7, %v689_v5 }
 0x84c   :  { %2681 = vtanh.f32 %v3111_v8  ;;  %v728_v9 = vpop.permute.xlu1 %727  ;;  %v854_v42 = vrot.slane %v3111_v8, 4 }
 0x84d   :  { %v730_v10 = vadd.f32 %v728_v9, %v720_v19 }
 0x84f   :  { %2683 = vtanh.f32 %v730_v10  ;;  %v882_v41 = vrot.slane %v730_v10, 4 }
 0x856   :  { %v2682_v11 = vpop.eup %2681 }
 0x857   :  { %702 = vrot.lane.b32.xlu0 %v2682_v11, %s2832_s5 }
 0x859   :  { %v2684_v12 = vpop.eup %2683 }
 0x85a   :  { %733 = vrot.lane.b32.xlu1 %v2684_v12, %s2832_s5 }
 0x8c9   :  { %v703_v13 = vpop.permute.xlu0 %702 }
 0x8ca   :  { %v705_v14 = vmul.f32 %v2678_v58, %v703_v13 }
 0x8cc   :  { %738 = vrot.lane.b32.xlu0 %v705_v14, %s2833_s20  ;;  %v734_v15 = vpop.permute.xlu1 %733 }
 0x8cd   :  { %v736_v16 = vmul.f32 %v2680_v63, %v734_v15 }
 0x8cf   :  { %743 = vrot.lane.b32.xlu1 %v736_v16, %s2832_s5 }
 0x93e   :  { %v739_v17 = vpop.permute.xlu0 %738 }
 0x93f   :  { %741 = vst.msk [vmem:[#allocation4] sm:$0xf] %vm409_vm5, %v739_v17  ;;  %747 = vst.msk [vmem:[#allocation3 + $0x8] sm:$0xf] %vm409_vm5, %v739_v17 }
 0x941   :  { %v744_v18 = vpop.permute.xlu1 %743 }
 0x942   :  { %746 = vst.msk [vmem:[#allocation4 - $0x4] sm:$0xf0] %vm415_vm6, %v744_v18  ;;  %748 = vst.msk [vmem:[#allocation3 + $0x8] sm:$0xf0] %vm415_vm6, %v744_v18 }
 0x949   :  { %v751_v20 = vld [vmem:[#allocation4] sm:$0xf] }
 0x94a   :  { %2365 = vmatmul.mubr.msk.f32.vlgmr.msra.gmra.mrb[14].mxu1 %vm277_vm3, %v751_v20 }
 0x94b   :  { %2507 = vmatpush1.bf16.msra.mxu1 %v2950_v25  ;;  %1163 = vmatprep.mubr.f32.mxu1 %v2831_v3 }
 0x94c   :  { %2509 = vmatprep.subr.bf16.mxu1 %v2959_v28 }
 0x94f   :  { %2511 = vmatpush1.bf16.msra.mxu1 %v2967_v31 }
 0x950   :  { %2513 = vmatprep.subr.bf16.mxu1 %v2977_v34 }
 0x953   :  { %2515 = vmatpush1.bf16.msra.mxu1 %v2985_v37 }
 0x954   :  { %2517 = vmatprep.subr.bf16.mxu1 %v2997_v40 }
 0x957   :  { %2519 = vmatpush1.bf16.msra.mxu1 %v3005_v43 }
 0xa1d   :  { %v837_v21 = vpop.f32.mrb[14].mxu1 }
 0xa1e   :  { %v843_v22 = vrot.slane %v837_v21, 4  ;;  %v839_v24 = vpop.f32.mrb[15].mxu1 }
 0xa1f   :  { %v873_v25 = vadd.f32 %v839_v24, %v750_v23 }
 0xa20   :  { %v845_v27 = vadd.f32 %v843_v22, %v749_v26 }
 0xa21   :  { %2685 = vtanh.f32 %v873_v25  ;;  %v2367_v31 = vmul.f32 -1.442695, %v873_v25 }
 0xa22   :  { %2687 = vtanh.f32 %v845_v27  ;;  %v2366_v34 = vmul.f32 -1.442695, %v845_v27 }
 0xa23   :  { %2689 = vpow2.f32 %v2367_v31 }
 0xa24   :  { %2691 = vpow2.f32 %v2366_v34 }
 0xa2b   :  { %v2686_v28 = vpop.eup %2685 }
 0xa2c   :  { %v2688_v29 = vpop.eup %2687  ;;  %886 = vrot.lane.b32.xlu1 %v2686_v28, %s2832_s5 }
 0xa2d   :  { %858 = vrot.lane.b32.xlu0 %v2688_v29, %s2832_s5  ;;  %v2690_v37 = vpop.eup %2689 }
 0xa2e   :  { %v2692_v40 = vpop.eup %2691  ;;  %v877_v43 = vadd.f32 1.0, %v2690_v37 }
 0xa2f   :  { %v849_v30 = vadd.f32 1.0, %v2692_v40 }
 0xa30   :  { %2693 = vrcp.f32 %v877_v43 }
 0xa31   :  { %2695 = vrcp.f32 %v849_v30 }
 0xa3a   :  { %v2694_v32 = vpop.eup %2693 }
 0xa3b   :  { %v2696_v35 = vpop.eup %2695  ;;  %v884_v44 = vmul.f32 %v2694_v32, %v882_v41 }
 0xa3c   :  { %v856_v46 = vmul.f32 %v2696_v35, %v854_v42 }
 0xa9e   :  { %v887_v33 = vpop.permute.xlu1 %886 }
 0xa9f   :  { %v889_v36 = vmul.f32 %v2694_v32, %v887_v33  ;;  %v859_v38 = vpop.permute.xlu0 %858 }
 0xaa0   :  { %v861_v39 = vmul.f32 %v2696_v35, %v859_v38 }
 0xaa1   :  { %891 = vrot.lane.b32.xlu1 %v889_v36, %s2833_s20  ;;  %v1078_v36 = vld [vmem:[#allocation2 + $0x8] sm:$0xf] }
 0xaa2   :  { %863 = vrot.lane.b32.xlu0 %v861_v39, %s2833_s20  ;;  %v1077_v39 = vld [vmem:[#allocation2 + $0x20] sm:$0xf0] }
 0xb13   :  { %v892_v45 = vpop.permute.xlu1 %891 }
 0xb14   :  { %v894_v47 = vadd.f32 %v892_v45, %v884_v44  ;;  %v864_v48 = vpop.permute.xlu0 %863 }
 0xb15   :  { %v866_v49 = vadd.f32 %v864_v48, %v856_v46 }
 0xb16   :  { %2697 = vtanh.f32 %v894_v47  ;;  %v1046_v22 = vrot.slane %v894_v47, 4 }
 0xb17   :  { %2699 = vtanh.f32 %v866_v49  ;;  %v1015_v20 = vrot.slane %v866_v49, 4 }
 0xb20   :  { %v2698_v50 = vpop.eup %2697 }
 0xb21   :  { %v2700_v51 = vpop.eup %2699  ;;  %897 = vrot.lane.b32.xlu1 %v2698_v50, %s2832_s5 }
 0xb22   :  { %869 = vrot.lane.b32.xlu0 %v2700_v51, %s2832_s5 }
 0xb93   :  { %v898_v52 = vpop.permute.xlu1 %897 }
 0xb94   :  { %v900_v53 = vmul.f32 %v2694_v32, %v898_v52  ;;  %v870_v54 = vpop.permute.xlu0 %869 }
 0xb95   :  { %v872_v55 = vmul.f32 %v2696_v35, %v870_v54 }
 0xb96   :  { %907 = vrot.lane.b32.xlu1 %v900_v53, %s2832_s5 }
 0xb97   :  { %902 = vrot.lane.b32.xlu0 %v872_v55, %s2833_s20 }
 0xc08   :  { %v908_v56 = vpop.permute.xlu1 %907 }
 0xc09   :  { %912 = vst.msk [vmem:[#allocation3 + $0x8] sm:$0xf] %vm581_vm7, %v908_v56  ;;  %v903_v57 = vpop.permute.xlu0 %902 }
 0xc0a   :  { %905 = vst.msk [vmem:[#allocation4 - $0x4] sm:$0xf0] %vm575_vm8, %v903_v57  ;;  %911 = vst.msk [vmem:[#allocation3 + $0x8] sm:$0xf0] %vm575_vm8, %v903_v57 }
 0xc0b   :  { %910 = vst.msk [vmem:[#allocation4] sm:$0xf] %vm581_vm7, %v908_v56 }
 0xc12   :  { %v915_v58 = vld [vmem:[#allocation4] sm:$0xf] }
 0xc13   :  { %2368 = vmatmul.mubr.msk.f32.vlgmr.msra.gmra.mrb[4].mxu0 %vm277_vm3, %v915_v58 }
 0xc14   :  { %1345 = vmatprep.mubr.f32.mxu0 %v2831_v3 }
 0xce6   :  { %v1001_v60 = vpop.f32.mrb[4].mxu0 }
 0xce7   :  { %v1006_v63 = vadd.f32 %v1001_v60, %v913_v59  ;;  %v1003_v1 = vpop.f32.mrb[5].mxu0 }
 0xce8   :  { %v1035_v2 = vrot.slane %v1003_v1, 4 }
 0xce9   :  { %2701 = vtanh.f32 %v1006_v63  ;;  %v2369_v8 = vmul.f32 -1.442695, %v1006_v63 }
 0xcea   :  { %v1037_v5 = vadd.f32 %v1035_v2, %v914_v4 }
 0xcec   :  { %2703 = vtanh.f32 %v1037_v5  ;;  %v2370_v19 = vmul.f32 -1.442695, %v1037_v5 }
 0xced   :  { %2705 = vpow2.f32 %v2369_v8  ;;  %v1244_v8 = vld [vmem:[%s3455_s6] sm:$0xff] }
 0xcee   :  { %2707 = vpow2.f32 %v2370_v19 }
 0xcf3   :  { %v2702_v6 = vpop.eup %2701 }
 0xcf4   :  { %1019 = vrot.lane.b32.xlu0 %v2702_v6, %s2832_s5  ;;  %v1245_v6 = vld [vmem:[%s3455_s6 + $0x8] sm:$0xff] }
 0xcf6   :  { %v2704_v7 = vpop.eup %2703 }
 0xcf7   :  { %1050 = vrot.lane.b32.xlu1 %v2704_v7, %s2832_s5  ;;  %v2706_v9 = vpop.eup %2705  ;;  %v1247_v7 = vld [vmem:[%s3455_s6 + $0x18] sm:$0xff] }
 0xcf8   :  { %v2708_v10 = vpop.eup %2707  ;;  %v1010_v11 = vadd.f32 1.0, %v2706_v9  ;;  %v2520_v19 = vpack.c.bf16 %v1247_v7, %v1245_v6  ;;  %v1246_v9 = vld [vmem:[%s3455_s6 + $0x10] sm:$0xff]  ;;  %v1260_v6 = vld [vmem:[%s3457_s8] sm:$0x3] }
 0xcf9   :  { %v1041_v12 = vadd.f32 1.0, %v2708_v10  ;;  %v1249_v10 = vld [vmem:[%s3455_s6 + $0x28] sm:$0xff]  ;;  %v1265_v7 = vrot.slane %v1260_v6, %v149_v62 }
 0xcfa   :  { %2709 = vrcp.f32 %v1010_v11  ;;  %v1251_v11 = vld [vmem:[%s3455_s6 + $0x38] sm:$0xff]  ;;  %2521 = vmatprep.subr.bf16.mxu0 %v2520_v19 }
 0xcfb   :  { %2711 = vrcp.f32 %v1041_v12  ;;  %v2522_v12 = vpack.c.bf16 %v1246_v9, %v1244_v8  ;;  %v1269_v8 = vrot.slane %v1260_v6, %v153_v0 }
 0xcfd   :  { %2523 = vmatpush1.bf16.msra.mxu0 %v2522_v12 }
 0xd04   :  { %v2710_v13 = vpop.eup %2709 }
 0xd05   :  { %v2712_v16 = vpop.eup %2711  ;;  %v1017_v21 = vmul.f32 %v2710_v13, %v1015_v20  ;;  %v1253_v20 = vld [vmem:[%s3455_s6 + $0x48] sm:$0xff] }
 0xd06   :  { %v1048_v26 = vmul.f32 %v2712_v16, %v1046_v22 }
 0xd66   :  { %v1020_v14 = vpop.permute.xlu0 %1019 }
 0xd67   :  { %v1022_v15 = vmul.f32 %v2710_v13, %v1020_v14  ;;  %v1248_v14 = vld [vmem:[%s3455_s6 + $0x20] sm:$0xff] }
 0xd69   :  { %1024 = vrot.lane.b32.xlu0 %v1022_v15, %s2833_s20  ;;  %v1051_v17 = vpop.permute.xlu1 %1050  ;;  %v1250_v15 = vld [vmem:[%s3455_s6 + $0x30] sm:$0xff] }
 0xd6a   :  { %v1053_v18 = vmul.f32 %v2712_v16, %v1051_v17 }
 0xd6c   :  { %1055 = vrot.lane.b32.xlu1 %v1053_v18, %s2833_s20 }
 0xddb   :  { %v1025_v23 = vpop.permute.xlu0 %1024 }
 0xddc   :  { %v1027_v24 = vadd.f32 %v1025_v23, %v1017_v21  ;;  %v1255_v21 = vld [vmem:[%s3455_s6 + $0x58] sm:$0xff]  ;;  %v1252_v23 = vld [vmem:[%s3455_s6 + $0x40] sm:$0xff] }
 0xddd   :  { %v2528_v22 = vpack.c.bf16 %v1255_v21, %v1253_v20 }
 0xdde   :  { %2713 = vtanh.f32 %v1027_v24  ;;  %v1056_v25 = vpop.permute.xlu1 %1055  ;;  %v1182_v59 = vrot.slane %v1027_v24, 4  ;;  %v1254_v24 = vld [vmem:[%s3455_s6 + $0x50] sm:$0xff] }
 0xddf   :  { %v1058_v27 = vadd.f32 %v1056_v25, %v1048_v26  ;;  %v2530_v26 = vpack.c.bf16 %v1254_v24, %v1252_v23  ;;  %v1375_v25 = vld [vmem:[%s3456_s7 + $0x8] sm:$0xff] }
 0xde1   :  { %2715 = vtanh.f32 %v1058_v27  ;;  %v1210_v58 = vrot.slane %v1058_v27, 4  ;;  %v1377_v27 = vld [vmem:[%s3456_s7 + $0x18] sm:$0xff] }
 0xde8   :  { %v2714_v28 = vpop.eup %2713 }
 0xde9   :  { %1030 = vrot.lane.b32.xlu0 %v2714_v28, %s2832_s5  ;;  %v3216_v28 = vpack.c.bf16 %v1377_v27, %v1375_v25 }
 0xdeb   :  { %v2716_v29 = vpop.eup %2715  ;;  %2537 = vmatprep.subr.bf16.mxu1 %v3216_v28 }
 0xdec   :  { %1061 = vrot.lane.b32.xlu1 %v2716_v29, %s2832_s5  ;;  %v1374_v29 = vld [vmem:[%s3456_s7] sm:$0xff] }
 0xe5b   :  { %v1031_v31 = vpop.permute.xlu0 %1030 }
 0xe5c   :  { %v1033_v34 = vmul.f32 %v2710_v13, %v1031_v31  ;;  %v2524_v13 = vpack.c.bf16 %v1251_v11, %v1249_v10  ;;  %v1376_v31 = vld [vmem:[%s3456_s7 + $0x10] sm:$0xff] }
 0xe5e   :  { %1066 = vrot.lane.b32.xlu0 %v1033_v34, %s2833_s20  ;;  %v1062_v37 = vpop.permute.xlu1 %1061  ;;  %2525 = vmatprep.subr.bf16.mxu0 %v2524_v13  ;;  %v3224_v34 = vpack.c.bf16 %v1376_v31, %v1374_v29 }
 0xe5f   :  { %v1064_v40 = vmul.f32 %v2712_v16, %v1062_v37  ;;  %v2526_v16 = vpack.c.bf16 %v1250_v15, %v1248_v14  ;;  %v1257_v37 = vld [vmem:[%s3455_s6 + $0x68] sm:$0xff] }
 0xe61   :  { %1071 = vrot.lane.b32.xlu1 %v1064_v40, %s2832_s5  ;;  %2527 = vmatpush1.bf16.msra.mxu0 %v2526_v16  ;;  %v1259_v40 = vld [vmem:[%s3455_s6 + $0x78] sm:$0xff] }
 0xe62   :  { %2529 = vmatprep.subr.bf16.mxu0 %v2528_v22 }
 0xe65   :  { %2531 = vmatpush1.bf16.msra.mxu0 %v2530_v26 }
 0xed0   :  { %v1067_v43 = vpop.permute.xlu0 %1066 }
 0xed1   :  { %1069 = vst.msk [vmem:[#allocation4] sm:$0xf] %vm409_vm5, %v1067_v43  ;;  %1075 = vst.msk [vmem:[#allocation3 + $0x10] sm:$0xf] %vm409_vm5, %v1067_v43  ;;  %v2532_v43 = vpack.c.bf16 %v1259_v40, %v1257_v37 }
 0xed3   :  { %v1072_v30 = vpop.permute.xlu1 %1071  ;;  %2533 = vmatprep.subr.bf16.mxu0 %v2532_v43 }
 0xed4   :  { %1074 = vst.msk [vmem:[#allocation4 - $0x4] sm:$0xf0] %vm415_vm6, %v1072_v30  ;;  %1076 = vst.msk [vmem:[#allocation3] sm:$0xf0] %vm415_vm6, %v1072_v30  ;;  %v1256_v30 = vld [vmem:[%s3455_s6 + $0x60] sm:$0xff] }
 0xedb   :  { %v1079_v32 = vld [vmem:[#allocation4] sm:$0xf] }
 0xedc   :  { %2371 = vmatmul.mubr.msk.f32.vlgmr.msra.gmra.mrb[16].mxu1 %vm277_vm3, %v1079_v32  ;;  %v1258_v32 = vld [vmem:[%s3455_s6 + $0x70] sm:$0xff] }
 0xedd   :  { %1457 = vmatprep.mubr.f32.mxu1 %v2831_v3  ;;  %2539 = vmatpush1.bf16.msra.mxu1 %v3224_v34 }
 0xfaf   :  { %v1165_v33 = vpop.f32.mrb[16].mxu1 }
 0xfb0   :  { %v1171_v35 = vrot.slane %v1165_v33, 4  ;;  %v1167_v38 = vpop.f32.mrb[17].mxu1  ;;  %v2534_v33 = vpack.c.bf16 %v1258_v32, %v1256_v30 }
 0xfb1   :  { %v1201_v41 = vadd.f32 %v1167_v38, %v1078_v36  ;;  %v1381_v36 = vld [vmem:[%s3456_s7 + $0x38] sm:$0xff]  ;;  %v1378_v38 = vld [vmem:[%s3456_s7 + $0x20] sm:$0xff] }
 0xfb2   :  { %v1173_v42 = vadd.f32 %v1171_v35, %v1077_v39  ;;  %v1379_v35 = vld [vmem:[%s3456_s7 + $0x28] sm:$0xff]  ;;  %2535 = vmatpush1.bf16.msra.mxu0 %v2534_v33 }
 0xfb3   :  { %2717 = vtanh.f32 %v1201_v41  ;;  %v2373_v46 = vmul.f32 -1.442695, %v1201_v41  ;;  %v3249_v39 = vpack.c.bf16 %v1381_v36, %v1379_v35  ;;  %v1380_v41 = vld [vmem:[%s3456_s7 + $0x30] sm:$0xff]  ;;  %2553 = vmatprep.subr.bf16.mxu0 %v3216_v28 }
 0xfb4   :  { %2719 = vtanh.f32 %v1173_v42  ;;  %v2372_v47 = vmul.f32 -1.442695, %v1173_v42  ;;  %v3254_v42 = vpack.c.bf16 %v1380_v41, %v1378_v38 }
 0xfb5   :  { %2721 = vpow2.f32 %v2373_v46  ;;  %2541 = vmatprep.subr.bf16.mxu1 %v3249_v39 }
 0xfb6   :  { %2723 = vpow2.f32 %v2372_v47  ;;  %2543 = vmatpush1.bf16.msra.mxu1 %v3254_v42  ;;  %v1382_v47 = vld [vmem:[%s3456_s7 + $0x40] sm:$0xff] }
 0xfbd   :  { %v2718_v44 = vpop.eup %2717 }
 0xfbe   :  { %v2720_v45 = vpop.eup %2719  ;;  %1214 = vrot.lane.b32.xlu0 %v2718_v44, %s2832_s5  ;;  %v1383_v44 = vld [vmem:[%s3456_s7 + $0x48] sm:$0xff] }
 0xfbf   :  { %1186 = vrot.lane.b32.xlu1 %v2720_v45, %s2832_s5  ;;  %v2722_v48 = vpop.eup %2721  ;;  %v1385_v45 = vld [vmem:[%s3456_s7 + $0x58] sm:$0xff] }
 0xfc0   :  { %v2724_v49 = vpop.eup %2723  ;;  %v1205_v50 = vadd.f32 1.0, %v2722_v48  ;;  %v3265_v46 = vpack.c.bf16 %v1385_v45, %v1383_v44  ;;  %v1384_v48 = vld [vmem:[%s3456_s7 + $0x50] sm:$0xff] }
 0xfc1   :  { %v1177_v51 = vadd.f32 1.0, %v2724_v49  ;;  %v3273_v49 = vpack.c.bf16 %v1384_v48, %v1382_v47 }
 0xfc2   :  { %2725 = vrcp.f32 %v1205_v50  ;;  %2545 = vmatprep.subr.bf16.mxu1 %v3265_v46 }
 0xfc3   :  { %2727 = vrcp.f32 %v1177_v51  ;;  %2547 = vmatpush1.bf16.msra.mxu1 %v3273_v49 }
 0xfcc   :  { %v3162_v52 = vpop.eup %2725 }
 0xfcd   :  { %v3164_v54 = vpop.eup %2727  ;;  %v1212_v60 = vmul.f32 %v3162_v52, %v1210_v58 }
 0xfce   :  { %v1184_v1 = vmul.f32 %v3164_v54, %v1182_v59  ;;  %v1386_v59 = vld [vmem:[%s3456_s7 + $0x60] sm:$0xff] }
0x1030   :  { %v1215_v53 = vpop.permute.xlu0 %1214 }
0x1031   :  { %v1217_v55 = vmul.f32 %v3162_v52, %v1215_v53  ;;  %v1187_v56 = vpop.permute.xlu1 %1186 }
0x1032   :  { %v1189_v57 = vmul.f32 %v3164_v54, %v1187_v56  ;;  %v1389_v56 = vld [vmem:[%s3456_s7 + $0x78] sm:$0xff] }
0x1033   :  { %1219 = vrot.lane.b32.xlu0 %v1217_v55, %s2833_s20  ;;  %v1387_v55 = vld [vmem:[%s3456_s7 + $0x68] sm:$0xff] }
0x1034   :  { %1191 = vrot.lane.b32.xlu1 %v1189_v57, %s2833_s20  ;;  %v3285_v58 = vpack.c.bf16 %v1389_v56, %v1387_v55 }
0x1036   :  { %2549 = vmatprep.subr.bf16.mxu1 %v3285_v58 }
0x10a5   :  { %v1220_v63 = vpop.permute.xlu0 %1219 }
0x10a6   :  { %v1222_v2 = vadd.f32 %v1220_v63, %v1212_v60  ;;  %v1192_v4 = vpop.permute.xlu1 %1191 }
0x10a7   :  { %v1194_v5 = vadd.f32 %v1192_v4, %v1184_v1  ;;  %v1242_v4 = vld [vmem:[#allocation3 + $0x8] sm:$0xff] }
0x10a8   :  { %2729 = vtanh.f32 %v1222_v2 }
0x10a9   :  { %2731 = vtanh.f32 %v1194_v5 }
0x10b2   :  { %v2730_v17 = vpop.eup %2729 }
0x10b3   :  { %v2732_v18 = vpop.eup %2731  ;;  %1225 = vrot.lane.b32.xlu0 %v2730_v17, %s2832_s5 }
0x10b4   :  { %1197 = vrot.lane.b32.xlu1 %v2732_v18, %s2832_s5 }
0x1125   :  { %v1226_v50 = vpop.permute.xlu0 %1225 }
0x1126   :  { %v1228_v51 = vmul.f32 %v3162_v52, %v1226_v50  ;;  %v1198_v53 = vpop.permute.xlu1 %1197  ;;  %v1388_v52 = vld [vmem:[%s3456_s7 + $0x70] sm:$0xff] }
0x1127   :  { %v1200_v57 = vmul.f32 %v3164_v54, %v1198_v53  ;;  %v3294_v60 = vpack.c.bf16 %v1388_v52, %v1386_v59 }
0x1128   :  { %1235 = vrot.lane.b32.xlu0 %v1228_v51, %s2832_s5 }
0x1129   :  { %1230 = vrot.lane.b32.xlu1 %v1200_v57, %s2833_s20  ;;  %2551 = vmatpush1.bf16.msra.mxu1 %v3294_v60 }
0x112a   :  { %2569 = vmatprep.subr.bf16.mxu1 %v3216_v28 }
0x119a   :  { %v1236_v54 = vpop.permute.xlu0 %1235 }
0x119b   :  { %1240 = vst.msk [vmem:[#allocation3] sm:$0xf] %vm581_vm7, %v1236_v54  ;;  %v1231_v63 = vpop.permute.xlu1 %1230 }
0x119c   :  { %1233 = vst.msk [vmem:[#allocation4 - $0x4] sm:$0xf0] %vm575_vm8, %v1231_v63  ;;  %1239 = vst.msk [vmem:[#allocation3 + $0x10] sm:$0xf0] %vm575_vm8, %v1231_v63 }
0x119d   :  { %1238 = vst.msk [vmem:[#allocation4] sm:$0xf] %vm581_vm7, %v1236_v54 }
0x119e   :  { %1370 = vst.msk [vmem:[#allocation4] sm:$0xf] %vm256_vm2, %v2831_v3 }
0x11a2   :  { %v1241_v1 = vld [vmem:[#allocation3] sm:$0xff] }
0x11a3   :  { %2374 = vmatmul.mubr.msk.f32.vlgmr.msra.gmra.mrb[6].mxu0 %vm277_vm3, %v1241_v1  ;;  %v1243_v5 = vld [vmem:[#allocation3 + $0x10] sm:$0xff] }
0x11a4   :  { %1351 = vmatprep.mubr.f32.mxu0 %v2831_v3  ;;  %2555 = vmatpush1.bf16.msra.mxu0 %v3224_v34 }
0x11a5   :  { %v1373_v2 = vld [vmem:[#allocation4] sm:$0xf]  ;;  %2557 = vmatprep.subr.bf16.mxu0 %v3249_v39 }
0x11a6   :  { %2377 = vmatmul.mubr.msk.f32.vlgmr.msra.gmra.mrb[18].mxu1 %vm277_vm3, %v1373_v2 }
0x11a7   :  { %2375 = vmatmul.mubr.msk.f32.gmra.mrb[8].mxu0 %vm277_vm3, %v1242_v4  ;;  %2571 = vmatpush1.bf16.msra.mxu1 %v3224_v34 }
0x11a8   :  { %1357 = vmatprep.mubr.f32.mxu0 %v2831_v3  ;;  %2559 = vmatpush1.bf16.msra.mxu0 %v3254_v42 }
0x11a9   :  { %2561 = vmatprep.subr.bf16.mxu0 %v3265_v46  ;;  %2573 = vmatprep.subr.bf16.mxu1 %v3249_v39 }
0x11aa   :  { %1775 = vmatprep.mubr.f32.mxu1 %v2831_v3 }
0x11ab   :  { %2376 = vmatmul.mubr.msk.f32.gmra.mrb[10].mxu0 %vm277_vm3, %v1243_v5  ;;  %2575 = vmatpush1.bf16.msra.mxu1 %v3254_v42 }
0x11ac   :  { %2563 = vmatpush1.bf16.msra.mxu0 %v3273_v49  ;;  %1613 = vmatprep.mubr.f32.mxu0 %v2831_v3 }
0x11ad   :  { %2565 = vmatprep.subr.bf16.mxu0 %v3285_v58  ;;  %2577 = vmatprep.subr.bf16.mxu1 %v3265_v46 }
0x11af   :  { %2579 = vmatpush1.bf16.msra.mxu1 %v3273_v49 }
0x11b0   :  { %2567 = vmatpush1.bf16.msra.mxu0 %v3294_v60  ;;  %2581 = vmatprep.subr.bf16.mxu1 %v3285_v58 }
0x11b1   :  { %2585 = vmatprep.subr.bf16.mxu0 %v3216_v28 }
0x11b3   :  { %2583 = vmatpush1.bf16.msra.mxu1 %v3294_v60 }
0x11b4   :  { %2601 = vmatprep.subr.bf16.mxu1 %v3216_v28 }
0x1276   :  { %v1347_v19 = vpop.f32.mrb[6].mxu0 }
0x1277   :  { %v1348_v9 = vadd.f32 %v1347_v19, %v1265_v7  ;;  %v1349_v10 = vpop.f32.mrb[7].mxu0 }
0x1278   :  { %v1350_v11 = vadd.f32 %v1349_v10, %v1269_v8 }
0x1279   :  { %1364 = vst [vmem:[#allocation2] sm:$0xff] %v1348_v9  ;;  %v1459_v12 = vpop.f32.mrb[18].mxu1 }
0x127a   :  { %1365 = vst [vmem:[#allocation2 + $0x8] sm:$0xff] %v1350_v11  ;;  %v1353_v13 = vpop.f32.mrb[8].mxu0  ;;  %v1461_v14 = vpop.f32.mrb[19].mxu1 }
0x127b   :  { %v1354_v15 = vadd.f32 %v1353_v13, %v1265_v7  ;;  %v1355_v16 = vpop.f32.mrb[9].mxu0  ;;  %v1490_v22 = vrot.slane %v1461_v14, 4 }
0x127c   :  { %v1356_v17 = vadd.f32 %v1355_v16, %v1269_v8 }
0x127d   :  { %1366 = vst [vmem:[#allocation2 + $0x10] sm:$0xff] %v1354_v15 }
0x127e   :  { %1367 = vst [vmem:[#allocation2 + $0x18] sm:$0xff] %v1356_v17  ;;  %v1359_v18 = vpop.f32.mrb[10].mxu0 }
0x127f   :  { %v1360_v20 = vadd.f32 %v1359_v18, %v1265_v7  ;;  %v1361_v62 = vpop.f32.mrb[11].mxu0 }
0x1280   :  { %v1362_v21 = vadd.f32 %v1361_v62, %v1269_v8  ;;  %v1371_v61 = vld [vmem:[#allocation2] sm:$0xf]  ;;  %v1527_v6 = vld [vmem:[#allocation2] sm:$0xf0] }
0x1281   :  { %1368 = vst [vmem:[#allocation2 + $0x20] sm:$0xff] %v1360_v20  ;;  %v1464_v0 = vadd.f32 %v1459_v12, %v1371_v61 }
0x1282   :  { %1369 = vst [vmem:[#allocation2 + $0x28] sm:$0xff] %v1362_v21 }
0x1283   :  { %2733 = vtanh.f32 %v1464_v0  ;;  %v2378_v27 = vmul.f32 -1.442695, %v1464_v0 }
0x1289   :  { %v1372_v23 = vld [vmem:[#allocation2 + $0x28] sm:$0xf0]  ;;  %v1528_v4 = vld [vmem:[#allocation2 + $0x28] sm:$0xf] }
0x128a   :  { %v1492_v24 = vadd.f32 %v1490_v22, %v1372_v23 }
0x128c   :  { %2735 = vtanh.f32 %v1492_v24  ;;  %v2379_v29 = vmul.f32 -1.442695, %v1492_v24 }
0x128d   :  { %v2734_v26 = vpop.eup %2733  ;;  %2737 = vpow2.f32 %v2378_v27 }
0x128e   :  { %1474 = vrot.lane.b32.xlu0 %v2734_v26, %s2832_s5  ;;  %2739 = vpow2.f32 %v2379_v29 }
0x1296   :  { %v2736_v25 = vpop.eup %2735 }
0x1297   :  { %1502 = vrot.lane.b32.xlu1 %v2736_v25, %s2832_s5  ;;  %v2738_v31 = vpop.eup %2737 }
0x1298   :  { %v1468_v37 = vadd.f32 1.0, %v2738_v31  ;;  %v2740_v40 = vpop.eup %2739 }
0x1299   :  { %v1496_v43 = vadd.f32 1.0, %v2740_v40 }
0x129a   :  { %2741 = vrcp.f32 %v1468_v37 }
0x129b   :  { %2743 = vrcp.f32 %v1496_v43 }
0x12a4   :  { %v2742_v30 = vpop.eup %2741 }
0x12a5   :  { %v2744_v35 = vpop.eup %2743  ;;  %v1472_v41 = vmul.f32 0.0, %v2742_v30 }
0x12a6   :  { %v1500_v47 = vmul.f32 0.0, %v2744_v35 }
0x1300   :  { %v1475_v32 = vpop.permute.xlu0 %1474 }
0x1301   :  { %v1477_v33 = vmul.f32 %v2742_v30, %v1475_v32 }
0x1303   :  { %1479 = vrot.lane.b32.xlu0 %v1477_v33, %s2833_s20 }
0x1309   :  { %v1503_v36 = vpop.permute.xlu1 %1502 }
0x130a   :  { %v1505_v38 = vmul.f32 %v2744_v35, %v1503_v36 }
0x130c   :  { %1507 = vrot.lane.b32.xlu1 %v1505_v38, %s2833_s20 }
0x1375   :  { %v1480_v44 = vpop.permute.xlu0 %1479 }
0x1376   :  { %v3341_v45 = vadd.f32 %v1480_v44, %v1472_v41 }
0x1378   :  { %2745 = vtanh.f32 %v3341_v45  ;;  %v1632_v61 = vrot.slane %v3341_v45, 4  ;;  %v1690_v45 = vld [vmem:[#allocation2 + $0x18] sm:$0xf0] }
0x137e   :  { %v1508_v48 = vpop.permute.xlu1 %1507 }
0x137f   :  { %v1510_v50 = vadd.f32 %v1508_v48, %v1500_v47 }
0x1381   :  { %2747 = vtanh.f32 %v1510_v50  ;;  %v1660_v21 = vrot.slane %v1510_v50, 4 }
0x1382   :  { %v2746_v51 = vpop.eup %2745 }
0x1383   :  { %1485 = vrot.lane.b32.xlu0 %v2746_v51, %s2832_s5 }
0x138b   :  { %v2748_v53 = vpop.eup %2747 }
0x138c   :  { %1513 = vrot.lane.b32.xlu1 %v2748_v53, %s2832_s5 }
0x13f5   :  { %v1486_v55 = vpop.permute.xlu0 %1485 }
0x13f6   :  { %v1488_v56 = vmul.f32 %v2742_v30, %v1486_v55 }
0x13f8   :  { %1518 = vrot.lane.b32.xlu0 %v1488_v56, %s2833_s20 }
0x13fe   :  { %v1514_v57 = vpop.permute.xlu1 %1513 }
0x13ff   :  { %v1516_v59 = vmul.f32 %v2744_v35, %v1514_v57  ;;  %v1689_v35 = vld [vmem:[#allocation2 + $0x10] sm:$0xf] }
0x1401   :  { %1523 = vrot.lane.b32.xlu1 %v1516_v59, %s2832_s5 }
0x146a   :  { %v1519_v52 = vpop.permute.xlu0 %1518 }
0x146b   :  { %1521 = vst.msk [vmem:[#allocation4] sm:$0xf] %vm409_vm5, %v1519_v52 }
0x1473   :  { %v1524_v54 = vpop.permute.xlu1 %1523 }
0x1474   :  { %1526 = vst.msk [vmem:[#allocation4 - $0x4] sm:$0xf0] %vm415_vm6, %v1524_v54 }
0x147b   :  { %v1529_v63 = vld [vmem:[#allocation4] sm:$0xf] }
0x147c   :  { %2380 = vmatmul.mubr.msk.f32.vlgmr.msra.gmra.mrb[12].mxu0 %vm277_vm3, %v1529_v63 }
0x147d   :  { %2587 = vmatpush1.bf16.msra.mxu0 %v3224_v34  ;;  %1937 = vmatprep.mubr.f32.mxu0 %v2831_v3 }
0x147e   :  { %2589 = vmatprep.subr.bf16.mxu0 %v3249_v39 }
0x1481   :  { %2591 = vmatpush1.bf16.msra.mxu0 %v3254_v42 }
0x1482   :  { %2593 = vmatprep.subr.bf16.mxu0 %v3265_v46 }
0x1485   :  { %2595 = vmatpush1.bf16.msra.mxu0 %v3273_v49 }
0x1486   :  { %2597 = vmatprep.subr.bf16.mxu0 %v3285_v58 }
0x1489   :  { %2599 = vmatpush1.bf16.msra.mxu0 %v3294_v60 }
0x148a   :  { %2617 = vmatprep.subr.bf16.mxu0 %v3216_v28 }
0x154f   :  { %v1615_v1 = vpop.f32.mrb[12].mxu0 }
0x1550   :  { %v1621_v2 = vrot.slane %v1615_v1, 4  ;;  %v1617_v5 = vpop.f32.mrb[13].mxu0 }
0x1551   :  { %v1651_v7 = vadd.f32 %v1617_v5, %v1528_v4 }
0x1552   :  { %v1623_v8 = vadd.f32 %v1621_v2, %v1527_v6 }
0x1553   :  { %2749 = vtanh.f32 %v1651_v7  ;;  %v2382_v10 = vmul.f32 -1.442695, %v1651_v7 }
0x1554   :  { %2751 = vtanh.f32 %v1623_v8  ;;  %v2381_v11 = vmul.f32 -1.442695, %v1623_v8 }
0x1555   :  { %2753 = vpow2.f32 %v2382_v10 }
0x1556   :  { %2755 = vpow2.f32 %v2381_v11 }
0x155d   :  { %v2750_v19 = vpop.eup %2749 }
0x155e   :  { %v2752_v9 = vpop.eup %2751  ;;  %1664 = vrot.lane.b32.xlu1 %v2750_v19, %s2832_s5 }
0x155f   :  { %1636 = vrot.lane.b32.xlu0 %v2752_v9, %s2832_s5  ;;  %v2754_v28 = vpop.eup %2753 }
0x1560   :  { %v2756_v12 = vpop.eup %2755  ;;  %v1655_v13 = vadd.f32 1.0, %v2754_v28 }
0x1561   :  { %v1627_v14 = vadd.f32 1.0, %v2756_v12 }
0x1562   :  { %2757 = vrcp.f32 %v1655_v13 }
0x1563   :  { %2759 = vrcp.f32 %v1627_v14 }
0x156c   :  { %v2758_v15 = vpop.eup %2757 }
0x156d   :  { %v2760_v17 = vpop.eup %2759  ;;  %v1662_v0 = vmul.f32 %v2758_v15, %v1660_v21 }
0x156e   :  { %v1634_v23 = vmul.f32 %v2760_v17, %v1632_v61  ;;  %v1852_v61 = vld [vmem:[#allocation2 + $0x18] sm:$0xf] }
0x15d0   :  { %v1665_v16 = vpop.permute.xlu1 %1664 }
0x15d1   :  { %v1667_v18 = vmul.f32 %v2758_v15, %v1665_v16  ;;  %v1637_v20 = vpop.permute.xlu0 %1636 }
0x15d2   :  { %v1639_v62 = vmul.f32 %v2760_v17, %v1637_v20 }
0x15d3   :  { %1669 = vrot.lane.b32.xlu1 %v1667_v18, %s2833_s20 }
0x15d4   :  { %1641 = vrot.lane.b32.xlu0 %v1639_v62, %s2833_s20 }
0x1645   :  { %v1670_v22 = vpop.permute.xlu1 %1669 }
0x1646   :  { %v3365_v24 = vadd.f32 %v1670_v22, %v1662_v0  ;;  %v1642_v26 = vpop.permute.xlu0 %1641  ;;  %v1851_v22 = vld [vmem:[#allocation2 + $0x10] sm:$0xf0] }
0x1647   :  { %v1644_v25 = vadd.f32 %v1642_v26, %v1634_v23 }
0x1648   :  { %2761 = vtanh.f32 %v3365_v24  ;;  %v1822_v7 = vrot.slane %v3365_v24, 4 }
0x1649   :  { %2763 = vtanh.f32 %v1644_v25  ;;  %v1791_v5 = vrot.slane %v1644_v25, 4 }
0x1652   :  { %v2762_v27 = vpop.eup %2761 }
0x1653   :  { %v2764_v29 = vpop.eup %2763  ;;  %1675 = vrot.lane.b32.xlu1 %v2762_v27, %s2832_s5 }
0x1654   :  { %1647 = vrot.lane.b32.xlu0 %v2764_v29, %s2832_s5 }
0x16c5   :  { %v1676_v31 = vpop.permute.xlu1 %1675 }
0x16c6   :  { %v1678_v37 = vmul.f32 %v2758_v15, %v1676_v31  ;;  %v1648_v40 = vpop.permute.xlu0 %1647 }
0x16c7   :  { %v1650_v43 = vmul.f32 %v2760_v17, %v1648_v40 }
0x16c8   :  { %1685 = vrot.lane.b32.xlu1 %v1678_v37, %s2832_s5 }
0x16c9   :  { %1680 = vrot.lane.b32.xlu0 %v1650_v43, %s2833_s20 }
0x173a   :  { %v1686_v32 = vpop.permute.xlu1 %1685 }
0x173b   :  { %v1681_v30 = vpop.permute.xlu0 %1680 }
0x173c   :  { %1683 = vst.msk [vmem:[#allocation4 - $0x4] sm:$0xf0] %vm575_vm8, %v1681_v30 }
0x173d   :  { %1688 = vst.msk [vmem:[#allocation4] sm:$0xf] %vm581_vm7, %v1686_v32 }
0x1744   :  { %v1691_v33 = vld [vmem:[#allocation4] sm:$0xf] }
0x1745   :  { %2383 = vmatmul.mubr.msk.f32.vlgmr.msra.gmra.mrb[20].mxu1 %vm277_vm3, %v1691_v33 }
0x1746   :  { %2603 = vmatpush1.bf16.msra.mxu1 %v3224_v34  ;;  %2099 = vmatprep.mubr.f32.mxu1 %v2831_v3 }
0x1747   :  { %2605 = vmatprep.subr.bf16.mxu1 %v3249_v39 }
0x174a   :  { %2607 = vmatpush1.bf16.msra.mxu1 %v3254_v42 }
0x174b   :  { %2609 = vmatprep.subr.bf16.mxu1 %v3265_v46 }
0x174e   :  { %2611 = vmatpush1.bf16.msra.mxu1 %v3273_v49 }
0x174f   :  { %2613 = vmatprep.subr.bf16.mxu1 %v3285_v58 }
0x1752   :  { %2615 = vmatpush1.bf16.msra.mxu1 %v3294_v60 }
0x1818   :  { %v1777_v36 = vpop.f32.mrb[20].mxu1 }
0x1819   :  { %v1782_v38 = vadd.f32 %v1777_v36, %v1689_v35  ;;  %v1779_v41 = vpop.f32.mrb[21].mxu1 }
0x181a   :  { %v1811_v44 = vrot.slane %v1779_v41, 4 }
0x181b   :  { %2765 = vtanh.f32 %v1782_v38  ;;  %v2384_v51 = vmul.f32 -1.442695, %v1782_v38 }
0x181c   :  { %v1813_v47 = vadd.f32 %v1811_v44, %v1690_v45 }
0x181e   :  { %2767 = vtanh.f32 %v1813_v47  ;;  %v2385_v53 = vmul.f32 -1.442695, %v1813_v47 }
0x181f   :  { %2769 = vpow2.f32 %v2384_v51 }
0x1820   :  { %2771 = vpow2.f32 %v2385_v53 }
0x1825   :  { %v2766_v48 = vpop.eup %2765 }
0x1826   :  { %1795 = vrot.lane.b32.xlu0 %v2766_v48, %s2832_s5 }
0x1828   :  { %v2768_v50 = vpop.eup %2767 }
0x1829   :  { %1826 = vrot.lane.b32.xlu1 %v2768_v50, %s2832_s5  ;;  %v2770_v55 = vpop.eup %2769 }
0x182a   :  { %v2772_v56 = vpop.eup %2771  ;;  %v1786_v57 = vadd.f32 1.0, %v2770_v55 }
0x182b   :  { %v1817_v59 = vadd.f32 1.0, %v2772_v56  ;;  %v2013_v56 = vld [vmem:[#allocation2 + $0x20] sm:$0xf] }
0x182c   :  { %2773 = vrcp.f32 %v1786_v57 }
0x182d   :  { %2775 = vrcp.f32 %v1817_v59 }
0x1836   :  { %v2774_v52 = vpop.eup %2773 }
0x1837   :  { %v2776_v1 = vpop.eup %2775  ;;  %v1793_v6 = vmul.f32 %v2774_v52, %v1791_v5 }
0x1838   :  { %v1824_v9 = vmul.f32 %v2776_v1, %v1822_v7 }
0x1898   :  { %v1796_v54 = vpop.permute.xlu0 %1795 }
0x1899   :  { %v1798_v63 = vmul.f32 %v2774_v52, %v1796_v54 }
0x189b   :  { %1800 = vrot.lane.b32.xlu0 %v1798_v63, %s2833_s20  ;;  %v1827_v2 = vpop.permute.xlu1 %1826  ;;  %v2014_v63 = vld [vmem:[#allocation2 + $0x8] sm:$0xf0] }
0x189c   :  { %v1829_v4 = vmul.f32 %v2776_v1, %v1827_v2 }
0x189e   :  { %1831 = vrot.lane.b32.xlu1 %v1829_v4, %s2833_s20 }
0x190d   :  { %v1801_v8 = vpop.permute.xlu0 %1800 }
0x190e   :  { %v3388_v19 = vadd.f32 %v1801_v8, %v1793_v6 }
0x1910   :  { %2777 = vtanh.f32 %v3388_v19  ;;  %v1832_v10 = vpop.permute.xlu1 %1831  ;;  %v1956_v43 = vrot.slane %v3388_v19, 4 }
0x1911   :  { %v1834_v11 = vadd.f32 %v1832_v10, %v1824_v9 }
0x1913   :  { %2779 = vtanh.f32 %v1834_v11  ;;  %v1984_v40 = vrot.slane %v1834_v11, 4 }
0x191a   :  { %v2778_v28 = vpop.eup %2777 }
0x191b   :  { %1806 = vrot.lane.b32.xlu0 %v2778_v28, %s2832_s5 }
0x191d   :  { %v2780_v12 = vpop.eup %2779 }
0x191e   :  { %1837 = vrot.lane.b32.xlu1 %v2780_v12, %s2832_s5 }
0x198d   :  { %v1807_v13 = vpop.permute.xlu0 %1806 }
0x198e   :  { %v1809_v14 = vmul.f32 %v2774_v52, %v1807_v13 }
0x1990   :  { %1842 = vrot.lane.b32.xlu0 %v1809_v14, %s2833_s20  ;;  %v1838_v15 = vpop.permute.xlu1 %1837 }
0x1991   :  { %v1840_v16 = vmul.f32 %v2776_v1, %v1838_v15 }
0x1993   :  { %1847 = vrot.lane.b32.xlu1 %v1840_v16, %s2832_s5 }
0x1a02   :  { %v1843_v17 = vpop.permute.xlu0 %1842 }
0x1a03   :  { %1845 = vst.msk [vmem:[#allocation4] sm:$0xf] %vm409_vm5, %v1843_v17 }
0x1a05   :  { %v1848_v18 = vpop.permute.xlu1 %1847 }
0x1a06   :  { %1850 = vst.msk [vmem:[#allocation4 - $0x4] sm:$0xf0] %vm415_vm6, %v1848_v18 }
0x1a0d   :  { %v1853_v20 = vld [vmem:[#allocation4] sm:$0xf] }
0x1a0e   :  { %2386 = vmatmul.mubr.msk.f32.vlgmr.msra.gmra.mrb[14].mxu0 %vm277_vm3, %v1853_v20 }
0x1a0f   :  { %2619 = vmatpush1.bf16.msra.mxu0 %v3224_v34  ;;  %2261 = vmatprep.mubr.f32.mxu0 %v2831_v3 }
0x1a10   :  { %2621 = vmatprep.subr.bf16.mxu0 %v3249_v39 }
0x1a13   :  { %2623 = vmatpush1.bf16.msra.mxu0 %v3254_v42 }
0x1a14   :  { %2625 = vmatprep.subr.bf16.mxu0 %v3265_v46 }
0x1a17   :  { %2627 = vmatpush1.bf16.msra.mxu0 %v3273_v49 }
0x1a18   :  { %2629 = vmatprep.subr.bf16.mxu0 %v3285_v58 }
0x1a1b   :  { %2631 = vmatpush1.bf16.msra.mxu0 %v3294_v60 }
0x1ae1   :  { %v1939_v62 = vpop.f32.mrb[14].mxu0 }
0x1ae2   :  { %v1945_v21 = vrot.slane %v1939_v62, 4  ;;  %v1941_v0 = vpop.f32.mrb[15].mxu0 }
0x1ae3   :  { %v1975_v34 = vadd.f32 %v1941_v0, %v1852_v61 }
0x1ae4   :  { %v1947_v23 = vadd.f32 %v1945_v21, %v1851_v22 }
0x1ae5   :  { %2781 = vtanh.f32 %v1975_v34  ;;  %v2388_v42 = vmul.f32 -1.442695, %v1975_v34 }
0x1ae6   :  { %2783 = vtanh.f32 %v1947_v23  ;;  %v2387_v46 = vmul.f32 -1.442695, %v1947_v23 }
0x1ae7   :  { %2785 = vpow2.f32 %v2388_v42 }
0x1ae8   :  { %2787 = vpow2.f32 %v2387_v46 }
0x1aef   :  { %v2782_v3 = vpop.eup %2781 }
0x1af0   :  { %v2784_v39 = vpop.eup %2783  ;;  %1988 = vrot.lane.b32.xlu1 %v2782_v3, %s2832_s5 }
0x1af1   :  { %1960 = vrot.lane.b32.xlu0 %v2784_v39, %s2832_s5  ;;  %v2786_v49 = vpop.eup %2785 }
0x1af2   :  { %v2788_v58 = vpop.eup %2787  ;;  %v1979_v60 = vadd.f32 1.0, %v2786_v49 }
0x1af3   :  { %v1951_v24 = vadd.f32 1.0, %v2788_v58 }
0x1af4   :  { %2789 = vrcp.f32 %v1979_v60 }
0x1af5   :  { %2791 = vrcp.f32 %v1951_v24  ;;  %v2176_v24 = vld [vmem:[#allocation2 + $0x8] sm:$0xf] }
0x1afe   :  { %v2790_v26 = vpop.eup %2789 }
0x1aff   :  { %v2792_v27 = vpop.eup %2791  ;;  %v1986_v30 = vmul.f32 %v2790_v26, %v1984_v40 }
0x1b00   :  { %v1958_v33 = vmul.f32 %v2792_v27, %v1956_v43 }
0x1b62   :  { %v1989_v25 = vpop.permute.xlu1 %1988 }
0x1b63   :  { %v1991_v29 = vmul.f32 %v2790_v26, %v1989_v25  ;;  %v1961_v31 = vpop.permute.xlu0 %1960  ;;  %v2175_v25 = vld [vmem:[#allocation2 + $0x20] sm:$0xf0] }
0x1b64   :  { %v1963_v37 = vmul.f32 %v2792_v27, %v1961_v31 }
0x1b65   :  { %1993 = vrot.lane.b32.xlu1 %v1991_v29, %s2833_s20 }
0x1b66   :  { %1965 = vrot.lane.b32.xlu0 %v1963_v37, %s2833_s20 }
0x1bd7   :  { %v1994_v32 = vpop.permute.xlu1 %1993 }
0x1bd8   :  { %v1996_v35 = vadd.f32 %v1994_v32, %v1986_v30  ;;  %v1966_v36 = vpop.permute.xlu0 %1965 }
0x1bd9   :  { %v1968_v38 = vadd.f32 %v1966_v36, %v1958_v33 }
0x1bda   :  { %2793 = vtanh.f32 %v1996_v35  ;;  %v2146_v17 = vrot.slane %v1996_v35, 4 }
0x1bdb   :  { %2795 = vtanh.f32 %v1968_v38  ;;  %v2115_v15 = vrot.slane %v1968_v38, 4 }
0x1be4   :  { %v2794_v41 = vpop.eup %2793 }
0x1be5   :  { %v2796_v44 = vpop.eup %2795  ;;  %1999 = vrot.lane.b32.xlu1 %v2794_v41, %s2832_s5 }
0x1be6   :  { %1971 = vrot.lane.b32.xlu0 %v2796_v44, %s2832_s5 }
0x1c57   :  { %v2000_v45 = vpop.permute.xlu1 %1999 }
0x1c58   :  { %v2002_v47 = vmul.f32 %v2790_v26, %v2000_v45  ;;  %v1972_v48 = vpop.permute.xlu0 %1971 }
0x1c59   :  { %v1974_v50 = vmul.f32 %v2792_v27, %v1972_v48 }
0x1c5a   :  { %2009 = vrot.lane.b32.xlu1 %v2002_v47, %s2832_s5 }
0x1c5b   :  { %2004 = vrot.lane.b32.xlu0 %v1974_v50, %s2833_s20 }
0x1ccc   :  { %v2010_v53 = vpop.permute.xlu1 %2009 }
0x1ccd   :  { %v2005_v51 = vpop.permute.xlu0 %2004 }
0x1cce   :  { %2007 = vst.msk [vmem:[#allocation4 - $0x4] sm:$0xf0] %vm575_vm8, %v2005_v51 }
0x1ccf   :  { %2012 = vst.msk [vmem:[#allocation4] sm:$0xf] %vm581_vm7, %v2010_v53 }
0x1cd6   :  { %v2015_v55 = vld [vmem:[#allocation4] sm:$0xf] }
0x1cd7   :  { %2389 = vmatmul.mubr.msk.f32.vlgmr.msra.gmra.mrb[22].mxu1 %vm277_vm3, %v2015_v55 }
0x1daa   :  { %v2101_v57 = vpop.f32.mrb[22].mxu1 }
0x1dab   :  { %v2106_v59 = vadd.f32 %v2101_v57, %v2013_v56  ;;  %v2103_v52 = vpop.f32.mrb[23].mxu1 }
0x1dac   :  { %v2135_v54 = vrot.slane %v2103_v52, 4 }
0x1dad   :  { %2797 = vtanh.f32 %v2106_v59  ;;  %v2390_v5 = vmul.f32 -1.442695, %v2106_v59 }
0x1dae   :  { %v2137_v1 = vadd.f32 %v2135_v54, %v2014_v63 }
0x1db0   :  { %2799 = vtanh.f32 %v2137_v1  ;;  %v2391_v6 = vmul.f32 -1.442695, %v2137_v1 }
0x1db1   :  { %2801 = vpow2.f32 %v2390_v5 }
0x1db2   :  { %2803 = vpow2.f32 %v2391_v6 }
0x1db7   :  { %v2798_v2 = vpop.eup %2797 }
0x1db8   :  { %2119 = vrot.lane.b32.xlu0 %v2798_v2, %s2832_s5 }
0x1dba   :  { %v2800_v4 = vpop.eup %2799 }
0x1dbb   :  { %2150 = vrot.lane.b32.xlu1 %v2800_v4, %s2832_s5  ;;  %v2802_v7 = vpop.eup %2801 }
0x1dbc   :  { %v2804_v8 = vpop.eup %2803  ;;  %v2110_v19 = vadd.f32 1.0, %v2802_v7 }
0x1dbd   :  { %v2141_v9 = vadd.f32 1.0, %v2804_v8 }
0x1dbe   :  { %2805 = vrcp.f32 %v2110_v19 }
0x1dbf   :  { %2807 = vrcp.f32 %v2141_v9 }
0x1dc8   :  { %v2806_v10 = vpop.eup %2805 }
0x1dc9   :  { %v2808_v12 = vpop.eup %2807  ;;  %v2117_v16 = vmul.f32 %v2806_v10, %v2115_v15 }
0x1dca   :  { %v2148_v62 = vmul.f32 %v2808_v12, %v2146_v17 }
0x1e2a   :  { %v2120_v11 = vpop.permute.xlu0 %2119 }
0x1e2b   :  { %v2122_v28 = vmul.f32 %v2806_v10, %v2120_v11 }
0x1e2d   :  { %2124 = vrot.lane.b32.xlu0 %v2122_v28, %s2833_s20  ;;  %v2151_v13 = vpop.permute.xlu1 %2150 }
0x1e2e   :  { %v2153_v14 = vmul.f32 %v2808_v12, %v2151_v13 }
0x1e30   :  { %2155 = vrot.lane.b32.xlu1 %v2153_v14, %s2833_s20 }
0x1e9f   :  { %v2125_v18 = vpop.permute.xlu0 %2124 }
0x1ea0   :  { %v2127_v20 = vadd.f32 %v2125_v18, %v2117_v16 }
0x1ea2   :  { %2809 = vtanh.f32 %v2127_v20  ;;  %v2156_v21 = vpop.permute.xlu1 %2155  ;;  %v2280_v50 = vrot.slane %v2127_v20, 4 }
0x1ea3   :  { %v2158_v61 = vadd.f32 %v2156_v21, %v2148_v62 }
0x1ea5   :  { %2811 = vtanh.f32 %v2158_v61  ;;  %v2308_v48 = vrot.slane %v2158_v61, 4 }
0x1eac   :  { %v2810_v0 = vpop.eup %2809 }
0x1ead   :  { %2130 = vrot.lane.b32.xlu0 %v2810_v0, %s2832_s5 }
0x1eaf   :  { %v2812_v22 = vpop.eup %2811 }
0x1eb0   :  { %2161 = vrot.lane.b32.xlu1 %v2812_v22, %s2832_s5 }
0x1f1f   :  { %v2131_v34 = vpop.permute.xlu0 %2130 }
0x1f20   :  { %v2133_v23 = vmul.f32 %v2806_v10, %v2131_v34 }
0x1f22   :  { %2166 = vrot.lane.b32.xlu0 %v2133_v23, %s2833_s20  ;;  %v2162_v3 = vpop.permute.xlu1 %2161 }
0x1f23   :  { %v2164_v39 = vmul.f32 %v2808_v12, %v2162_v3 }
0x1f25   :  { %2171 = vrot.lane.b32.xlu1 %v2164_v39, %s2832_s5 }
0x1f94   :  { %v2167_v42 = vpop.permute.xlu0 %2166 }
0x1f95   :  { %2169 = vst.msk [vmem:[#allocation4] sm:$0xf] %vm409_vm5, %v2167_v42 }
0x1f97   :  { %v2172_v46 = vpop.permute.xlu1 %2171 }
0x1f98   :  { %2174 = vst.msk [vmem:[#allocation4 - $0x4] sm:$0xf0] %vm415_vm6, %v2172_v46 }
0x1f9f   :  { %v2177_v49 = vld [vmem:[#allocation4] sm:$0xf] }
0x1fa0   :  { %2392 = vmatmul.mubr.msk.f32.vlgmr.msra.gmra.mrb[16].mxu0 %vm277_vm3, %v2177_v49 }
0x2073   :  { %v2263_v58 = vpop.f32.mrb[16].mxu0 }
0x2074   :  { %v2269_v60 = vrot.slane %v2263_v58, 4  ;;  %v2265_v26 = vpop.f32.mrb[17].mxu0 }
0x2075   :  { %v2299_v27 = vadd.f32 %v2265_v26, %v2176_v24 }
0x2076   :  { %v2271_v29 = vadd.f32 %v2269_v60, %v2175_v25 }
0x2077   :  { %2813 = vtanh.f32 %v2299_v27  ;;  %v2394_v40 = vmul.f32 -1.442695, %v2299_v27 }
0x2078   :  { %2815 = vtanh.f32 %v2271_v29  ;;  %v2393_v43 = vmul.f32 -1.442695, %v2271_v29 }
0x2079   :  { %2817 = vpow2.f32 %v2394_v40 }
0x207a   :  { %2819 = vpow2.f32 %v2393_v43 }
0x2081   :  { %v2814_v31 = vpop.eup %2813 }
0x2082   :  { %v2816_v37 = vpop.eup %2815  ;;  %2312 = vrot.lane.b32.xlu1 %v2814_v31, %s2832_s5 }
0x2083   :  { %2284 = vrot.lane.b32.xlu0 %v2816_v37, %s2832_s5  ;;  %v2818_v30 = vpop.eup %2817 }
0x2084   :  { %v2820_v32 = vpop.eup %2819  ;;  %v2303_v33 = vadd.f32 1.0, %v2818_v30 }
0x2085   :  { %v2275_v35 = vadd.f32 1.0, %v2820_v32 }
0x2086   :  { %2821 = vrcp.f32 %v2303_v33 }
0x2087   :  { %2823 = vrcp.f32 %v2275_v35 }
0x2090   :  { %v2822_v36 = vpop.eup %2821 }
0x2091   :  { %v2824_v41 = vpop.eup %2823  ;;  %v2310_v51 = vmul.f32 %v2822_v36, %v2308_v48 }
0x2092   :  { %v2282_v55 = vmul.f32 %v2824_v41, %v2280_v50 }
0x20f4   :  { %v2313_v38 = vpop.permute.xlu1 %2312 }
0x20f5   :  { %v2315_v44 = vmul.f32 %v2822_v36, %v2313_v38  ;;  %v2285_v45 = vpop.permute.xlu0 %2284 }
0x20f6   :  { %v2287_v47 = vmul.f32 %v2824_v41, %v2285_v45 }
0x20f7   :  { %2317 = vrot.lane.b32.xlu1 %v2315_v44, %s2833_s20 }
0x20f8   :  { %2289 = vrot.lane.b32.xlu0 %v2287_v47, %s2833_s20 }
0x2169   :  { %v2318_v53 = vpop.permute.xlu1 %2317 }
0x216a   :  { %v2320_v56 = vadd.f32 %v2318_v53, %v2310_v51  ;;  %v2290_v57 = vpop.permute.xlu0 %2289 }
0x216b   :  { %v2292_v59 = vadd.f32 %v2290_v57, %v2282_v55 }
0x216c   :  { %2825 = vtanh.f32 %v2320_v56 }
0x216d   :  { %2827 = vtanh.f32 %v2292_v59 }
0x2176   :  { %v2826_v52 = vpop.eup %2825 }
0x2177   :  { %v2828_v54 = vpop.eup %2827  ;;  %2323 = vrot.lane.b32.xlu1 %v2826_v52, %s2832_s5 }
0x2178   :  { %2295 = vrot.lane.b32.xlu0 %v2828_v54, %s2832_s5 }
0x21e9   :  { %v2324_v63 = vpop.permute.xlu1 %2323 }
0x21ea   :  { %v2326_v1 = vmul.f32 %v2822_v36, %v2324_v63  ;;  %v2296_v2 = vpop.permute.xlu0 %2295 }
0x21eb   :  { %v2298_v4 = vmul.f32 %v2824_v41, %v2296_v2 }
0x21ec   :  { %2337 = vrot.lane.b32.xlu1 %v2326_v1, %s2833_s20 }
0x21ed   :  { %2328 = vrot.lane.b32.xlu0 %v2298_v4, %s2833_s20 }
0x21f0   :  { %2341 = vrot.lane.b32.xlu1 %v2298_v4, %s2832_s5 }
0x21f1   :  { %2333 = vrot.lane.b32.xlu0 %v2326_v1, %s2832_s5 }
0x225e   :  { %v2338_v5 = vpop.permute.xlu1 %2337 }
0x225f   :  { %2340 = vst.msk [vmem:[%s3458_s9] sm:$0xf] %vm409_vm5, %v2338_v5  ;;  %v2329_v6 = vpop.permute.xlu0 %2328 }
0x2260   :  { %2331 = vst.msk [vmem:[#allocation4 - $0x4] sm:$0xf0] %vm575_vm8, %v2329_v6 }
0x2262   :  { %v2342_v7 = vpop.permute.xlu1 %2341 }
0x2263   :  { %2344 = vst.msk [vmem:[%s3458_s9 - $0x4] sm:$0xf0] %vm415_vm6, %v2342_v7  ;;  %v2334_v8 = vpop.permute.xlu0 %2333 }
0x2264   :  { %2336 = vst.msk [vmem:[#allocation4] sm:$0xf] %vm581_vm7, %v2334_v8 }

// kernel: nli_bilstm_forward.3
= control target key start
LH: loop header
LB: loop body
LE: loop exit
PB: predicated region body
PF: predicated region fallthrough
CT: control target
= control target key end

     0   :  { %vm45_vm0 = vcmask 130048   ;;  %v3654_v31 = vmov 0.0   ;;  %vm277_vm1 = vcmask 519168   ;;  %vm298_vm2 = vcmask 523264   ;;  %s3656_s24 = smov 32   ;;  %s4458_s1 = inlined_call_operand.vmem [shape: f32[16,32], index: 1, kind: input, shape index: {}]   ;;  %s4459_s0 = inlined_call_operand.vmem [shape: f32[32,16], index: 0, kind: input, shape index: {}]   ;;  %s4460_s3 = inlined_call_operand.vmem [shape: f32[32,256], index: 3, kind: input, shape index: {}]   ;;  %s4461_s4 = inlined_call_operand.vmem [shape: f32[64,256], index: 4, kind: input, shape index: {}]   ;;  %s4462_s2 = inlined_call_operand.vmem [shape: f32[1,32], index: 2, kind: input, shape index: {}]   ;;  %s4463_s5 = inlined_call_operand.vmem [shape: f32[1,256], index: 5, kind: input, shape index: {}]   ;;  %s4464_s6 = inlined_call_operand.vmem [shape: f32[64,256], index: 6, kind: input, shape index: {}]   ;;  %s4465_s7 = inlined_call_operand.vmem [shape: f32[64,256], index: 7, kind: input, shape index: {}]   ;;  %s4466_s8 = inlined_call_operand.vmem [shape: f32[1,256], index: 8, kind: input, shape index: {}]   ;;  %s4467_s9 = inlined_call_operand.vmem [shape: f32[4,64], index: 9, kind: output, shape index: {}]  }
   0x1   :  { %v36_v0 = vld [vmem:[%s4458_s1] sm:$0xff]  ;;  %v37_v1 = vld [vmem:[%s4458_s1 + $0x8] sm:$0xff]  ;;  %v150_v5 = vld [vmem:[%s4460_s3 + $0x18] sm:$0xff]  ;;  %366 = vmatprep.mubr.f32.mxu0 %v3654_v31  ;;  %278 = vst.msk [vmem:[#allocation4] sm:$0xf] %vm277_vm1, %v3654_v31  ;;  %vm167_vm3 = vcmask 261120   ;;  %v157_v60 = vlaneseq }
   0x2   :  { %v32_v2 = vld [vmem:[%s4459_s0] sm:$0xff]  ;;  %v3111_v3 = vpack.c.bf16 %v37_v1, %v36_v0  ;;  %v148_v4 = vld [vmem:[%s4460_s3 + $0x8] sm:$0xff]  ;;  %v149_v8 = vld [vmem:[%s4460_s3 + $0x10] sm:$0xff]  ;;  %vm430_vm4 = vcmask 257024   ;;  %vm436_vm5 = vcmask 523524   ;;  %vm602_vm6 = vcmask 519424  }
   0x3   :  { %3105 = vmatprep.mubr.msk.f32.mxu1 %vm45_vm0, %v32_v2  ;;  %v147_v6 = vld [vmem:[%s4460_s3] sm:$0xff]  ;;  %v3115_v7 = vpack.c.bf16 %v150_v5, %v148_v4  ;;  %v33_v9 = vld [vmem:[%s4459_s0 + $0x8] sm:$0xff]  ;;  %v34_v11 = vld [vmem:[%s4459_s0 + $0x10] sm:$0xff]  ;;  %v3860_v61 = vshrl.u32 %v157_v60, 7  ;;  %vm596_vm7 = vcmask 261124  }
   0x4   :  { %3112 = vmatprep.subr.bf16.mxu1 %v3111_v3  ;;  %v3117_v10 = vpack.c.bf16 %v149_v8, %v147_v6  ;;  %v35_v12 = vld [vmem:[%s4459_s0 + $0x18] sm:$0xff]  ;;  %v283_v13 = vld [vmem:[%s4461_s4 + $0x8] sm:$0xff]  ;;  %v282_v16 = vld [vmem:[%s4461_s4] sm:$0xff] }
   0x5   :  { %3114 = vmatpush3.bf16.msra.mxu1 %v3111_v3  ;;  %v285_v14 = vld [vmem:[%s4461_s4 + $0x18] sm:$0xff]  ;;  %v284_v17 = vld [vmem:[%s4461_s4 + $0x10] sm:$0xff]  ;;  %v152_v18 = vld [vmem:[%s4460_s3 + $0x28] sm:$0xff]  ;;  %v159_v62 = vsub.s32 0, %v3860_v61  ;;  %v163_v0 = vsub.s32 1, %v3860_v61 }
   0x6   :  { %3116 = vmatprep.subr.bf16.mxu1 %v3115_v7  ;;  %v3747_v15 = vpack.c.bf16 %v285_v14, %v283_v13  ;;  %v154_v19 = vld [vmem:[%s4460_s3 + $0x38] sm:$0xff]  ;;  %v3761_v20 = vpack.c.bf16 %v284_v17, %v282_v16  ;;  %v151_v22 = vld [vmem:[%s4460_s3 + $0x20] sm:$0xff]  ;;  %v153_v23 = vld [vmem:[%s4460_s3 + $0x30] sm:$0xff] }
   0x7   :  { %v3119_v21 = vpack.c.bf16 %v154_v19, %v152_v18  ;;  %v3121_v24 = vpack.c.bf16 %v153_v23, %v151_v22  ;;  %v287_v25 = vld [vmem:[%s4461_s4 + $0x28] sm:$0xff]  ;;  %v289_v26 = vld [vmem:[%s4461_s4 + $0x38] sm:$0xff]  ;;  %v286_v28 = vld [vmem:[%s4461_s4 + $0x20] sm:$0xff] }
   0x8   :  { %3106 = vmatmul.mubr.msk.f32.vlgmr.msra.gmra.mrb[0].mxu1 %vm45_vm0, %v33_v9  ;;  %3124 = vmatprep.subr.bf16.mxu0 %v3747_v15  ;;  %v3777_v27 = vpack.c.bf16 %v289_v26, %v287_v25  ;;  %v288_v29 = vld [vmem:[%s4461_s4 + $0x30] sm:$0xff]  ;;  %v291_v32 = vld [vmem:[%s4461_s4 + $0x48] sm:$0xff]  ;;  %v293_v33 = vld [vmem:[%s4461_s4 + $0x58] sm:$0xff] }
   0x9   :  { %3108 = vmatprep.mubr.msk.f32.mxu1 %vm45_vm0, %v34_v11  ;;  %3118 = vmatpush1.bf16.msra.mxu1 %v3117_v10  ;;  %v3785_v30 = vpack.c.bf16 %v288_v29, %v286_v28  ;;  %v3797_v34 = vpack.c.bf16 %v293_v33, %v291_v32  ;;  %v290_v35 = vld [vmem:[%s4461_s4 + $0x40] sm:$0xff]  ;;  %v292_v36 = vld [vmem:[%s4461_s4 + $0x50] sm:$0xff]  ;;  %v295_v38 = vld [vmem:[%s4461_s4 + $0x68] sm:$0xff] }
   0xa   :  { %3126 = vmatpush1.bf16.msra.mxu0 %v3761_v20  ;;  %3120 = vmatprep.subr.bf16.mxu1 %v3119_v21  ;;  %v3806_v37 = vpack.c.bf16 %v292_v36, %v290_v35  ;;  %v297_v39 = vld [vmem:[%s4461_s4 + $0x78] sm:$0xff]  ;;  %v294_v41 = vld [vmem:[%s4461_s4 + $0x60] sm:$0xff]  ;;  %v296_v42 = vld [vmem:[%s4461_s4 + $0x70] sm:$0xff] }
   0xb   :  { %3128 = vmatprep.subr.bf16.mxu0 %v3777_v27  ;;  %v3818_v40 = vpack.c.bf16 %v297_v39, %v295_v38  ;;  %v3826_v43 = vpack.c.bf16 %v296_v42, %v294_v41  ;;  %v281_v44 = vld [vmem:[#allocation4] sm:$0xf] }
   0xc   :  { %3109 = vmatmul.mubr.msk.f32.gmra.mrb[2].mxu1 %vm45_vm0, %v35_v12  ;;  %v3034_v45 = vld [vmem:[%s4462_s2] ss:$0 sm:$0xff] }
   0xd   :  { %3122 = vmatpush1.bf16.msra.mxu1 %v3121_v24  ;;  %244 = vmatprep.mubr.f32.mxu1 %v3654_v31  ;;  %v155_v63 = vld [vmem:[%s4463_s5] sm:$0x3]  ;;  %s3655_s5 = smov 64  }
   0xe   :  { %3140 = vmatprep.subr.bf16.mxu1 %v3747_v15  ;;  %3130 = vmatpush1.bf16.msra.mxu0 %v3785_v30  ;;  %v160_v1 = vrot.slane %v155_v63, %v159_v62  ;;  %v164_v2 = vrot.slane %v155_v63, %v163_v0 }
   0xf   :  { %3132 = vmatprep.subr.bf16.mxu0 %v3797_v34 }
  0x12   :  { %3134 = vmatpush1.bf16.msra.mxu0 %v3806_v37 }
  0x13   :  { %3136 = vmatprep.subr.bf16.mxu0 %v3818_v40 }
  0x16   :  { %3138 = vmatpush1.bf16.msra.mxu0 %v3826_v43 }
  0x17   :  { %3156 = vmatprep.subr.bf16.mxu0 %v3747_v15 }
  0x19   :  { %3043 = vmatmul.mubr.msk.f32.vlgmr.msra.gmra.mrb[0].mxu0 %vm298_vm2, %v281_v44 }
  0x1a   :  { %3158 = vmatpush1.bf16.msra.mxu0 %v3761_v20  ;;  %692 = vmatprep.mubr.f32.mxu0 %v3654_v31 }
  0x1b   :  { %3160 = vmatprep.subr.bf16.mxu0 %v3777_v27 }
  0x1e   :  { %3162 = vmatpush1.bf16.msra.mxu0 %v3785_v30 }
  0x1f   :  { %3164 = vmatprep.subr.bf16.mxu0 %v3797_v34 }
  0x22   :  { %3166 = vmatpush1.bf16.msra.mxu0 %v3806_v37 }
  0x23   :  { %3168 = vmatprep.subr.bf16.mxu0 %v3818_v40 }
  0x26   :  { %3170 = vmatpush1.bf16.msra.mxu0 %v3826_v43 }
  0x27   :  { %3188 = vmatprep.subr.bf16.mxu0 %v3747_v15 }
  0xdb   :  { %v3107_v46 = vpop.f32.mrb[0].mxu1 }
  0xdc   :  { %v124_v47 = vpop.f32.mrb[1].mxu1  ;;  %v130_v49 = vadd.f32 %v3107_v46, %v3034_v45 }
  0xdd   :  { %v125_v48 = vadd.f32 %v3034_v45, %v124_v47 }
  0xde   :  { %v144_v54 = vmax.f32 %v130_v49, 0.0 }
  0xdf   :  { %v143_v50 = vmax.f32 %v125_v48, 0.0  ;;  %v3110_v51 = vpop.f32.mrb[2].mxu1 }
  0xe0   :  { %v134_v52 = vpop.f32.mrb[3].mxu1  ;;  %v140_v56 = vadd.f32 %v3110_v51, %v3034_v45 }
  0xe1   :  { %3039 = vmatmul.mubr.msk.f32.vlgmr.msra.gmra.mrb[4].mxu1 %vm167_vm3, %v143_v50  ;;  %v135_v53 = vadd.f32 %v3034_v45, %v134_v52 }
  0xe2   :  { %250 = vmatprep.mubr.f32.mxu1 %v3654_v31  ;;  %3142 = vmatpush1.bf16.msra.mxu1 %v3761_v20  ;;  %v146_v57 = vmax.f32 %v140_v56, 0.0 }
  0xe3   :  { %3144 = vmatprep.subr.bf16.mxu1 %v3777_v27  ;;  %v145_v55 = vmax.f32 %v135_v53, 0.0 }
  0xe5   :  { %3040 = vmatmul.mubr.msk.f32.gmra.mrb[6].mxu1 %vm167_vm3, %v144_v54 }
  0xe6   :  { %256 = vmatprep.mubr.f32.mxu1 %v3654_v31  ;;  %3146 = vmatpush1.bf16.msra.mxu1 %v3785_v30 }
  0xe7   :  { %3148 = vmatprep.subr.bf16.mxu1 %v3797_v34 }
  0xe9   :  { %3041 = vmatmul.mubr.msk.f32.gmra.mrb[8].mxu1 %vm167_vm3, %v145_v55 }
  0xea   :  { %262 = vmatprep.mubr.f32.mxu1 %v3654_v31  ;;  %3150 = vmatpush1.bf16.msra.mxu1 %v3806_v37 }
  0xeb   :  { %3152 = vmatprep.subr.bf16.mxu1 %v3818_v40 }
  0xec   :  { %v368_v58 = vpop.f32.mrb[0].mxu0 }
  0xed   :  { %3042 = vmatmul.mubr.msk.f32.gmra.mrb[10].mxu1 %vm167_vm3, %v146_v57  ;;  %v370_v59 = vpop.f32.mrb[1].mxu0 }
  0xee   :  { %3154 = vmatpush1.bf16.msra.mxu1 %v3826_v43  ;;  %526 = vmatprep.mubr.f32.mxu1 %v3654_v31  ;;  %v399_v23 = vrot.slane %v370_v59, 4 }
  0xef   :  { %3172 = vmatprep.subr.bf16.mxu1 %v3747_v15 }
 0x1b4   :  { %v246_v3 = vpop.f32.mrb[4].mxu1 }
 0x1b5   :  { %v247_v4 = vadd.f32 %v246_v3, %v160_v1  ;;  %v248_v5 = vpop.f32.mrb[5].mxu1 }
 0x1b6   :  { %v249_v6 = vadd.f32 %v248_v5, %v164_v2 }
 0x1b7   :  { %269 = vst [vmem:[#allocation2] sm:$0xff] %v247_v4 }
 0x1b8   :  { %270 = vst [vmem:[#allocation2 + $0x8] sm:$0xff] %v249_v6  ;;  %v252_v7 = vpop.f32.mrb[6].mxu1 }
 0x1b9   :  { %v253_v8 = vadd.f32 %v252_v7, %v160_v1  ;;  %v254_v9 = vpop.f32.mrb[7].mxu1 }
 0x1ba   :  { %v255_v10 = vadd.f32 %v254_v9, %v164_v2 }
 0x1bb   :  { %271 = vst [vmem:[#allocation2 + $0x10] sm:$0xff] %v253_v8 }
 0x1bc   :  { %272 = vst [vmem:[#allocation2 + $0x18] sm:$0xff] %v255_v10  ;;  %v258_v11 = vpop.f32.mrb[8].mxu1 }
 0x1bd   :  { %v259_v12 = vadd.f32 %v258_v11, %v160_v1  ;;  %v260_v13 = vpop.f32.mrb[9].mxu1 }
 0x1be   :  { %v261_v14 = vadd.f32 %v260_v13, %v164_v2  ;;  %v279_v16 = vld [vmem:[#allocation2] sm:$0xf]  ;;  %v440_v5 = vld [vmem:[#allocation2] sm:$0xf0] }
 0x1bf   :  { %273 = vst [vmem:[#allocation2 + $0x20] sm:$0xff] %v259_v12  ;;  %v373_v17 = vadd.f32 %v368_v58, %v279_v16 }
 0x1c0   :  { %274 = vst [vmem:[#allocation2 + $0x28] sm:$0xff] %v261_v14  ;;  %v264_v18 = vpop.f32.mrb[10].mxu1 }
 0x1c1   :  { %3398 = vtanh.f32 %v373_v17  ;;  %v265_v19 = vadd.f32 %v264_v18, %v160_v1  ;;  %v266_v21 = vpop.f32.mrb[11].mxu1  ;;  %v3044_v29 = vmul.f32 -1.442695, %v373_v17 }
 0x1c2   :  { %v267_v22 = vadd.f32 %v266_v21, %v164_v2 }
 0x1c3   :  { %275 = vst [vmem:[#allocation2 + $0x30] sm:$0xff] %v265_v19 }
 0x1c4   :  { %276 = vst [vmem:[#allocation2 + $0x38] sm:$0xff] %v267_v22 }
 0x1cb   :  { %v3399_v24 = vpop.eup %3398  ;;  %v280_v25 = vld [vmem:[#allocation2 + $0x38] sm:$0xf0]  ;;  %v441_v3 = vld [vmem:[#allocation2 + $0x38] sm:$0xf] }
 0x1cc   :  { %v401_v26 = vadd.f32 %v399_v23, %v280_v25  ;;  %383 = vrot.lane.b32.xlu0 %v3399_v24, %s3655_s5 }
 0x1ce   :  { %3400 = vtanh.f32 %v401_v26  ;;  %v3045_v32 = vmul.f32 -1.442695, %v401_v26 }
 0x1cf   :  { %3402 = vpow2.f32 %v3044_v29 }
 0x1d0   :  { %3404 = vpow2.f32 %v3045_v32 }
 0x1d8   :  { %v3401_v28 = vpop.eup %3400 }
 0x1d9   :  { %411 = vrot.lane.b32.xlu0 %v3401_v28, %s3655_s5  ;;  %v3403_v33 = vpop.eup %3402 }
 0x1da   :  { %v377_v35 = vadd.f32 1.0, %v3403_v33  ;;  %v3405_v36 = vpop.eup %3404 }
 0x1db   :  { %v405_v38 = vadd.f32 1.0, %v3405_v36 }
 0x1dc   :  { %3406 = vrcp.f32 %v377_v35 }
 0x1dd   :  { %3408 = vrcp.f32 %v405_v38 }
 0x1e6   :  { %v3407_v39 = vpop.eup %3406 }
 0x1e7   :  { %v3409_v44 = vpop.eup %3408  ;;  %v381_v47 = vmul.f32 0.0, %v3407_v39 }
 0x1e8   :  { %v409_v50 = vmul.f32 0.0, %v3409_v44 }
 0x23e   :  { %v384_v41 = vpop.permute.xlu0 %383 }
 0x23f   :  { %v386_v42 = vmul.f32 %v3407_v39, %v384_v41 }
 0x241   :  { %388 = vrot.lane.b32.xlu1 %v386_v42, %s3656_s24 }
 0x24b   :  { %v412_v45 = vpop.permute.xlu0 %411 }
 0x24c   :  { %v414_v46 = vmul.f32 %v3409_v44, %v412_v45 }
 0x24e   :  { %416 = vrot.lane.b32.xlu1 %v414_v46, %s3656_s24 }
 0x2b3   :  { %v389_v48 = vpop.permute.xlu1 %388 }
 0x2b4   :  { %v3875_v49 = vadd.f32 %v389_v48, %v381_v47  ;;  %v606_v47 = vld [vmem:[#allocation2 + $0x10] sm:$0xf] }
 0x2b6   :  { %3410 = vtanh.f32 %v3875_v49  ;;  %v545_v24 = vrot.slane %v3875_v49, 4 }
 0x2c0   :  { %v3411_v51 = vpop.eup %3410  ;;  %v417_v52 = vpop.permute.xlu1 %416 }
 0x2c1   :  { %v3878_v53 = vadd.f32 %v417_v52, %v409_v50  ;;  %394 = vrot.lane.b32.xlu0 %v3411_v51, %s3655_s5  ;;  %v607_v52 = vld [vmem:[#allocation2 + $0x28] sm:$0xf0] }
 0x2c3   :  { %3412 = vtanh.f32 %v3878_v53  ;;  %v573_v23 = vrot.slane %v3878_v53, 4 }
 0x2cd   :  { %v3413_v54 = vpop.eup %3412 }
 0x2ce   :  { %422 = vrot.lane.b32.xlu1 %v3413_v54, %s3655_s5 }
 0x333   :  { %v395_v55 = vpop.permute.xlu0 %394 }
 0x334   :  { %v397_v56 = vmul.f32 %v3407_v39, %v395_v55 }
 0x336   :  { %427 = vrot.lane.b32.xlu0 %v397_v56, %s3656_s24 }
 0x340   :  { %v423_v57 = vpop.permute.xlu1 %422 }
 0x341   :  { %v425_v58 = vmul.f32 %v3409_v44, %v423_v57 }
 0x343   :  { %433 = vrot.lane.b32.xlu1 %v425_v58, %s3655_s5 }
 0x3a8   :  { %v428_v59 = vpop.permute.xlu0 %427 }
 0x3a9   :  { %431 = vst.msk [vmem:[#allocation4] sm:$0xf] %vm430_vm4, %v428_v59  ;;  %438 = vst.msk [vmem:[#allocation3] sm:$0xf] %vm430_vm4, %v428_v59 }
 0x3b5   :  { %v434_v60 = vpop.permute.xlu1 %433 }
 0x3b6   :  { %437 = vst.msk [vmem:[#allocation4 - $0x4] sm:$0xf0] %vm436_vm5, %v434_v60  ;;  %439 = vst.msk [vmem:[#allocation3 + $0x18] sm:$0xf0] %vm436_vm5, %v434_v60 }
 0x3bd   :  { %v442_v63 = vld [vmem:[#allocation4] sm:$0xf] }
 0x3be   :  { %3046 = vmatmul.mubr.msk.f32.vlgmr.msra.gmra.mrb[12].mxu1 %vm298_vm2, %v442_v63 }
 0x3bf   :  { %3174 = vmatpush1.bf16.msra.mxu1 %v3761_v20  ;;  %856 = vmatprep.mubr.f32.mxu1 %v3654_v31 }
 0x3c0   :  { %3176 = vmatprep.subr.bf16.mxu1 %v3777_v27 }
 0x3c3   :  { %3178 = vmatpush1.bf16.msra.mxu1 %v3785_v30 }
 0x3c4   :  { %3180 = vmatprep.subr.bf16.mxu1 %v3797_v34 }
 0x3c7   :  { %3182 = vmatpush1.bf16.msra.mxu1 %v3806_v37 }
 0x3c8   :  { %3184 = vmatprep.subr.bf16.mxu1 %v3818_v40 }
 0x3cb   :  { %3186 = vmatpush1.bf16.msra.mxu1 %v3826_v43 }
 0x3cc   :  { %3204 = vmatprep.subr.bf16.mxu1 %v3747_v15 }
 0x491   :  { %v528_v1 = vpop.f32.mrb[12].mxu1 }
 0x492   :  { %v534_v2 = vrot.slane %v528_v1, 4  ;;  %v530_v4 = vpop.f32.mrb[13].mxu1 }
 0x493   :  { %v564_v6 = vadd.f32 %v530_v4, %v441_v3 }
 0x494   :  { %v536_v7 = vadd.f32 %v534_v2, %v440_v5 }
 0x495   :  { %3414 = vtanh.f32 %v564_v6  ;;  %v3048_v10 = vmul.f32 -1.442695, %v564_v6 }
 0x496   :  { %3416 = vtanh.f32 %v536_v7  ;;  %v3047_v11 = vmul.f32 -1.442695, %v536_v7 }
 0x497   :  { %3418 = vpow2.f32 %v3048_v10 }
 0x498   :  { %3420 = vpow2.f32 %v3047_v11 }
 0x49f   :  { %v3415_v8 = vpop.eup %3414 }
 0x4a0   :  { %v3417_v9 = vpop.eup %3416  ;;  %577 = vrot.lane.b32.xlu1 %v3415_v8, %s3655_s5 }
 0x4a1   :  { %549 = vrot.lane.b32.xlu0 %v3417_v9, %s3655_s5  ;;  %v3419_v15 = vpop.eup %3418 }
 0x4a2   :  { %v3421_v12 = vpop.eup %3420  ;;  %v568_v13 = vadd.f32 1.0, %v3419_v15 }
 0x4a3   :  { %v540_v14 = vadd.f32 1.0, %v3421_v12 }
 0x4a4   :  { %3422 = vrcp.f32 %v568_v13 }
 0x4a5   :  { %3424 = vrcp.f32 %v540_v14 }
 0x4ae   :  { %v3423_v16 = vpop.eup %3422 }
 0x4af   :  { %v3425_v18 = vpop.eup %3424  ;;  %v575_v25 = vmul.f32 %v3423_v16, %v573_v23 }
 0x4b0   :  { %v547_v28 = vmul.f32 %v3425_v18, %v545_v24 }
 0x512   :  { %v578_v17 = vpop.permute.xlu1 %577 }
 0x513   :  { %v580_v19 = vmul.f32 %v3423_v16, %v578_v17  ;;  %v550_v21 = vpop.permute.xlu0 %549 }
 0x514   :  { %v552_v22 = vmul.f32 %v3425_v18, %v550_v21 }
 0x515   :  { %582 = vrot.lane.b32.xlu1 %v580_v19, %s3656_s24 }
 0x516   :  { %554 = vrot.lane.b32.xlu0 %v552_v22, %s3656_s24 }
 0x587   :  { %v583_v26 = vpop.permute.xlu1 %582 }
 0x588   :  { %v3905_v29 = vadd.f32 %v583_v26, %v575_v25  ;;  %v555_v32 = vpop.permute.xlu0 %554 }
 0x589   :  { %v3907_v33 = vadd.f32 %v555_v32, %v547_v28  ;;  %v771_v28 = vld [vmem:[#allocation2 + $0x28] sm:$0xf]  ;;  %v770_v32 = vld [vmem:[#allocation2 + $0x10] sm:$0xf0] }
 0x58a   :  { %3426 = vtanh.f32 %v3905_v29  ;;  %v739_v9 = vrot.slane %v3905_v29, 4 }
 0x58b   :  { %3428 = vtanh.f32 %v3907_v33  ;;  %v708_v7 = vrot.slane %v3907_v33, 4 }
 0x594   :  { %v3427_v35 = vpop.eup %3426 }
 0x595   :  { %v3429_v36 = vpop.eup %3428  ;;  %588 = vrot.lane.b32.xlu1 %v3427_v35, %s3655_s5 }
 0x596   :  { %560 = vrot.lane.b32.xlu0 %v3429_v36, %s3655_s5 }
 0x607   :  { %v589_v38 = vpop.permute.xlu1 %588 }
 0x608   :  { %v591_v39 = vmul.f32 %v3423_v16, %v589_v38  ;;  %v561_v41 = vpop.permute.xlu0 %560 }
 0x609   :  { %v563_v42 = vmul.f32 %v3425_v18, %v561_v41 }
 0x60a   :  { %599 = vrot.lane.b32.xlu1 %v591_v39, %s3655_s5 }
 0x60b   :  { %593 = vrot.lane.b32.xlu0 %v563_v42, %s3656_s24 }
 0x67c   :  { %v600_v44 = vpop.permute.xlu1 %599 }
 0x67d   :  { %605 = vst.msk [vmem:[#allocation3 + $0x18] sm:$0xf] %vm602_vm6, %v600_v44  ;;  %v594_v45 = vpop.permute.xlu0 %593 }
 0x67e   :  { %597 = vst.msk [vmem:[#allocation4 - $0x4] sm:$0xf0] %vm596_vm7, %v594_v45  ;;  %604 = vst.msk [vmem:[#allocation3] sm:$0xf0] %vm596_vm7, %v594_v45 }
 0x67f   :  { %603 = vst.msk [vmem:[#allocation4] sm:$0xf] %vm602_vm6, %v600_v44 }
 0x686   :  { %v608_v46 = vld [vmem:[#allocation4] sm:$0xf] }
 0x687   :  { %3049 = vmatmul.mubr.msk.f32.vlgmr.msra.gmra.mrb[2].mxu0 %vm298_vm2, %v608_v46 }
 0x688   :  { %3190 = vmatpush1.bf16.msra.mxu0 %v3761_v20  ;;  %1020 = vmatprep.mubr.f32.mxu0 %v3654_v31 }
 0x689   :  { %3192 = vmatprep.subr.bf16.mxu0 %v3777_v27 }
 0x68c   :  { %3194 = vmatpush1.bf16.msra.mxu0 %v3785_v30 }
 0x68d   :  { %3196 = vmatprep.subr.bf16.mxu0 %v3797_v34 }
 0x690   :  { %3198 = vmatpush1.bf16.msra.mxu0 %v3806_v37 }
 0x691   :  { %3200 = vmatprep.subr.bf16.mxu0 %v3818_v40 }
 0x694   :  { %3202 = vmatpush1.bf16.msra.mxu0 %v3826_v43 }
 0x75a   :  { %v694_v48 = vpop.f32.mrb[2].mxu0 }
 0x75b   :  { %v699_v49 = vadd.f32 %v694_v48, %v606_v47  ;;  %v696_v50 = vpop.f32.mrb[3].mxu0 }
 0x75c   :  { %v728_v51 = vrot.slane %v696_v50, 4 }
 0x75d   :  { %3430 = vtanh.f32 %v699_v49  ;;  %v3050_v56 = vmul.f32 -1.442695, %v699_v49 }
 0x75e   :  { %v730_v53 = vadd.f32 %v728_v51, %v607_v52 }
 0x760   :  { %3432 = vtanh.f32 %v730_v53  ;;  %v3051_v57 = vmul.f32 -1.442695, %v730_v53 }
 0x761   :  { %3434 = vpow2.f32 %v3050_v56 }
 0x762   :  { %3436 = vpow2.f32 %v3051_v57 }
 0x767   :  { %v3431_v54 = vpop.eup %3430 }
 0x768   :  { %712 = vrot.lane.b32.xlu0 %v3431_v54, %s3655_s5 }
 0x76a   :  { %v3433_v55 = vpop.eup %3432 }
 0x76b   :  { %743 = vrot.lane.b32.xlu1 %v3433_v55, %s3655_s5  ;;  %v3435_v58 = vpop.eup %3434 }
 0x76c   :  { %v3437_v59 = vpop.eup %3436  ;;  %v703_v60 = vadd.f32 1.0, %v3435_v58 }
 0x76d   :  { %v734_v63 = vadd.f32 1.0, %v3437_v59 }
 0x76e   :  { %3438 = vrcp.f32 %v703_v60 }
 0x76f   :  { %3440 = vrcp.f32 %v734_v63 }
 0x778   :  { %v3439_v1 = vpop.eup %3438 }
 0x779   :  { %v3441_v4 = vpop.eup %3440  ;;  %v710_v8 = vmul.f32 %v3439_v1, %v708_v7  ;;  %v935_v7 = vld [vmem:[#allocation2 + $0x18] sm:$0xf0] }
 0x77a   :  { %v741_v15 = vmul.f32 %v3441_v4, %v739_v9 }
 0x7da   :  { %v713_v2 = vpop.permute.xlu0 %712 }
 0x7db   :  { %v715_v3 = vmul.f32 %v3439_v1, %v713_v2  ;;  %v934_v2 = vld [vmem:[#allocation2 + $0x20] sm:$0xf] }
 0x7dd   :  { %717 = vrot.lane.b32.xlu0 %v715_v3, %s3656_s24  ;;  %v744_v5 = vpop.permute.xlu1 %743 }
 0x7de   :  { %v746_v6 = vmul.f32 %v3441_v4, %v744_v5 }
 0x7e0   :  { %748 = vrot.lane.b32.xlu1 %v746_v6, %s3656_s24 }
 0x84f   :  { %v718_v10 = vpop.permute.xlu0 %717 }
 0x850   :  { %v3934_v11 = vadd.f32 %v718_v10, %v710_v8 }
 0x852   :  { %3442 = vtanh.f32 %v3934_v11  ;;  %v749_v12 = vpop.permute.xlu1 %748  ;;  %v875_v47 = vrot.slane %v3934_v11, 4 }
 0x853   :  { %v751_v13 = vadd.f32 %v749_v12, %v741_v15 }
 0x855   :  { %3444 = vtanh.f32 %v751_v13  ;;  %v903_v46 = vrot.slane %v751_v13, 4 }
 0x85c   :  { %v3443_v14 = vpop.eup %3442 }
 0x85d   :  { %723 = vrot.lane.b32.xlu0 %v3443_v14, %s3655_s5 }
 0x85f   :  { %v3445_v16 = vpop.eup %3444 }
 0x860   :  { %754 = vrot.lane.b32.xlu1 %v3445_v16, %s3655_s5 }
 0x8cf   :  { %v724_v17 = vpop.permute.xlu0 %723 }
 0x8d0   :  { %v726_v18 = vmul.f32 %v3439_v1, %v724_v17 }
 0x8d2   :  { %759 = vrot.lane.b32.xlu0 %v726_v18, %s3656_s24  ;;  %v755_v19 = vpop.permute.xlu1 %754 }
 0x8d3   :  { %v757_v21 = vmul.f32 %v3441_v4, %v755_v19 }
 0x8d5   :  { %764 = vrot.lane.b32.xlu1 %v757_v21, %s3655_s5 }
 0x944   :  { %v760_v22 = vpop.permute.xlu0 %759 }
 0x945   :  { %762 = vst.msk [vmem:[#allocation4] sm:$0xf] %vm430_vm4, %v760_v22  ;;  %768 = vst.msk [vmem:[#allocation3 + $0x8] sm:$0xf] %vm430_vm4, %v760_v22 }
 0x947   :  { %v765_v23 = vpop.permute.xlu1 %764 }
 0x948   :  { %767 = vst.msk [vmem:[#allocation4 - $0x4] sm:$0xf0] %vm436_vm5, %v765_v23  ;;  %769 = vst.msk [vmem:[#allocation3 + $0x10] sm:$0xf0] %vm436_vm5, %v765_v23 }
 0x94f   :  { %v772_v24 = vld [vmem:[#allocation4] sm:$0xf] }
 0x950   :  { %3052 = vmatmul.mubr.msk.f32.vlgmr.msra.gmra.mrb[14].mxu1 %vm298_vm2, %v772_v24 }
 0x951   :  { %3206 = vmatpush1.bf16.msra.mxu1 %v3761_v20  ;;  %1184 = vmatprep.mubr.f32.mxu1 %v3654_v31 }
 0x952   :  { %3208 = vmatprep.subr.bf16.mxu1 %v3777_v27 }
 0x955   :  { %3210 = vmatpush1.bf16.msra.mxu1 %v3785_v30 }
 0x956   :  { %3212 = vmatprep.subr.bf16.mxu1 %v3797_v34 }
 0x959   :  { %3214 = vmatpush1.bf16.msra.mxu1 %v3806_v37 }
 0x95a   :  { %3216 = vmatprep.subr.bf16.mxu1 %v3818_v40 }
 0x95d   :  { %3218 = vmatpush1.bf16.msra.mxu1 %v3826_v43 }
 0xa23   :  { %v858_v25 = vpop.f32.mrb[14].mxu1 }
 0xa24   :  { %v864_v26 = vrot.slane %v858_v25, 4  ;;  %v860_v29 = vpop.f32.mrb[15].mxu1 }
 0xa25   :  { %v894_v20 = vadd.f32 %v860_v29, %v771_v28 }
 0xa26   :  { %v866_v33 = vadd.f32 %v864_v26, %v770_v32 }
 0xa27   :  { %3446 = vtanh.f32 %v894_v20  ;;  %v3054_v30 = vmul.f32 -1.442695, %v894_v20 }
 0xa28   :  { %3448 = vtanh.f32 %v866_v33  ;;  %v3053_v34 = vmul.f32 -1.442695, %v866_v33 }
 0xa29   :  { %3450 = vpow2.f32 %v3054_v30 }
 0xa2a   :  { %3452 = vpow2.f32 %v3053_v34 }
 0xa31   :  { %v3447_v27 = vpop.eup %3446 }
 0xa32   :  { %v3449_v35 = vpop.eup %3448  ;;  %907 = vrot.lane.b32.xlu1 %v3447_v27, %s3655_s5 }
 0xa33   :  { %879 = vrot.lane.b32.xlu0 %v3449_v35, %s3655_s5  ;;  %v3451_v37 = vpop.eup %3450 }
 0xa34   :  { %v3453_v40 = vpop.eup %3452  ;;  %v898_v43 = vadd.f32 1.0, %v3451_v37 }
 0xa35   :  { %v870_v36 = vadd.f32 1.0, %v3453_v40 }
 0xa36   :  { %3454 = vrcp.f32 %v898_v43 }
 0xa37   :  { %3456 = vrcp.f32 %v870_v36 }
 0xa40   :  { %v3455_v38 = vpop.eup %3454 }
 0xa41   :  { %v3457_v41 = vpop.eup %3456  ;;  %v905_v48 = vmul.f32 %v3455_v38, %v903_v46 }
 0xa42   :  { %v877_v50 = vmul.f32 %v3457_v41, %v875_v47 }
 0xaa4   :  { %v908_v39 = vpop.permute.xlu1 %907 }
 0xaa5   :  { %v910_v42 = vmul.f32 %v3455_v38, %v908_v39  ;;  %v880_v44 = vpop.permute.xlu0 %879 }
 0xaa6   :  { %v882_v45 = vmul.f32 %v3457_v41, %v880_v44 }
 0xaa7   :  { %912 = vrot.lane.b32.xlu1 %v910_v42, %s3656_s24  ;;  %v1099_v42 = vld [vmem:[#allocation2 + $0x18] sm:$0xf] }
 0xaa8   :  { %884 = vrot.lane.b32.xlu0 %v882_v45, %s3656_s24  ;;  %v1098_v45 = vld [vmem:[#allocation2 + $0x20] sm:$0xf0] }
 0xb19   :  { %v913_v49 = vpop.permute.xlu1 %912 }
 0xb1a   :  { %v915_v51 = vadd.f32 %v913_v49, %v905_v48  ;;  %v885_v52 = vpop.permute.xlu0 %884 }
 0xb1b   :  { %v887_v53 = vadd.f32 %v885_v52, %v877_v50 }
 0xb1c   :  { %3458 = vtanh.f32 %v915_v51  ;;  %v1067_v26 = vrot.slane %v915_v51, 4 }
 0xb1d   :  { %3460 = vtanh.f32 %v887_v53  ;;  %v1036_v24 = vrot.slane %v887_v53, 4 }
 0xb26   :  { %v3459_v54 = vpop.eup %3458 }
 0xb27   :  { %v3461_v55 = vpop.eup %3460  ;;  %918 = vrot.lane.b32.xlu1 %v3459_v54, %s3655_s5 }
 0xb28   :  { %890 = vrot.lane.b32.xlu0 %v3461_v55, %s3655_s5 }
 0xb99   :  { %v919_v56 = vpop.permute.xlu1 %918 }
 0xb9a   :  { %v921_v57 = vmul.f32 %v3455_v38, %v919_v56  ;;  %v891_v58 = vpop.permute.xlu0 %890 }
 0xb9b   :  { %v893_v59 = vmul.f32 %v3457_v41, %v891_v58 }
 0xb9c   :  { %928 = vrot.lane.b32.xlu1 %v921_v57, %s3655_s5 }
 0xb9d   :  { %923 = vrot.lane.b32.xlu0 %v893_v59, %s3656_s24 }
 0xc0e   :  { %v929_v60 = vpop.permute.xlu1 %928 }
 0xc0f   :  { %933 = vst.msk [vmem:[#allocation3 + $0x10] sm:$0xf] %vm602_vm6, %v929_v60  ;;  %v924_v63 = vpop.permute.xlu0 %923 }
 0xc10   :  { %926 = vst.msk [vmem:[#allocation4 - $0x4] sm:$0xf0] %vm596_vm7, %v924_v63  ;;  %932 = vst.msk [vmem:[#allocation3 + $0x8] sm:$0xf0] %vm596_vm7, %v924_v63 }
 0xc11   :  { %931 = vst.msk [vmem:[#allocation4] sm:$0xf] %vm602_vm6, %v929_v60 }
 0xc18   :  { %v936_v1 = vld [vmem:[#allocation4] sm:$0xf] }
 0xc19   :  { %3055 = vmatmul.mubr.msk.f32.vlgmr.msra.gmra.mrb[4].mxu0 %vm298_vm2, %v936_v1 }
 0xc1a   :  { %1348 = vmatprep.mubr.f32.mxu0 %v3654_v31 }
 0xcec   :  { %v1022_v3 = vpop.f32.mrb[4].mxu0 }
 0xced   :  { %v1027_v4 = vadd.f32 %v1022_v3, %v934_v2  ;;  %v1024_v5 = vpop.f32.mrb[5].mxu0 }
 0xcee   :  { %v1056_v6 = vrot.slane %v1024_v5, 4 }
 0xcef   :  { %3462 = vtanh.f32 %v1027_v4  ;;  %v3056_v11 = vmul.f32 -1.442695, %v1027_v4 }
 0xcf0   :  { %v1058_v8 = vadd.f32 %v1056_v6, %v935_v7 }
 0xcf2   :  { %3464 = vtanh.f32 %v1058_v8  ;;  %v3057_v15 = vmul.f32 -1.442695, %v1058_v8 }
 0xcf3   :  { %3466 = vpow2.f32 %v3056_v11  ;;  %v1265_v11 = vld [vmem:[%s4461_s4] sm:$0xff] }
 0xcf4   :  { %3468 = vpow2.f32 %v3057_v15 }
 0xcf9   :  { %v3463_v9 = vpop.eup %3462 }
 0xcfa   :  { %1040 = vrot.lane.b32.xlu0 %v3463_v9, %s3655_s5  ;;  %v1266_v9 = vld [vmem:[%s4461_s4 + $0x8] sm:$0xff] }
 0xcfc   :  { %v3465_v10 = vpop.eup %3464 }
 0xcfd   :  { %1071 = vrot.lane.b32.xlu1 %v3465_v10, %s3655_s5  ;;  %v3467_v12 = vpop.eup %3466  ;;  %v1268_v10 = vld [vmem:[%s4461_s4 + $0x18] sm:$0xff] }
 0xcfe   :  { %v3469_v13 = vpop.eup %3468  ;;  %v1031_v14 = vadd.f32 1.0, %v3467_v12  ;;  %v3219_v15 = vpack.c.bf16 %v1268_v10, %v1266_v9  ;;  %v1267_v12 = vld [vmem:[%s4461_s4 + $0x10] sm:$0xff] }
 0xcff   :  { %v1062_v16 = vadd.f32 1.0, %v3469_v13  ;;  %v1270_v13 = vld [vmem:[%s4461_s4 + $0x28] sm:$0xff] }
 0xd00   :  { %3470 = vrcp.f32 %v1031_v14  ;;  %v1272_v14 = vld [vmem:[%s4461_s4 + $0x38] sm:$0xff]  ;;  %3220 = vmatprep.subr.bf16.mxu0 %v3219_v15  ;;  %3236 = vmatprep.subr.bf16.mxu1 %v3219_v15 }
 0xd01   :  { %3472 = vrcp.f32 %v1062_v16  ;;  %v3221_v16 = vpack.c.bf16 %v1267_v12, %v1265_v11 }
 0xd03   :  { %3222 = vmatpush1.bf16.msra.mxu0 %v3221_v16 }
 0xd0a   :  { %v3471_v17 = vpop.eup %3470 }
 0xd0b   :  { %v3473_v21 = vpop.eup %3472  ;;  %v1038_v25 = vmul.f32 %v3471_v17, %v1036_v24  ;;  %v1274_v24 = vld [vmem:[%s4461_s4 + $0x48] sm:$0xff] }
 0xd0c   :  { %v1069_v32 = vmul.f32 %v3473_v21, %v1067_v26 }
 0xd6c   :  { %v1041_v18 = vpop.permute.xlu0 %1040 }
 0xd6d   :  { %v1043_v19 = vmul.f32 %v3471_v17, %v1041_v18  ;;  %v1269_v18 = vld [vmem:[%s4461_s4 + $0x20] sm:$0xff] }
 0xd6f   :  { %1045 = vrot.lane.b32.xlu0 %v1043_v19, %s3656_s24  ;;  %v1072_v22 = vpop.permute.xlu1 %1071  ;;  %v1271_v19 = vld [vmem:[%s4461_s4 + $0x30] sm:$0xff] }
 0xd70   :  { %v1074_v23 = vmul.f32 %v3473_v21, %v1072_v22 }
 0xd72   :  { %1076 = vrot.lane.b32.xlu1 %v1074_v23, %s3656_s24 }
 0xde1   :  { %v1046_v28 = vpop.permute.xlu0 %1045 }
 0xde2   :  { %v1048_v29 = vadd.f32 %v1046_v28, %v1038_v25  ;;  %v1276_v25 = vld [vmem:[%s4461_s4 + $0x58] sm:$0xff]  ;;  %v1273_v28 = vld [vmem:[%s4461_s4 + $0x40] sm:$0xff] }
 0xde3   :  { %v3227_v26 = vpack.c.bf16 %v1276_v25, %v1274_v24  ;;  %v1426_v25 = vld [vmem:[#allocation2 + $0x30] sm:$0xf0] }
 0xde4   :  { %3474 = vtanh.f32 %v1048_v29  ;;  %v1077_v20 = vpop.permute.xlu1 %1076  ;;  %v1203_v2 = vrot.slane %v1048_v29, 4  ;;  %v1275_v29 = vld [vmem:[%s4461_s4 + $0x50] sm:$0xff] }
 0xde5   :  { %v1079_v33 = vadd.f32 %v1077_v20, %v1069_v32  ;;  %v3229_v32 = vpack.c.bf16 %v1275_v29, %v1273_v28  ;;  %v1278_v20 = vld [vmem:[%s4461_s4 + $0x68] sm:$0xff] }
 0xde7   :  { %3476 = vtanh.f32 %v1079_v33  ;;  %v1231_v1 = vrot.slane %v1079_v33, 4  ;;  %v1280_v33 = vld [vmem:[%s4461_s4 + $0x78] sm:$0xff] }
 0xdee   :  { %v3475_v27 = vpop.eup %3474 }
 0xdef   :  { %1051 = vrot.lane.b32.xlu0 %v3475_v27, %s3655_s5  ;;  %v3231_v27 = vpack.c.bf16 %v1280_v33, %v1278_v20 }
 0xdf1   :  { %v3477_v35 = vpop.eup %3476 }
 0xdf2   :  { %1082 = vrot.lane.b32.xlu1 %v3477_v35, %s3655_s5  ;;  %v1277_v35 = vld [vmem:[%s4461_s4 + $0x60] sm:$0xff] }
 0xe61   :  { %v1052_v30 = vpop.permute.xlu0 %1051 }
 0xe62   :  { %v1054_v34 = vmul.f32 %v3471_v17, %v1052_v30  ;;  %v3223_v17 = vpack.c.bf16 %v1272_v14, %v1270_v13  ;;  %v1279_v30 = vld [vmem:[%s4461_s4 + $0x70] sm:$0xff] }
 0xe64   :  { %1087 = vrot.lane.b32.xlu0 %v1054_v34, %s3656_s24  ;;  %v1083_v37 = vpop.permute.xlu1 %1082  ;;  %3224 = vmatprep.subr.bf16.mxu0 %v3223_v17  ;;  %v3233_v34 = vpack.c.bf16 %v1279_v30, %v1277_v35 }
 0xe65   :  { %v1085_v40 = vmul.f32 %v3473_v21, %v1083_v37  ;;  %v3225_v21 = vpack.c.bf16 %v1271_v19, %v1269_v18 }
 0xe67   :  { %1092 = vrot.lane.b32.xlu1 %v1085_v40, %s3655_s5  ;;  %3226 = vmatpush1.bf16.msra.mxu0 %v3225_v21 }
 0xe68   :  { %3228 = vmatprep.subr.bf16.mxu0 %v3227_v26 }
 0xe6b   :  { %3230 = vmatpush1.bf16.msra.mxu0 %v3229_v32 }
 0xe6c   :  { %3232 = vmatprep.subr.bf16.mxu0 %v3231_v27 }
 0xe6f   :  { %3234 = vmatpush1.bf16.msra.mxu0 %v3233_v34 }
 0xed6   :  { %v1088_v43 = vpop.permute.xlu0 %1087 }
 0xed7   :  { %1090 = vst.msk [vmem:[#allocation4] sm:$0xf] %vm430_vm4, %v1088_v43  ;;  %1096 = vst.msk [vmem:[#allocation3 + $0x10] sm:$0xf] %vm430_vm4, %v1088_v43 }
 0xed9   :  { %v1093_v36 = vpop.permute.xlu1 %1092 }
 0xeda   :  { %1095 = vst.msk [vmem:[#allocation4 - $0x4] sm:$0xf0] %vm436_vm5, %v1093_v36  ;;  %1097 = vst.msk [vmem:[#allocation3 + $0x8] sm:$0xf0] %vm436_vm5, %v1093_v36 }
 0xee1   :  { %v1100_v38 = vld [vmem:[#allocation4] sm:$0xf] }
 0xee2   :  { %3058 = vmatmul.mubr.msk.f32.vlgmr.msra.gmra.mrb[16].mxu1 %vm298_vm2, %v1100_v38 }
 0xee3   :  { %1512 = vmatprep.mubr.f32.mxu1 %v3654_v31  ;;  %3238 = vmatpush1.bf16.msra.mxu1 %v3221_v16 }
 0xee4   :  { %3240 = vmatprep.subr.bf16.mxu1 %v3223_v17 }
 0xee7   :  { %3242 = vmatpush1.bf16.msra.mxu1 %v3225_v21 }
 0xee8   :  { %3244 = vmatprep.subr.bf16.mxu1 %v3227_v26 }
 0xeeb   :  { %3246 = vmatpush1.bf16.msra.mxu1 %v3229_v32 }
 0xeec   :  { %3248 = vmatprep.subr.bf16.mxu1 %v3231_v27 }
 0xeef   :  { %3250 = vmatpush1.bf16.msra.mxu1 %v3233_v34 }
 0xfb5   :  { %v1186_v39 = vpop.f32.mrb[16].mxu1 }
 0xfb6   :  { %v1192_v41 = vrot.slane %v1186_v39, 4  ;;  %v1188_v44 = vpop.f32.mrb[17].mxu1 }
 0xfb7   :  { %v1222_v46 = vadd.f32 %v1188_v44, %v1099_v42  ;;  %v1262_v42 = vld [vmem:[#allocation2 + $0x30] sm:$0xf] }
 0xfb8   :  { %v1194_v47 = vadd.f32 %v1192_v41, %v1098_v45 }
 0xfb9   :  { %3478 = vtanh.f32 %v1222_v46  ;;  %v3060_v50 = vmul.f32 -1.442695, %v1222_v46 }
 0xfba   :  { %3480 = vtanh.f32 %v1194_v47  ;;  %v3059_v51 = vmul.f32 -1.442695, %v1194_v47 }
 0xfbb   :  { %3482 = vpow2.f32 %v3060_v50 }
 0xfbc   :  { %3484 = vpow2.f32 %v3059_v51 }
 0xfc3   :  { %v3479_v48 = vpop.eup %3478 }
 0xfc4   :  { %v3481_v49 = vpop.eup %3480  ;;  %1235 = vrot.lane.b32.xlu1 %v3479_v48, %s3655_s5  ;;  %v1263_v48 = vld [vmem:[#allocation2 + $0x8] sm:$0xf0] }
 0xfc5   :  { %1207 = vrot.lane.b32.xlu0 %v3481_v49, %s3655_s5  ;;  %v3483_v52 = vpop.eup %3482 }
 0xfc6   :  { %v3485_v53 = vpop.eup %3484  ;;  %v1226_v54 = vadd.f32 1.0, %v3483_v52 }
 0xfc7   :  { %v1198_v55 = vadd.f32 1.0, %v3485_v53 }
 0xfc8   :  { %3486 = vrcp.f32 %v1226_v54 }
 0xfc9   :  { %3488 = vrcp.f32 %v1198_v55 }
 0xfd2   :  { %v3985_v56 = vpop.eup %3486 }
 0xfd3   :  { %v3987_v58 = vpop.eup %3488  ;;  %v1233_v3 = vmul.f32 %v3985_v56, %v1231_v1 }
 0xfd4   :  { %v1205_v5 = vmul.f32 %v3987_v58, %v1203_v2 }
0x1036   :  { %v1236_v57 = vpop.permute.xlu1 %1235 }
0x1037   :  { %v1238_v59 = vmul.f32 %v3985_v56, %v1236_v57  ;;  %v1208_v60 = vpop.permute.xlu0 %1207 }
0x1038   :  { %v1210_v63 = vmul.f32 %v3987_v58, %v1208_v60 }
0x1039   :  { %1240 = vrot.lane.b32.xlu1 %v1238_v59, %s3656_s24 }
0x103a   :  { %1212 = vrot.lane.b32.xlu0 %v1210_v63, %s3656_s24 }
0x10ab   :  { %v1241_v4 = vpop.permute.xlu1 %1240 }
0x10ac   :  { %v3995_v6 = vadd.f32 %v1241_v4, %v1233_v3  ;;  %v1213_v7 = vpop.permute.xlu0 %1212 }
0x10ad   :  { %v3997_v8 = vadd.f32 %v1213_v7, %v1205_v5 }
0x10ae   :  { %3490 = vtanh.f32 %v3995_v6  ;;  %v1395_v5 = vrot.slane %v3995_v6, 4 }
0x10af   :  { %3492 = vtanh.f32 %v3997_v8  ;;  %v1364_v3 = vrot.slane %v3997_v8, 4 }
0x10b8   :  { %v3491_v22 = vpop.eup %3490 }
0x10b9   :  { %v3493_v23 = vpop.eup %3492  ;;  %1246 = vrot.lane.b32.xlu1 %v3491_v22, %s3655_s5 }
0x10ba   :  { %1218 = vrot.lane.b32.xlu0 %v3493_v23, %s3655_s5  ;;  %v1427_v23 = vld [vmem:[#allocation2 + $0x8] sm:$0xf] }
0x112b   :  { %v1247_v37 = vpop.permute.xlu1 %1246 }
0x112c   :  { %v1249_v40 = vmul.f32 %v3985_v56, %v1247_v37  ;;  %v1219_v43 = vpop.permute.xlu0 %1218 }
0x112d   :  { %v1221_v36 = vmul.f32 %v3987_v58, %v1219_v43 }
0x112e   :  { %1256 = vrot.lane.b32.xlu1 %v1249_v40, %s3655_s5 }
0x112f   :  { %1251 = vrot.lane.b32.xlu0 %v1221_v36, %s3656_s24 }
0x11a0   :  { %v1257_v38 = vpop.permute.xlu1 %1256 }
0x11a1   :  { %1261 = vst.msk [vmem:[#allocation3 + $0x8] sm:$0xf] %vm602_vm6, %v1257_v38  ;;  %v1252_v39 = vpop.permute.xlu0 %1251 }
0x11a2   :  { %1254 = vst.msk [vmem:[#allocation4 - $0x4] sm:$0xf0] %vm596_vm7, %v1252_v39  ;;  %1260 = vst.msk [vmem:[#allocation3 + $0x10] sm:$0xf0] %vm596_vm7, %v1252_v39 }
0x11a3   :  { %1259 = vst.msk [vmem:[#allocation4] sm:$0xf] %vm602_vm6, %v1257_v38 }
0x11aa   :  { %v1264_v41 = vld [vmem:[#allocation4] sm:$0xf] }
0x11ab   :  { %3061 = vmatmul.mubr.msk.f32.vlgmr.msra.gmra.mrb[6].mxu0 %vm298_vm2, %v1264_v41 }
0x11ac   :  { %1698 = vmatprep.mubr.f32.mxu0 %v3654_v31 }
0x127e   :  { %v1350_v44 = vpop.f32.mrb[6].mxu0 }
0x127f   :  { %v1355_v45 = vadd.f32 %v1350_v44, %v1262_v42  ;;  %v1352_v46 = vpop.f32.mrb[7].mxu0 }
0x1280   :  { %v1384_v47 = vrot.slane %v1352_v46, 4 }
0x1281   :  { %3494 = vtanh.f32 %v1355_v45  ;;  %v3062_v52 = vmul.f32 -1.442695, %v1355_v45 }
0x1282   :  { %v1386_v49 = vadd.f32 %v1384_v47, %v1263_v48 }
0x1284   :  { %3496 = vtanh.f32 %v1386_v49  ;;  %v3063_v53 = vmul.f32 -1.442695, %v1386_v49 }
0x1285   :  { %3498 = vpow2.f32 %v3062_v52  ;;  %v1594_v52 = vld [vmem:[%s4464_s6] sm:$0xff] }
0x1286   :  { %3500 = vpow2.f32 %v3063_v53 }
0x128b   :  { %v3495_v50 = vpop.eup %3494 }
0x128c   :  { %1368 = vrot.lane.b32.xlu0 %v3495_v50, %s3655_s5  ;;  %v1595_v50 = vld [vmem:[%s4464_s6 + $0x8] sm:$0xff] }
0x128e   :  { %v3497_v51 = vpop.eup %3496 }
0x128f   :  { %1399 = vrot.lane.b32.xlu1 %v3497_v51, %s3655_s5  ;;  %v3499_v54 = vpop.eup %3498  ;;  %v1597_v51 = vld [vmem:[%s4464_s6 + $0x18] sm:$0xff] }
0x1290   :  { %v3501_v55 = vpop.eup %3500  ;;  %v1359_v56 = vadd.f32 1.0, %v3499_v54  ;;  %v3251_v53 = vpack.c.bf16 %v1597_v51, %v1595_v50  ;;  %v1596_v54 = vld [vmem:[%s4464_s6 + $0x10] sm:$0xff]  ;;  %v1610_v51 = vld [vmem:[%s4466_s8] sm:$0x3] }
0x1291   :  { %v1390_v57 = vadd.f32 1.0, %v3501_v55  ;;  %v1599_v55 = vld [vmem:[%s4464_s6 + $0x28] sm:$0xff] }
0x1292   :  { %3502 = vrcp.f32 %v1359_v56  ;;  %v1601_v56 = vld [vmem:[%s4464_s6 + $0x38] sm:$0xff]  ;;  %3252 = vmatprep.subr.bf16.mxu0 %v3251_v53  ;;  %v1619_v53 = vrot.slane %v1610_v51, %v163_v0 }
0x1293   :  { %3504 = vrcp.f32 %v1390_v57  ;;  %v3253_v57 = vpack.c.bf16 %v1596_v54, %v1594_v52  ;;  %v1615_v52 = vrot.slane %v1610_v51, %v159_v62 }
0x1295   :  { %3254 = vmatpush1.bf16.msra.mxu0 %v3253_v57 }
0x129c   :  { %v3503_v58 = vpop.eup %3502 }
0x129d   :  { %v3505_v63 = vpop.eup %3504  ;;  %v1366_v4 = vmul.f32 %v3503_v58, %v1364_v3  ;;  %v1603_v3 = vld [vmem:[%s4464_s6 + $0x48] sm:$0xff] }
0x129e   :  { %v1397_v10 = vmul.f32 %v3505_v63, %v1395_v5 }
0x12fe   :  { %v1369_v59 = vpop.permute.xlu0 %1368 }
0x12ff   :  { %v1371_v60 = vmul.f32 %v3503_v58, %v1369_v59  ;;  %v1598_v59 = vld [vmem:[%s4464_s6 + $0x20] sm:$0xff] }
0x1301   :  { %1373 = vrot.lane.b32.xlu0 %v1371_v60, %s3656_s24  ;;  %v1400_v1 = vpop.permute.xlu1 %1399  ;;  %v1600_v60 = vld [vmem:[%s4464_s6 + $0x30] sm:$0xff] }
0x1302   :  { %v1402_v2 = vmul.f32 %v3505_v63, %v1400_v1 }
0x1304   :  { %1404 = vrot.lane.b32.xlu1 %v1402_v2, %s3656_s24 }
0x1373   :  { %v1374_v7 = vpop.permute.xlu0 %1373 }
0x1374   :  { %v1376_v9 = vadd.f32 %v1374_v7, %v1366_v4  ;;  %v1605_v4 = vld [vmem:[%s4464_s6 + $0x58] sm:$0xff]  ;;  %v1602_v7 = vld [vmem:[%s4464_s6 + $0x40] sm:$0xff] }
0x1375   :  { %v3259_v5 = vpack.c.bf16 %v1605_v4, %v1603_v3 }
0x1376   :  { %3506 = vtanh.f32 %v1376_v9  ;;  %v1405_v11 = vpop.permute.xlu1 %1404  ;;  %v1531_v42 = vrot.slane %v1376_v9, 4  ;;  %v1604_v9 = vld [vmem:[%s4464_s6 + $0x50] sm:$0xff] }
0x1377   :  { %v1407_v15 = vadd.f32 %v1405_v11, %v1397_v10  ;;  %v3261_v10 = vpack.c.bf16 %v1604_v9, %v1602_v7  ;;  %v1736_v11 = vld [vmem:[%s4465_s7 + $0x8] sm:$0xff] }
0x1379   :  { %3508 = vtanh.f32 %v1407_v15  ;;  %v1559_v41 = vrot.slane %v1407_v15, 4  ;;  %v1738_v15 = vld [vmem:[%s4465_s7 + $0x18] sm:$0xff] }
0x1380   :  { %v3507_v12 = vpop.eup %3506 }
0x1381   :  { %1379 = vrot.lane.b32.xlu0 %v3507_v12, %s3655_s5  ;;  %v4133_v12 = vpack.c.bf16 %v1738_v15, %v1736_v11 }
0x1383   :  { %v3509_v13 = vpop.eup %3508  ;;  %3268 = vmatprep.subr.bf16.mxu1 %v4133_v12 }
0x1384   :  { %1410 = vrot.lane.b32.xlu1 %v3509_v13, %s3655_s5  ;;  %v1735_v13 = vld [vmem:[%s4465_s7] sm:$0xff] }
0x13f3   :  { %v1380_v14 = vpop.permute.xlu0 %1379 }
0x13f4   :  { %v1382_v16 = vmul.f32 %v3503_v58, %v1380_v14  ;;  %v3255_v58 = vpack.c.bf16 %v1601_v56, %v1599_v55  ;;  %v1737_v14 = vld [vmem:[%s4465_s7 + $0x10] sm:$0xff] }
0x13f6   :  { %1415 = vrot.lane.b32.xlu0 %v1382_v16, %s3656_s24  ;;  %v1411_v8 = vpop.permute.xlu1 %1410  ;;  %3256 = vmatprep.subr.bf16.mxu0 %v3255_v58  ;;  %v4141_v16 = vpack.c.bf16 %v1737_v14, %v1735_v13 }
0x13f7   :  { %v1413_v17 = vmul.f32 %v3505_v63, %v1411_v8  ;;  %v3257_v63 = vpack.c.bf16 %v1600_v60, %v1598_v59  ;;  %v1607_v8 = vld [vmem:[%s4464_s6 + $0x68] sm:$0xff] }
0x13f9   :  { %1420 = vrot.lane.b32.xlu1 %v1413_v17, %s3655_s5  ;;  %3258 = vmatpush1.bf16.msra.mxu0 %v3257_v63  ;;  %v1609_v17 = vld [vmem:[%s4464_s6 + $0x78] sm:$0xff] }
0x13fa   :  { %3260 = vmatprep.subr.bf16.mxu0 %v3259_v5 }
0x13fd   :  { %3262 = vmatpush1.bf16.msra.mxu0 %v3261_v10 }
0x1468   :  { %v1416_v6 = vpop.permute.xlu0 %1415 }
0x1469   :  { %1418 = vst.msk [vmem:[#allocation4] sm:$0xf] %vm430_vm4, %v1416_v6  ;;  %1424 = vst.msk [vmem:[#allocation3 + $0x18] sm:$0xf] %vm430_vm4, %v1416_v6  ;;  %v3263_v6 = vpack.c.bf16 %v1609_v17, %v1607_v8 }
0x146b   :  { %v1421_v18 = vpop.permute.xlu1 %1420  ;;  %3264 = vmatprep.subr.bf16.mxu0 %v3263_v6 }
0x146c   :  { %1423 = vst.msk [vmem:[#allocation4 - $0x4] sm:$0xf0] %vm436_vm5, %v1421_v18  ;;  %1425 = vst.msk [vmem:[#allocation3] sm:$0xf0] %vm436_vm5, %v1421_v18  ;;  %v1606_v18 = vld [vmem:[%s4464_s6 + $0x60] sm:$0xff] }
0x1473   :  { %v1428_v19 = vld [vmem:[#allocation4] sm:$0xf] }
0x1474   :  { %3064 = vmatmul.mubr.msk.f32.vlgmr.msra.gmra.mrb[18].mxu1 %vm298_vm2, %v1428_v19  ;;  %v1608_v19 = vld [vmem:[%s4464_s6 + $0x70] sm:$0xff] }
0x1475   :  { %1818 = vmatprep.mubr.f32.mxu1 %v3654_v31  ;;  %3270 = vmatpush1.bf16.msra.mxu1 %v4141_v16 }
0x1547   :  { %v1514_v21 = vpop.f32.mrb[18].mxu1 }
0x1548   :  { %v1520_v22 = vrot.slane %v1514_v21, 4  ;;  %v1516_v24 = vpop.f32.mrb[19].mxu1  ;;  %v1740_v21 = vld [vmem:[%s4465_s7 + $0x28] sm:$0xff] }
0x1549   :  { %v1550_v26 = vadd.f32 %v1516_v24, %v1427_v23  ;;  %v1742_v23 = vld [vmem:[%s4465_s7 + $0x38] sm:$0xff]  ;;  %v1739_v24 = vld [vmem:[%s4465_s7 + $0x20] sm:$0xff] }
0x154a   :  { %v1522_v28 = vadd.f32 %v1520_v22, %v1426_v25  ;;  %v3265_v22 = vpack.c.bf16 %v1608_v19, %v1606_v18  ;;  %v1741_v25 = vld [vmem:[%s4465_s7 + $0x30] sm:$0xff] }
0x154b   :  { %3510 = vtanh.f32 %v1550_v26  ;;  %v3066_v20 = vmul.f32 -1.442695, %v1550_v26  ;;  %v4169_v26 = vpack.c.bf16 %v1742_v23, %v1740_v21 }
0x154c   :  { %3512 = vtanh.f32 %v1522_v28  ;;  %v3065_v33 = vmul.f32 -1.442695, %v1522_v28  ;;  %v4171_v28 = vpack.c.bf16 %v1741_v25, %v1739_v24  ;;  %3266 = vmatpush1.bf16.msra.mxu0 %v3265_v22 }
0x154d   :  { %3514 = vpow2.f32 %v3066_v20  ;;  %3272 = vmatprep.subr.bf16.mxu1 %v4169_v26  ;;  %3284 = vmatprep.subr.bf16.mxu0 %v4133_v12 }
0x154e   :  { %3516 = vpow2.f32 %v3065_v33  ;;  %3274 = vmatpush1.bf16.msra.mxu1 %v4171_v28  ;;  %v1743_v33 = vld [vmem:[%s4465_s7 + $0x40] sm:$0xff] }
0x1555   :  { %v3511_v29 = vpop.eup %3510 }
0x1556   :  { %v3513_v32 = vpop.eup %3512  ;;  %1563 = vrot.lane.b32.xlu0 %v3511_v29, %s3655_s5  ;;  %v1744_v29 = vld [vmem:[%s4465_s7 + $0x48] sm:$0xff] }
0x1557   :  { %1535 = vrot.lane.b32.xlu1 %v3513_v32, %s3655_s5  ;;  %v3515_v27 = vpop.eup %3514  ;;  %v1746_v32 = vld [vmem:[%s4465_s7 + $0x58] sm:$0xff] }
0x1558   :  { %v3517_v35 = vpop.eup %3516  ;;  %v1554_v30 = vadd.f32 1.0, %v3515_v27  ;;  %v4182_v20 = vpack.c.bf16 %v1746_v32, %v1744_v29  ;;  %v1745_v27 = vld [vmem:[%s4465_s7 + $0x50] sm:$0xff] }
0x1559   :  { %v1526_v34 = vadd.f32 1.0, %v3517_v35 }
0x155a   :  { %3518 = vrcp.f32 %v1554_v30  ;;  %v4190_v30 = vpack.c.bf16 %v1745_v27, %v1743_v33  ;;  %3276 = vmatprep.subr.bf16.mxu1 %v4182_v20 }
0x155b   :  { %3520 = vrcp.f32 %v1526_v34 }
0x155c   :  { %3278 = vmatpush1.bf16.msra.mxu1 %v4190_v30 }
0x1564   :  { %v4079_v37 = vpop.eup %3518 }
0x1565   :  { %v4081_v43 = vpop.eup %3520  ;;  %v1561_v44 = vmul.f32 %v4079_v37, %v1559_v41 }
0x1566   :  { %v1533_v46 = vmul.f32 %v4081_v43, %v1531_v42 }
0x15c8   :  { %v1564_v40 = vpop.permute.xlu0 %1563 }
0x15c9   :  { %v1566_v36 = vmul.f32 %v4079_v37, %v1564_v40  ;;  %v1536_v38 = vpop.permute.xlu1 %1535 }
0x15ca   :  { %v1538_v39 = vmul.f32 %v4081_v43, %v1536_v38  ;;  %v1748_v38 = vld [vmem:[%s4465_s7 + $0x68] sm:$0xff] }
0x15cb   :  { %1568 = vrot.lane.b32.xlu0 %v1566_v36, %s3656_s24 }
0x15cc   :  { %1540 = vrot.lane.b32.xlu1 %v1538_v39, %s3656_s24  ;;  %v1750_v39 = vld [vmem:[%s4465_s7 + $0x78] sm:$0xff] }
0x15cd   :  { %v4203_v41 = vpack.c.bf16 %v1750_v39, %v1748_v38 }
0x15cf   :  { %3280 = vmatprep.subr.bf16.mxu1 %v4203_v41 }
0x163d   :  { %v1569_v45 = vpop.permute.xlu0 %1568 }
0x163e   :  { %v1571_v47 = vadd.f32 %v1569_v45, %v1561_v44  ;;  %v1541_v48 = vpop.permute.xlu1 %1540 }
0x163f   :  { %v1543_v49 = vadd.f32 %v1541_v48, %v1533_v46  ;;  %v1591_v48 = vld [vmem:[#allocation3 + $0x8] sm:$0xff] }
0x1640   :  { %3522 = vtanh.f32 %v1571_v47 }
0x1641   :  { %3524 = vtanh.f32 %v1543_v49  ;;  %v1592_v49 = vld [vmem:[#allocation3 + $0x10] sm:$0xff] }
0x164a   :  { %v3523_v1 = vpop.eup %3522 }
0x164b   :  { %v3525_v2 = vpop.eup %3524  ;;  %1574 = vrot.lane.b32.xlu0 %v3523_v1, %s3655_s5 }
0x164c   :  { %1546 = vrot.lane.b32.xlu1 %v3525_v2, %s3655_s5 }
0x16bd   :  { %v1575_v35 = vpop.permute.xlu0 %1574 }
0x16be   :  { %v1577_v34 = vmul.f32 %v4079_v37, %v1575_v35  ;;  %v1547_v40 = vpop.permute.xlu1 %1546  ;;  %v1747_v37 = vld [vmem:[%s4465_s7 + $0x60] sm:$0xff] }
0x16bf   :  { %v1549_v36 = vmul.f32 %v4081_v43, %v1547_v40  ;;  %v1749_v43 = vld [vmem:[%s4465_s7 + $0x70] sm:$0xff] }
0x16c0   :  { %1584 = vrot.lane.b32.xlu0 %v1577_v34, %s3655_s5  ;;  %v4212_v42 = vpack.c.bf16 %v1749_v43, %v1747_v37 }
0x16c1   :  { %1579 = vrot.lane.b32.xlu1 %v1549_v36, %s3656_s24 }
0x16c2   :  { %3282 = vmatpush1.bf16.msra.mxu1 %v4212_v42 }
0x16c3   :  { %3300 = vmatprep.subr.bf16.mxu1 %v4133_v12 }
0x1732   :  { %v1585_v44 = vpop.permute.xlu0 %1584 }
0x1733   :  { %1589 = vst.msk [vmem:[#allocation3] sm:$0xf] %vm602_vm6, %v1585_v44  ;;  %v1580_v45 = vpop.permute.xlu1 %1579 }
0x1734   :  { %1582 = vst.msk [vmem:[#allocation4 - $0x4] sm:$0xf0] %vm596_vm7, %v1580_v45  ;;  %1588 = vst.msk [vmem:[#allocation3 + $0x18] sm:$0xf0] %vm596_vm7, %v1580_v45 }
0x1735   :  { %1587 = vst.msk [vmem:[#allocation4] sm:$0xf] %vm602_vm6, %v1585_v44 }
0x1736   :  { %1731 = vst.msk [vmem:[#allocation4] sm:$0xf] %vm277_vm1, %v3654_v31 }
0x173a   :  { %v1590_v46 = vld [vmem:[#allocation3] sm:$0xff] }
0x173b   :  { %3067 = vmatmul.mubr.msk.f32.vlgmr.msra.gmra.mrb[8].mxu0 %vm298_vm2, %v1590_v46  ;;  %v1593_v50 = vld [vmem:[#allocation3 + $0x18] sm:$0xff] }
0x173c   :  { %1704 = vmatprep.mubr.f32.mxu0 %v3654_v31  ;;  %3286 = vmatpush1.bf16.msra.mxu0 %v4141_v16 }
0x173d   :  { %v1734_v47 = vld [vmem:[#allocation4] sm:$0xf]  ;;  %3288 = vmatprep.subr.bf16.mxu0 %v4169_v26 }
0x173e   :  { %3071 = vmatmul.mubr.msk.f32.vlgmr.msra.gmra.mrb[20].mxu1 %vm298_vm2, %v1734_v47 }
0x173f   :  { %3068 = vmatmul.mubr.msk.f32.gmra.mrb[10].mxu0 %vm298_vm2, %v1591_v48  ;;  %3302 = vmatpush1.bf16.msra.mxu1 %v4141_v16 }
0x1740   :  { %1710 = vmatprep.mubr.f32.mxu0 %v3654_v31  ;;  %3290 = vmatpush1.bf16.msra.mxu0 %v4171_v28 }
0x1741   :  { %3292 = vmatprep.subr.bf16.mxu0 %v4182_v20  ;;  %3304 = vmatprep.subr.bf16.mxu1 %v4169_v26 }
0x1742   :  { %2136 = vmatprep.mubr.f32.mxu1 %v3654_v31 }
0x1743   :  { %3069 = vmatmul.mubr.msk.f32.gmra.mrb[12].mxu0 %vm298_vm2, %v1592_v49  ;;  %3306 = vmatpush1.bf16.msra.mxu1 %v4171_v28 }
0x1744   :  { %1716 = vmatprep.mubr.f32.mxu0 %v3654_v31  ;;  %3294 = vmatpush1.bf16.msra.mxu0 %v4190_v30 }
0x1745   :  { %3296 = vmatprep.subr.bf16.mxu0 %v4203_v41  ;;  %3308 = vmatprep.subr.bf16.mxu1 %v4182_v20 }
0x1747   :  { %3070 = vmatmul.mubr.msk.f32.gmra.mrb[14].mxu0 %vm298_vm2, %v1593_v50  ;;  %3310 = vmatpush1.bf16.msra.mxu1 %v4190_v30 }
0x1748   :  { %3298 = vmatpush1.bf16.msra.mxu0 %v4212_v42  ;;  %1974 = vmatprep.mubr.f32.mxu0 %v3654_v31 }
0x1749   :  { %3312 = vmatprep.subr.bf16.mxu1 %v4203_v41  ;;  %3316 = vmatprep.subr.bf16.mxu0 %v4133_v12 }
0x174b   :  { %3314 = vmatpush1.bf16.msra.mxu1 %v4212_v42 }
0x174c   :  { %3332 = vmatprep.subr.bf16.mxu1 %v4133_v12 }
0x180e   :  { %v1700_v54 = vpop.f32.mrb[8].mxu0 }
0x180f   :  { %v1701_v55 = vadd.f32 %v1700_v54, %v1615_v52  ;;  %v1702_v56 = vpop.f32.mrb[9].mxu0 }
0x1810   :  { %v1703_v57 = vadd.f32 %v1702_v56, %v1619_v53 }
0x1811   :  { %1723 = vst [vmem:[#allocation2] sm:$0xff] %v1701_v55  ;;  %v1820_v58 = vpop.f32.mrb[20].mxu1 }
0x1812   :  { %1724 = vst [vmem:[#allocation2 + $0x8] sm:$0xff] %v1703_v57  ;;  %v1706_v59 = vpop.f32.mrb[10].mxu0  ;;  %v1822_v60 = vpop.f32.mrb[21].mxu1 }
0x1813   :  { %v1707_v63 = vadd.f32 %v1706_v59, %v1615_v52  ;;  %v1708_v1 = vpop.f32.mrb[11].mxu0  ;;  %v1851_v15 = vrot.slane %v1822_v60, 4 }
0x1814   :  { %v1709_v2 = vadd.f32 %v1708_v1, %v1619_v53 }
0x1815   :  { %1725 = vst [vmem:[#allocation2 + $0x10] sm:$0xff] %v1707_v63 }
0x1816   :  { %1726 = vst [vmem:[#allocation2 + $0x18] sm:$0xff] %v1709_v2  ;;  %v1712_v3 = vpop.f32.mrb[12].mxu0 }
0x1817   :  { %v1713_v4 = vadd.f32 %v1712_v3, %v1615_v52  ;;  %v1714_v62 = vpop.f32.mrb[13].mxu0 }
0x1818   :  { %v1715_v5 = vadd.f32 %v1714_v62, %v1619_v53  ;;  %v1732_v61 = vld [vmem:[#allocation2] sm:$0xf]  ;;  %v1888_v55 = vld [vmem:[#allocation2] sm:$0xf0] }
0x1819   :  { %1727 = vst [vmem:[#allocation2 + $0x20] sm:$0xff] %v1713_v4  ;;  %v1825_v0 = vadd.f32 %v1820_v58, %v1732_v61 }
0x181a   :  { %1728 = vst [vmem:[#allocation2 + $0x28] sm:$0xff] %v1715_v5  ;;  %v1718_v7 = vpop.f32.mrb[14].mxu0 }
0x181b   :  { %3526 = vtanh.f32 %v1825_v0  ;;  %v1719_v9 = vadd.f32 %v1718_v7, %v1615_v52  ;;  %v1720_v10 = vpop.f32.mrb[15].mxu0  ;;  %v3072_v6 = vmul.f32 -1.442695, %v1825_v0 }
0x181c   :  { %v1721_v11 = vadd.f32 %v1720_v10, %v1619_v53 }
0x181d   :  { %1729 = vst [vmem:[#allocation2 + $0x30] sm:$0xff] %v1719_v9 }
0x181e   :  { %1730 = vst [vmem:[#allocation2 + $0x38] sm:$0xff] %v1721_v11 }
0x1825   :  { %v3527_v13 = vpop.eup %3526  ;;  %v1733_v14 = vld [vmem:[#allocation2 + $0x38] sm:$0xf0]  ;;  %v1889_v53 = vld [vmem:[#allocation2 + $0x38] sm:$0xf] }
0x1826   :  { %v1853_v8 = vadd.f32 %v1851_v15, %v1733_v14  ;;  %1835 = vrot.lane.b32.xlu0 %v3527_v13, %s3655_s5 }
0x1828   :  { %3528 = vtanh.f32 %v1853_v8  ;;  %v3073_v18 = vmul.f32 -1.442695, %v1853_v8 }
0x1829   :  { %3530 = vpow2.f32 %v3072_v6 }
0x182a   :  { %3532 = vpow2.f32 %v3073_v18 }
0x1832   :  { %v3529_v17 = vpop.eup %3528 }
0x1833   :  { %1863 = vrot.lane.b32.xlu1 %v3529_v17, %s3655_s5  ;;  %v3531_v19 = vpop.eup %3530 }
0x1834   :  { %v1829_v21 = vadd.f32 1.0, %v3531_v19  ;;  %v3533_v22 = vpop.eup %3532 }
0x1835   :  { %v1857_v23 = vadd.f32 1.0, %v3533_v22 }
0x1836   :  { %3534 = vrcp.f32 %v1829_v21 }
0x1837   :  { %3536 = vrcp.f32 %v1857_v23 }
0x1840   :  { %v3535_v24 = vpop.eup %3534 }
0x1841   :  { %v3537_v32 = vpop.eup %3536  ;;  %v1833_v35 = vmul.f32 0.0, %v3535_v24 }
0x1842   :  { %v1861_v36 = vmul.f32 0.0, %v3537_v32 }
0x1898   :  { %v1836_v25 = vpop.permute.xlu0 %1835 }
0x1899   :  { %v1838_v29 = vmul.f32 %v3535_v24, %v1836_v25 }
0x189b   :  { %1840 = vrot.lane.b32.xlu0 %v1838_v29, %s3656_s24 }
0x18a5   :  { %v1864_v33 = vpop.permute.xlu1 %1863 }
0x18a6   :  { %v1866_v27 = vmul.f32 %v3537_v32, %v1864_v33 }
0x18a8   :  { %1868 = vrot.lane.b32.xlu1 %v1866_v27, %s3656_s24 }
0x190d   :  { %v1841_v34 = vpop.permute.xlu0 %1840 }
0x190e   :  { %v4260_v40 = vadd.f32 %v1841_v34, %v1833_v35 }
0x1910   :  { %3538 = vtanh.f32 %v4260_v40  ;;  %v1993_v10 = vrot.slane %v4260_v40, 4  ;;  %v2051_v40 = vld [vmem:[#allocation2 + $0x28] sm:$0xf0] }
0x191a   :  { %v3539_v38 = vpop.eup %3538  ;;  %v1869_v39 = vpop.permute.xlu1 %1868 }
0x191b   :  { %v1871_v37 = vadd.f32 %v1869_v39, %v1861_v36  ;;  %1846 = vrot.lane.b32.xlu0 %v3539_v38, %s3655_s5 }
0x191d   :  { %3540 = vtanh.f32 %v1871_v37  ;;  %v2021_v9 = vrot.slane %v1871_v37, 4 }
0x1927   :  { %v3541_v43 = vpop.eup %3540 }
0x1928   :  { %1874 = vrot.lane.b32.xlu1 %v3541_v43, %s3655_s5 }
0x198d   :  { %v1847_v44 = vpop.permute.xlu0 %1846 }
0x198e   :  { %v1849_v45 = vmul.f32 %v3535_v24, %v1847_v44 }
0x1990   :  { %1879 = vrot.lane.b32.xlu0 %v1849_v45, %s3656_s24 }
0x199a   :  { %v1875_v46 = vpop.permute.xlu1 %1874 }
0x199b   :  { %v1877_v47 = vmul.f32 %v3537_v32, %v1875_v46  ;;  %v2050_v32 = vld [vmem:[#allocation2 + $0x10] sm:$0xf] }
0x199d   :  { %1884 = vrot.lane.b32.xlu1 %v1877_v47, %s3655_s5 }
0x1a02   :  { %v1880_v48 = vpop.permute.xlu0 %1879 }
0x1a03   :  { %1882 = vst.msk [vmem:[#allocation4] sm:$0xf] %vm430_vm4, %v1880_v48 }
0x1a0f   :  { %v1885_v49 = vpop.permute.xlu1 %1884 }
0x1a10   :  { %1887 = vst.msk [vmem:[#allocation4 - $0x4] sm:$0xf0] %vm436_vm5, %v1885_v49 }
0x1a17   :  { %v1890_v50 = vld [vmem:[#allocation4] sm:$0xf] }
0x1a18   :  { %3074 = vmatmul.mubr.msk.f32.vlgmr.msra.gmra.mrb[16].mxu0 %vm298_vm2, %v1890_v50 }
0x1a19   :  { %3318 = vmatpush1.bf16.msra.mxu0 %v4141_v16  ;;  %2298 = vmatprep.mubr.f32.mxu0 %v3654_v31 }
0x1a1a   :  { %3320 = vmatprep.subr.bf16.mxu0 %v4169_v26 }
0x1a1d   :  { %3322 = vmatpush1.bf16.msra.mxu0 %v4171_v28 }
0x1a1e   :  { %3324 = vmatprep.subr.bf16.mxu0 %v4182_v20 }
0x1a21   :  { %3326 = vmatpush1.bf16.msra.mxu0 %v4190_v30 }
0x1a22   :  { %3328 = vmatprep.subr.bf16.mxu0 %v4203_v41 }
0x1a25   :  { %3330 = vmatpush1.bf16.msra.mxu0 %v4212_v42 }
0x1a26   :  { %3348 = vmatprep.subr.bf16.mxu0 %v4133_v12 }
0x1aeb   :  { %v1976_v51 = vpop.f32.mrb[16].mxu0 }
0x1aec   :  { %v1982_v52 = vrot.slane %v1976_v51, 4  ;;  %v1978_v54 = vpop.f32.mrb[17].mxu0 }
0x1aed   :  { %v2012_v56 = vadd.f32 %v1978_v54, %v1889_v53 }
0x1aee   :  { %v1984_v57 = vadd.f32 %v1982_v52, %v1888_v55 }
0x1aef   :  { %3542 = vtanh.f32 %v2012_v56  ;;  %v3076_v60 = vmul.f32 -1.442695, %v2012_v56 }
0x1af0   :  { %3544 = vtanh.f32 %v1984_v57  ;;  %v3075_v63 = vmul.f32 -1.442695, %v1984_v57 }
0x1af1   :  { %3546 = vpow2.f32 %v3076_v60 }
0x1af2   :  { %3548 = vpow2.f32 %v3075_v63 }
0x1af9   :  { %v3543_v58 = vpop.eup %3542 }
0x1afa   :  { %v3545_v59 = vpop.eup %3544  ;;  %2025 = vrot.lane.b32.xlu1 %v3543_v58, %s3655_s5 }
0x1afb   :  { %1997 = vrot.lane.b32.xlu0 %v3545_v59, %s3655_s5  ;;  %v3547_v12 = vpop.eup %3546 }
0x1afc   :  { %v3549_v1 = vpop.eup %3548  ;;  %v2016_v2 = vadd.f32 1.0, %v3547_v12 }
0x1afd   :  { %v1988_v3 = vadd.f32 1.0, %v3549_v1 }
0x1afe   :  { %3550 = vrcp.f32 %v2016_v2 }
0x1aff   :  { %3552 = vrcp.f32 %v1988_v3 }
0x1b08   :  { %v3551_v4 = vpop.eup %3550 }
0x1b09   :  { %v3553_v5 = vpop.eup %3552  ;;  %v2023_v11 = vmul.f32 %v3551_v4, %v2021_v9 }
0x1b0a   :  { %v1995_v13 = vmul.f32 %v3553_v5, %v1993_v10  ;;  %v2213_v10 = vld [vmem:[#allocation2 + $0x28] sm:$0xf] }
0x1b6c   :  { %v2026_v62 = vpop.permute.xlu1 %2025 }
0x1b6d   :  { %v2028_v61 = vmul.f32 %v3551_v4, %v2026_v62  ;;  %v1998_v0 = vpop.permute.xlu0 %1997 }
0x1b6e   :  { %v2000_v7 = vmul.f32 %v3553_v5, %v1998_v0 }
0x1b6f   :  { %2030 = vrot.lane.b32.xlu1 %v2028_v61, %s3656_s24 }
0x1b70   :  { %2002 = vrot.lane.b32.xlu0 %v2000_v7, %s3656_s24 }
0x1be1   :  { %v2031_v15 = vpop.permute.xlu1 %2030 }
0x1be2   :  { %v4284_v14 = vadd.f32 %v2031_v15, %v2023_v11  ;;  %v2003_v8 = vpop.permute.xlu0 %2002  ;;  %v2212_v15 = vld [vmem:[#allocation2 + $0x10] sm:$0xf0] }
0x1be3   :  { %v2005_v17 = vadd.f32 %v2003_v8, %v1995_v13 }
0x1be4   :  { %3554 = vtanh.f32 %v4284_v14  ;;  %v2183_v56 = vrot.slane %v4284_v14, 4 }
0x1be5   :  { %3556 = vtanh.f32 %v2005_v17  ;;  %v2152_v54 = vrot.slane %v2005_v17, 4 }
0x1bee   :  { %v3555_v6 = vpop.eup %3554 }
0x1bef   :  { %v3557_v18 = vpop.eup %3556  ;;  %2036 = vrot.lane.b32.xlu1 %v3555_v6, %s3655_s5 }
0x1bf0   :  { %2008 = vrot.lane.b32.xlu0 %v3557_v18, %s3655_s5 }
0x1c61   :  { %v2037_v19 = vpop.permute.xlu1 %2036 }
0x1c62   :  { %v2039_v21 = vmul.f32 %v3551_v4, %v2037_v19  ;;  %v2009_v22 = vpop.permute.xlu0 %2008 }
0x1c63   :  { %v2011_v23 = vmul.f32 %v3553_v5, %v2009_v22 }
0x1c64   :  { %2046 = vrot.lane.b32.xlu1 %v2039_v21, %s3655_s5 }
0x1c65   :  { %2041 = vrot.lane.b32.xlu0 %v2011_v23, %s3656_s24 }
0x1cd6   :  { %v2047_v25 = vpop.permute.xlu1 %2046 }
0x1cd7   :  { %v2042_v24 = vpop.permute.xlu0 %2041 }
0x1cd8   :  { %2044 = vst.msk [vmem:[#allocation4 - $0x4] sm:$0xf0] %vm596_vm7, %v2042_v24 }
0x1cd9   :  { %2049 = vst.msk [vmem:[#allocation4] sm:$0xf] %vm602_vm6, %v2047_v25 }
0x1ce0   :  { %v2052_v29 = vld [vmem:[#allocation4] sm:$0xf] }
0x1ce1   :  { %3077 = vmatmul.mubr.msk.f32.vlgmr.msra.gmra.mrb[22].mxu1 %vm298_vm2, %v2052_v29 }
0x1ce2   :  { %3334 = vmatpush1.bf16.msra.mxu1 %v4141_v16  ;;  %2460 = vmatprep.mubr.f32.mxu1 %v3654_v31 }
0x1ce3   :  { %3336 = vmatprep.subr.bf16.mxu1 %v4169_v26 }
0x1ce6   :  { %3338 = vmatpush1.bf16.msra.mxu1 %v4171_v28 }
0x1ce7   :  { %3340 = vmatprep.subr.bf16.mxu1 %v4182_v20 }
0x1cea   :  { %3342 = vmatpush1.bf16.msra.mxu1 %v4190_v30 }
0x1ceb   :  { %3344 = vmatprep.subr.bf16.mxu1 %v4203_v41 }
0x1cee   :  { %3346 = vmatpush1.bf16.msra.mxu1 %v4212_v42 }
0x1db4   :  { %v2138_v33 = vpop.f32.mrb[22].mxu1 }
0x1db5   :  { %v2143_v27 = vadd.f32 %v2138_v33, %v2050_v32  ;;  %v2140_v35 = vpop.f32.mrb[23].mxu1 }
0x1db6   :  { %v2172_v34 = vrot.slane %v2140_v35, 4 }
0x1db7   :  { %3558 = vtanh.f32 %v2143_v27  ;;  %v3078_v37 = vmul.f32 -1.442695, %v2143_v27 }
0x1db8   :  { %v2174_v36 = vadd.f32 %v2172_v34, %v2051_v40 }
0x1dba   :  { %3560 = vtanh.f32 %v2174_v36  ;;  %v3079_v43 = vmul.f32 -1.442695, %v2174_v36 }
0x1dbb   :  { %3562 = vpow2.f32 %v3078_v37 }
0x1dbc   :  { %3564 = vpow2.f32 %v3079_v43 }
0x1dc1   :  { %v3559_v38 = vpop.eup %3558 }
0x1dc2   :  { %2156 = vrot.lane.b32.xlu0 %v3559_v38, %s3655_s5 }
0x1dc4   :  { %v3561_v39 = vpop.eup %3560 }
0x1dc5   :  { %2187 = vrot.lane.b32.xlu1 %v3561_v39, %s3655_s5  ;;  %v3563_v44 = vpop.eup %3562 }
0x1dc6   :  { %v3565_v45 = vpop.eup %3564  ;;  %v2147_v46 = vadd.f32 1.0, %v3563_v44 }
0x1dc7   :  { %v2178_v47 = vadd.f32 1.0, %v3565_v45 }
0x1dc8   :  { %3566 = vrcp.f32 %v2147_v46  ;;  %v2374_v46 = vld [vmem:[#allocation2 + $0x20] sm:$0xf] }
0x1dc9   :  { %3568 = vrcp.f32 %v2178_v47 }
0x1dd2   :  { %v3567_v48 = vpop.eup %3566 }
0x1dd3   :  { %v3569_v51 = vpop.eup %3568  ;;  %v2154_v55 = vmul.f32 %v3567_v48, %v2152_v54 }
0x1dd4   :  { %v2185_v59 = vmul.f32 %v3569_v51, %v2183_v56 }
0x1e34   :  { %v2157_v49 = vpop.permute.xlu0 %2156 }
0x1e35   :  { %v2159_v50 = vmul.f32 %v3567_v48, %v2157_v49 }
0x1e37   :  { %2161 = vrot.lane.b32.xlu0 %v2159_v50, %s3656_s24  ;;  %v2188_v52 = vpop.permute.xlu1 %2187 }
0x1e38   :  { %v2190_v53 = vmul.f32 %v3569_v51, %v2188_v52 }
0x1e3a   :  { %2192 = vrot.lane.b32.xlu1 %v2190_v53, %s3656_s24 }
0x1ea9   :  { %v2162_v57 = vpop.permute.xlu0 %2161 }
0x1eaa   :  { %v4307_v58 = vadd.f32 %v2162_v57, %v2154_v55 }
0x1eac   :  { %3570 = vtanh.f32 %v4307_v58  ;;  %v2193_v60 = vpop.permute.xlu1 %2192  ;;  %v2317_v24 = vrot.slane %v4307_v58, 4 }
0x1ead   :  { %v2195_v63 = vadd.f32 %v2193_v60, %v2185_v59 }
0x1eaf   :  { %3572 = vtanh.f32 %v2195_v63  ;;  %v2345_v23 = vrot.slane %v2195_v63, 4 }
0x1eb6   :  { %v3571_v12 = vpop.eup %3570 }
0x1eb7   :  { %2167 = vrot.lane.b32.xlu0 %v3571_v12, %s3655_s5 }
0x1eb9   :  { %v3573_v1 = vpop.eup %3572 }
0x1eba   :  { %2198 = vrot.lane.b32.xlu1 %v3573_v1, %s3655_s5 }
0x1f29   :  { %v2168_v2 = vpop.permute.xlu0 %2167 }
0x1f2a   :  { %v2170_v3 = vmul.f32 %v3567_v48, %v2168_v2 }
0x1f2c   :  { %2203 = vrot.lane.b32.xlu0 %v2170_v3, %s3656_s24  ;;  %v2199_v4 = vpop.permute.xlu1 %2198 }
0x1f2d   :  { %v2201_v62 = vmul.f32 %v3569_v51, %v2199_v4  ;;  %v2375_v51 = vld [vmem:[#allocation2 + $0x18] sm:$0xf0] }
0x1f2f   :  { %2208 = vrot.lane.b32.xlu1 %v2201_v62, %s3655_s5 }
0x1f9e   :  { %v2204_v5 = vpop.permute.xlu0 %2203 }
0x1f9f   :  { %2206 = vst.msk [vmem:[#allocation4] sm:$0xf] %vm430_vm4, %v2204_v5 }
0x1fa1   :  { %v2209_v61 = vpop.permute.xlu1 %2208 }
0x1fa2   :  { %2211 = vst.msk [vmem:[#allocation4 - $0x4] sm:$0xf0] %vm436_vm5, %v2209_v61 }
0x1fa9   :  { %v2214_v0 = vld [vmem:[#allocation4] sm:$0xf] }
0x1faa   :  { %3080 = vmatmul.mubr.msk.f32.vlgmr.msra.gmra.mrb[18].mxu0 %vm298_vm2, %v2214_v0 }
0x1fab   :  { %3350 = vmatpush1.bf16.msra.mxu0 %v4141_v16  ;;  %2622 = vmatprep.mubr.f32.mxu0 %v3654_v31 }
0x1fac   :  { %3352 = vmatprep.subr.bf16.mxu0 %v4169_v26 }
0x1faf   :  { %3354 = vmatpush1.bf16.msra.mxu0 %v4171_v28 }
0x1fb0   :  { %3356 = vmatprep.subr.bf16.mxu0 %v4182_v20 }
0x1fb3   :  { %3358 = vmatpush1.bf16.msra.mxu0 %v4190_v30 }
0x1fb4   :  { %3360 = vmatprep.subr.bf16.mxu0 %v4203_v41 }
0x1fb7   :  { %3362 = vmatpush1.bf16.msra.mxu0 %v4212_v42 }
0x207d   :  { %v2300_v7 = vpop.f32.mrb[18].mxu0 }
0x207e   :  { %v2306_v9 = vrot.slane %v2300_v7, 4  ;;  %v2302_v11 = vpop.f32.mrb[19].mxu0 }
0x207f   :  { %v2336_v16 = vadd.f32 %v2302_v11, %v2213_v10 }
0x2080   :  { %v2308_v13 = vadd.f32 %v2306_v9, %v2212_v15 }
0x2081   :  { %3574 = vtanh.f32 %v2336_v16  ;;  %v3082_v28 = vmul.f32 -1.442695, %v2336_v16 }
0x2082   :  { %3576 = vtanh.f32 %v2308_v13  ;;  %v3081_v20 = vmul.f32 -1.442695, %v2308_v13 }
0x2083   :  { %3578 = vpow2.f32 %v3082_v28 }
0x2084   :  { %3580 = vpow2.f32 %v3081_v20 }
0x208b   :  { %v3575_v26 = vpop.eup %3574 }
0x208c   :  { %v3577_v14 = vpop.eup %3576  ;;  %2349 = vrot.lane.b32.xlu1 %v3575_v26, %s3655_s5 }
0x208d   :  { %2321 = vrot.lane.b32.xlu0 %v3577_v14, %s3655_s5  ;;  %v3579_v30 = vpop.eup %3578 }
0x208e   :  { %v3581_v41 = vpop.eup %3580  ;;  %v2340_v42 = vadd.f32 1.0, %v3579_v30 }
0x208f   :  { %v2312_v8 = vadd.f32 1.0, %v3581_v41 }
0x2090   :  { %3582 = vrcp.f32 %v2340_v42 }
0x2091   :  { %3584 = vrcp.f32 %v2312_v8 }
0x209a   :  { %v3583_v17 = vpop.eup %3582 }
0x209b   :  { %v3585_v18 = vpop.eup %3584  ;;  %v2347_v25 = vmul.f32 %v3583_v17, %v2345_v23 }
0x209c   :  { %v2319_v32 = vmul.f32 %v3585_v18, %v2317_v24 }
0x20fe   :  { %v2350_v6 = vpop.permute.xlu1 %2349 }
0x20ff   :  { %v2352_v19 = vmul.f32 %v3583_v17, %v2350_v6  ;;  %v2322_v21 = vpop.permute.xlu0 %2321 }
0x2100   :  { %v2324_v22 = vmul.f32 %v3585_v18, %v2322_v21 }
0x2101   :  { %2354 = vrot.lane.b32.xlu1 %v2352_v19, %s3656_s24 }
0x2102   :  { %2326 = vrot.lane.b32.xlu0 %v2324_v22, %s3656_s24 }
0x2173   :  { %v2355_v29 = vpop.permute.xlu1 %2354 }
0x2174   :  { %v2357_v33 = vadd.f32 %v2355_v29, %v2347_v25  ;;  %v2327_v27 = vpop.permute.xlu0 %2326 }
0x2175   :  { %v2329_v35 = vadd.f32 %v2327_v27, %v2319_v32 }
0x2176   :  { %3586 = vtanh.f32 %v2357_v33  ;;  %v2507_v61 = vrot.slane %v2357_v33, 4 }
0x2177   :  { %3588 = vtanh.f32 %v2329_v35  ;;  %v2476_v62 = vrot.slane %v2329_v35, 4 }
0x2180   :  { %v3587_v34 = vpop.eup %3586 }
0x2181   :  { %v3589_v40 = vpop.eup %3588  ;;  %2360 = vrot.lane.b32.xlu1 %v3587_v34, %s3655_s5 }
0x2182   :  { %2332 = vrot.lane.b32.xlu0 %v3589_v40, %s3655_s5 }
0x21f3   :  { %v2361_v36 = vpop.permute.xlu1 %2360 }
0x21f4   :  { %v2363_v38 = vmul.f32 %v3583_v17, %v2361_v36  ;;  %v2333_v39 = vpop.permute.xlu0 %2332  ;;  %v2537_v17 = vld [vmem:[#allocation2 + $0x18] sm:$0xf] }
0x21f5   :  { %v2335_v37 = vmul.f32 %v3585_v18, %v2333_v39  ;;  %v2536_v18 = vld [vmem:[#allocation2 + $0x20] sm:$0xf0] }
0x21f6   :  { %2370 = vrot.lane.b32.xlu1 %v2363_v38, %s3655_s5 }
0x21f7   :  { %2365 = vrot.lane.b32.xlu0 %v2335_v37, %s3656_s24 }
0x2268   :  { %v2371_v44 = vpop.permute.xlu1 %2370 }
0x2269   :  { %v2366_v43 = vpop.permute.xlu0 %2365 }
0x226a   :  { %2368 = vst.msk [vmem:[#allocation4 - $0x4] sm:$0xf0] %vm596_vm7, %v2366_v43 }
0x226b   :  { %2373 = vst.msk [vmem:[#allocation4] sm:$0xf] %vm602_vm6, %v2371_v44 }
0x2272   :  { %v2376_v45 = vld [vmem:[#allocation4] sm:$0xf] }
0x2273   :  { %3083 = vmatmul.mubr.msk.f32.vlgmr.msra.gmra.mrb[24].mxu1 %vm298_vm2, %v2376_v45 }
0x2274   :  { %2784 = vmatprep.mubr.f32.mxu1 %v3654_v31 }
0x2346   :  { %v2462_v47 = vpop.f32.mrb[24].mxu1 }
0x2347   :  { %v2467_v48 = vadd.f32 %v2462_v47, %v2374_v46  ;;  %v2464_v49 = vpop.f32.mrb[25].mxu1 }
0x2348   :  { %v2496_v50 = vrot.slane %v2464_v49, 4  ;;  %v2702_v49 = vld [vmem:[%s4465_s7 + $0x8] sm:$0xff] }
0x2349   :  { %3590 = vtanh.f32 %v2467_v48  ;;  %v3084_v55 = vmul.f32 -1.442695, %v2467_v48 }
0x234a   :  { %v2498_v52 = vadd.f32 %v2496_v50, %v2375_v51  ;;  %v2704_v50 = vld [vmem:[%s4465_s7 + $0x18] sm:$0xff]  ;;  %v2701_v51 = vld [vmem:[%s4465_s7] sm:$0xff] }
0x234c   :  { %3592 = vtanh.f32 %v2498_v52  ;;  %v3085_v56 = vmul.f32 -1.442695, %v2498_v52  ;;  %v3363_v52 = vpack.c.bf16 %v2704_v50, %v2702_v49 }
0x234d   :  { %3594 = vpow2.f32 %v3084_v55  ;;  %v2708_v55 = vld [vmem:[%s4465_s7 + $0x38] sm:$0xff] }
0x234e   :  { %3596 = vpow2.f32 %v3085_v56  ;;  %3364 = vmatprep.subr.bf16.mxu1 %v3363_v52  ;;  %3380 = vmatprep.subr.bf16.mxu0 %v3363_v52 }
0x2353   :  { %v3591_v53 = vpop.eup %3590 }
0x2354   :  { %2480 = vrot.lane.b32.xlu0 %v3591_v53, %s3655_s5  ;;  %v2703_v53 = vld [vmem:[%s4465_s7 + $0x10] sm:$0xff] }
0x2355   :  { %v3365_v56 = vpack.c.bf16 %v2703_v53, %v2701_v51 }
0x2356   :  { %v3593_v54 = vpop.eup %3592 }
0x2357   :  { %2511 = vrot.lane.b32.xlu1 %v3593_v54, %s3655_s5  ;;  %v3595_v57 = vpop.eup %3594  ;;  %v2706_v54 = vld [vmem:[%s4465_s7 + $0x28] sm:$0xff]  ;;  %3366 = vmatpush1.bf16.msra.mxu1 %v3365_v56 }
0x2358   :  { %v3597_v58 = vpop.eup %3596  ;;  %v2471_v59 = vadd.f32 1.0, %v3595_v57  ;;  %v3367_v57 = vpack.c.bf16 %v2708_v55, %v2706_v54 }
0x2359   :  { %v2502_v60 = vadd.f32 1.0, %v3597_v58  ;;  %v2705_v58 = vld [vmem:[%s4465_s7 + $0x20] sm:$0xff] }
0x235a   :  { %3598 = vrcp.f32 %v2471_v59  ;;  %v2707_v59 = vld [vmem:[%s4465_s7 + $0x30] sm:$0xff]  ;;  %3368 = vmatprep.subr.bf16.mxu1 %v3367_v57 }
0x235b   :  { %3600 = vrcp.f32 %v2502_v60  ;;  %v3369_v60 = vpack.c.bf16 %v2707_v59, %v2705_v58  ;;  %v2861_v58 = vld [vmem:[#allocation2 + $0x8] sm:$0xf] }
0x235d   :  { %3370 = vmatpush1.bf16.msra.mxu1 %v3369_v60 }
0x2364   :  { %v3599_v63 = vpop.eup %3598 }
0x2365   :  { %v3601_v2 = vpop.eup %3600  ;;  %v2478_v5 = vmul.f32 %v3599_v63, %v2476_v62  ;;  %v2711_v62 = vld [vmem:[%s4465_s7 + $0x50] sm:$0xff] }
0x2366   :  { %v2509_v9 = vmul.f32 %v3601_v2, %v2507_v61  ;;  %v2714_v61 = vld [vmem:[%s4465_s7 + $0x68] sm:$0xff] }
0x23c6   :  { %v2481_v12 = vpop.permute.xlu0 %2480 }
0x23c7   :  { %v2483_v1 = vmul.f32 %v3599_v63, %v2481_v12 }
0x23c9   :  { %2485 = vrot.lane.b32.xlu0 %v2483_v1, %s3656_s24  ;;  %v2512_v3 = vpop.permute.xlu1 %2511  ;;  %v2710_v1 = vld [vmem:[%s4465_s7 + $0x48] sm:$0xff] }
0x23ca   :  { %v2514_v4 = vmul.f32 %v3601_v2, %v2512_v3 }
0x23cc   :  { %2516 = vrot.lane.b32.xlu1 %v2514_v4, %s3656_s24  ;;  %v2709_v4 = vld [vmem:[%s4465_s7 + $0x40] sm:$0xff] }
0x243b   :  { %v2486_v0 = vpop.permute.xlu0 %2485 }
0x243c   :  { %v2488_v7 = vadd.f32 %v2486_v0, %v2478_v5  ;;  %v3373_v5 = vpack.c.bf16 %v2711_v62, %v2709_v4  ;;  %v2716_v0 = vld [vmem:[%s4465_s7 + $0x78] sm:$0xff] }
0x243e   :  { %3602 = vtanh.f32 %v2488_v7  ;;  %v2517_v10 = vpop.permute.xlu1 %2516  ;;  %v2641_v37 = vrot.slane %v2488_v7, 4  ;;  %v2713_v7 = vld [vmem:[%s4465_s7 + $0x60] sm:$0xff] }
0x243f   :  { %v2519_v11 = vadd.f32 %v2517_v10, %v2509_v9  ;;  %v3375_v9 = vpack.c.bf16 %v2716_v0, %v2714_v61  ;;  %v2715_v10 = vld [vmem:[%s4465_s7 + $0x70] sm:$0xff] }
0x2441   :  { %3604 = vtanh.f32 %v2519_v11  ;;  %v2669_v39 = vrot.slane %v2519_v11, 4  ;;  %v3377_v11 = vpack.c.bf16 %v2715_v10, %v2713_v7 }
0x2448   :  { %v3603_v15 = vpop.eup %3602 }
0x2449   :  { %2491 = vrot.lane.b32.xlu0 %v3603_v15, %s3655_s5 }
0x244b   :  { %v3605_v16 = vpop.eup %3604 }
0x244c   :  { %2522 = vrot.lane.b32.xlu1 %v3605_v16, %s3655_s5 }
0x24bb   :  { %v2492_v13 = vpop.permute.xlu0 %2491 }
0x24bc   :  { %v2494_v26 = vmul.f32 %v3599_v63, %v2492_v13 }
0x24be   :  { %2527 = vrot.lane.b32.xlu0 %v2494_v26, %s3656_s24  ;;  %v2523_v14 = vpop.permute.xlu1 %2522 }
0x24bf   :  { %v2525_v28 = vmul.f32 %v3601_v2, %v2523_v14  ;;  %v2712_v2 = vld [vmem:[%s4465_s7 + $0x58] sm:$0xff] }
0x24c0   :  { %v3371_v3 = vpack.c.bf16 %v2712_v2, %v2710_v1 }
0x24c1   :  { %2532 = vrot.lane.b32.xlu1 %v2525_v28, %s3655_s5 }
0x24c2   :  { %3372 = vmatprep.subr.bf16.mxu1 %v3371_v3 }
0x24c3   :  { %3374 = vmatpush1.bf16.msra.mxu1 %v3373_v5 }
0x24c4   :  { %3376 = vmatprep.subr.bf16.mxu1 %v3375_v9 }
0x24c7   :  { %3378 = vmatpush1.bf16.msra.mxu1 %v3377_v11 }
0x2530   :  { %v2528_v20 = vpop.permute.xlu0 %2527 }
0x2531   :  { %2530 = vst.msk [vmem:[#allocation4] sm:$0xf] %vm430_vm4, %v2528_v20 }
0x2533   :  { %v2533_v30 = vpop.permute.xlu1 %2532 }
0x2534   :  { %2535 = vst.msk [vmem:[#allocation4 - $0x4] sm:$0xf0] %vm436_vm5, %v2533_v30  ;;  %v2698_v30 = vld [vmem:[#allocation2 + $0x30] sm:$0xf] }
0x253b   :  { %v2538_v41 = vld [vmem:[#allocation4] sm:$0xf] }
0x253c   :  { %3086 = vmatmul.mubr.msk.f32.vlgmr.msra.gmra.mrb[20].mxu0 %vm298_vm2, %v2538_v41 }
0x253d   :  { %2946 = vmatprep.mubr.f32.mxu0 %v3654_v31  ;;  %3382 = vmatpush1.bf16.msra.mxu0 %v3365_v56 }
0x253e   :  { %3384 = vmatprep.subr.bf16.mxu0 %v3367_v57 }
0x2541   :  { %3386 = vmatpush1.bf16.msra.mxu0 %v3369_v60  ;;  %v2860_v60 = vld [vmem:[#allocation2 + $0x30] sm:$0xf0] }
0x2542   :  { %3388 = vmatprep.subr.bf16.mxu0 %v3371_v3 }
0x2545   :  { %3390 = vmatpush1.bf16.msra.mxu0 %v3373_v5 }
0x2546   :  { %3392 = vmatprep.subr.bf16.mxu0 %v3375_v9 }
0x2549   :  { %3394 = vmatpush1.bf16.msra.mxu0 %v3377_v11 }
0x260f   :  { %v2624_v42 = vpop.f32.mrb[20].mxu0 }
0x2610   :  { %v2630_v8 = vrot.slane %v2624_v42, 4  ;;  %v2626_v6 = vpop.f32.mrb[21].mxu0 }
0x2611   :  { %v2660_v19 = vadd.f32 %v2626_v6, %v2537_v17  ;;  %v2699_v6 = vld [vmem:[#allocation2 + $0x8] sm:$0xf0] }
0x2612   :  { %v2632_v21 = vadd.f32 %v2630_v8, %v2536_v18 }
0x2613   :  { %3606 = vtanh.f32 %v2660_v19  ;;  %v3088_v24 = vmul.f32 -1.442695, %v2660_v19 }
0x2614   :  { %3608 = vtanh.f32 %v2632_v21  ;;  %v3087_v25 = vmul.f32 -1.442695, %v2632_v21 }
0x2615   :  { %3610 = vpow2.f32 %v3088_v24 }
0x2616   :  { %3612 = vpow2.f32 %v3087_v25 }
0x261d   :  { %v3607_v22 = vpop.eup %3606 }
0x261e   :  { %v3609_v23 = vpop.eup %3608  ;;  %2673 = vrot.lane.b32.xlu1 %v3607_v22, %s3655_s5 }
0x261f   :  { %2645 = vrot.lane.b32.xlu0 %v3609_v23, %s3655_s5  ;;  %v3611_v31 = vpop.eup %3610 }
0x2620   :  { %v3613_v29 = vpop.eup %3612  ;;  %v2664_v32 = vadd.f32 1.0, %v3611_v31 }
0x2621   :  { %v2636_v33 = vadd.f32 1.0, %v3613_v29 }
0x2622   :  { %3614 = vrcp.f32 %v2664_v32 }
0x2623   :  { %3616 = vrcp.f32 %v2636_v33 }
0x262c   :  { %v4352_v27 = vpop.eup %3614 }
0x262d   :  { %v4354_v34 = vpop.eup %3616  ;;  %v2671_v43 = vmul.f32 %v4352_v27, %v2669_v39 }
0x262e   :  { %v2643_v45 = vmul.f32 %v4354_v34, %v2641_v37 }
0x2690   :  { %v2674_v35 = vpop.permute.xlu1 %2673 }
0x2691   :  { %v2676_v40 = vmul.f32 %v4352_v27, %v2674_v35  ;;  %v2646_v36 = vpop.permute.xlu0 %2645 }
0x2692   :  { %v2648_v38 = vmul.f32 %v4354_v34, %v2646_v36 }
0x2693   :  { %2678 = vrot.lane.b32.xlu1 %v2676_v40, %s3656_s24 }
0x2694   :  { %2650 = vrot.lane.b32.xlu0 %v2648_v38, %s3656_s24 }
0x2705   :  { %v2679_v44 = vpop.permute.xlu1 %2678 }
0x2706   :  { %v4362_v46 = vadd.f32 %v2679_v44, %v2671_v43  ;;  %v2651_v47 = vpop.permute.xlu0 %2650 }
0x2707   :  { %v4364_v48 = vadd.f32 %v2651_v47, %v2643_v45 }
0x2708   :  { %3618 = vtanh.f32 %v4362_v46  ;;  %v2831_v39 = vrot.slane %v4362_v46, 4 }
0x2709   :  { %3620 = vtanh.f32 %v4364_v48  ;;  %v2800_v36 = vrot.slane %v4364_v48, 4 }
0x2712   :  { %v3619_v63 = vpop.eup %3618 }
0x2713   :  { %v3621_v12 = vpop.eup %3620  ;;  %2684 = vrot.lane.b32.xlu1 %v3619_v63, %s3655_s5 }
0x2714   :  { %2656 = vrot.lane.b32.xlu0 %v3621_v12, %s3655_s5 }
0x2785   :  { %v2685_v15 = vpop.permute.xlu1 %2684 }
0x2786   :  { %v2687_v16 = vmul.f32 %v4352_v27, %v2685_v15  ;;  %v2657_v13 = vpop.permute.xlu0 %2656 }
0x2787   :  { %v2659_v26 = vmul.f32 %v4354_v34, %v2657_v13 }
0x2788   :  { %2694 = vrot.lane.b32.xlu1 %v2687_v16, %s3655_s5 }
0x2789   :  { %2689 = vrot.lane.b32.xlu0 %v2659_v26, %s3656_s24 }
0x27fa   :  { %v2695_v28 = vpop.permute.xlu1 %2694 }
0x27fb   :  { %v2690_v14 = vpop.permute.xlu0 %2689 }
0x27fc   :  { %2692 = vst.msk [vmem:[#allocation4 - $0x4] sm:$0xf0] %vm596_vm7, %v2690_v14 }
0x27fd   :  { %2697 = vst.msk [vmem:[#allocation4] sm:$0xf] %vm602_vm6, %v2695_v28 }
0x2804   :  { %v2700_v20 = vld [vmem:[#allocation4] sm:$0xf] }
0x2805   :  { %3089 = vmatmul.mubr.msk.f32.vlgmr.msra.gmra.mrb[26].mxu1 %vm298_vm2, %v2700_v20 }
0x28d8   :  { %v2786_v41 = vpop.f32.mrb[26].mxu1 }
0x28d9   :  { %v2791_v42 = vadd.f32 %v2786_v41, %v2698_v30  ;;  %v2788_v8 = vpop.f32.mrb[27].mxu1 }
0x28da   :  { %v2820_v17 = vrot.slane %v2788_v8, 4 }
0x28db   :  { %3622 = vtanh.f32 %v2791_v42  ;;  %v3090_v22 = vmul.f32 -1.442695, %v2791_v42 }
0x28dc   :  { %v2822_v18 = vadd.f32 %v2820_v17, %v2699_v6 }
0x28de   :  { %3624 = vtanh.f32 %v2822_v18  ;;  %v3091_v23 = vmul.f32 -1.442695, %v2822_v18 }
0x28df   :  { %3626 = vpow2.f32 %v3090_v22 }
0x28e0   :  { %3628 = vpow2.f32 %v3091_v23 }
0x28e5   :  { %v3623_v19 = vpop.eup %3622 }
0x28e6   :  { %2804 = vrot.lane.b32.xlu0 %v3623_v19, %s3655_s5 }
0x28e8   :  { %v3625_v21 = vpop.eup %3624 }
0x28e9   :  { %2835 = vrot.lane.b32.xlu1 %v3625_v21, %s3655_s5  ;;  %v3627_v24 = vpop.eup %3626 }
0x28ea   :  { %v3629_v25 = vpop.eup %3628  ;;  %v2795_v31 = vadd.f32 1.0, %v3627_v24 }
0x28eb   :  { %v2826_v29 = vadd.f32 1.0, %v3629_v25 }
0x28ec   :  { %3630 = vrcp.f32 %v2795_v31 }
0x28ed   :  { %3632 = vrcp.f32 %v2826_v29 }
0x28f6   :  { %v3631_v32 = vpop.eup %3630 }
0x28f7   :  { %v3633_v35 = vpop.eup %3632  ;;  %v2802_v38 = vmul.f32 %v3631_v32, %v2800_v36 }
0x28f8   :  { %v2833_v44 = vmul.f32 %v3633_v35, %v2831_v39 }
0x2958   :  { %v2805_v33 = vpop.permute.xlu0 %2804 }
0x2959   :  { %v2807_v27 = vmul.f32 %v3631_v32, %v2805_v33 }
0x295b   :  { %2809 = vrot.lane.b32.xlu0 %v2807_v27, %s3656_s24  ;;  %v2836_v34 = vpop.permute.xlu1 %2835 }
0x295c   :  { %v2838_v40 = vmul.f32 %v3633_v35, %v2836_v34 }
0x295e   :  { %2840 = vrot.lane.b32.xlu1 %v2838_v40, %s3656_s24 }
0x29cd   :  { %v2810_v37 = vpop.permute.xlu0 %2809 }
0x29ce   :  { %v2812_v43 = vadd.f32 %v2810_v37, %v2802_v38 }
0x29d0   :  { %3634 = vtanh.f32 %v2812_v43  ;;  %v2841_v45 = vpop.permute.xlu1 %2840  ;;  %v2965_v26 = vrot.slane %v2812_v43, 4 }
0x29d1   :  { %v2843_v47 = vadd.f32 %v2841_v45, %v2833_v44 }
0x29d3   :  { %3636 = vtanh.f32 %v2843_v47  ;;  %v2993_v13 = vrot.slane %v2843_v47, 4 }
0x29da   :  { %v3635_v49 = vpop.eup %3634 }
0x29db   :  { %2815 = vrot.lane.b32.xlu0 %v3635_v49, %s3655_s5 }
0x29dd   :  { %v3637_v50 = vpop.eup %3636 }
0x29de   :  { %2846 = vrot.lane.b32.xlu1 %v3637_v50, %s3655_s5 }
0x2a4d   :  { %v2816_v51 = vpop.permute.xlu0 %2815 }
0x2a4e   :  { %v2818_v52 = vmul.f32 %v3631_v32, %v2816_v51 }
0x2a50   :  { %2851 = vrot.lane.b32.xlu0 %v2818_v52, %s3656_s24  ;;  %v2847_v48 = vpop.permute.xlu1 %2846 }
0x2a51   :  { %v2849_v53 = vmul.f32 %v3633_v35, %v2847_v48 }
0x2a53   :  { %2856 = vrot.lane.b32.xlu1 %v2849_v53, %s3655_s5 }
0x2ac2   :  { %v2852_v46 = vpop.permute.xlu0 %2851 }
0x2ac3   :  { %2854 = vst.msk [vmem:[#allocation4] sm:$0xf] %vm430_vm4, %v2852_v46 }
0x2ac5   :  { %v2857_v54 = vpop.permute.xlu1 %2856 }
0x2ac6   :  { %2859 = vst.msk [vmem:[#allocation4 - $0x4] sm:$0xf0] %vm436_vm5, %v2857_v54 }
0x2acd   :  { %v2862_v55 = vld [vmem:[#allocation4] sm:$0xf] }
0x2ace   :  { %3092 = vmatmul.mubr.msk.f32.vlgmr.msra.gmra.mrb[22].mxu0 %vm298_vm2, %v2862_v55 }
0x2ba1   :  { %v2948_v56 = vpop.f32.mrb[22].mxu0 }
0x2ba2   :  { %v2954_v57 = vrot.slane %v2948_v56, 4  ;;  %v2950_v59 = vpop.f32.mrb[23].mxu0 }
0x2ba3   :  { %v2984_v63 = vadd.f32 %v2950_v59, %v2861_v58 }
0x2ba4   :  { %v2956_v12 = vadd.f32 %v2954_v57, %v2860_v60 }
0x2ba5   :  { %3638 = vtanh.f32 %v2984_v63  ;;  %v3094_v3 = vmul.f32 -1.442695, %v2984_v63 }
0x2ba6   :  { %3640 = vtanh.f32 %v2956_v12  ;;  %v3093_v4 = vmul.f32 -1.442695, %v2956_v12 }
0x2ba7   :  { %3642 = vpow2.f32 %v3094_v3 }
0x2ba8   :  { %3644 = vpow2.f32 %v3093_v4 }
0x2baf   :  { %v3639_v1 = vpop.eup %3638 }
0x2bb0   :  { %v3641_v2 = vpop.eup %3640  ;;  %2997 = vrot.lane.b32.xlu1 %v3639_v1, %s3655_s5 }
0x2bb1   :  { %2969 = vrot.lane.b32.xlu0 %v3641_v2, %s3655_s5  ;;  %v3643_v62 = vpop.eup %3642 }
0x2bb2   :  { %v3645_v5 = vpop.eup %3644  ;;  %v2988_v61 = vadd.f32 1.0, %v3643_v62 }
0x2bb3   :  { %v2960_v0 = vadd.f32 1.0, %v3645_v5 }
0x2bb4   :  { %3646 = vrcp.f32 %v2988_v61 }
0x2bb5   :  { %3648 = vrcp.f32 %v2960_v0 }
0x2bbe   :  { %v3647_v7 = vpop.eup %3646 }
0x2bbf   :  { %v3649_v10 = vpop.eup %3648  ;;  %v2995_v14 = vmul.f32 %v3647_v7, %v2993_v13 }
0x2bc0   :  { %v2967_v20 = vmul.f32 %v3649_v10, %v2965_v26 }
0x2c22   :  { %v2998_v9 = vpop.permute.xlu1 %2997 }
0x2c23   :  { %v3000_v11 = vmul.f32 %v3647_v7, %v2998_v9  ;;  %v2970_v15 = vpop.permute.xlu0 %2969 }
0x2c24   :  { %v2972_v16 = vmul.f32 %v3649_v10, %v2970_v15 }
0x2c25   :  { %3002 = vrot.lane.b32.xlu1 %v3000_v11, %s3656_s24 }
0x2c26   :  { %2974 = vrot.lane.b32.xlu0 %v2972_v16, %s3656_s24 }
0x2c97   :  { %v3003_v28 = vpop.permute.xlu1 %3002 }
0x2c98   :  { %v3005_v30 = vadd.f32 %v3003_v28, %v2995_v14  ;;  %v2975_v41 = vpop.permute.xlu0 %2974 }
0x2c99   :  { %v2977_v42 = vadd.f32 %v2975_v41, %v2967_v20 }
0x2c9a   :  { %3650 = vtanh.f32 %v3005_v30 }
0x2c9b   :  { %3652 = vtanh.f32 %v2977_v42 }
0x2ca4   :  { %v3651_v8 = vpop.eup %3650 }
0x2ca5   :  { %v3653_v17 = vpop.eup %3652  ;;  %3008 = vrot.lane.b32.xlu1 %v3651_v8, %s3655_s5 }
0x2ca6   :  { %2980 = vrot.lane.b32.xlu0 %v3653_v17, %s3655_s5 }
0x2d17   :  { %v3009_v6 = vpop.permute.xlu1 %3008 }
0x2d18   :  { %v3011_v18 = vmul.f32 %v3647_v7, %v3009_v6  ;;  %v2981_v19 = vpop.permute.xlu0 %2980 }
0x2d19   :  { %v2983_v21 = vmul.f32 %v3649_v10, %v2981_v19 }
0x2d1a   :  { %3022 = vrot.lane.b32.xlu1 %v3011_v18, %s3656_s24 }
0x2d1b   :  { %3013 = vrot.lane.b32.xlu0 %v2983_v21, %s3656_s24 }
0x2d1e   :  { %3026 = vrot.lane.b32.xlu1 %v2983_v21, %s3655_s5 }
0x2d1f   :  { %3018 = vrot.lane.b32.xlu0 %v3011_v18, %s3655_s5 }
0x2d8c   :  { %v3023_v22 = vpop.permute.xlu1 %3022 }
0x2d8d   :  { %3025 = vst.msk [vmem:[%s4467_s9] sm:$0xf] %vm430_vm4, %v3023_v22  ;;  %v3014_v23 = vpop.permute.xlu0 %3013 }
0x2d8e   :  { %3016 = vst.msk [vmem:[#allocation4 - $0x4] sm:$0xf0] %vm596_vm7, %v3014_v23 }
0x2d90   :  { %v3027_v24 = vpop.permute.xlu1 %3026 }
0x2d91   :  { %3029 = vst.msk [vmem:[%s4467_s9 - $0x4] sm:$0xf0] %vm436_vm5, %v3027_v24  ;;  %v3019_v25 = vpop.permute.xlu0 %3018 }
0x2d92   :  { %3021 = vst.msk [vmem:[#allocation4] sm:$0xf] %vm602_vm6, %v3019_v25 }

</bundles_post_ra>
